<compile_context>
chip_gen: v6e
topology: v6e:2x2x1
jax: 0.10.0
libtpu: 0.0.40
codegen_flags: <defaults>
</compile_context>

<pallas_src>
import functools

import jax
import jax.numpy as jnp
from jax.experimental import pallas as pl
from jax.experimental.pallas import tpu as pltpu


CPAD = 128                       # output-channel padding -> lane-dense MXU stores
LAYER_STRIDES = (1, 2, 2, 2, 2)  # init_gen block strides (static config)
LAYER_PADS = (0, 1, 1, 1, 1)     # init_gen block paddings (static config)

_VMEM_LIMIT = 32 * 1024 * 1024            # scoped VMEM cap (safe on v5e/v6e/v7x)
_FUSE_SCRATCH_BUDGET = 16 * 1024 * 1024   # fused path keeps full-layer f32 y in VMEM
_TILE_VMEM_BUDGET = 8 * 1024 * 1024       # per-grid-step pipeline footprint target


# ----------------------------------------------------------------------------
# Pallas kernels
# ----------------------------------------------------------------------------
def _fused_conv_bn_relu_kernel(xcol_ref, w_ref, gamma_ref, beta_ref, o_ref,
                               y_sc, sum_sc, sq_sc, scale_sc, shift_sc,
                               *, m, eps, gm):
    """One ConvTranspose2d + BatchNorm2d(train) + ReLU layer in a single call.

    Grid = (2, P, Gm), all axes sequential ('arbitrary'):
      pass 0: per-phase im2col matmul (bf16 x bf16 -> f32 acc) into the VMEM
              y scratch + sublane-partial sum / sum-of-squares accumulation.
      pass 1: fold the statistics once into per-channel scale/shift, then a
              pure lane-dense scale-add-ReLU store straight from the f32
              scratch (y never round-trips through HBM; BN sees f32 y).
    """
    pass_idx = pl.program_id(0)
    ph = pl.program_id(1)
    i = pl.program_id(2)
    tm = xcol_ref.shape[1]
    row0 = pl.multiple_of((ph * gm + i) * tm, 8)

    @pl.when(pass_idx == 0)
    def _conv_and_stats():
        y = jnp.dot(xcol_ref[0], w_ref[0], preferred_element_type=jnp.float32)
        y_sc[pl.ds(row0, tm), :] = y

        @pl.when((ph == 0) & (i == 0))
        def _():
            sum_sc[...] = jnp.zeros_like(sum_sc)
            sq_sc[...] = jnp.zeros_like(sq_sc)

        # Sublane-parallel partial reduction (pure VPU adds); the single
        # cross-sublane collapse happens once at the start of pass 1.
        yb = y.reshape(tm // 8, 8, y.shape[-1])
        sum_sc[...] += jnp.sum(yb, axis=0)
        sq_sc[...] += jnp.sum(yb * yb, axis=0)

    @pl.when(pass_idx == 1)
    def _normalize_and_store():
        @pl.when((ph == 0) & (i == 0))
        def _():
            s1 = jnp.sum(sum_sc[...], axis=0, keepdims=True)     # (1, C)
            s2 = jnp.sum(sq_sc[...], axis=0, keepdims=True)      # (1, C)
            mean = s1 * (1.0 / m)
            # Single-pass E[y^2]-mean^2 can cancel slightly negative in f32.
            var = jnp.maximum(s2 * (1.0 / m) - mean * mean, 0.0)
            inv = jax.lax.rsqrt(var + eps) * gamma_ref[...]
            scale_sc[...] = inv
            shift_sc[...] = beta_ref[...] - mean * inv

        y = y_sc[pl.ds(row0, tm), :]
        o_ref[0] = jnp.maximum(y * scale_sc[...] + shift_sc[...],
                               0.0).astype(o_ref.dtype)


def _conv_stats_kernel(xcol_ref, w_ref, y_ref, sum_ref, sq_ref):
    """Fallback pass A: matmul + fully collapsed (1, C) per-tile statistics."""
    y = jnp.dot(xcol_ref[0], w_ref[0], preferred_element_type=jnp.float32)
    y_ref[0] = y.astype(y_ref.dtype)
    sum_ref[0, 0] = jnp.sum(y, axis=0, keepdims=True)
    sq_ref[0, 0] = jnp.sum(y * y, axis=0, keepdims=True)


def _scale_relu_kernel(y_ref, scale_ref, shift_ref, o_ref):
    """Fallback pass B: pure lane-dense y*scale + shift + ReLU (aliases y)."""
    y = y_ref[0].astype(jnp.float32)
    o_ref[0] = jnp.maximum(y * scale_ref[...] + shift_ref[...],
                           0.0).astype(o_ref.dtype)


def _pick_tile(mp, kp):
    """Largest M-tile dividing mp whose per-step pipeline footprint
    (double-buffered bf16 xcol/out blocks + f32 in-kernel temporaries) fits the
    budget.  Rows are multiples of 8 and >= 16 where possible (bf16 packing);
    the budget keeps v7x's 64 MiB physical VMEM comfortable."""
    per_row = 4 * kp + 4 * CPAD + 16 * CPAD   # rough bytes/row upper bound
    cap = max(16, _TILE_VMEM_BUDGET // per_row)
    if mp <= cap:
        return mp
    t = (cap // 8) * 8
    while t >= 16:
        if mp % t == 0:
            return t
        t -= 8
    return 8 if mp % 8 == 0 else mp


# ----------------------------------------------------------------------------
# One `_block`: ConvTranspose2d (no bias) + BatchNorm2d (training) + ReLU
# ----------------------------------------------------------------------------
def conv_transpose_bn_relu(x, w, gamma, beta, *, stride, padding, eps=1e-5):
    """x: (N, H, W, Cin) bf16 channel-dense; w: (Cin, Cout, k, k) f32.

    Returns (N, Hout, Wout, Cout) bf16, channel-dense.
    """
    N, H, W, Cin = x.shape
    Cin_w, Cout, k, _ = w.shape
    s, p = stride, padding
    assert Cin == Cin_w and H == W and k % s == 0 and Cout <= CPAD
    kk = k // s
    Hout = (H - 1) * s - 2 * p + k
    assert Hout % s == 0
    Hq = Hout // s
    P = s * s
    Mp = N * Hq * Hq
    assert Mp % 8 == 0

    # Sub-pixel (phase) decomposition: each output phase is a stride-1 conv over
    # the original input with a (kk x kk) slice of the transposed kernel.
    bases = [(ph + p) // s for ph in range(s)]
    pad_lo = max(kk - 1 - b for b in bases)
    pad_hi = max(Hq - 1 + b - (H - 1) for b in bases)
    x_p = jnp.pad(x, ((0, 0), (pad_lo, pad_hi), (pad_lo, pad_hi), (0, 0)))

    # Dense-K im2col: contraction dim = kk*kk*Cin (real channels), padded ONCE
    # up to a multiple of 128 -- not per-tap to 128.
    Kd = kk * kk * Cin
    Kp = ((Kd + CPAD - 1) // CPAD) * CPAD
    xcols, wmats = [], []
    for py in range(s):
        for px in range(s):
            oy = bases[py] + pad_lo - kk + 1
            ox = bases[px] + pad_lo - kk + 1
            patches = [x_p[:, oy + dy:oy + dy + Hq, ox + dx:ox + dx + Hq, :]
                       for dy in range(kk) for dx in range(kk)]
            xc = jnp.stack(patches, axis=3).reshape(Mp, Kd)
            xcols.append(jnp.pad(xc, ((0, 0), (0, Kp - Kd))))

            kys = [(py + p) % s + s * (kk - 1 - dy) for dy in range(kk)]
            kxs = [(px + p) % s + s * (kk - 1 - dx) for dx in range(kk)]
            wsel = w[:, :, kys, :][:, :, :, kxs]            # (Cin, Cout, kk, kk)
            wt = wsel.transpose(2, 3, 0, 1).reshape(Kd, Cout)
            wmats.append(jnp.pad(wt, ((0, Kp - Kd), (0, CPAD - Cout))))

    # TODO(synk): the im2col (kk^2-duplicated input) is still materialized by
    # XLA; at production sizes gather the taps in-kernel (tap grid axis) instead.
    xcol_ph = jnp.stack(xcols).astype(jnp.bfloat16)          # (P, Mp, Kp)
    w_ph = jnp.stack(wmats).astype(jnp.bfloat16)             # (P, Kp, CPAD)
    gamma_p = jnp.pad(gamma, (0, CPAD - Cout), constant_values=1.0).reshape(1, CPAD)
    beta_p = jnp.pad(beta, (0, CPAD - Cout)).reshape(1, CPAD)

    tm = _pick_tile(Mp, Kp)
    Gm = Mp // tm
    m = float(P * Mp)

    if P * Mp * CPAD * 4 <= _FUSE_SCRATCH_BUDGET:
        # ---- fused path: conv + stats + BN + ReLU in ONE pallas_call ----
        out_ph = pl.pallas_call(
            functools.partial(_fused_conv_bn_relu_kernel, m=m, eps=eps, gm=Gm),
            out_shape=jax.ShapeDtypeStruct((P, Mp, CPAD), jnp.bfloat16),
            grid=(2, P, Gm),
            in_specs=[
                pl.BlockSpec((1, tm, Kp),
                             lambda pp, ph, i: (ph * (1 - pp), i * (1 - pp), 0)),
                pl.BlockSpec((1, Kp, CPAD),
                             lambda pp, ph, i: (ph * (1 - pp), 0, 0)),
                pl.BlockSpec((1, CPAD), lambda pp, ph, i: (0, 0)),
                pl.BlockSpec((1, CPAD), lambda pp, ph, i: (0, 0)),
            ],
            # Pass 0 never writes the output; its block index is pinned to
            # (0,0,0) so nothing is copied back to HBM until pass 1 fills it.
            out_specs=pl.BlockSpec((1, tm, CPAD),
                                   lambda pp, ph, i: (ph * pp, i * pp, 0)),
            scratch_shapes=[
                pltpu.VMEM((P * Mp, CPAD), jnp.float32),   # full-layer f32 y
                pltpu.VMEM((8, CPAD), jnp.float32),        # sublane-partial sum
                pltpu.VMEM((8, CPAD), jnp.float32),        # sublane-partial sum(y^2)
                pltpu.VMEM((1, CPAD), jnp.float32),        # per-channel scale
                pltpu.VMEM((1, CPAD), jnp.float32),        # per-channel shift
            ],
            compiler_params=pltpu.CompilerParams(
                dimension_semantics=("arbitrary", "arbitrary", "arbitrary"),
                vmem_limit_bytes=_VMEM_LIMIT),
        )(xcol_ph, w_ph, gamma_p, beta_p)
    else:
        # ---- two-pass fallback: full-layer f32 y would not fit VMEM scratch ----
        y_ph, sum_p, sq_p = pl.pallas_call(
            _conv_stats_kernel,
            out_shape=(jax.ShapeDtypeStruct((P, Mp, CPAD), jnp.bfloat16),
                       jax.ShapeDtypeStruct((P, Gm, 1, CPAD), jnp.float32),
                       jax.ShapeDtypeStruct((P, Gm, 1, CPAD), jnp.float32)),
            grid=(P, Gm),
            in_specs=[pl.BlockSpec((1, tm, Kp), lambda ph, i: (ph, i, 0)),
                      pl.BlockSpec((1, Kp, CPAD), lambda ph, i: (ph, 0, 0))],
            out_specs=(pl.BlockSpec((1, tm, CPAD), lambda ph, i: (ph, i, 0)),
                       pl.BlockSpec((1, 1, 1, CPAD), lambda ph, i: (ph, i, 0, 0)),
                       pl.BlockSpec((1, 1, 1, CPAD), lambda ph, i: (ph, i, 0, 0))),
            compiler_params=pltpu.CompilerParams(
                dimension_semantics=("parallel", "parallel"),
                vmem_limit_bytes=_VMEM_LIMIT),
        )(xcol_ph, w_ph)

        # Per-channel scale/shift computed ONCE (tiny), not per grid step.
        s1 = jnp.sum(sum_p, axis=(0, 1, 2))
        s2 = jnp.sum(sq_p, axis=(0, 1, 2))
        mean = s1 / m
        var = jnp.maximum(s2 / m - mean * mean, 0.0)
        scale = (jax.lax.rsqrt(var + eps) * gamma_p[0]).reshape(1, CPAD)
        shift = (beta_p[0] - mean * scale[0]).reshape(1, CPAD)

        out_ph = pl.pallas_call(
            _scale_relu_kernel,
            out_shape=jax.ShapeDtypeStruct((P, Mp, CPAD), jnp.bfloat16),
            grid=(P, Gm),
            in_specs=[pl.BlockSpec((1, tm, CPAD), lambda ph, i: (ph, i, 0)),
                      pl.BlockSpec((1, CPAD), lambda ph, i: (0, 0)),
                      pl.BlockSpec((1, CPAD), lambda ph, i: (0, 0))],
            out_specs=pl.BlockSpec((1, tm, CPAD), lambda ph, i: (ph, i, 0)),
            input_output_aliases={0: 0},
            compiler_params=pltpu.CompilerParams(
                dimension_semantics=("parallel", "parallel"),
                vmem_limit_bytes=_VMEM_LIMIT),
        )(y_ph, scale, shift)

    # Drop output-channel padding (next layer's contraction is channel-dense),
    # then re-interleave the s*s phases back into (N, Hout, Wout, Cout).
    # TODO(synk): fold this interleave into the kernel's out_spec (write
    # (N, Hq, s, Wq, s, C) blocks directly) to save one small XLA pass.
    out = out_ph[:, :, :Cout]
    out = out.reshape(s, s, N, Hq, Hq, Cout)
    out = out.transpose(2, 3, 0, 4, 1, 5).reshape(N, Hout, Hout, Cout)
    return out


# ----------------------------------------------------------------------------
# MDEQ glue helpers (list2vec / vec2list as in the MDEQ codebase)
# ----------------------------------------------------------------------------
def list2vec(z_list):
    bsz = z_list[0].shape[0]
    return jnp.concatenate([z.reshape(bsz, -1, 1) for z in z_list], axis=1)


def vec2list(z, cutoffs):
    bsz = z.shape[0]
    out, start = [], 0
    for (c, h, w) in cutoffs:
        n = c * h * w
        out.append(z[:, start:start + n].reshape(bsz, c, h, w))
        start += n
    return out


# TODO(synk): MDEQModule (`self.fullstage`) is not defined in the provided module;
# stand in with pure input injection so the fixed point is well defined.
def fullstage_stub(z_list, x_list):
    del z_list
    return list(x_list)


def forward_iteration_solver(func, z0, threshold, stop_mode="abs", tol=1e-6):
    """Fixed-point forward iteration; stopping criterion stays on-device."""
    del stop_mode

    def cond(state):
        it, _, diff = state
        return jnp.logical_and(it < threshold, diff >= tol)

    def body(state):
        it, z, _ = state
        z_new = func(z)
        return it + 1, z_new, jnp.max(jnp.abs(z_new - z))

    init = (jnp.array(0, jnp.int32), z0, jnp.array(jnp.inf, z0.dtype))
    _, z, _ = jax.lax.while_loop(cond, body, init)
    return {"result": z}


# ----------------------------------------------------------------------------
# Generator parameters + forward
# ----------------------------------------------------------------------------
def init_generator_params(key, z_dim, feature_g, num_channels):
    chans = [z_dim, feature_g * 16, feature_g * 8, feature_g * 4, feature_g * 2,
             num_channels[0]]
    params = []
    for li in range(5):
        key, kw_, kg, kb = jax.random.split(key, 4)
        cin, cout = chans[li], chans[li + 1]
        w = 0.05 * jax.random.normal(kw_, (cin, cout, 4, 4), jnp.float32)
        gamma = 1.0 + 0.1 * jax.random.normal(kg, (cout,), jnp.float32)
        beta = 0.05 * jax.random.normal(kb, (cout,), jnp.float32)
        params.append(dict(w=w, gamma=gamma, beta=beta))
    return params


def generator_forward(params, x, *, num_branches, f_thres):
    # ---- init_gen: 5 x (ConvTranspose2d + BatchNorm2d + ReLU), all Pallas ----
    h = x.transpose(0, 2, 3, 1).astype(jnp.bfloat16)     # NCHW -> NHWC once, dense C
    for li, prm in enumerate(params):
        h = conv_transpose_bn_relu(h, prm["w"], prm["gamma"], prm["beta"],
                                   stride=LAYER_STRIDES[li], padding=LAYER_PADS[li])
    h = h.transpose(0, 3, 1, 2).astype(jnp.float32)      # NHWC -> NCHW once
    # (PyTorch forward does `print(x.shape)` here; omitted to keep stdout clean.)

    # ---- multi-resolution branch lists --------------------------------------
    x_list = [h]
    for _ in range(1, num_branches):
        bsz, C, H, W = x_list[-1].shape
        x_list.append(jnp.zeros((bsz, C, H // 2, W // 2), h.dtype))
    z_list = [jnp.zeros_like(e) for e in x_list]
    z1 = list2vec(z_list)
    cutoffs = [(e.shape[1], e.shape[2], e.shape[3]) for e in z_list]

    func = lambda z: list2vec(fullstage_stub(vec2list(z, cutoffs), x_list))

    # TODO(synk): the real f_solver / b_solver (and the backward hook) are
    # constructor arguments external to this module; an on-device forward
    # iteration is used here and no implicit-gradient hook is registered.
    res = forward_iteration_solver(func, z1, threshold=f_thres, stop_mode="abs")
    z1 = res["result"]
    new_z1 = func(z1)

    # iodrop = VariationalHidDropout2d(0.0) -> identity at p=0.0
    y_list = vec2list(new_z1, cutoffs)
    return y_list


# ----------------------------------------------------------------------------
if __name__ == "__main__":
    key = jax.random.PRNGKey(0)
    k_in, k_par = jax.random.split(key)

    # Small, forward-consistent shapes: DCGAN-style latent (N, z_dim, 1, 1).
    batch, z_dim, feature_g = 2, 8, 4
    num_branches, num_channels = 2, [4, 4]
    f_thres = 5

    x = jax.random.normal(k_in, (batch, z_dim, 1, 1), jnp.float32)
    params = init_generator_params(k_par, z_dim, feature_g, num_channels)

    fwd = jax.jit(functools.partial(generator_forward,
                                    num_branches=num_branches, f_thres=f_thres))
    y_list = fwd(params, x)
    y_list = [jax.block_until_ready(y) for y in y_list]

    # basic sanity: expected shapes and finite values
    assert y_list[0].shape == (batch, num_channels[0], 64, 64)
    assert y_list[1].shape == (batch, num_channels[0], 32, 32)
    assert all(bool(jnp.all(jnp.isfinite(y))) for y in y_list)

    print("KERNEL_OK")
</pallas_src>

<mosaic_0001>
module attributes {stable_mosaic.version = 11 : i64} {
  func.func @_fused_conv_bn_relu_kernel(%arg0: i32, %arg1: i32, %arg2: i32, %arg3: memref<1x32x128xbf16, #tpu.memory_space<vmem>>, %arg4: memref<1x128x128xbf16, #tpu.memory_space<vmem>>, %arg5: memref<1x128xf32, #tpu.memory_space<vmem>>, %arg6: memref<1x128xf32, #tpu.memory_space<vmem>>, %arg7: memref<1x32x128xbf16, #tpu.memory_space<vmem>>, %arg8: memref<32x128xf32, #tpu.memory_space<vmem>>, %arg9: memref<8x128xf32, #tpu.memory_space<vmem>>, %arg10: memref<8x128xf32, #tpu.memory_space<vmem>>, %arg11: memref<1x128xf32, #tpu.memory_space<vmem>>, %arg12: memref<1x128xf32, #tpu.memory_space<vmem>>) attributes {dimension_semantics = [#tpu.dimension_semantics<arbitrary>, #tpu.dimension_semantics<arbitrary>, #tpu.dimension_semantics<arbitrary>], iteration_bounds = array<i64: 2, 1, 1>, scalar_prefetch = 0 : i64, scratch_operands = 5 : i64, tpu.core_type = #tpu.core_type<tc>, window_params = [{transform_indices = @transform_0, window_bounds = array<i64: 1, 32, 128>}, {transform_indices = @transform_1, window_bounds = array<i64: 1, 128, 128>}, {pipeline_mode = #tpu.pipeline_mode<synchronous>, transform_indices = @transform_2, window_bounds = array<i64: 1, 128>}, {pipeline_mode = #tpu.pipeline_mode<synchronous>, transform_indices = @transform_3, window_bounds = array<i64: 1, 128>}, {transform_indices = @transform_4, window_bounds = array<i64: 1, 32, 128>}]} {
    %c1_i32 = arith.constant 1 : i32
    %0 = arith.muli %arg1, %c1_i32 : i32
    %1 = arith.addi %0, %arg2 : i32
    %c32_i32 = arith.constant 32 : i32
    %2 = arith.muli %1, %c32_i32 : i32
    %3 = tpu.assume_multiple %2, 8 : i32
    %c0_i32 = arith.constant 0 : i32
    %4 = arith.cmpi eq, %arg0, %c0_i32 : i32
    %5 = arith.extui %4 : i1 to i32
    %c0_i32_0 = arith.constant 0 : i32
    %6 = arith.cmpi ne, %5, %c0_i32_0 : i32
    scf.if %6 {
      %c0 = arith.constant 0 : index
      %c0_3 = arith.constant 0 : index
      %c0_4 = arith.constant 0 : index
      %10 = vector.load %arg3[%c0, %c0_3, %c0_4] : memref<1x32x128xbf16, #tpu.memory_space<vmem>>, vector<1x32x128xbf16>
      %11 = vector.shape_cast %10 : vector<1x32x128xbf16> to vector<32x128xbf16>
      %c0_5 = arith.constant 0 : index
      %c0_6 = arith.constant 0 : index
      %c0_7 = arith.constant 0 : index
      %12 = vector.load %arg4[%c0_5, %c0_6, %c0_7] : memref<1x128x128xbf16, #tpu.memory_space<vmem>>, vector<1x128x128xbf16>
      %13 = vector.shape_cast %12 : vector<1x128x128xbf16> to vector<128x128xbf16>
      %cst = arith.constant dense<0.000000e+00> : vector<32x128xf32>
      %14 = tpu.matmul %11, %13, %cst {dimension_numbers = #tpu.dot_dimension_numbers<[1], [0], [0], [1], [0, 0, 1, 1], [], []>} : vector<32x128xbf16>, vector<128x128xbf16>, vector<32x128xf32> -> vector<32x128xf32>
      %15 = arith.index_cast %3 : i32 to index
      %c0_8 = arith.constant 0 : index
      %16 = vector.load %arg8[%15, %c0_8] : memref<32x128xf32, #tpu.memory_space<vmem>>, vector<32x128xf32>
      tpu.vector_store %arg8[%15, %c0_8], %14 {strides = array<i32>} : memref<32x128xf32, #tpu.memory_space<vmem>>, vector<32x128xf32>,
      %c0_i32_9 = arith.constant 0 : i32
      %17 = arith.cmpi eq, %arg1, %c0_i32_9 : i32
      %c0_i32_10 = arith.constant 0 : i32
      %18 = arith.cmpi eq, %arg2, %c0_i32_10 : i32
      %19 = arith.andi %17, %18 : i1
      %20 = arith.extui %19 : i1 to i32
      %c0_i32_11 = arith.constant 0 : i32
      %21 = arith.cmpi ne, %20, %c0_i32_11 : i32
      scf.if %21 {
        %cst_22 = arith.constant 0.000000e+00 : f32
        %32 = vector.broadcast %cst_22 : f32 to vector<8x128xf32>
        %c0_23 = arith.constant 0 : index
        %c0_24 = arith.constant 0 : index
        %33 = vector.load %arg9[%c0_23, %c0_24] : memref<8x128xf32, #tpu.memory_space<vmem>>, vector<8x128xf32>
        tpu.vector_store %arg9[%c0_23, %c0_24], %32 {strides = array<i32>} : memref<8x128xf32, #tpu.memory_space<vmem>>, vector<8x128xf32>,
        %cst_25 = arith.constant 0.000000e+00 : f32
        %34 = vector.broadcast %cst_25 : f32 to vector<8x128xf32>
        %c0_26 = arith.constant 0 : index
        %c0_27 = arith.constant 0 : index
        %35 = vector.load %arg10[%c0_26, %c0_27] : memref<8x128xf32, #tpu.memory_space<vmem>>, vector<8x128xf32>
        tpu.vector_store %arg10[%c0_26, %c0_27], %34 {strides = array<i32>} : memref<8x128xf32, #tpu.memory_space<vmem>>, vector<8x128xf32>,
      } else {
      }
      %22 = vector.shape_cast %14 : vector<32x128xf32> to vector<4x8x128xf32>
      %c0_12 = arith.constant 0 : index
      %c0_13 = arith.constant 0 : index
      %23 = vector.load %arg9[%c0_12, %c0_13] : memref<8x128xf32, #tpu.memory_space<vmem>>, vector<8x128xf32>
      %cst_14 = arith.constant dense<0.000000e+00> : vector<8x128xf32>
      %24 = vector.multi_reduction <add>, %22, %cst_14 [0] : vector<4x8x128xf32> to vector<8x128xf32>
      %25 = arith.addf %23, %24 : vector<8x128xf32>
      %c0_15 = arith.constant 0 : index
      %c0_16 = arith.constant 0 : index
      %26 = vector.load %arg9[%c0_15, %c0_16] : memref<8x128xf32, #tpu.memory_space<vmem>>, vector<8x128xf32>
      tpu.vector_store %arg9[%c0_15, %c0_16], %25 {strides = array<i32>} : memref<8x128xf32, #tpu.memory_space<vmem>>, vector<8x128xf32>,
      %c0_17 = arith.constant 0 : index
      %c0_18 = arith.constant 0 : index
      %27 = vector.load %arg10[%c0_17, %c0_18] : memref<8x128xf32, #tpu.memory_space<vmem>>, vector<8x128xf32>
      %28 = arith.mulf %22, %22 : vector<4x8x128xf32>
      %cst_19 = arith.constant dense<0.000000e+00> : vector<8x128xf32>
      %29 = vector.multi_reduction <add>, %28, %cst_19 [0] : vector<4x8x128xf32> to vector<8x128xf32>
      %30 = arith.addf %27, %29 : vector<8x128xf32>
      %c0_20 = arith.constant 0 : index
      %c0_21 = arith.constant 0 : index
      %31 = vector.load %arg10[%c0_20, %c0_21] : memref<8x128xf32, #tpu.memory_space<vmem>>, vector<8x128xf32>
      tpu.vector_store %arg10[%c0_20, %c0_21], %30 {strides = array<i32>} : memref<8x128xf32, #tpu.memory_space<vmem>>, vector<8x128xf32>,
    } else {
    }
    %c1_i32_1 = arith.constant 1 : i32
    %7 = arith.cmpi eq, %arg0, %c1_i32_1 : i32
    %8 = arith.extui %7 : i1 to i32
    %c0_i32_2 = arith.constant 0 : i32
    %9 = arith.cmpi ne, %8, %c0_i32_2 : i32
    scf.if %9 {
      %c0_i32_3 = arith.constant 0 : i32
      %10 = arith.cmpi eq, %arg1, %c0_i32_3 : i32
      %c0_i32_4 = arith.constant 0 : i32
      %11 = arith.cmpi eq, %arg2, %c0_i32_4 : i32
      %12 = arith.andi %10, %11 : i1
      %13 = arith.extui %12 : i1 to i32
      %c0_i32_5 = arith.constant 0 : i32
      %14 = arith.cmpi ne, %13, %c0_i32_5 : i32
      scf.if %14 {
        %c0_13 = arith.constant 0 : index
        %c0_14 = arith.constant 0 : index
        %29 = vector.load %arg9[%c0_13, %c0_14] : memref<8x128xf32, #tpu.memory_space<vmem>>, vector<8x128xf32>
        %cst_15 = arith.constant dense<0.000000e+00> : vector<128xf32>
        %30 = vector.multi_reduction <add>, %29, %cst_15 [0] : vector<8x128xf32> to vector<128xf32>
        %31 = vector.shape_cast %30 : vector<128xf32> to vector<1x128xf32>
        %c0_16 = arith.constant 0 : index
        %c0_17 = arith.constant 0 : index
        %32 = vector.load %arg10[%c0_16, %c0_17] : memref<8x128xf32, #tpu.memory_space<vmem>>, vector<8x128xf32>
        %cst_18 = arith.constant dense<0.000000e+00> : vector<128xf32>
        %33 = vector.multi_reduction <add>, %32, %cst_18 [0] : vector<8x128xf32> to vector<128xf32>
        %34 = vector.shape_cast %33 : vector<128xf32> to vector<1x128xf32>
        %cst_19 = arith.constant 3.125000e-02 : f32
        %35 = vector.broadcast %cst_19 : f32 to vector<1x128xf32>
        %36 = arith.mulf %31, %35 : vector<1x128xf32>
        %cst_20 = arith.constant 3.125000e-02 : f32
        %37 = vector.broadcast %cst_20 : f32 to vector<1x128xf32>
        %38 = arith.mulf %34, %37 : vector<1x128xf32>
        %39 = arith.mulf %36, %36 : vector<1x128xf32>
        %40 = arith.subf %38, %39 : vector<1x128xf32>
        %cst_21 = arith.constant 0.000000e+00 : f32
        %41 = vector.broadcast %cst_21 : f32 to vector<1x128xf32>
        %42 = arith.maximumf %40, %41 : vector<1x128xf32>
        %cst_22 = arith.constant 9.99999974E-6 : f32
        %43 = vector.broadcast %cst_22 : f32 to vector<1x128xf32>
        %44 = arith.addf %42, %43 : vector<1x128xf32>
        %45 = math.rsqrt %44 : vector<1x128xf32>
        %c0_23 = arith.constant 0 : index
        %c0_24 = arith.constant 0 : index
        %46 = vector.load %arg5[%c0_23, %c0_24] : memref<1x128xf32, #tpu.memory_space<vmem>>, vector<1x128xf32>
        %47 = arith.mulf %45, %46 : vector<1x128xf32>
        %c0_25 = arith.constant 0 : index
        %c0_26 = arith.constant 0 : index
        %48 = vector.load %arg11[%c0_25, %c0_26] : memref<1x128xf32, #tpu.memory_space<vmem>>, vector<1x128xf32>
        tpu.vector_store %arg11[%c0_25, %c0_26], %47 {strides = array<i32>} : memref<1x128xf32, #tpu.memory_space<vmem>>, vector<1x128xf32>,
        %c0_27 = arith.constant 0 : index
        %c0_28 = arith.constant 0 : index
        %49 = vector.load %arg6[%c0_27, %c0_28] : memref<1x128xf32, #tpu.memory_space<vmem>>, vector<1x128xf32>
        %50 = arith.mulf %36, %47 : vector<1x128xf32>
        %51 = arith.subf %49, %50 : vector<1x128xf32>
        %c0_29 = arith.constant 0 : index
        %c0_30 = arith.constant 0 : index
        %52 = vector.load %arg12[%c0_29, %c0_30] : memref<1x128xf32, #tpu.memory_space<vmem>>, vector<1x128xf32>
        tpu.vector_store %arg12[%c0_29, %c0_30], %51 {strides = array<i32>} : memref<1x128xf32, #tpu.memory_space<vmem>>, vector<1x128xf32>,
      } else {
      }
      %15 = arith.index_cast %3 : i32 to index
      %c0 = arith.constant 0 : index
      %16 = vector.load %arg8[%15, %c0] : memref<32x128xf32, #tpu.memory_space<vmem>>, vector<32x128xf32>
      %c0_6 = arith.constant 0 : index
      %c0_7 = arith.constant 0 : index
      %17 = vector.load %arg11[%c0_6, %c0_7] : memref<1x128xf32, #tpu.memory_space<vmem>>, vector<1x128xf32>
      %18 = vector.broadcast %17 : vector<1x128xf32> to vector<32x128xf32>
      %19 = arith.mulf %16, %18 : vector<32x128xf32>
      %c0_8 = arith.constant 0 : index
      %c0_9 = arith.constant 0 : index
      %20 = vector.load %arg12[%c0_8, %c0_9] : memref<1x128xf32, #tpu.memory_space<vmem>>, vector<1x128xf32>
      %21 = vector.broadcast %20 : vector<1x128xf32> to vector<32x128xf32>
      %22 = arith.addf %19, %21 : vector<32x128xf32>
      %cst = arith.constant 0.000000e+00 : f32
      %23 = vector.broadcast %cst : f32 to vector<32x128xf32>
      %24 = arith.maximumf %22, %23 : vector<32x128xf32>
      %25 = arith.truncf %24 : vector<32x128xf32> to vector<32x128xbf16>
      %c0_10 = arith.constant 0 : index
      %c0_11 = arith.constant 0 : index
      %c0_12 = arith.constant 0 : index
      %26 = vector.load %arg7[%c0_10, %c0_11, %c0_12] : memref<1x32x128xbf16, #tpu.memory_space<vmem>>, vector<1x32x128xbf16>
      %27 = vector.shape_cast %26 : vector<1x32x128xbf16> to vector<32x128xbf16>
      %28 = vector.shape_cast %25 : vector<32x128xbf16> to vector<1x32x128xbf16>
      tpu.vector_store %arg7[%c0_10, %c0_11, %c0_12], %28 {strides = array<i32>} : memref<1x32x128xbf16, #tpu.memory_space<vmem>>, vector<1x32x128xbf16>,
    } else {
    }
    return
  }
  func.func @transform_0(%arg0: i32, %arg1: i32, %arg2: i32) -> (i32, i32, i32) {
    %c1_i32 = arith.constant 1 : i32
    %0 = arith.subi %c1_i32, %arg0 : i32
    %1 = arith.muli %arg1, %0 : i32
    %c1_i32_0 = arith.constant 1 : i32
    %2 = arith.subi %c1_i32_0, %arg0 : i32
    %3 = arith.muli %arg2, %2 : i32
    %c0_i32 = arith.constant 0 : i32
    %c0_i32_1 = arith.constant 0 : i32
    return %1, %3, %c0_i32 : i32, i32, i32
  }
  func.func @transform_1(%arg0: i32, %arg1: i32, %arg2: i32) -> (i32, i32, i32) {
    %c1_i32 = arith.constant 1 : i32
    %0 = arith.subi %c1_i32, %arg0 : i32
    %1 = arith.muli %arg1, %0 : i32
    %c0_i32 = arith.constant 0 : i32
    %c0_i32_0 = arith.constant 0 : i32
    %c0_i32_1 = arith.constant 0 : i32
    return %1, %c0_i32, %c0_i32_0 : i32, i32, i32
  }
  func.func @transform_2(%arg0: i32, %arg1: i32, %arg2: i32) -> (i32, i32) {
    %c0_i32 = arith.constant 0 : i32
    %c0_i32_0 = arith.constant 0 : i32
    %c0_i32_1 = arith.constant 0 : i32
    return %c0_i32, %c0_i32_0 : i32, i32
  }
  func.func @transform_3(%arg0: i32, %arg1: i32, %arg2: i32) -> (i32, i32) {
    %c0_i32 = arith.constant 0 : i32
    %c0_i32_0 = arith.constant 0 : i32
    %c0_i32_1 = arith.constant 0 : i32
    return %c0_i32, %c0_i32_0 : i32, i32
  }
  func.func @transform_4(%arg0: i32, %arg1: i32, %arg2: i32) -> (i32, i32, i32) {
    %0 = arith.muli %arg1, %arg0 : i32
    %1 = arith.muli %arg2, %arg0 : i32
    %c0_i32 = arith.constant 0 : i32
    %c0_i32_0 = arith.constant 0 : i32
    return %0, %1, %c0_i32 : i32, i32, i32
  }
}

module attributes {stable_mosaic.version = 11 : i64} {
  func.func @_fused_conv_bn_relu_kernel(%arg0: i32, %arg1: i32, %arg2: i32, %arg3: memref<1x32x256xbf16, #tpu.memory_space<vmem>>, %arg4: memref<1x256x128xbf16, #tpu.memory_space<vmem>>, %arg5: memref<1x128xf32, #tpu.memory_space<vmem>>, %arg6: memref<1x128xf32, #tpu.memory_space<vmem>>, %arg7: memref<1x32x128xbf16, #tpu.memory_space<vmem>>, %arg8: memref<128x128xf32, #tpu.memory_space<vmem>>, %arg9: memref<8x128xf32, #tpu.memory_space<vmem>>, %arg10: memref<8x128xf32, #tpu.memory_space<vmem>>, %arg11: memref<1x128xf32, #tpu.memory_space<vmem>>, %arg12: memref<1x128xf32, #tpu.memory_space<vmem>>) attributes {dimension_semantics = [#tpu.dimension_semantics<arbitrary>, #tpu.dimension_semantics<arbitrary>, #tpu.dimension_semantics<arbitrary>], iteration_bounds = array<i64: 2, 4, 1>, scalar_prefetch = 0 : i64, scratch_operands = 5 : i64, tpu.core_type = #tpu.core_type<tc>, window_params = [{transform_indices = @transform_0, window_bounds = array<i64: 1, 32, 256>}, {transform_indices = @transform_1, window_bounds = array<i64: 1, 256, 128>}, {pipeline_mode = #tpu.pipeline_mode<synchronous>, transform_indices = @transform_2, window_bounds = array<i64: 1, 128>}, {pipeline_mode = #tpu.pipeline_mode<synchronous>, transform_indices = @transform_3, window_bounds = array<i64: 1, 128>}, {transform_indices = @transform_4, window_bounds = array<i64: 1, 32, 128>}]} {
    %c1_i32 = arith.constant 1 : i32
    %0 = arith.muli %arg1, %c1_i32 : i32
    %1 = arith.addi %0, %arg2 : i32
    %c32_i32 = arith.constant 32 : i32
    %2 = arith.muli %1, %c32_i32 : i32
    %3 = tpu.assume_multiple %2, 8 : i32
    %c0_i32 = arith.constant 0 : i32
    %4 = arith.cmpi eq, %arg0, %c0_i32 : i32
    %5 = arith.extui %4 : i1 to i32
    %c0_i32_0 = arith.constant 0 : i32
    %6 = arith.cmpi ne, %5, %c0_i32_0 : i32
    scf.if %6 {
      %c0 = arith.constant 0 : index
      %c0_3 = arith.constant 0 : index
      %c0_4 = arith.constant 0 : index
      %10 = vector.load %arg3[%c0, %c0_3, %c0_4] : memref<1x32x256xbf16, #tpu.memory_space<vmem>>, vector<1x32x256xbf16>
      %11 = vector.shape_cast %10 : vector<1x32x256xbf16> to vector<32x256xbf16>
      %c0_5 = arith.constant 0 : index
      %c0_6 = arith.constant 0 : index
      %c0_7 = arith.constant 0 : index
      %12 = vector.load %arg4[%c0_5, %c0_6, %c0_7] : memref<1x256x128xbf16, #tpu.memory_space<vmem>>, vector<1x256x128xbf16>
      %13 = vector.shape_cast %12 : vector<1x256x128xbf16> to vector<256x128xbf16>
      %cst = arith.constant dense<0.000000e+00> : vector<32x128xf32>
      %14 = tpu.matmul %11, %13, %cst {dimension_numbers = #tpu.dot_dimension_numbers<[1], [0], [0], [1], [0, 0, 1, 1], [], []>} : vector<32x256xbf16>, vector<256x128xbf16>, vector<32x128xf32> -> vector<32x128xf32>
      %15 = arith.index_cast %3 : i32 to index
      %c0_8 = arith.constant 0 : index
      %16 = vector.load %arg8[%15, %c0_8] : memref<128x128xf32, #tpu.memory_space<vmem>>, vector<32x128xf32>
      tpu.vector_store %arg8[%15, %c0_8], %14 {strides = array<i32>} : memref<128x128xf32, #tpu.memory_space<vmem>>, vector<32x128xf32>,
      %c0_i32_9 = arith.constant 0 : i32
      %17 = arith.cmpi eq, %arg1, %c0_i32_9 : i32
      %c0_i32_10 = arith.constant 0 : i32
      %18 = arith.cmpi eq, %arg2, %c0_i32_10 : i32
      %19 = arith.andi %17, %18 : i1
      %20 = arith.extui %19 : i1 to i32
      %c0_i32_11 = arith.constant 0 : i32
      %21 = arith.cmpi ne, %20, %c0_i32_11 : i32
      scf.if %21 {
        %cst_22 = arith.constant 0.000000e+00 : f32
        %32 = vector.broadcast %cst_22 : f32 to vector<8x128xf32>
        %c0_23 = arith.constant 0 : index
        %c0_24 = arith.constant 0 : index
        %33 = vector.load %arg9[%c0_23, %c0_24] : memref<8x128xf32, #tpu.memory_space<vmem>>, vector<8x128xf32>
        tpu.vector_store %arg9[%c0_23, %c0_24], %32 {strides = array<i32>} : memref<8x128xf32, #tpu.memory_space<vmem>>, vector<8x128xf32>,
        %cst_25 = arith.constant 0.000000e+00 : f32
        %34 = vector.broadcast %cst_25 : f32 to vector<8x128xf32>
        %c0_26 = arith.constant 0 : index
        %c0_27 = arith.constant 0 : index
        %35 = vector.load %arg10[%c0_26, %c0_27] : memref<8x128xf32, #tpu.memory_space<vmem>>, vector<8x128xf32>
        tpu.vector_store %arg10[%c0_26, %c0_27], %34 {strides = array<i32>} : memref<8x128xf32, #tpu.memory_space<vmem>>, vector<8x128xf32>,
      } else {
      }
      %22 = vector.shape_cast %14 : vector<32x128xf32> to vector<4x8x128xf32>
      %c0_12 = arith.constant 0 : index
      %c0_13 = arith.constant 0 : index
      %23 = vector.load %arg9[%c0_12, %c0_13] : memref<8x128xf32, #tpu.memory_space<vmem>>, vector<8x128xf32>
      %cst_14 = arith.constant dense<0.000000e+00> : vector<8x128xf32>
      %24 = vector.multi_reduction <add>, %22, %cst_14 [0] : vector<4x8x128xf32> to vector<8x128xf32>
      %25 = arith.addf %23, %24 : vector<8x128xf32>
      %c0_15 = arith.constant 0 : index
      %c0_16 = arith.constant 0 : index
      %26 = vector.load %arg9[%c0_15, %c0_16] : memref<8x128xf32, #tpu.memory_space<vmem>>, vector<8x128xf32>
      tpu.vector_store %arg9[%c0_15, %c0_16], %25 {strides = array<i32>} : memref<8x128xf32, #tpu.memory_space<vmem>>, vector<8x128xf32>,
      %c0_17 = arith.constant 0 : index
      %c0_18 = arith.constant 0 : index
      %27 = vector.load %arg10[%c0_17, %c0_18] : memref<8x128xf32, #tpu.memory_space<vmem>>, vector<8x128xf32>
      %28 = arith.mulf %22, %22 : vector<4x8x128xf32>
      %cst_19 = arith.constant dense<0.000000e+00> : vector<8x128xf32>
      %29 = vector.multi_reduction <add>, %28, %cst_19 [0] : vector<4x8x128xf32> to vector<8x128xf32>
      %30 = arith.addf %27, %29 : vector<8x128xf32>
      %c0_20 = arith.constant 0 : index
      %c0_21 = arith.constant 0 : index
      %31 = vector.load %arg10[%c0_20, %c0_21] : memref<8x128xf32, #tpu.memory_space<vmem>>, vector<8x128xf32>
      tpu.vector_store %arg10[%c0_20, %c0_21], %30 {strides = array<i32>} : memref<8x128xf32, #tpu.memory_space<vmem>>, vector<8x128xf32>,
    } else {
    }
    %c1_i32_1 = arith.constant 1 : i32
    %7 = arith.cmpi eq, %arg0, %c1_i32_1 : i32
    %8 = arith.extui %7 : i1 to i32
    %c0_i32_2 = arith.constant 0 : i32
    %9 = arith.cmpi ne, %8, %c0_i32_2 : i32
    scf.if %9 {
      %c0_i32_3 = arith.constant 0 : i32
      %10 = arith.cmpi eq, %arg1, %c0_i32_3 : i32
      %c0_i32_4 = arith.constant 0 : i32
      %11 = arith.cmpi eq, %arg2, %c0_i32_4 : i32
      %12 = arith.andi %10, %11 : i1
      %13 = arith.extui %12 : i1 to i32
      %c0_i32_5 = arith.constant 0 : i32
      %14 = arith.cmpi ne, %13, %c0_i32_5 : i32
      scf.if %14 {
        %c0_13 = arith.constant 0 : index
        %c0_14 = arith.constant 0 : index
        %29 = vector.load %arg9[%c0_13, %c0_14] : memref<8x128xf32, #tpu.memory_space<vmem>>, vector<8x128xf32>
        %cst_15 = arith.constant dense<0.000000e+00> : vector<128xf32>
        %30 = vector.multi_reduction <add>, %29, %cst_15 [0] : vector<8x128xf32> to vector<128xf32>
        %31 = vector.shape_cast %30 : vector<128xf32> to vector<1x128xf32>
        %c0_16 = arith.constant 0 : index
        %c0_17 = arith.constant 0 : index
        %32 = vector.load %arg10[%c0_16, %c0_17] : memref<8x128xf32, #tpu.memory_space<vmem>>, vector<8x128xf32>
        %cst_18 = arith.constant dense<0.000000e+00> : vector<128xf32>
        %33 = vector.multi_reduction <add>, %32, %cst_18 [0] : vector<8x128xf32> to vector<128xf32>
        %34 = vector.shape_cast %33 : vector<128xf32> to vector<1x128xf32>
        %cst_19 = arith.constant 7.812500e-03 : f32
        %35 = vector.broadcast %cst_19 : f32 to vector<1x128xf32>
        %36 = arith.mulf %31, %35 : vector<1x128xf32>
        %cst_20 = arith.constant 7.812500e-03 : f32
        %37 = vector.broadcast %cst_20 : f32 to vector<1x128xf32>
        %38 = arith.mulf %34, %37 : vector<1x128xf32>
        %39 = arith.mulf %36, %36 : vector<1x128xf32>
        %40 = arith.subf %38, %39 : vector<1x128xf32>
        %cst_21 = arith.constant 0.000000e+00 : f32
        %41 = vector.broadcast %cst_21 : f32 to vector<1x128xf32>
        %42 = arith.maximumf %40, %41 : vector<1x128xf32>
        %cst_22 = arith.constant 9.99999974E-6 : f32
        %43 = vector.broadcast %cst_22 : f32 to vector<1x128xf32>
        %44 = arith.addf %42, %43 : vector<1x128xf32>
        %45 = math.rsqrt %44 : vector<1x128xf32>
        %c0_23 = arith.constant 0 : index
        %c0_24 = arith.constant 0 : index
        %46 = vector.load %arg5[%c0_23, %c0_24] : memref<1x128xf32, #tpu.memory_space<vmem>>, vector<1x128xf32>
        %47 = arith.mulf %45, %46 : vector<1x128xf32>
        %c0_25 = arith.constant 0 : index
        %c0_26 = arith.constant 0 : index
        %48 = vector.load %arg11[%c0_25, %c0_26] : memref<1x128xf32, #tpu.memory_space<vmem>>, vector<1x128xf32>
        tpu.vector_store %arg11[%c0_25, %c0_26], %47 {strides = array<i32>} : memref<1x128xf32, #tpu.memory_space<vmem>>, vector<1x128xf32>,
        %c0_27 = arith.constant 0 : index
        %c0_28 = arith.constant 0 : index
        %49 = vector.load %arg6[%c0_27, %c0_28] : memref<1x128xf32, #tpu.memory_space<vmem>>, vector<1x128xf32>
        %50 = arith.mulf %36, %47 : vector<1x128xf32>
        %51 = arith.subf %49, %50 : vector<1x128xf32>
        %c0_29 = arith.constant 0 : index
        %c0_30 = arith.constant 0 : index
        %52 = vector.load %arg12[%c0_29, %c0_30] : memref<1x128xf32, #tpu.memory_space<vmem>>, vector<1x128xf32>
        tpu.vector_store %arg12[%c0_29, %c0_30], %51 {strides = array<i32>} : memref<1x128xf32, #tpu.memory_space<vmem>>, vector<1x128xf32>,
      } else {
      }
      %15 = arith.index_cast %3 : i32 to index
      %c0 = arith.constant 0 : index
      %16 = vector.load %arg8[%15, %c0] : memref<128x128xf32, #tpu.memory_space<vmem>>, vector<32x128xf32>
      %c0_6 = arith.constant 0 : index
      %c0_7 = arith.constant 0 : index
      %17 = vector.load %arg11[%c0_6, %c0_7] : memref<1x128xf32, #tpu.memory_space<vmem>>, vector<1x128xf32>
      %18 = vector.broadcast %17 : vector<1x128xf32> to vector<32x128xf32>
      %19 = arith.mulf %16, %18 : vector<32x128xf32>
      %c0_8 = arith.constant 0 : index
      %c0_9 = arith.constant 0 : index
      %20 = vector.load %arg12[%c0_8, %c0_9] : memref<1x128xf32, #tpu.memory_space<vmem>>, vector<1x128xf32>
      %21 = vector.broadcast %20 : vector<1x128xf32> to vector<32x128xf32>
      %22 = arith.addf %19, %21 : vector<32x128xf32>
      %cst = arith.constant 0.000000e+00 : f32
      %23 = vector.broadcast %cst : f32 to vector<32x128xf32>
      %24 = arith.maximumf %22, %23 : vector<32x128xf32>
      %25 = arith.truncf %24 : vector<32x128xf32> to vector<32x128xbf16>
      %c0_10 = arith.constant 0 : index
      %c0_11 = arith.constant 0 : index
      %c0_12 = arith.constant 0 : index
      %26 = vector.load %arg7[%c0_10, %c0_11, %c0_12] : memref<1x32x128xbf16, #tpu.memory_space<vmem>>, vector<1x32x128xbf16>
      %27 = vector.shape_cast %26 : vector<1x32x128xbf16> to vector<32x128xbf16>
      %28 = vector.shape_cast %25 : vector<32x128xbf16> to vector<1x32x128xbf16>
      tpu.vector_store %arg7[%c0_10, %c0_11, %c0_12], %28 {strides = array<i32>} : memref<1x32x128xbf16, #tpu.memory_space<vmem>>, vector<1x32x128xbf16>,
    } else {
    }
    return
  }
  func.func @transform_0(%arg0: i32, %arg1: i32, %arg2: i32) -> (i32, i32, i32) {
    %c1_i32 = arith.constant 1 : i32
    %0 = arith.subi %c1_i32, %arg0 : i32
    %1 = arith.muli %arg1, %0 : i32
    %c1_i32_0 = arith.constant 1 : i32
    %2 = arith.subi %c1_i32_0, %arg0 : i32
    %3 = arith.muli %arg2, %2 : i32
    %c0_i32 = arith.constant 0 : i32
    %c0_i32_1 = arith.constant 0 : i32
    return %1, %3, %c0_i32 : i32, i32, i32
  }
  func.func @transform_1(%arg0: i32, %arg1: i32, %arg2: i32) -> (i32, i32, i32) {
    %c1_i32 = arith.constant 1 : i32
    %0 = arith.subi %c1_i32, %arg0 : i32
    %1 = arith.muli %arg1, %0 : i32
    %c0_i32 = arith.constant 0 : i32
    %c0_i32_0 = arith.constant 0 : i32
    %c0_i32_1 = arith.constant 0 : i32
    return %1, %c0_i32, %c0_i32_0 : i32, i32, i32
  }
  func.func @transform_2(%arg0: i32, %arg1: i32, %arg2: i32) -> (i32, i32) {
    %c0_i32 = arith.constant 0 : i32
    %c0_i32_0 = arith.constant 0 : i32
    %c0_i32_1 = arith.constant 0 : i32
    return %c0_i32, %c0_i32_0 : i32, i32
  }
  func.func @transform_3(%arg0: i32, %arg1: i32, %arg2: i32) -> (i32, i32) {
    %c0_i32 = arith.constant 0 : i32
    %c0_i32_0 = arith.constant 0 : i32
    %c0_i32_1 = arith.constant 0 : i32
    return %c0_i32, %c0_i32_0 : i32, i32
  }
  func.func @transform_4(%arg0: i32, %arg1: i32, %arg2: i32) -> (i32, i32, i32) {
    %0 = arith.muli %arg1, %arg0 : i32
    %1 = arith.muli %arg2, %arg0 : i32
    %c0_i32 = arith.constant 0 : i32
    %c0_i32_0 = arith.constant 0 : i32
    return %0, %1, %c0_i32 : i32, i32, i32
  }
}

module attributes {stable_mosaic.version = 11 : i64} {
  func.func @_fused_conv_bn_relu_kernel(%arg0: i32, %arg1: i32, %arg2: i32, %arg3: memref<1x128x128xbf16, #tpu.memory_space<vmem>>, %arg4: memref<1x128x128xbf16, #tpu.memory_space<vmem>>, %arg5: memref<1x128xf32, #tpu.memory_space<vmem>>, %arg6: memref<1x128xf32, #tpu.memory_space<vmem>>, %arg7: memref<1x128x128xbf16, #tpu.memory_space<vmem>>, %arg8: memref<512x128xf32, #tpu.memory_space<vmem>>, %arg9: memref<8x128xf32, #tpu.memory_space<vmem>>, %arg10: memref<8x128xf32, #tpu.memory_space<vmem>>, %arg11: memref<1x128xf32, #tpu.memory_space<vmem>>, %arg12: memref<1x128xf32, #tpu.memory_space<vmem>>) attributes {dimension_semantics = [#tpu.dimension_semantics<arbitrary>, #tpu.dimension_semantics<arbitrary>, #tpu.dimension_semantics<arbitrary>], iteration_bounds = array<i64: 2, 4, 1>, scalar_prefetch = 0 : i64, scratch_operands = 5 : i64, tpu.core_type = #tpu.core_type<tc>, window_params = [{transform_indices = @transform_0, window_bounds = array<i64: 1, 128, 128>}, {transform_indices = @transform_1, window_bounds = array<i64: 1, 128, 128>}, {pipeline_mode = #tpu.pipeline_mode<synchronous>, transform_indices = @transform_2, window_bounds = array<i64: 1, 128>}, {pipeline_mode = #tpu.pipeline_mode<synchronous>, transform_indices = @transform_3, window_bounds = array<i64: 1, 128>}, {transform_indices = @transform_4, window_bounds = array<i64: 1, 128, 128>}]} {
    %c1_i32 = arith.constant 1 : i32
    %0 = arith.muli %arg1, %c1_i32 : i32
    %1 = arith.addi %0, %arg2 : i32
    %c128_i32 = arith.constant 128 : i32
    %2 = arith.muli %1, %c128_i32 : i32
    %3 = tpu.assume_multiple %2, 8 : i32
    %c0_i32 = arith.constant 0 : i32
    %4 = arith.cmpi eq, %arg0, %c0_i32 : i32
    %5 = arith.extui %4 : i1 to i32
    %c0_i32_0 = arith.constant 0 : i32
    %6 = arith.cmpi ne, %5, %c0_i32_0 : i32
    scf.if %6 {
      %c0 = arith.constant 0 : index
      %c0_3 = arith.constant 0 : index
      %c0_4 = arith.constant 0 : index
      %10 = vector.load %arg3[%c0, %c0_3, %c0_4] : memref<1x128x128xbf16, #tpu.memory_space<vmem>>, vector<1x128x128xbf16>
      %11 = vector.shape_cast %10 : vector<1x128x128xbf16> to vector<128x128xbf16>
      %c0_5 = arith.constant 0 : index
      %c0_6 = arith.constant 0 : index
      %c0_7 = arith.constant 0 : index
      %12 = vector.load %arg4[%c0_5, %c0_6, %c0_7] : memref<1x128x128xbf16, #tpu.memory_space<vmem>>, vector<1x128x128xbf16>
      %13 = vector.shape_cast %12 : vector<1x128x128xbf16> to vector<128x128xbf16>
      %cst = arith.constant dense<0.000000e+00> : vector<128x128xf32>
      %14 = tpu.matmul %11, %13, %cst {dimension_numbers = #tpu.dot_dimension_numbers<[1], [0], [0], [1], [0, 0, 1, 1], [], []>} : vector<128x128xbf16>, vector<128x128xbf16>, vector<128x128xf32> -> vector<128x128xf32>
      %15 = arith.index_cast %3 : i32 to index
      %c0_8 = arith.constant 0 : index
      %16 = vector.load %arg8[%15, %c0_8] : memref<512x128xf32, #tpu.memory_space<vmem>>, vector<128x128xf32>
      tpu.vector_store %arg8[%15, %c0_8], %14 {strides = array<i32>} : memref<512x128xf32, #tpu.memory_space<vmem>>, vector<128x128xf32>,
      %c0_i32_9 = arith.constant 0 : i32
      %17 = arith.cmpi eq, %arg1, %c0_i32_9 : i32
      %c0_i32_10 = arith.constant 0 : i32
      %18 = arith.cmpi eq, %arg2, %c0_i32_10 : i32
      %19 = arith.andi %17, %18 : i1
      %20 = arith.extui %19 : i1 to i32
      %c0_i32_11 = arith.constant 0 : i32
      %21 = arith.cmpi ne, %20, %c0_i32_11 : i32
      scf.if %21 {
        %cst_22 = arith.constant 0.000000e+00 : f32
        %32 = vector.broadcast %cst_22 : f32 to vector<8x128xf32>
        %c0_23 = arith.constant 0 : index
        %c0_24 = arith.constant 0 : index
        %33 = vector.load %arg9[%c0_23, %c0_24] : memref<8x128xf32, #tpu.memory_space<vmem>>, vector<8x128xf32>
        tpu.vector_store %arg9[%c0_23, %c0_24], %32 {strides = array<i32>} : memref<8x128xf32, #tpu.memory_space<vmem>>, vector<8x128xf32>,
        %cst_25 = arith.constant 0.000000e+00 : f32
        %34 = vector.broadcast %cst_25 : f32 to vector<8x128xf32>
        %c0_26 = arith.constant 0 : index
        %c0_27 = arith.constant 0 : index
        %35 = vector.load %arg10[%c0_26, %c0_27] : memref<8x128xf32, #tpu.memory_space<vmem>>, vector<8x128xf32>
        tpu.vector_store %arg10[%c0_26, %c0_27], %34 {strides = array<i32>} : memref<8x128xf32, #tpu.memory_space<vmem>>, vector<8x128xf32>,
      } else {
      }
      %22 = vector.shape_cast %14 : vector<128x128xf32> to vector<16x8x128xf32>
      %c0_12 = arith.constant 0 : index
      %c0_13 = arith.constant 0 : index
      %23 = vector.load %arg9[%c0_12, %c0_13] : memref<8x128xf32, #tpu.memory_space<vmem>>, vector<8x128xf32>
      %cst_14 = arith.constant dense<0.000000e+00> : vector<8x128xf32>
      %24 = vector.multi_reduction <add>, %22, %cst_14 [0] : vector<16x8x128xf32> to vector<8x128xf32>
      %25 = arith.addf %23, %24 : vector<8x128xf32>
      %c0_15 = arith.constant 0 : index
      %c0_16 = arith.constant 0 : index
      %26 = vector.load %arg9[%c0_15, %c0_16] : memref<8x128xf32, #tpu.memory_space<vmem>>, vector<8x128xf32>
      tpu.vector_store %arg9[%c0_15, %c0_16], %25 {strides = array<i32>} : memref<8x128xf32, #tpu.memory_space<vmem>>, vector<8x128xf32>,
      %c0_17 = arith.constant 0 : index
      %c0_18 = arith.constant 0 : index
      %27 = vector.load %arg10[%c0_17, %c0_18] : memref<8x128xf32, #tpu.memory_space<vmem>>, vector<8x128xf32>
      %28 = arith.mulf %22, %22 : vector<16x8x128xf32>
      %cst_19 = arith.constant dense<0.000000e+00> : vector<8x128xf32>
      %29 = vector.multi_reduction <add>, %28, %cst_19 [0] : vector<16x8x128xf32> to vector<8x128xf32>
      %30 = arith.addf %27, %29 : vector<8x128xf32>
      %c0_20 = arith.constant 0 : index
      %c0_21 = arith.constant 0 : index
      %31 = vector.load %arg10[%c0_20, %c0_21] : memref<8x128xf32, #tpu.memory_space<vmem>>, vector<8x128xf32>
      tpu.vector_store %arg10[%c0_20, %c0_21], %30 {strides = array<i32>} : memref<8x128xf32, #tpu.memory_space<vmem>>, vector<8x128xf32>,
    } else {
    }
    %c1_i32_1 = arith.constant 1 : i32
    %7 = arith.cmpi eq, %arg0, %c1_i32_1 : i32
    %8 = arith.extui %7 : i1 to i32
    %c0_i32_2 = arith.constant 0 : i32
    %9 = arith.cmpi ne, %8, %c0_i32_2 : i32
    scf.if %9 {
      %c0_i32_3 = arith.constant 0 : i32
      %10 = arith.cmpi eq, %arg1, %c0_i32_3 : i32
      %c0_i32_4 = arith.constant 0 : i32
      %11 = arith.cmpi eq, %arg2, %c0_i32_4 : i32
      %12 = arith.andi %10, %11 : i1
      %13 = arith.extui %12 : i1 to i32
      %c0_i32_5 = arith.constant 0 : i32
      %14 = arith.cmpi ne, %13, %c0_i32_5 : i32
      scf.if %14 {
        %c0_13 = arith.constant 0 : index
        %c0_14 = arith.constant 0 : index
        %29 = vector.load %arg9[%c0_13, %c0_14] : memref<8x128xf32, #tpu.memory_space<vmem>>, vector<8x128xf32>
        %cst_15 = arith.constant dense<0.000000e+00> : vector<128xf32>
        %30 = vector.multi_reduction <add>, %29, %cst_15 [0] : vector<8x128xf32> to vector<128xf32>
        %31 = vector.shape_cast %30 : vector<128xf32> to vector<1x128xf32>
        %c0_16 = arith.constant 0 : index
        %c0_17 = arith.constant 0 : index
        %32 = vector.load %arg10[%c0_16, %c0_17] : memref<8x128xf32, #tpu.memory_space<vmem>>, vector<8x128xf32>
        %cst_18 = arith.constant dense<0.000000e+00> : vector<128xf32>
        %33 = vector.multi_reduction <add>, %32, %cst_18 [0] : vector<8x128xf32> to vector<128xf32>
        %34 = vector.shape_cast %33 : vector<128xf32> to vector<1x128xf32>
        %cst_19 = arith.constant 0.001953125 : f32
        %35 = vector.broadcast %cst_19 : f32 to vector<1x128xf32>
        %36 = arith.mulf %31, %35 : vector<1x128xf32>
        %cst_20 = arith.constant 0.001953125 : f32
        %37 = vector.broadcast %cst_20 : f32 to vector<1x128xf32>
        %38 = arith.mulf %34, %37 : vector<1x128xf32>
        %39 = arith.mulf %36, %36 : vector<1x128xf32>
        %40 = arith.subf %38, %39 : vector<1x128xf32>
        %cst_21 = arith.constant 0.000000e+00 : f32
        %41 = vector.broadcast %cst_21 : f32 to vector<1x128xf32>
        %42 = arith.maximumf %40, %41 : vector<1x128xf32>
        %cst_22 = arith.constant 9.99999974E-6 : f32
        %43 = vector.broadcast %cst_22 : f32 to vector<1x128xf32>
        %44 = arith.addf %42, %43 : vector<1x128xf32>
        %45 = math.rsqrt %44 : vector<1x128xf32>
        %c0_23 = arith.constant 0 : index
        %c0_24 = arith.constant 0 : index
        %46 = vector.load %arg5[%c0_23, %c0_24] : memref<1x128xf32, #tpu.memory_space<vmem>>, vector<1x128xf32>
        %47 = arith.mulf %45, %46 : vector<1x128xf32>
        %c0_25 = arith.constant 0 : index
        %c0_26 = arith.constant 0 : index
        %48 = vector.load %arg11[%c0_25, %c0_26] : memref<1x128xf32, #tpu.memory_space<vmem>>, vector<1x128xf32>
        tpu.vector_store %arg11[%c0_25, %c0_26], %47 {strides = array<i32>} : memref<1x128xf32, #tpu.memory_space<vmem>>, vector<1x128xf32>,
        %c0_27 = arith.constant 0 : index
        %c0_28 = arith.constant 0 : index
        %49 = vector.load %arg6[%c0_27, %c0_28] : memref<1x128xf32, #tpu.memory_space<vmem>>, vector<1x128xf32>
        %50 = arith.mulf %36, %47 : vector<1x128xf32>
        %51 = arith.subf %49, %50 : vector<1x128xf32>
        %c0_29 = arith.constant 0 : index
        %c0_30 = arith.constant 0 : index
        %52 = vector.load %arg12[%c0_29, %c0_30] : memref<1x128xf32, #tpu.memory_space<vmem>>, vector<1x128xf32>
        tpu.vector_store %arg12[%c0_29, %c0_30], %51 {strides = array<i32>} : memref<1x128xf32, #tpu.memory_space<vmem>>, vector<1x128xf32>,
      } else {
      }
      %15 = arith.index_cast %3 : i32 to index
      %c0 = arith.constant 0 : index
      %16 = vector.load %arg8[%15, %c0] : memref<512x128xf32, #tpu.memory_space<vmem>>, vector<128x128xf32>
      %c0_6 = arith.constant 0 : index
      %c0_7 = arith.constant 0 : index
      %17 = vector.load %arg11[%c0_6, %c0_7] : memref<1x128xf32, #tpu.memory_space<vmem>>, vector<1x128xf32>
      %18 = vector.broadcast %17 : vector<1x128xf32> to vector<128x128xf32>
      %19 = arith.mulf %16, %18 : vector<128x128xf32>
      %c0_8 = arith.constant 0 : index
      %c0_9 = arith.constant 0 : index
      %20 = vector.load %arg12[%c0_8, %c0_9] : memref<1x128xf32, #tpu.memory_space<vmem>>, vector<1x128xf32>
      %21 = vector.broadcast %20 : vector<1x128xf32> to vector<128x128xf32>
      %22 = arith.addf %19, %21 : vector<128x128xf32>
      %cst = arith.constant 0.000000e+00 : f32
      %23 = vector.broadcast %cst : f32 to vector<128x128xf32>
      %24 = arith.maximumf %22, %23 : vector<128x128xf32>
      %25 = arith.truncf %24 : vector<128x128xf32> to vector<128x128xbf16>
      %c0_10 = arith.constant 0 : index
      %c0_11 = arith.constant 0 : index
      %c0_12 = arith.constant 0 : index
      %26 = vector.load %arg7[%c0_10, %c0_11, %c0_12] : memref<1x128x128xbf16, #tpu.memory_space<vmem>>, vector<1x128x128xbf16>
      %27 = vector.shape_cast %26 : vector<1x128x128xbf16> to vector<128x128xbf16>
      %28 = vector.shape_cast %25 : vector<128x128xbf16> to vector<1x128x128xbf16>
      tpu.vector_store %arg7[%c0_10, %c0_11, %c0_12], %28 {strides = array<i32>} : memref<1x128x128xbf16, #tpu.memory_space<vmem>>, vector<1x128x128xbf16>,
    } else {
    }
    return
  }
  func.func @transform_0(%arg0: i32, %arg1: i32, %arg2: i32) -> (i32, i32, i32) {
    %c1_i32 = arith.constant 1 : i32
    %0 = arith.subi %c1_i32, %arg0 : i32
    %1 = arith.muli %arg1, %0 : i32
    %c1_i32_0 = arith.constant 1 : i32
    %2 = arith.subi %c1_i32_0, %arg0 : i32
    %3 = arith.muli %arg2, %2 : i32
    %c0_i32 = arith.constant 0 : i32
    %c0_i32_1 = arith.constant 0 : i32
    return %1, %3, %c0_i32 : i32, i32, i32
  }
  func.func @transform_1(%arg0: i32, %arg1: i32, %arg2: i32) -> (i32, i32, i32) {
    %c1_i32 = arith.constant 1 : i32
    %0 = arith.subi %c1_i32, %arg0 : i32
    %1 = arith.muli %arg1, %0 : i32
    %c0_i32 = arith.constant 0 : i32
    %c0_i32_0 = arith.constant 0 : i32
    %c0_i32_1 = arith.constant 0 : i32
    return %1, %c0_i32, %c0_i32_0 : i32, i32, i32
  }
  func.func @transform_2(%arg0: i32, %arg1: i32, %arg2: i32) -> (i32, i32) {
    %c0_i32 = arith.constant 0 : i32
    %c0_i32_0 = arith.constant 0 : i32
    %c0_i32_1 = arith.constant 0 : i32
    return %c0_i32, %c0_i32_0 : i32, i32
  }
  func.func @transform_3(%arg0: i32, %arg1: i32, %arg2: i32) -> (i32, i32) {
    %c0_i32 = arith.constant 0 : i32
    %c0_i32_0 = arith.constant 0 : i32
    %c0_i32_1 = arith.constant 0 : i32
    return %c0_i32, %c0_i32_0 : i32, i32
  }
  func.func @transform_4(%arg0: i32, %arg1: i32, %arg2: i32) -> (i32, i32, i32) {
    %0 = arith.muli %arg1, %arg0 : i32
    %1 = arith.muli %arg2, %arg0 : i32
    %c0_i32 = arith.constant 0 : i32
    %c0_i32_0 = arith.constant 0 : i32
    return %0, %1, %c0_i32 : i32, i32, i32
  }
}

module attributes {stable_mosaic.version = 11 : i64} {
  func.func @_fused_conv_bn_relu_kernel(%arg0: i32, %arg1: i32, %arg2: i32, %arg3: memref<1x512x128xbf16, #tpu.memory_space<vmem>>, %arg4: memref<1x128x128xbf16, #tpu.memory_space<vmem>>, %arg5: memref<1x128xf32, #tpu.memory_space<vmem>>, %arg6: memref<1x128xf32, #tpu.memory_space<vmem>>, %arg7: memref<1x512x128xbf16, #tpu.memory_space<vmem>>, %arg8: memref<2048x128xf32, #tpu.memory_space<vmem>>, %arg9: memref<8x128xf32, #tpu.memory_space<vmem>>, %arg10: memref<8x128xf32, #tpu.memory_space<vmem>>, %arg11: memref<1x128xf32, #tpu.memory_space<vmem>>, %arg12: memref<1x128xf32, #tpu.memory_space<vmem>>) attributes {dimension_semantics = [#tpu.dimension_semantics<arbitrary>, #tpu.dimension_semantics<arbitrary>, #tpu.dimension_semantics<arbitrary>], iteration_bounds = array<i64: 2, 4, 1>, scalar_prefetch = 0 : i64, scratch_operands = 5 : i64, tpu.core_type = #tpu.core_type<tc>, window_params = [{transform_indices = @transform_0, window_bounds = array<i64: 1, 512, 128>}, {transform_indices = @transform_1, window_bounds = array<i64: 1, 128, 128>}, {pipeline_mode = #tpu.pipeline_mode<synchronous>, transform_indices = @transform_2, window_bounds = array<i64: 1, 128>}, {pipeline_mode = #tpu.pipeline_mode<synchronous>, transform_indices = @transform_3, window_bounds = array<i64: 1, 128>}, {transform_indices = @transform_4, window_bounds = array<i64: 1, 512, 128>}]} {
    %c1_i32 = arith.constant 1 : i32
    %0 = arith.muli %arg1, %c1_i32 : i32
    %1 = arith.addi %0, %arg2 : i32
    %c512_i32 = arith.constant 512 : i32
    %2 = arith.muli %1, %c512_i32 : i32
    %3 = tpu.assume_multiple %2, 8 : i32
    %c0_i32 = arith.constant 0 : i32
    %4 = arith.cmpi eq, %arg0, %c0_i32 : i32
    %5 = arith.extui %4 : i1 to i32
    %c0_i32_0 = arith.constant 0 : i32
    %6 = arith.cmpi ne, %5, %c0_i32_0 : i32
    scf.if %6 {
      %c0 = arith.constant 0 : index
      %c0_3 = arith.constant 0 : index
      %c0_4 = arith.constant 0 : index
      %10 = vector.load %arg3[%c0, %c0_3, %c0_4] : memref<1x512x128xbf16, #tpu.memory_space<vmem>>, vector<1x512x128xbf16>
      %11 = vector.shape_cast %10 : vector<1x512x128xbf16> to vector<512x128xbf16>
      %c0_5 = arith.constant 0 : index
      %c0_6 = arith.constant 0 : index
      %c0_7 = arith.constant 0 : index
      %12 = vector.load %arg4[%c0_5, %c0_6, %c0_7] : memref<1x128x128xbf16, #tpu.memory_space<vmem>>, vector<1x128x128xbf16>
      %13 = vector.shape_cast %12 : vector<1x128x128xbf16> to vector<128x128xbf16>
      %cst = arith.constant dense<0.000000e+00> : vector<512x128xf32>
      %14 = tpu.matmul %11, %13, %cst {dimension_numbers = #tpu.dot_dimension_numbers<[1], [0], [0], [1], [0, 0, 1, 1], [], []>} : vector<512x128xbf16>, vector<128x128xbf16>, vector<512x128xf32> -> vector<512x128xf32>
      %15 = arith.index_cast %3 : i32 to index
      %c0_8 = arith.constant 0 : index
      %16 = vector.load %arg8[%15, %c0_8] : memref<2048x128xf32, #tpu.memory_space<vmem>>, vector<512x128xf32>
      tpu.vector_store %arg8[%15, %c0_8], %14 {strides = array<i32>} : memref<2048x128xf32, #tpu.memory_space<vmem>>, vector<512x128xf32>,
      %c0_i32_9 = arith.constant 0 : i32
      %17 = arith.cmpi eq, %arg1, %c0_i32_9 : i32
      %c0_i32_10 = arith.constant 0 : i32
      %18 = arith.cmpi eq, %arg2, %c0_i32_10 : i32
      %19 = arith.andi %17, %18 : i1
      %20 = arith.extui %19 : i1 to i32
      %c0_i32_11 = arith.constant 0 : i32
      %21 = arith.cmpi ne, %20, %c0_i32_11 : i32
      scf.if %21 {
        %cst_22 = arith.constant 0.000000e+00 : f32
        %32 = vector.broadcast %cst_22 : f32 to vector<8x128xf32>
        %c0_23 = arith.constant 0 : index
        %c0_24 = arith.constant 0 : index
        %33 = vector.load %arg9[%c0_23, %c0_24] : memref<8x128xf32, #tpu.memory_space<vmem>>, vector<8x128xf32>
        tpu.vector_store %arg9[%c0_23, %c0_24], %32 {strides = array<i32>} : memref<8x128xf32, #tpu.memory_space<vmem>>, vector<8x128xf32>,
        %cst_25 = arith.constant 0.000000e+00 : f32
        %34 = vector.broadcast %cst_25 : f32 to vector<8x128xf32>
        %c0_26 = arith.constant 0 : index
        %c0_27 = arith.constant 0 : index
        %35 = vector.load %arg10[%c0_26, %c0_27] : memref<8x128xf32, #tpu.memory_space<vmem>>, vector<8x128xf32>
        tpu.vector_store %arg10[%c0_26, %c0_27], %34 {strides = array<i32>} : memref<8x128xf32, #tpu.memory_space<vmem>>, vector<8x128xf32>,
      } else {
      }
      %22 = vector.shape_cast %14 : vector<512x128xf32> to vector<64x8x128xf32>
      %c0_12 = arith.constant 0 : index
      %c0_13 = arith.constant 0 : index
      %23 = vector.load %arg9[%c0_12, %c0_13] : memref<8x128xf32, #tpu.memory_space<vmem>>, vector<8x128xf32>
      %cst_14 = arith.constant dense<0.000000e+00> : vector<8x128xf32>
      %24 = vector.multi_reduction <add>, %22, %cst_14 [0] : vector<64x8x128xf32> to vector<8x128xf32>
      %25 = arith.addf %23, %24 : vector<8x128xf32>
      %c0_15 = arith.constant 0 : index
      %c0_16 = arith.constant 0 : index
      %26 = vector.load %arg9[%c0_15, %c0_16] : memref<8x128xf32, #tpu.memory_space<vmem>>, vector<8x128xf32>
      tpu.vector_store %arg9[%c0_15, %c0_16], %25 {strides = array<i32>} : memref<8x128xf32, #tpu.memory_space<vmem>>, vector<8x128xf32>,
      %c0_17 = arith.constant 0 : index
      %c0_18 = arith.constant 0 : index
      %27 = vector.load %arg10[%c0_17, %c0_18] : memref<8x128xf32, #tpu.memory_space<vmem>>, vector<8x128xf32>
      %28 = arith.mulf %22, %22 : vector<64x8x128xf32>
      %cst_19 = arith.constant dense<0.000000e+00> : vector<8x128xf32>
      %29 = vector.multi_reduction <add>, %28, %cst_19 [0] : vector<64x8x128xf32> to vector<8x128xf32>
      %30 = arith.addf %27, %29 : vector<8x128xf32>
      %c0_20 = arith.constant 0 : index
      %c0_21 = arith.constant 0 : index
      %31 = vector.load %arg10[%c0_20, %c0_21] : memref<8x128xf32, #tpu.memory_space<vmem>>, vector<8x128xf32>
      tpu.vector_store %arg10[%c0_20, %c0_21], %30 {strides = array<i32>} : memref<8x128xf32, #tpu.memory_space<vmem>>, vector<8x128xf32>,
    } else {
    }
    %c1_i32_1 = arith.constant 1 : i32
    %7 = arith.cmpi eq, %arg0, %c1_i32_1 : i32
    %8 = arith.extui %7 : i1 to i32
    %c0_i32_2 = arith.constant 0 : i32
    %9 = arith.cmpi ne, %8, %c0_i32_2 : i32
    scf.if %9 {
      %c0_i32_3 = arith.constant 0 : i32
      %10 = arith.cmpi eq, %arg1, %c0_i32_3 : i32
      %c0_i32_4 = arith.constant 0 : i32
      %11 = arith.cmpi eq, %arg2, %c0_i32_4 : i32
      %12 = arith.andi %10, %11 : i1
      %13 = arith.extui %12 : i1 to i32
      %c0_i32_5 = arith.constant 0 : i32
      %14 = arith.cmpi ne, %13, %c0_i32_5 : i32
      scf.if %14 {
        %c0_13 = arith.constant 0 : index
        %c0_14 = arith.constant 0 : index
        %29 = vector.load %arg9[%c0_13, %c0_14] : memref<8x128xf32, #tpu.memory_space<vmem>>, vector<8x128xf32>
        %cst_15 = arith.constant dense<0.000000e+00> : vector<128xf32>
        %30 = vector.multi_reduction <add>, %29, %cst_15 [0] : vector<8x128xf32> to vector<128xf32>
        %31 = vector.shape_cast %30 : vector<128xf32> to vector<1x128xf32>
        %c0_16 = arith.constant 0 : index
        %c0_17 = arith.constant 0 : index
        %32 = vector.load %arg10[%c0_16, %c0_17] : memref<8x128xf32, #tpu.memory_space<vmem>>, vector<8x128xf32>
        %cst_18 = arith.constant dense<0.000000e+00> : vector<128xf32>
        %33 = vector.multi_reduction <add>, %32, %cst_18 [0] : vector<8x128xf32> to vector<128xf32>
        %34 = vector.shape_cast %33 : vector<128xf32> to vector<1x128xf32>
        %cst_19 = arith.constant 4.8828125E-4 : f32
        %35 = vector.broadcast %cst_19 : f32 to vector<1x128xf32>
        %36 = arith.mulf %31, %35 : vector<1x128xf32>
        %cst_20 = arith.constant 4.8828125E-4 : f32
        %37 = vector.broadcast %cst_20 : f32 to vector<1x128xf32>
        %38 = arith.mulf %34, %37 : vector<1x128xf32>
        %39 = arith.mulf %36, %36 : vector<1x128xf32>
        %40 = arith.subf %38, %39 : vector<1x128xf32>
        %cst_21 = arith.constant 0.000000e+00 : f32
        %41 = vector.broadcast %cst_21 : f32 to vector<1x128xf32>
        %42 = arith.maximumf %40, %41 : vector<1x128xf32>
        %cst_22 = arith.constant 9.99999974E-6 : f32
        %43 = vector.broadcast %cst_22 : f32 to vector<1x128xf32>
        %44 = arith.addf %42, %43 : vector<1x128xf32>
        %45 = math.rsqrt %44 : vector<1x128xf32>
        %c0_23 = arith.constant 0 : index
        %c0_24 = arith.constant 0 : index
        %46 = vector.load %arg5[%c0_23, %c0_24] : memref<1x128xf32, #tpu.memory_space<vmem>>, vector<1x128xf32>
        %47 = arith.mulf %45, %46 : vector<1x128xf32>
        %c0_25 = arith.constant 0 : index
        %c0_26 = arith.constant 0 : index
        %48 = vector.load %arg11[%c0_25, %c0_26] : memref<1x128xf32, #tpu.memory_space<vmem>>, vector<1x128xf32>
        tpu.vector_store %arg11[%c0_25, %c0_26], %47 {strides = array<i32>} : memref<1x128xf32, #tpu.memory_space<vmem>>, vector<1x128xf32>,
        %c0_27 = arith.constant 0 : index
        %c0_28 = arith.constant 0 : index
        %49 = vector.load %arg6[%c0_27, %c0_28] : memref<1x128xf32, #tpu.memory_space<vmem>>, vector<1x128xf32>
        %50 = arith.mulf %36, %47 : vector<1x128xf32>
        %51 = arith.subf %49, %50 : vector<1x128xf32>
        %c0_29 = arith.constant 0 : index
        %c0_30 = arith.constant 0 : index
        %52 = vector.load %arg12[%c0_29, %c0_30] : memref<1x128xf32, #tpu.memory_space<vmem>>, vector<1x128xf32>
        tpu.vector_store %arg12[%c0_29, %c0_30], %51 {strides = array<i32>} : memref<1x128xf32, #tpu.memory_space<vmem>>, vector<1x128xf32>,
      } else {
      }
      %15 = arith.index_cast %3 : i32 to index
      %c0 = arith.constant 0 : index
      %16 = vector.load %arg8[%15, %c0] : memref<2048x128xf32, #tpu.memory_space<vmem>>, vector<512x128xf32>
      %c0_6 = arith.constant 0 : index
      %c0_7 = arith.constant 0 : index
      %17 = vector.load %arg11[%c0_6, %c0_7] : memref<1x128xf32, #tpu.memory_space<vmem>>, vector<1x128xf32>
      %18 = vector.broadcast %17 : vector<1x128xf32> to vector<512x128xf32>
      %19 = arith.mulf %16, %18 : vector<512x128xf32>
      %c0_8 = arith.constant 0 : index
      %c0_9 = arith.constant 0 : index
      %20 = vector.load %arg12[%c0_8, %c0_9] : memref<1x128xf32, #tpu.memory_space<vmem>>, vector<1x128xf32>
      %21 = vector.broadcast %20 : vector<1x128xf32> to vector<512x128xf32>
      %22 = arith.addf %19, %21 : vector<512x128xf32>
      %cst = arith.constant 0.000000e+00 : f32
      %23 = vector.broadcast %cst : f32 to vector<512x128xf32>
      %24 = arith.maximumf %22, %23 : vector<512x128xf32>
      %25 = arith.truncf %24 : vector<512x128xf32> to vector<512x128xbf16>
      %c0_10 = arith.constant 0 : index
      %c0_11 = arith.constant 0 : index
      %c0_12 = arith.constant 0 : index
      %26 = vector.load %arg7[%c0_10, %c0_11, %c0_12] : memref<1x512x128xbf16, #tpu.memory_space<vmem>>, vector<1x512x128xbf16>
      %27 = vector.shape_cast %26 : vector<1x512x128xbf16> to vector<512x128xbf16>
      %28 = vector.shape_cast %25 : vector<512x128xbf16> to vector<1x512x128xbf16>
      tpu.vector_store %arg7[%c0_10, %c0_11, %c0_12], %28 {strides = array<i32>} : memref<1x512x128xbf16, #tpu.memory_space<vmem>>, vector<1x512x128xbf16>,
    } else {
    }
    return
  }
  func.func @transform_0(%arg0: i32, %arg1: i32, %arg2: i32) -> (i32, i32, i32) {
    %c1_i32 = arith.constant 1 : i32
    %0 = arith.subi %c1_i32, %arg0 : i32
    %1 = arith.muli %arg1, %0 : i32
    %c1_i32_0 = arith.constant 1 : i32
    %2 = arith.subi %c1_i32_0, %arg0 : i32
    %3 = arith.muli %arg2, %2 : i32
    %c0_i32 = arith.constant 0 : i32
    %c0_i32_1 = arith.constant 0 : i32
    return %1, %3, %c0_i32 : i32, i32, i32
  }
  func.func @transform_1(%arg0: i32, %arg1: i32, %arg2: i32) -> (i32, i32, i32) {
    %c1_i32 = arith.constant 1 : i32
    %0 = arith.subi %c1_i32, %arg0 : i32
    %1 = arith.muli %arg1, %0 : i32
    %c0_i32 = arith.constant 0 : i32
    %c0_i32_0 = arith.constant 0 : i32
    %c0_i32_1 = arith.constant 0 : i32
    return %1, %c0_i32, %c0_i32_0 : i32, i32, i32
  }
  func.func @transform_2(%arg0: i32, %arg1: i32, %arg2: i32) -> (i32, i32) {
    %c0_i32 = arith.constant 0 : i32
    %c0_i32_0 = arith.constant 0 : i32
    %c0_i32_1 = arith.constant 0 : i32
    return %c0_i32, %c0_i32_0 : i32, i32
  }
  func.func @transform_3(%arg0: i32, %arg1: i32, %arg2: i32) -> (i32, i32) {
    %c0_i32 = arith.constant 0 : i32
    %c0_i32_0 = arith.constant 0 : i32
    %c0_i32_1 = arith.constant 0 : i32
    return %c0_i32, %c0_i32_0 : i32, i32
  }
  func.func @transform_4(%arg0: i32, %arg1: i32, %arg2: i32) -> (i32, i32, i32) {
    %0 = arith.muli %arg1, %arg0 : i32
    %1 = arith.muli %arg2, %arg0 : i32
    %c0_i32 = arith.constant 0 : i32
    %c0_i32_0 = arith.constant 0 : i32
    return %0, %1, %c0_i32 : i32, i32, i32
  }
}

module attributes {stable_mosaic.version = 11 : i64} {
  func.func @_fused_conv_bn_relu_kernel(%arg0: i32, %arg1: i32, %arg2: i32, %arg3: memref<1x2048x128xbf16, #tpu.memory_space<vmem>>, %arg4: memref<1x128x128xbf16, #tpu.memory_space<vmem>>, %arg5: memref<1x128xf32, #tpu.memory_space<vmem>>, %arg6: memref<1x128xf32, #tpu.memory_space<vmem>>, %arg7: memref<1x2048x128xbf16, #tpu.memory_space<vmem>>, %arg8: memref<8192x128xf32, #tpu.memory_space<vmem>>, %arg9: memref<8x128xf32, #tpu.memory_space<vmem>>, %arg10: memref<8x128xf32, #tpu.memory_space<vmem>>, %arg11: memref<1x128xf32, #tpu.memory_space<vmem>>, %arg12: memref<1x128xf32, #tpu.memory_space<vmem>>) attributes {dimension_semantics = [#tpu.dimension_semantics<arbitrary>, #tpu.dimension_semantics<arbitrary>, #tpu.dimension_semantics<arbitrary>], iteration_bounds = array<i64: 2, 4, 1>, scalar_prefetch = 0 : i64, scratch_operands = 5 : i64, tpu.core_type = #tpu.core_type<tc>, window_params = [{transform_indices = @transform_0, window_bounds = array<i64: 1, 2048, 128>}, {transform_indices = @transform_1, window_bounds = array<i64: 1, 128, 128>}, {pipeline_mode = #tpu.pipeline_mode<synchronous>, transform_indices = @transform_2, window_bounds = array<i64: 1, 128>}, {pipeline_mode = #tpu.pipeline_mode<synchronous>, transform_indices = @transform_3, window_bounds = array<i64: 1, 128>}, {transform_indices = @transform_4, window_bounds = array<i64: 1, 2048, 128>}]} {
    %c1_i32 = arith.constant 1 : i32
    %0 = arith.muli %arg1, %c1_i32 : i32
    %1 = arith.addi %0, %arg2 : i32
    %c2048_i32 = arith.constant 2048 : i32
    %2 = arith.muli %1, %c2048_i32 : i32
    %3 = tpu.assume_multiple %2, 8 : i32
    %c0_i32 = arith.constant 0 : i32
    %4 = arith.cmpi eq, %arg0, %c0_i32 : i32
    %5 = arith.extui %4 : i1 to i32
    %c0_i32_0 = arith.constant 0 : i32
    %6 = arith.cmpi ne, %5, %c0_i32_0 : i32
    scf.if %6 {
      %c0 = arith.constant 0 : index
      %c0_3 = arith.constant 0 : index
      %c0_4 = arith.constant 0 : index
      %10 = vector.load %arg3[%c0, %c0_3, %c0_4] : memref<1x2048x128xbf16, #tpu.memory_space<vmem>>, vector<1x2048x128xbf16>
      %11 = vector.shape_cast %10 : vector<1x2048x128xbf16> to vector<2048x128xbf16>
      %c0_5 = arith.constant 0 : index
      %c0_6 = arith.constant 0 : index
      %c0_7 = arith.constant 0 : index
      %12 = vector.load %arg4[%c0_5, %c0_6, %c0_7] : memref<1x128x128xbf16, #tpu.memory_space<vmem>>, vector<1x128x128xbf16>
      %13 = vector.shape_cast %12 : vector<1x128x128xbf16> to vector<128x128xbf16>
      %cst = arith.constant dense<0.000000e+00> : vector<2048x128xf32>
      %14 = tpu.matmul %11, %13, %cst {dimension_numbers = #tpu.dot_dimension_numbers<[1], [0], [0], [1], [0, 0, 1, 1], [], []>} : vector<2048x128xbf16>, vector<128x128xbf16>, vector<2048x128xf32> -> vector<2048x128xf32>
      %15 = arith.index_cast %3 : i32 to index
      %c0_8 = arith.constant 0 : index
      %16 = vector.load %arg8[%15, %c0_8] : memref<8192x128xf32, #tpu.memory_space<vmem>>, vector<2048x128xf32>
      tpu.vector_store %arg8[%15, %c0_8], %14 {strides = array<i32>} : memref<8192x128xf32, #tpu.memory_space<vmem>>, vector<2048x128xf32>,
      %c0_i32_9 = arith.constant 0 : i32
      %17 = arith.cmpi eq, %arg1, %c0_i32_9 : i32
      %c0_i32_10 = arith.constant 0 : i32
      %18 = arith.cmpi eq, %arg2, %c0_i32_10 : i32
      %19 = arith.andi %17, %18 : i1
      %20 = arith.extui %19 : i1 to i32
      %c0_i32_11 = arith.constant 0 : i32
      %21 = arith.cmpi ne, %20, %c0_i32_11 : i32
      scf.if %21 {
        %cst_22 = arith.constant 0.000000e+00 : f32
        %32 = vector.broadcast %cst_22 : f32 to vector<8x128xf32>
        %c0_23 = arith.constant 0 : index
        %c0_24 = arith.constant 0 : index
        %33 = vector.load %arg9[%c0_23, %c0_24] : memref<8x128xf32, #tpu.memory_space<vmem>>, vector<8x128xf32>
        tpu.vector_store %arg9[%c0_23, %c0_24], %32 {strides = array<i32>} : memref<8x128xf32, #tpu.memory_space<vmem>>, vector<8x128xf32>,
        %cst_25 = arith.constant 0.000000e+00 : f32
        %34 = vector.broadcast %cst_25 : f32 to vector<8x128xf32>
        %c0_26 = arith.constant 0 : index
        %c0_27 = arith.constant 0 : index
        %35 = vector.load %arg10[%c0_26, %c0_27] : memref<8x128xf32, #tpu.memory_space<vmem>>, vector<8x128xf32>
        tpu.vector_store %arg10[%c0_26, %c0_27], %34 {strides = array<i32>} : memref<8x128xf32, #tpu.memory_space<vmem>>, vector<8x128xf32>,
      } else {
      }
      %22 = vector.shape_cast %14 : vector<2048x128xf32> to vector<256x8x128xf32>
      %c0_12 = arith.constant 0 : index
      %c0_13 = arith.constant 0 : index
      %23 = vector.load %arg9[%c0_12, %c0_13] : memref<8x128xf32, #tpu.memory_space<vmem>>, vector<8x128xf32>
      %cst_14 = arith.constant dense<0.000000e+00> : vector<8x128xf32>
      %24 = vector.multi_reduction <add>, %22, %cst_14 [0] : vector<256x8x128xf32> to vector<8x128xf32>
      %25 = arith.addf %23, %24 : vector<8x128xf32>
      %c0_15 = arith.constant 0 : index
      %c0_16 = arith.constant 0 : index
      %26 = vector.load %arg9[%c0_15, %c0_16] : memref<8x128xf32, #tpu.memory_space<vmem>>, vector<8x128xf32>
      tpu.vector_store %arg9[%c0_15, %c0_16], %25 {strides = array<i32>} : memref<8x128xf32, #tpu.memory_space<vmem>>, vector<8x128xf32>,
      %c0_17 = arith.constant 0 : index
      %c0_18 = arith.constant 0 : index
      %27 = vector.load %arg10[%c0_17, %c0_18] : memref<8x128xf32, #tpu.memory_space<vmem>>, vector<8x128xf32>
      %28 = arith.mulf %22, %22 : vector<256x8x128xf32>
      %cst_19 = arith.constant dense<0.000000e+00> : vector<8x128xf32>
      %29 = vector.multi_reduction <add>, %28, %cst_19 [0] : vector<256x8x128xf32> to vector<8x128xf32>
      %30 = arith.addf %27, %29 : vector<8x128xf32>
      %c0_20 = arith.constant 0 : index
      %c0_21 = arith.constant 0 : index
      %31 = vector.load %arg10[%c0_20, %c0_21] : memref<8x128xf32, #tpu.memory_space<vmem>>, vector<8x128xf32>
      tpu.vector_store %arg10[%c0_20, %c0_21], %30 {strides = array<i32>} : memref<8x128xf32, #tpu.memory_space<vmem>>, vector<8x128xf32>,
    } else {
    }
    %c1_i32_1 = arith.constant 1 : i32
    %7 = arith.cmpi eq, %arg0, %c1_i32_1 : i32
    %8 = arith.extui %7 : i1 to i32
    %c0_i32_2 = arith.constant 0 : i32
    %9 = arith.cmpi ne, %8, %c0_i32_2 : i32
    scf.if %9 {
      %c0_i32_3 = arith.constant 0 : i32
      %10 = arith.cmpi eq, %arg1, %c0_i32_3 : i32
      %c0_i32_4 = arith.constant 0 : i32
      %11 = arith.cmpi eq, %arg2, %c0_i32_4 : i32
      %12 = arith.andi %10, %11 : i1
      %13 = arith.extui %12 : i1 to i32
      %c0_i32_5 = arith.constant 0 : i32
      %14 = arith.cmpi ne, %13, %c0_i32_5 : i32
      scf.if %14 {
        %c0_13 = arith.constant 0 : index
        %c0_14 = arith.constant 0 : index
        %29 = vector.load %arg9[%c0_13, %c0_14] : memref<8x128xf32, #tpu.memory_space<vmem>>, vector<8x128xf32>
        %cst_15 = arith.constant dense<0.000000e+00> : vector<128xf32>
        %30 = vector.multi_reduction <add>, %29, %cst_15 [0] : vector<8x128xf32> to vector<128xf32>
        %31 = vector.shape_cast %30 : vector<128xf32> to vector<1x128xf32>
        %c0_16 = arith.constant 0 : index
        %c0_17 = arith.constant 0 : index
        %32 = vector.load %arg10[%c0_16, %c0_17] : memref<8x128xf32, #tpu.memory_space<vmem>>, vector<8x128xf32>
        %cst_18 = arith.constant dense<0.000000e+00> : vector<128xf32>
        %33 = vector.multi_reduction <add>, %32, %cst_18 [0] : vector<8x128xf32> to vector<128xf32>
        %34 = vector.shape_cast %33 : vector<128xf32> to vector<1x128xf32>
        %cst_19 = arith.constant 1.22070313E-4 : f32
        %35 = vector.broadcast %cst_19 : f32 to vector<1x128xf32>
        %36 = arith.mulf %31, %35 : vector<1x128xf32>
        %cst_20 = arith.constant 1.22070313E-4 : f32
        %37 = vector.broadcast %cst_20 : f32 to vector<1x128xf32>
        %38 = arith.mulf %34, %37 : vector<1x128xf32>
        %39 = arith.mulf %36, %36 : vector<1x128xf32>
        %40 = arith.subf %38, %39 : vector<1x128xf32>
        %cst_21 = arith.constant 0.000000e+00 : f32
        %41 = vector.broadcast %cst_21 : f32 to vector<1x128xf32>
        %42 = arith.maximumf %40, %41 : vector<1x128xf32>
        %cst_22 = arith.constant 9.99999974E-6 : f32
        %43 = vector.broadcast %cst_22 : f32 to vector<1x128xf32>
        %44 = arith.addf %42, %43 : vector<1x128xf32>
        %45 = math.rsqrt %44 : vector<1x128xf32>
        %c0_23 = arith.constant 0 : index
        %c0_24 = arith.constant 0 : index
        %46 = vector.load %arg5[%c0_23, %c0_24] : memref<1x128xf32, #tpu.memory_space<vmem>>, vector<1x128xf32>
        %47 = arith.mulf %45, %46 : vector<1x128xf32>
        %c0_25 = arith.constant 0 : index
        %c0_26 = arith.constant 0 : index
        %48 = vector.load %arg11[%c0_25, %c0_26] : memref<1x128xf32, #tpu.memory_space<vmem>>, vector<1x128xf32>
        tpu.vector_store %arg11[%c0_25, %c0_26], %47 {strides = array<i32>} : memref<1x128xf32, #tpu.memory_space<vmem>>, vector<1x128xf32>,
        %c0_27 = arith.constant 0 : index
        %c0_28 = arith.constant 0 : index
        %49 = vector.load %arg6[%c0_27, %c0_28] : memref<1x128xf32, #tpu.memory_space<vmem>>, vector<1x128xf32>
        %50 = arith.mulf %36, %47 : vector<1x128xf32>
        %51 = arith.subf %49, %50 : vector<1x128xf32>
        %c0_29 = arith.constant 0 : index
        %c0_30 = arith.constant 0 : index
        %52 = vector.load %arg12[%c0_29, %c0_30] : memref<1x128xf32, #tpu.memory_space<vmem>>, vector<1x128xf32>
        tpu.vector_store %arg12[%c0_29, %c0_30], %51 {strides = array<i32>} : memref<1x128xf32, #tpu.memory_space<vmem>>, vector<1x128xf32>,
      } else {
      }
      %15 = arith.index_cast %3 : i32 to index
      %c0 = arith.constant 0 : index
      %16 = vector.load %arg8[%15, %c0] : memref<8192x128xf32, #tpu.memory_space<vmem>>, vector<2048x128xf32>
      %c0_6 = arith.constant 0 : index
      %c0_7 = arith.constant 0 : index
      %17 = vector.load %arg11[%c0_6, %c0_7] : memref<1x128xf32, #tpu.memory_space<vmem>>, vector<1x128xf32>
      %18 = vector.broadcast %17 : vector<1x128xf32> to vector<2048x128xf32>
      %19 = arith.mulf %16, %18 : vector<2048x128xf32>
      %c0_8 = arith.constant 0 : index
      %c0_9 = arith.constant 0 : index
      %20 = vector.load %arg12[%c0_8, %c0_9] : memref<1x128xf32, #tpu.memory_space<vmem>>, vector<1x128xf32>
      %21 = vector.broadcast %20 : vector<1x128xf32> to vector<2048x128xf32>
      %22 = arith.addf %19, %21 : vector<2048x128xf32>
      %cst = arith.constant 0.000000e+00 : f32
      %23 = vector.broadcast %cst : f32 to vector<2048x128xf32>
      %24 = arith.maximumf %22, %23 : vector<2048x128xf32>
      %25 = arith.truncf %24 : vector<2048x128xf32> to vector<2048x128xbf16>
      %c0_10 = arith.constant 0 : index
      %c0_11 = arith.constant 0 : index
      %c0_12 = arith.constant 0 : index
      %26 = vector.load %arg7[%c0_10, %c0_11, %c0_12] : memref<1x2048x128xbf16, #tpu.memory_space<vmem>>, vector<1x2048x128xbf16>
      %27 = vector.shape_cast %26 : vector<1x2048x128xbf16> to vector<2048x128xbf16>
      %28 = vector.shape_cast %25 : vector<2048x128xbf16> to vector<1x2048x128xbf16>
      tpu.vector_store %arg7[%c0_10, %c0_11, %c0_12], %28 {strides = array<i32>} : memref<1x2048x128xbf16, #tpu.memory_space<vmem>>, vector<1x2048x128xbf16>,
    } else {
    }
    return
  }
  func.func @transform_0(%arg0: i32, %arg1: i32, %arg2: i32) -> (i32, i32, i32) {
    %c1_i32 = arith.constant 1 : i32
    %0 = arith.subi %c1_i32, %arg0 : i32
    %1 = arith.muli %arg1, %0 : i32
    %c1_i32_0 = arith.constant 1 : i32
    %2 = arith.subi %c1_i32_0, %arg0 : i32
    %3 = arith.muli %arg2, %2 : i32
    %c0_i32 = arith.constant 0 : i32
    %c0_i32_1 = arith.constant 0 : i32
    return %1, %3, %c0_i32 : i32, i32, i32
  }
  func.func @transform_1(%arg0: i32, %arg1: i32, %arg2: i32) -> (i32, i32, i32) {
    %c1_i32 = arith.constant 1 : i32
    %0 = arith.subi %c1_i32, %arg0 : i32
    %1 = arith.muli %arg1, %0 : i32
    %c0_i32 = arith.constant 0 : i32
    %c0_i32_0 = arith.constant 0 : i32
    %c0_i32_1 = arith.constant 0 : i32
    return %1, %c0_i32, %c0_i32_0 : i32, i32, i32
  }
  func.func @transform_2(%arg0: i32, %arg1: i32, %arg2: i32) -> (i32, i32) {
    %c0_i32 = arith.constant 0 : i32
    %c0_i32_0 = arith.constant 0 : i32
    %c0_i32_1 = arith.constant 0 : i32
    return %c0_i32, %c0_i32_0 : i32, i32
  }
  func.func @transform_3(%arg0: i32, %arg1: i32, %arg2: i32) -> (i32, i32) {
    %c0_i32 = arith.constant 0 : i32
    %c0_i32_0 = arith.constant 0 : i32
    %c0_i32_1 = arith.constant 0 : i32
    return %c0_i32, %c0_i32_0 : i32, i32
  }
  func.func @transform_4(%arg0: i32, %arg1: i32, %arg2: i32) -> (i32, i32, i32) {
    %0 = arith.muli %arg1, %arg0 : i32
    %1 = arith.muli %arg2, %arg0 : i32
    %c0_i32 = arith.constant 0 : i32
    %c0_i32_0 = arith.constant 0 : i32
    return %0, %1, %c0_i32 : i32, i32, i32
  }
}

</mosaic_0001>

<bundles_post_ra>
// kernel: generator_forward.5
= control target key start
LH: loop header
LB: loop body
LE: loop exit
PB: predicated region body
PF: predicated region fallthrough
CT: control target
= control target key end

     0   :  { %s837_s15 = smov 0   ;;  %s839_s16 = smov 0   ;;  %s910_s0 = inlined_call_operand.vmem [shape: bf16[1,32,128], index: 0, kind: input, shape index: {}]   ;;  %s911_s1 = inlined_call_operand.vmem [shape: bf16[1,128,128], index: 1, kind: input, shape index: {}]   ;;  %s912_s2 = inlined_call_operand.vmem [shape: f32[1,128], index: 2, kind: input, shape index: {}]   ;;  %s913_s3 = inlined_call_operand.vmem [shape: f32[1,128], index: 3, kind: input, shape index: {}]   ;;  %s914_s4 = inlined_call_operand.vmem [shape: bf16[1,32,128], index: 4, kind: output, shape index: {}]  }
   0x1   :  { %s841_s17 = smov 0  }
   0x2 LB: > { %s33_s18 = sadd.s32 1, %s806_s16  ;;  %p683_p0 = scmp.ge.s32.totalorder %s810_s17, 1  ;;  %s810_s17 = sphi %s841_s17, %s14_s17   ;;  %s806_s16 = sphi %s839_s16, %s916_s16   ;;  %s802_s15 = sphi %s837_s15, %s915_s15  }
   0x3   : > { %p35_p1 = scmp.ge.s32.totalorder %s33_s18, 2  ;;  %p224_p2 = scmp.lt.s32.totalorder %s810_s17, 3 }
   0x5   : > { %s918_s18 = smov (%p35_p1, %s33_s18), 0  ;;  %p225_p3 = pnand %p683_p0, %p224_p2 }
   0x6   : > { %p684_p4 = scmp.ne.s32.totalorder (!%p225_p3), %s802_s15, 0 }
   0x7   : > { %228 = sbr.rel (%p225_p3) target bundleno = 323 (0x143), region = 36 }
   0xc   : > { %315 = sbr.rel (%p684_p4) target bundleno = 258 (0x102), region = 40 }
  0x11   : > { %v776_v0 = vld [vmem:[%s911_s1 + $0x38] sm:$0xff]   ;;  %v777_v1 = vld [vmem:[%s911_s1 + $0x30] sm:$0xff]   ;;  %v778_v2 = vld [vmem:[%s911_s1 + $0x28] sm:$0xff]  }
  0x12   : > { %731 = vmatprep.subr.bf16.mxu0 %v776_v0  ;;  %v779_v3 = vld [vmem:[%s911_s1 + $0x20] sm:$0xff]   ;;  %v780_v5 = vld [vmem:[%s911_s1 + $0x18] sm:$0xff]   ;;  %v781_v6 = vld [vmem:[%s911_s1 + $0x10] sm:$0xff]  }
  0x13   : > { %732 = vmatpush3.bf16.msra.mxu0 %v776_v0  ;;  %v784_v4 = vld [vmem:[%s910_s0] sm:$0xff]   ;;  %v782_v7 = vld [vmem:[%s911_s1 + $0x8] sm:$0xff]  }
  0x14   : > { %733 = vmatprep.subr.bf16.mxu0 %v777_v1  ;;  %747 = vmatprep.mubr.bf16.mxu0 %v784_v4  ;;  %v783_v8 = vld [vmem:[%s911_s1] sm:$0xff]   ;;  %v785_v9 = vld [vmem:[%s910_s0 + $0x8] sm:$0xff]  }
  0x17   : > { %734 = vmatpush3.bf16.msra.mxu0 %v777_v1 }
  0x18   : > { %735 = vmatprep.subr.bf16.mxu0 %v778_v2 }
  0x1b   : > { %736 = vmatpush3.bf16.msra.mxu0 %v778_v2 }
  0x1c   : > { %737 = vmatprep.subr.bf16.mxu0 %v779_v3 }
  0x1f   : > { %738 = vmatpush3.bf16.msra.mxu0 %v779_v3 }
  0x20   : > { %739 = vmatprep.subr.bf16.mxu0 %v780_v5 }
  0x23   : > { %740 = vmatpush3.bf16.msra.mxu0 %v780_v5 }
  0x24   : > { %741 = vmatprep.subr.bf16.mxu0 %v781_v6 }
  0x27   : > { %742 = vmatpush3.bf16.msra.mxu0 %v781_v6 }
  0x28   : > { %743 = vmatprep.subr.bf16.mxu0 %v782_v7 }
  0x2b   : > { %744 = vmatpush3.bf16.msra.mxu0 %v782_v7 }
  0x2c   : > { %745 = vmatprep.subr.bf16.mxu0 %v783_v8 }
  0x2f   : > { %746 = vmatpush3.bf16.msra.mxu0 %v783_v8 }
  0x32   : > { %748 = vmatmul.mubr.bf16.vlgmr.msra.gmra.mxu0 %v785_v9 }
  0xf2   : > { %v749_v10 = vpop.f32.mrf.mxu0 }
  0xf3   : > { %448 = vst [vmem:[#allocation2 + $0x18] sm:$0xff] %v749_v10  ;;  %v467_v17 = vmul.f32 %v749_v10, %v749_v10 }
  0xf4   : > { %v430_v11 = vpop.f32.mrf.mxu0 }
  0xf5   : > { %446 = vst [vmem:[#allocation2 + $0x10] sm:$0xff] %v430_v11  ;;  %v465_v14 = vmul.f32 %v430_v11, %v430_v11 }
  0xf6   : > { %v750_v12 = vpop.f32.mrf.mxu0 }
  0xf7   : > { %449 = vst [vmem:[#allocation2 + $0x8] sm:$0xff] %v750_v12  ;;  %v468_v20 = vmul.f32 %v750_v12, %v750_v12 }
  0xf8   : > { %v433_v13 = vpop.f32.mrf.mxu0 }
  0xf9   : > { %447 = vst [vmem:[#allocation2] sm:$0xff] %v433_v13  ;;  %v459_v15 = vadd.f32 %v433_v13, %v430_v11  ;;  %v466_v16 = vmul.f32 %v433_v13, %v433_v13 }
  0xfb   : > { %v460_v18 = vadd.f32 %v749_v10, %v459_v15  ;;  %v469_v19 = vadd.f32 %v466_v16, %v465_v14 }
  0xfd   : > { %v461_v21 = vadd.f32 %v750_v12, %v460_v18  ;;  %v470_v22 = vadd.f32 %v469_v19, %v467_v17 }
  0xff   : > { %v471_v23 = vadd.f32 %v470_v22, %v468_v20  ;;  %463 = vst [vmem:[#allocation3] sm:$0xff] %v461_v21 }
 0x101   : > { %473 = vst [vmem:[#allocation4] sm:$0xff] %v471_v23 }
 0x102 PF: > { %p695_p5 = scmp.ne.s32.totalorder %s802_s15, 1 }
 0x104   : > { %477 = sbr.rel (%p695_p5) target bundleno = 323 (0x143), region = 48 }
 0x109   : > { %v484_v24 = vld [vmem:[#allocation3] sm:$0xff]  ;;  %v491_v25 = vld [vmem:[#allocation4] sm:$0xff]  ;;  %v513_v50 = vld [vmem:[#allocation2 + $0x10] sm:$0xff] }
 0x10a   : > { %v485_v26 = vrot.slane %v484_v24, 4  ;;  %v492_v27 = vrot.slane %v491_v25, 4  ;;  %v505_v44 = vld [vmem:[%s912_s2] sm:$0x1]  ;;  %v515_v52 = vld [vmem:[#allocation2 + $0x18] sm:$0xff]  ;;  %v516_v53 = vld [vmem:[#allocation2 + $0x8] sm:$0xff] }
 0x10b   : > { %v508_v47 = vld [vmem:[%s913_s3] sm:$0x1] }
 0x10c   : > { %v486_v28 = vadd.f32 %v485_v26, %v484_v24  ;;  %v493_v29 = vadd.f32 %v492_v27, %v491_v25  ;;  %v514_v51 = vld [vmem:[#allocation2] sm:$0xff] }
 0x10e   : > { %v487_v30 = vrot.slane %v486_v28, 2  ;;  %v494_v31 = vrot.slane %v493_v29, 2 }
 0x110   : > { %v488_v32 = vadd.f32 %v487_v30, %v486_v28  ;;  %v495_v33 = vadd.f32 %v494_v31, %v493_v29 }
 0x112   : > { %v489_v34 = vrot.slane %v488_v32, 1  ;;  %v496_v35 = vrot.slane %v495_v33, 1 }
 0x114   : > { %v490_v36 = vadd.f32 %v489_v34, %v488_v32  ;;  %v497_v37 = vadd.f32 %v496_v35, %v495_v33 }
 0x116   : > { %v498_v38 = vmul.f32 0.03125, %v490_v36  ;;  %v499_v39 = vmul.f32 0.03125, %v497_v37 }
 0x118   : > { %v500_v40 = vmul.f32 %v498_v38, %v498_v38 }
 0x11a   : > { %v501_v41 = vsub.f32 %v499_v39, %v500_v40 }
 0x11c   : > { %v502_v42 = vmax.f32 %v501_v41, 0.0 }
 0x11e   : > { %v503_v43 = vadd.f32 1e-05, %v502_v42 }
 0x120   : > { %786 = vrsqrt.f32 %v503_v43 }
 0x12d   : > { %v787_v45 = vpop.eup %786 }
 0x12e   : > { %v506_v46 = vmul.f32 %v787_v45, %v505_v44 }
 0x130   : > { %507 = vst [vmem:[#allocation5] sm:$0x1] %v506_v46  ;;  %v509_v48 = vmul.f32 %v506_v46, %v498_v38 }
 0x132   : > { %v510_v49 = vsub.f32 %v508_v47, %v509_v48 }
 0x134   : > { %511 = vst [vmem:[#allocation6] sm:$0x1] %v510_v49 }
 0x137   : > { %v696_v54 = vld [vmem:[#allocation5] ss:$0 sm:$0xff] }
 0x138   : > { %v524_v55 = vmul.f32 %v696_v54, %v513_v50  ;;  %v525_v56 = vmul.f32 %v696_v54, %v514_v51  ;;  %v526_v57 = vmul.f32 %v696_v54, %v515_v52  ;;  %v527_v58 = vmul.f32 %v696_v54, %v516_v53 }
 0x13b   : > { %v697_v59 = vld [vmem:[#allocation6] ss:$0 sm:$0xff] }
 0x13c   : > { %v535_v60 = vadd.f32 %v697_v59, %v524_v55  ;;  %v536_v61 = vadd.f32 %v697_v59, %v525_v56  ;;  %v537_v62 = vadd.f32 %v697_v59, %v526_v57  ;;  %v538_v63 = vadd.f32 %v697_v59, %v527_v58 }
 0x13e   : > { %v539_v0 = vmax.f32 %v535_v60, 0.0  ;;  %v540_v1 = vmax.f32 %v536_v61, 0.0  ;;  %v541_v2 = vmax.f32 %v537_v62, 0.0  ;;  %v542_v3 = vmax.f32 %v538_v63, 0.0 }
 0x140   : > { %v713_v4 = vpack.c.bf16 %v540_v1, %v539_v0  ;;  %v718_v5 = vpack.c.bf16 %v542_v3, %v541_v2 }
 0x142   : > { %714 = vst [vmem:[%s914_s4] sm:$0xff] %v713_v4   ;;  %720 = vst [vmem:[%s914_s4 + $0x8] sm:$0xff] %v718_v5  }
 0x143 PF: > { %s14_s17 = sadd.s32 1, %s810_s17   ;;  %s915_s15 = smov %s806_s16 }
 0x144   : > { %p11_p6 = scmp.ge.s32.totalorder %s14_s17, 4   ;;  %s916_s16 = smov %s918_s18 }
 0x146   :  { %13 = sbr.rel (!%p11_p6) target bundleno = 2 (0x2), region = 87 }

// kernel: generator_forward.6
= control target key start
LH: loop header
LB: loop body
LE: loop exit
PB: predicated region body
PF: predicated region fallthrough
CT: control target
= control target key end

     0   :  { %s997_s15 = smov 0   ;;  %s999_s16 = smov 0   ;;  %s1104_s0 = inlined_call_operand.vmem [shape: bf16[4,32,256], index: 0, kind: input, shape index: {}]   ;;  %s1105_s1 = inlined_call_operand.vmem [shape: bf16[4,256,128], index: 1, kind: input, shape index: {}]   ;;  %s1106_s2 = inlined_call_operand.vmem [shape: f32[1,128], index: 2, kind: input, shape index: {}]   ;;  %s1107_s3 = inlined_call_operand.vmem [shape: f32[1,128], index: 3, kind: input, shape index: {}]   ;;  %s1108_s4 = inlined_call_operand.vmem [shape: bf16[4,32,128], index: 4, kind: output, shape index: {}]  }
   0x1   :  { %s1001_s17 = smov 0   ;;  %s1003_s18 = smov 0  }
   0x2   :  { %s1005_s19 = smov 0  }
   0x3 LB: > { %s29_s20 = sadd.s32 1, %s961_s17  ;;  %s33_s21 = sadd.s32 1, %s965_s18  ;;  %s969_s19 = sphi %s1005_s19, %s14_s19   ;;  %s965_s18 = sphi %s1003_s18, %s1112_s18   ;;  %s961_s17 = sphi %s1001_s17, %s1111_s17   ;;  %s957_s16 = sphi %s999_s16, %s1110_s16   ;;  %s953_s15 = sphi %s997_s15, %s1109_s15  }
   0x4   : > { %p31_p0 = scmp.ge.s32.totalorder %s29_s20, 4  ;;  %p762_p1 = scmp.ge.s32.totalorder %s969_s19, 1 }
   0x5   : > { %p225_p2 = scmp.lt.s32.totalorder %s969_s19, 9 }
   0x6   : > { %s1114_s20 = smov (%p31_p0, %s29_s20), 0  ;;  %s1116_s21 = smov (!%p31_p0, %s33_s21), %s965_s18 }
   0x7   : > { %p226_p3 = pnand %p762_p1, %p225_p2  ;;  %p35_p4 = scmp.ge.s32.totalorder %s1116_s21, 2 }
   0x8   : > { %s272_s22 = ssub.s32 (!%p226_p3), 1, %s957_s16  ;;  %s298_s23 = smul.u32 (!%p226_p3), %s953_s15, %s957_s16 }
   0x9   : > { %s1118_s21 = smov (%p35_p4, %s1116_s21), 0  ;;  %229 = sbr.rel (%p226_p3) target bundleno = 334 (0x14e), region = 36 }
   0xa   : > { %s273_s24 = smul.u32 (!%p226_p3), %s953_s15, %s272_s22  ;;  %s769_s25 = sshll.u32 (!%p226_p3), %s953_s15, 5 }
   0xb   : > { %p301_p5 = scmp.lt.s32.totalorder (!%p226_p3), %s298_s23, 3  ;;  %p770_p7 = scmp.ne.s32.totalorder (!%p226_p3), %s957_s16, 0 }
   0xc   : > { %p276_p6 = scmp.lt.s32.totalorder (!%p226_p3), %s273_s24, 3 }
   0xe   : > { %s1120_s23 = smov (!%p301_p5, %s298_s23), 3  ;;  %s1122_s24 = smov (!%p276_p6, %s273_s24), 3 }
   0xf   : > { %s804_s26 = sshll.u32 %s1120_s23, 4  ;;  %s802_s27 = sshll.u32 %s1122_s24, 5 }
  0x10   : > { %s803_s28 = sshll.u32 %s1122_s24, 7  ;;  %s1039_s5 = scalar_lea.vmem %s1104_s0, %s802_s27 }
  0x11   : > { %s1044_s8 = scalar_lea.vmem %s1105_s1, %s803_s28  ;;  %s1049_s11 = scalar_lea.vmem %s1108_s4, %s804_s26 }
  0x12   : > { %318 = sbr.rel (%p770_p7) target bundleno = 269 (0x10d), region = 40  ;;  %p525_p8 = scmp.eq.s32.totalorder (!%p770_p7), %s953_s15, 0 }
  0x13   : > { %s520_s12 = scalar_lea.vmem (!%p770_p7), [#allocation2], %s769_s25 }
  0x17   : > { %v907_v0 = vld [vmem:[%s1044_s8 + $0x78] sm:$0xff]   ;;  %v909_v2 = vld [vmem:[%s1044_s8 + $0x70] sm:$0xff]   ;;  %v911_v4 = vld [vmem:[%s1044_s8 + $0x68] sm:$0xff]   ;;  %v971_v32 = vmov (%p525_p8), 0.0  }
  0x18   : > { %v908_v1 = vld [vmem:[%s1044_s8 + $0x38] sm:$0xff]   ;;  %822 = vmatprep.subr.bf16.mxu0 %v907_v0  ;;  %850 = vmatprep.subr.bf16.mxu1 %v907_v0  ;;  %v910_v3 = vld [vmem:[%s1044_s8 + $0x30] sm:$0xff]   ;;  %v912_v5 = vld [vmem:[%s1044_s8 + $0x28] sm:$0xff]   ;;  %531 = vst [vmem:[#allocation3] sm:$0xff] (%p525_p8), %v971_v32 }
  0x19   : > { %823 = vmatpush3.bf16.msra.mxu0 %v908_v1  ;;  %858 = vmatpush3.bf16.msra.mxu1 %v908_v1  ;;  %v913_v6 = vld [vmem:[%s1044_s8 + $0x60] sm:$0xff]   ;;  %v915_v8 = vld [vmem:[%s1044_s8 + $0x58] sm:$0xff]   ;;  %v917_v10 = vld [vmem:[%s1044_s8 + $0x50] sm:$0xff]   ;;  %532 = vst [vmem:[#allocation4] sm:$0xff] (%p525_p8), %v971_v32 }
  0x1a   : > { %824 = vmatprep.subr.bf16.mxu0 %v909_v2  ;;  %851 = vmatprep.subr.bf16.mxu1 %v909_v2  ;;  %v914_v7 = vld [vmem:[%s1044_s8 + $0x20] sm:$0xff]   ;;  %v916_v9 = vld [vmem:[%s1044_s8 + $0x18] sm:$0xff]   ;;  %v918_v13 = vld [vmem:[%s1044_s8 + $0x10] sm:$0xff]  }
  0x1b   : > { %v925_v11 = vld [vmem:[%s1039_s5 + $0x4] ss:$8 sps:$4 sm:$0xff]   ;;  %v928_v12 = vld [vmem:[%s1039_s5 + $0x14] ss:$8 sps:$4 sm:$0xff]   ;;  %v923_v18 = vld [vmem:[%s1039_s5] ss:$8 sps:$4 sm:$0xff]  }
  0x1c   : > { %v919_v14 = vld [vmem:[%s1044_s8 + $0x48] sm:$0xff]   ;;  %503 = vmatprep.mubr.bf16.mxu0 %v925_v11  ;;  %511 = vmatprep.mubr.bf16.mxu1 %v928_v12  ;;  %v921_v16 = vld [vmem:[%s1044_s8 + $0x40] sm:$0xff]   ;;  %v926_v19 = vld [vmem:[%s1039_s5 + $0x10] ss:$8 sps:$4 sm:$0xff]  }
  0x1d   : > { %825 = vmatpush3.bf16.msra.mxu0 %v910_v3  ;;  %859 = vmatpush3.bf16.msra.mxu1 %v910_v3  ;;  %v920_v15 = vld [vmem:[%s1044_s8 + $0x8] sm:$0xff]   ;;  %v922_v17 = vld [vmem:[%s1044_s8] sm:$0xff]  }
  0x1e   : > { %826 = vmatprep.subr.bf16.mxu0 %v911_v4  ;;  %852 = vmatprep.subr.bf16.mxu1 %v911_v4 }
  0x21   : > { %827 = vmatpush3.bf16.msra.mxu0 %v912_v5  ;;  %860 = vmatpush3.bf16.msra.mxu1 %v912_v5 }
  0x22   : > { %828 = vmatprep.subr.bf16.mxu0 %v913_v6  ;;  %853 = vmatprep.subr.bf16.mxu1 %v913_v6 }
  0x25   : > { %829 = vmatpush3.bf16.msra.mxu0 %v914_v7  ;;  %861 = vmatpush3.bf16.msra.mxu1 %v914_v7 }
  0x26   : > { %830 = vmatprep.subr.bf16.mxu0 %v915_v8  ;;  %854 = vmatprep.subr.bf16.mxu1 %v915_v8 }
  0x29   : > { %831 = vmatpush3.bf16.msra.mxu0 %v916_v9  ;;  %862 = vmatpush3.bf16.msra.mxu1 %v916_v9 }
  0x2a   : > { %832 = vmatprep.subr.bf16.mxu0 %v917_v10  ;;  %855 = vmatprep.subr.bf16.mxu1 %v917_v10 }
  0x2d   : > { %833 = vmatpush3.bf16.msra.mxu0 %v918_v13  ;;  %863 = vmatpush3.bf16.msra.mxu1 %v918_v13 }
  0x2e   : > { %834 = vmatprep.subr.bf16.mxu0 %v919_v14  ;;  %856 = vmatprep.subr.bf16.mxu1 %v919_v14 }
  0x31   : > { %835 = vmatpush3.bf16.msra.mxu0 %v920_v15  ;;  %864 = vmatpush3.bf16.msra.mxu1 %v920_v15 }
  0x32   : > { %836 = vmatprep.subr.bf16.mxu0 %v921_v16  ;;  %857 = vmatprep.subr.bf16.mxu1 %v921_v16 }
  0x35   : > { %837 = vmatpush3.bf16.msra.mxu0 %v922_v17  ;;  %865 = vmatpush3.bf16.msra.mxu1 %v922_v17 }
  0x38   : > { %504 = vmatmul.mubr.bf16.vlgmr.msra.gmra.mxu0 %v923_v18  ;;  %512 = vmatmul.mubr.bf16.vlgmr.msra.gmra.mxu1 %v926_v19 }
  0xf8   : > { %v838_v20 = vpop.f32.mrf.mxu0  ;;  %v844_v21 = vpop.f32.mrf.mxu1 }
  0xfa   : > { %v839_v22 = vpop.f32.mrf.mxu0  ;;  %v845_v23 = vpop.f32.mrf.mxu1 }
  0xfb   : > { %v840_v24 = vadd.f32 %v839_v22, %v838_v20  ;;  %v846_v25 = vadd.f32 %v845_v23, %v844_v21 }
  0xfc   : > { %v841_v26 = vpop.f32.mrf.mxu0  ;;  %v847_v27 = vpop.f32.mrf.mxu1 }
  0xfd   : > { %521 = vst [vmem:[%s520_s12] sm:$0xff] %v840_v24  ;;  %523 = vst [vmem:[%s520_s12 + $0x10] sm:$0xff] %v846_v25  ;;  %530 = sbr.rel (!%p525_p8) target bundleno = 258 (0x102), region = 44 }
  0xfe   : > { %v842_v28 = vpop.f32.mrf.mxu0  ;;  %v848_v29 = vpop.f32.mrf.mxu1 }
  0xff   : > { %v843_v30 = vadd.f32 %v842_v28, %v841_v26  ;;  %v849_v31 = vadd.f32 %v848_v29, %v847_v27 }
 0x101   : > { %522 = vst [vmem:[%s520_s12 + $0x8] sm:$0xff] %v843_v30  ;;  %524 = vst [vmem:[%s520_s12 + $0x18] sm:$0xff] %v849_v31 }
 0x102 PF: > { %v534_v33 = vadd.f32 %v843_v30, %v840_v24  ;;  %v540_v34 = vmul.f32 %v840_v24, %v840_v24  ;;  %v541_v35 = vmul.f32 %v843_v30, %v843_v30  ;;  %v542_v36 = vmul.f32 %v846_v25, %v846_v25  ;;  %v533_v40 = vld [vmem:[#allocation3] sm:$0xff]  ;;  %v539_v43 = vld [vmem:[#allocation4] sm:$0xff] }
 0x103   : > { %v543_v38 = vmul.f32 %v849_v31, %v849_v31 }
 0x104   : > { %v535_v37 = vadd.f32 %v846_v25, %v534_v33  ;;  %v544_v39 = vadd.f32 %v541_v35, %v540_v34 }
 0x106   : > { %v536_v41 = vadd.f32 %v849_v31, %v535_v37  ;;  %v545_v42 = vadd.f32 %v544_v39, %v542_v36 }
 0x108   : > { %v537_v44 = vadd.f32 %v536_v41, %v533_v40  ;;  %v546_v45 = vadd.f32 %v545_v42, %v543_v38 }
 0x10a   : > { %538 = vst [vmem:[#allocation3] sm:$0xff] %v537_v44  ;;  %v547_v46 = vadd.f32 %v546_v45, %v539_v43 }
 0x10c   : > { %548 = vst [vmem:[#allocation4] sm:$0xff] %v547_v46 }
 0x10d PF: > { %p792_p9 = scmp.ne.s32.totalorder %s957_s16, 1 }
 0x10e   : > { %p553_p10 = scmp.eq.s32.totalorder (!%p792_p9), %s953_s15, 0 }
 0x10f   : > { %552 = sbr.rel (%p792_p9) target bundleno = 334 (0x14e), region = 48 }
 0x114   : > { %558 = sbr.rel (!%p553_p10) target bundleno = 320 (0x140), region = 52  ;;  %v559_v47 = vld [vmem:[#allocation3] sm:$0xff] (%p553_p10)  ;;  %v566_v48 = vld [vmem:[#allocation4] sm:$0xff] (%p553_p10) }
 0x115   : > { %v560_v49 = vrot.slane (%p553_p10), %v559_v47, 4  ;;  %v567_v50 = vrot.slane (%p553_p10), %v566_v48, 4  ;;  %v580_v3 = vld [vmem:[%s1106_s2] sm:$0x1] (%p553_p10) }
 0x116   : > { %v583_v6 = vld [vmem:[%s1107_s3] sm:$0x1] (%p553_p10) }
 0x117   : > { %v561_v51 = vadd.f32 (%p553_p10), %v560_v49, %v559_v47  ;;  %v568_v52 = vadd.f32 (%p553_p10), %v567_v50, %v566_v48 }
 0x119   : > { %v562_v53 = vrot.slane %v561_v51, 2  ;;  %v569_v54 = vrot.slane %v568_v52, 2 }
 0x11b   : > { %v563_v55 = vadd.f32 %v562_v53, %v561_v51  ;;  %v570_v56 = vadd.f32 %v569_v54, %v568_v52 }
 0x11d   : > { %v564_v57 = vrot.slane %v563_v55, 1  ;;  %v571_v58 = vrot.slane %v570_v56, 1 }
 0x11f   : > { %v565_v59 = vadd.f32 %v564_v57, %v563_v55  ;;  %v572_v60 = vadd.f32 %v571_v58, %v570_v56 }
 0x121   : > { %v573_v61 = vmul.f32 0.0078125, %v565_v59  ;;  %v574_v62 = vmul.f32 0.0078125, %v572_v60 }
 0x123   : > { %v575_v63 = vmul.f32 %v573_v61, %v573_v61 }
 0x125   : > { %v576_v0 = vsub.f32 %v574_v62, %v575_v63 }
 0x127   : > { %v577_v1 = vmax.f32 %v576_v0, 0.0 }
 0x129   : > { %v578_v2 = vadd.f32 1e-05, %v577_v1 }
 0x12b   : > { %929 = vrsqrt.f32 %v578_v2 }
 0x138   : > { %v930_v4 = vpop.eup %929 }
 0x139   : > { %v581_v5 = vmul.f32 %v930_v4, %v580_v3 }
 0x13b   : > { %582 = vst [vmem:[#allocation5] sm:$0x1] %v581_v5  ;;  %v584_v7 = vmul.f32 %v581_v5, %v573_v61 }
 0x13d   : > { %v585_v8 = vsub.f32 %v583_v6, %v584_v7 }
 0x13f   : > { %586 = vst [vmem:[#allocation6] sm:$0x1] %v585_v8 }
 0x140 PF: > { %s587_s23 = scalar_lea.vmem [#allocation2], %s769_s25 }
 0x141   : > { %v588_v11 = vld [vmem:[%s587_s23] sm:$0xff]  ;;  %v589_v12 = vld [vmem:[%s587_s23 + $0x8] sm:$0xff]  ;;  %v590_v13 = vld [vmem:[%s587_s23 + $0x10] sm:$0xff] }
 0x142   : > { %v794_v9 = vld [vmem:[#allocation5] ss:$0 sm:$0xff]  ;;  %v591_v16 = vld [vmem:[%s587_s23 + $0x18] sm:$0xff] }
 0x143   : > { %v599_v14 = vmul.f32 %v794_v9, %v588_v11  ;;  %v600_v15 = vmul.f32 %v794_v9, %v589_v12  ;;  %v601_v17 = vmul.f32 %v794_v9, %v590_v13  ;;  %v602_v18 = vmul.f32 %v794_v9, %v591_v16 }
 0x146   : > { %v795_v10 = vld [vmem:[#allocation6] ss:$0 sm:$0xff] }
 0x147   : > { %v610_v19 = vadd.f32 %v795_v10, %v599_v14  ;;  %v611_v20 = vadd.f32 %v795_v10, %v600_v15  ;;  %v612_v21 = vadd.f32 %v795_v10, %v601_v17  ;;  %v613_v22 = vadd.f32 %v795_v10, %v602_v18 }
 0x149   : > { %v614_v23 = vmax.f32 %v610_v19, 0.0  ;;  %v615_v24 = vmax.f32 %v611_v20, 0.0  ;;  %v616_v25 = vmax.f32 %v612_v21, 0.0  ;;  %v617_v26 = vmax.f32 %v613_v22, 0.0 }
 0x14b   : > { %v814_v27 = vpack.c.bf16 %v615_v24, %v614_v23  ;;  %v819_v28 = vpack.c.bf16 %v617_v26, %v616_v25 }
 0x14d   : > { %815 = vst [vmem:[%s1049_s11] sm:$0xff] %v814_v27   ;;  %821 = vst [vmem:[%s1049_s11 + $0x8] sm:$0xff] %v819_v28  }
 0x14e PF: > { %s14_s19 = sadd.s32 1, %s969_s19   ;;  %s1109_s15 = smov %s961_s17 }
 0x14f   : > { %p11_p11 = scmp.ge.s32.totalorder %s14_s19, 10   ;;  %s1110_s16 = smov %s965_s18 }
 0x150   : > { %s1111_s17 = smov %s1114_s20  ;;  %s1112_s18 = smov %s1118_s21 }
 0x151   :  { %13 = sbr.rel (!%p11_p11) target bundleno = 3 (0x3), region = 87 }

// kernel: generator_forward.7
= control target key start
LH: loop header
LB: loop body
LE: loop exit
PB: predicated region body
PF: predicated region fallthrough
CT: control target
= control target key end

     0   :  { %s1241_s15 = smov 0   ;;  %s1243_s16 = smov 0   ;;  %s1410_s0 = inlined_call_operand.vmem [shape: bf16[4,128,128], index: 0, kind: input, shape index: {}]   ;;  %s1411_s1 = inlined_call_operand.vmem [shape: bf16[4,128,128], index: 1, kind: input, shape index: {}]   ;;  %s1412_s2 = inlined_call_operand.vmem [shape: f32[1,128], index: 2, kind: input, shape index: {}]   ;;  %s1413_s3 = inlined_call_operand.vmem [shape: f32[1,128], index: 3, kind: input, shape index: {}]   ;;  %s1414_s4 = inlined_call_operand.vmem [shape: bf16[4,128,128], index: 4, kind: output, shape index: {}]  }
   0x1   :  { %s1245_s17 = smov 0   ;;  %s1247_s18 = smov 0  }
   0x2   :  { %s1249_s19 = smov 0  }
   0x3 LB: > { %s29_s20 = sadd.s32 1, %s1205_s17  ;;  %s33_s21 = sadd.s32 1, %s1209_s18  ;;  %s1213_s19 = sphi %s1249_s19, %s14_s19   ;;  %s1209_s18 = sphi %s1247_s18, %s1418_s18   ;;  %s1205_s17 = sphi %s1245_s17, %s1417_s17   ;;  %s1201_s16 = sphi %s1243_s16, %s1416_s16   ;;  %s1197_s15 = sphi %s1241_s15, %s1415_s15  }
   0x4   : > { %p31_p0 = scmp.ge.s32.totalorder %s29_s20, 4  ;;  %p936_p1 = scmp.ge.s32.totalorder %s1213_s19, 1 }
   0x5   : > { %p224_p2 = scmp.lt.s32.totalorder %s1213_s19, 9 }
   0x6   : > { %s1420_s20 = smov (%p31_p0, %s29_s20), 0  ;;  %s1422_s21 = smov (!%p31_p0, %s33_s21), %s1209_s18 }
   0x7   : > { %p225_p3 = pnand %p936_p1, %p224_p2  ;;  %p35_p4 = scmp.ge.s32.totalorder %s1422_s21, 2 }
   0x8   : > { %s270_s22 = ssub.s32 (!%p225_p3), 1, %s1201_s16  ;;  %s295_s23 = smul.u32 (!%p225_p3), %s1197_s15, %s1201_s16 }
   0x9   : > { %s1424_s21 = smov (%p35_p4, %s1422_s21), 0  ;;  %228 = sbr.rel (%p225_p3) target bundleno = 372 (0x174), region = 36 }
   0xa   : > { %s271_s24 = smul.u32 (!%p225_p3), %s1197_s15, %s270_s22  ;;  %s943_s25 = sshll.u32 (!%p225_p3), %s1197_s15, 7 }
   0xb   : > { %p298_p5 = scmp.lt.s32.totalorder (!%p225_p3), %s295_s23, 3  ;;  %p944_p7 = scmp.ne.s32.totalorder (!%p225_p3), %s1201_s16, 0 }
   0xc   : > { %p274_p6 = scmp.lt.s32.totalorder (!%p225_p3), %s271_s24, 3 }
   0xe   : > { %s1426_s23 = smov (!%p298_p5, %s295_s23), 3  ;;  %s1428_s24 = smov (!%p274_p6, %s271_s24), 3 }
   0xf   : > { %s986_s26 = sshll.u32 %s1426_s23, 6  ;;  %s984_s27 = sshll.u32 %s1428_s24, 6 }
  0x10   : > { %s1283_s30 = scalar_lea.vmem %s1414_s4, %s986_s26  ;;  %s1288_s7 = scalar_lea.vmem %s1410_s0, %s984_s27 }
  0x11   : > { %s1293_s10 = scalar_lea.vmem %s1411_s1, %s984_s27  ;;  %315 = sbr.rel (%p944_p7) target bundleno = 298 (0x12a), region = 40 }
  0x12   : > { %p558_p8 = scmp.eq.s32.totalorder (!%p944_p7), %s1197_s15, 0  ;;  %s541_s11 = scalar_lea.vmem (!%p944_p7), [#allocation2], %s943_s25 }
  0x16   : > { %v1157_v0 = vld [vmem:[%s1293_s10 + $0x38] sm:$0xff]   ;;  %v1158_v1 = vld [vmem:[%s1293_s10 + $0x30] sm:$0xff]   ;;  %v1159_v2 = vld [vmem:[%s1293_s10 + $0x28] sm:$0xff]   ;;  %v1215_v32 = vmov (%p558_p8), 0.0  }
  0x17   : > { %1068 = vmatprep.subr.bf16.mxu0 %v1157_v0  ;;  %1100 = vmatprep.subr.bf16.mxu1 %v1157_v0  ;;  %v1160_v3 = vld [vmem:[%s1293_s10 + $0x20] sm:$0xff]   ;;  %v1161_v6 = vld [vmem:[%s1293_s10 + $0x18] sm:$0xff]   ;;  %v1162_v7 = vld [vmem:[%s1293_s10 + $0x10] sm:$0xff]   ;;  %564 = vst [vmem:[#allocation3] sm:$0xff] (%p558_p8), %v1215_v32 }
  0x18   : > { %1069 = vmatpush3.bf16.msra.mxu0 %v1157_v0  ;;  %1108 = vmatpush3.bf16.msra.mxu1 %v1157_v0  ;;  %v1165_v4 = vld [vmem:[%s1288_s7] sm:$0xff]   ;;  %v1163_v8 = vld [vmem:[%s1293_s10 + $0x8] sm:$0xff]   ;;  %v1169_v12 = vld [vmem:[%s1288_s7 + $0x10] sm:$0xff]   ;;  %565 = vst [vmem:[#allocation4] sm:$0xff] (%p558_p8), %v1215_v32 }
  0x19   : > { %1070 = vmatprep.subr.bf16.mxu0 %v1158_v1  ;;  %1101 = vmatprep.subr.bf16.mxu1 %v1158_v1  ;;  %v1166_v5 = vld [vmem:[%s1288_s7 + $0x20] sm:$0xff]   ;;  %v1167_v10 = vld [vmem:[%s1288_s7 + $0x8] sm:$0xff]   ;;  %v1170_v13 = vld [vmem:[%s1288_s7 + $0x30] sm:$0xff]  }
  0x1a   : > { %1084 = vmatprep.mubr.bf16.mxu0 %v1165_v4  ;;  %1092 = vmatprep.mubr.bf16.mxu1 %v1166_v5  ;;  %v1164_v9 = vld [vmem:[%s1293_s10] sm:$0xff]   ;;  %v1168_v11 = vld [vmem:[%s1288_s7 + $0x28] sm:$0xff]   ;;  %v1171_v14 = vld [vmem:[%s1288_s7 + $0x18] sm:$0xff]  }
  0x1b   : > { %v1172_v15 = vld [vmem:[%s1288_s7 + $0x38] sm:$0xff]  }
  0x1c   : > { %1071 = vmatpush3.bf16.msra.mxu0 %v1158_v1  ;;  %1109 = vmatpush3.bf16.msra.mxu1 %v1158_v1 }
  0x1d   : > { %1072 = vmatprep.subr.bf16.mxu0 %v1159_v2  ;;  %1102 = vmatprep.subr.bf16.mxu1 %v1159_v2 }
  0x20   : > { %1073 = vmatpush3.bf16.msra.mxu0 %v1159_v2  ;;  %1110 = vmatpush3.bf16.msra.mxu1 %v1159_v2 }
  0x21   : > { %1074 = vmatprep.subr.bf16.mxu0 %v1160_v3  ;;  %1103 = vmatprep.subr.bf16.mxu1 %v1160_v3 }
  0x24   : > { %1075 = vmatpush3.bf16.msra.mxu0 %v1160_v3  ;;  %1111 = vmatpush3.bf16.msra.mxu1 %v1160_v3 }
  0x25   : > { %1076 = vmatprep.subr.bf16.mxu0 %v1161_v6  ;;  %1104 = vmatprep.subr.bf16.mxu1 %v1161_v6 }
  0x28   : > { %1077 = vmatpush3.bf16.msra.mxu0 %v1161_v6  ;;  %1112 = vmatpush3.bf16.msra.mxu1 %v1161_v6 }
  0x29   : > { %1078 = vmatprep.subr.bf16.mxu0 %v1162_v7  ;;  %1105 = vmatprep.subr.bf16.mxu1 %v1162_v7 }
  0x2c   : > { %1079 = vmatpush3.bf16.msra.mxu0 %v1162_v7  ;;  %1113 = vmatpush3.bf16.msra.mxu1 %v1162_v7 }
  0x2d   : > { %1080 = vmatprep.subr.bf16.mxu0 %v1163_v8  ;;  %1106 = vmatprep.subr.bf16.mxu1 %v1163_v8 }
  0x30   : > { %1081 = vmatpush3.bf16.msra.mxu0 %v1163_v8  ;;  %1114 = vmatpush3.bf16.msra.mxu1 %v1163_v8 }
  0x31   : > { %1082 = vmatprep.subr.bf16.mxu0 %v1164_v9  ;;  %1107 = vmatprep.subr.bf16.mxu1 %v1164_v9 }
  0x34   : > { %1083 = vmatpush3.bf16.msra.mxu0 %v1164_v9  ;;  %1115 = vmatpush3.bf16.msra.mxu1 %v1164_v9 }
  0x37   : > { %1085 = vmatmul.mubr.bf16.vlgmr.msra.gmra.mxu0 %v1167_v10  ;;  %1093 = vmatmul.mubr.bf16.vlgmr.msra.gmra.mxu1 %v1168_v11 }
  0x38   : > { %1088 = vmatprep.mubr.bf16.mxu0 %v1169_v12  ;;  %1096 = vmatprep.mubr.bf16.mxu1 %v1170_v13 }
  0x3f   : > { %1089 = vmatmul.mubr.bf16.gmra.mxu0 %v1171_v14  ;;  %1097 = vmatmul.mubr.bf16.gmra.mxu1 %v1172_v15 }
  0xf7   : > { %v1086_v16 = vpop.f32.mrf.mxu0  ;;  %v1313_v17 = vpop.f32.mrf.mxu1 }
  0xf8   : > { %544 = vst [vmem:[%s541_s11 + $0x10] sm:$0xff] %v1086_v16  ;;  %552 = vst [vmem:[%s541_s11 + $0x50] sm:$0xff] %v1313_v17 }
  0xf9   : > { %v478_v18 = vpop.f32.mrf.mxu0  ;;  %v510_v19 = vpop.f32.mrf.mxu1 }
  0xfa   : > { %542 = vst [vmem:[%s541_s11] sm:$0xff] %v478_v18  ;;  %550 = vst [vmem:[%s541_s11 + $0x40] sm:$0xff] %v510_v19 }
  0xfb   : > { %v1087_v20 = vpop.f32.mrf.mxu0  ;;  %v1095_v21 = vpop.f32.mrf.mxu1 }
  0xfc   : > { %545 = vst [vmem:[%s541_s11 + $0x18] sm:$0xff] %v1087_v20  ;;  %553 = vst [vmem:[%s541_s11 + $0x58] sm:$0xff] %v1095_v21 }
  0xfd   : > { %v481_v22 = vpop.f32.mrf.mxu0  ;;  %v513_v23 = vpop.f32.mrf.mxu1 }
  0xfe   : > { %543 = vst [vmem:[%s541_s11 + $0x8] sm:$0xff] %v481_v22  ;;  %551 = vst [vmem:[%s541_s11 + $0x48] sm:$0xff] %v513_v23 }
  0xff   : > { %v1090_v24 = vpop.f32.mrf.mxu0  ;;  %v1098_v25 = vpop.f32.mrf.mxu1 }
 0x100   : > { %548 = vst [vmem:[%s541_s11 + $0x30] sm:$0xff] %v1090_v24  ;;  %556 = vst [vmem:[%s541_s11 + $0x70] sm:$0xff] %v1098_v25 }
 0x101   : > { %v494_v26 = vpop.f32.mrf.mxu0  ;;  %v526_v27 = vpop.f32.mrf.mxu1 }
 0x102   : > { %546 = vst [vmem:[%s541_s11 + $0x20] sm:$0xff] %v494_v26  ;;  %554 = vst [vmem:[%s541_s11 + $0x60] sm:$0xff] %v526_v27  ;;  %563 = sbr.rel (!%p558_p8) target bundleno = 263 (0x107), region = 44 }
 0x103   : > { %v1091_v28 = vpop.f32.mrf.mxu0  ;;  %v1099_v29 = vpop.f32.mrf.mxu1 }
 0x104   : > { %549 = vst [vmem:[%s541_s11 + $0x38] sm:$0xff] %v1091_v28  ;;  %557 = vst [vmem:[%s541_s11 + $0x78] sm:$0xff] %v1099_v29 }
 0x105   : > { %v497_v30 = vpop.f32.mrf.mxu0  ;;  %v529_v31 = vpop.f32.mrf.mxu1 }
 0x106   : > { %547 = vst [vmem:[%s541_s11 + $0x28] sm:$0xff] %v497_v30  ;;  %555 = vst [vmem:[%s541_s11 + $0x68] sm:$0xff] %v529_v31 }
 0x107 PF: > { %v567_v33 = vadd.f32 %v481_v22, %v478_v18  ;;  %v585_v34 = vmul.f32 %v478_v18, %v478_v18  ;;  %v586_v35 = vmul.f32 %v481_v22, %v481_v22  ;;  %v587_v37 = vmul.f32 %v1086_v16, %v1086_v16  ;;  %v566_v10 = vld [vmem:[#allocation3] sm:$0xff] }
 0x108   : > { %v588_v39 = vmul.f32 %v1087_v20, %v1087_v20  ;;  %v589_v42 = vmul.f32 %v494_v26, %v494_v26  ;;  %v590_v45 = vmul.f32 %v497_v30, %v497_v30  ;;  %v591_v48 = vmul.f32 %v1090_v24, %v1090_v24 }
 0x109   : > { %v568_v36 = vadd.f32 %v1086_v16, %v567_v33  ;;  %v601_v40 = vadd.f32 %v586_v35, %v585_v34  ;;  %v592_v51 = vmul.f32 %v1091_v28, %v1091_v28  ;;  %v593_v54 = vmul.f32 %v510_v19, %v510_v19  ;;  %v584_v16 = vld [vmem:[#allocation4] sm:$0xff] }
 0x10a   : > { %v594_v57 = vmul.f32 %v513_v23, %v513_v23  ;;  %v595_v60 = vmul.f32 %v1313_v17, %v1313_v17  ;;  %v596_v63 = vmul.f32 %v1095_v21, %v1095_v21  ;;  %v597_v2 = vmul.f32 %v526_v27, %v526_v27 }
 0x10b   : > { %v569_v38 = vadd.f32 %v1087_v20, %v568_v36  ;;  %v602_v43 = vadd.f32 %v601_v40, %v587_v37  ;;  %v598_v5 = vmul.f32 %v529_v31, %v529_v31  ;;  %v599_v8 = vmul.f32 %v1098_v25, %v1098_v25 }
 0x10c   : > { %v600_v12 = vmul.f32 %v1099_v29, %v1099_v29 }
 0x10d   : > { %v570_v41 = vadd.f32 %v569_v38, %v494_v26  ;;  %v603_v46 = vadd.f32 %v602_v43, %v588_v39 }
 0x10f   : > { %v571_v44 = vadd.f32 %v570_v41, %v497_v30  ;;  %v604_v49 = vadd.f32 %v603_v46, %v589_v42 }
 0x111   : > { %v572_v47 = vadd.f32 %v1090_v24, %v571_v44  ;;  %v605_v52 = vadd.f32 %v604_v49, %v590_v45 }
 0x113   : > { %v573_v50 = vadd.f32 %v1091_v28, %v572_v47  ;;  %v606_v55 = vadd.f32 %v605_v52, %v591_v48 }
 0x115   : > { %v574_v53 = vadd.f32 %v573_v50, %v510_v19  ;;  %v607_v58 = vadd.f32 %v606_v55, %v592_v51 }
 0x117   : > { %v575_v56 = vadd.f32 %v574_v53, %v513_v23  ;;  %v608_v61 = vadd.f32 %v607_v58, %v593_v54 }
 0x119   : > { %v576_v59 = vadd.f32 %v1313_v17, %v575_v56  ;;  %v609_v0 = vadd.f32 %v608_v61, %v594_v57 }
 0x11b   : > { %v577_v62 = vadd.f32 %v1095_v21, %v576_v59  ;;  %v610_v3 = vadd.f32 %v609_v0, %v595_v60 }
 0x11d   : > { %v578_v1 = vadd.f32 %v577_v62, %v526_v27  ;;  %v611_v6 = vadd.f32 %v610_v3, %v596_v63 }
 0x11f   : > { %v579_v4 = vadd.f32 %v578_v1, %v529_v31  ;;  %v612_v9 = vadd.f32 %v611_v6, %v597_v2 }
 0x121   : > { %v580_v7 = vadd.f32 %v1098_v25, %v579_v4  ;;  %v613_v13 = vadd.f32 %v612_v9, %v598_v5 }
 0x123   : > { %v581_v11 = vadd.f32 %v1099_v29, %v580_v7  ;;  %v614_v15 = vadd.f32 %v613_v13, %v599_v8 }
 0x125   : > { %v582_v14 = vadd.f32 %v581_v11, %v566_v10  ;;  %v615_v17 = vadd.f32 %v614_v15, %v600_v12 }
 0x127   : > { %583 = vst [vmem:[#allocation3] sm:$0xff] %v582_v14  ;;  %v616_v18 = vadd.f32 %v615_v17, %v584_v16 }
 0x129   : > { %617 = vst [vmem:[#allocation4] sm:$0xff] %v616_v18 }
 0x12a PF: > { %p962_p9 = scmp.ne.s32.totalorder %s1201_s16, 1 }
 0x12b   : > { %p622_p10 = scmp.eq.s32.totalorder (!%p962_p9), %s1197_s15, 0 }
 0x12c   : > { %621 = sbr.rel (%p962_p9) target bundleno = 372 (0x174), region = 48 }
 0x131   : > { %627 = sbr.rel (!%p622_p10) target bundleno = 349 (0x15d), region = 52  ;;  %v628_v19 = vld [vmem:[#allocation3] sm:$0xff] (%p622_p10)  ;;  %v635_v20 = vld [vmem:[#allocation4] sm:$0xff] (%p622_p10) }
 0x132   : > { %v629_v21 = vrot.slane (%p622_p10), %v628_v19, 4  ;;  %v636_v22 = vrot.slane (%p622_p10), %v635_v20, 4  ;;  %v649_v39 = vld [vmem:[%s1412_s2] sm:$0x1] (%p622_p10) }
 0x133   : > { %v652_v42 = vld [vmem:[%s1413_s3] sm:$0x1] (%p622_p10) }
 0x134   : > { %v630_v23 = vadd.f32 (%p622_p10), %v629_v21, %v628_v19  ;;  %v637_v24 = vadd.f32 (%p622_p10), %v636_v22, %v635_v20 }
 0x136   : > { %v631_v25 = vrot.slane %v630_v23, 2  ;;  %v638_v26 = vrot.slane %v637_v24, 2 }
 0x138   : > { %v632_v27 = vadd.f32 %v631_v25, %v630_v23  ;;  %v639_v28 = vadd.f32 %v638_v26, %v637_v24 }
 0x13a   : > { %v633_v29 = vrot.slane %v632_v27, 1  ;;  %v640_v30 = vrot.slane %v639_v28, 1 }
 0x13c   : > { %v634_v31 = vadd.f32 %v633_v29, %v632_v27  ;;  %v641_v32 = vadd.f32 %v640_v30, %v639_v28 }
 0x13e   : > { %v642_v33 = vmul.f32 0.001953125, %v634_v31  ;;  %v643_v34 = vmul.f32 0.001953125, %v641_v32 }
 0x140   : > { %v644_v35 = vmul.f32 %v642_v33, %v642_v33 }
 0x142   : > { %v645_v36 = vsub.f32 %v643_v34, %v644_v35 }
 0x144   : > { %v646_v37 = vmax.f32 %v645_v36, 0.0 }
 0x146   : > { %v647_v38 = vadd.f32 1e-05, %v646_v37 }
 0x148   : > { %1173 = vrsqrt.f32 %v647_v38 }
 0x155   : > { %v1174_v40 = vpop.eup %1173 }
 0x156   : > { %v650_v41 = vmul.f32 %v1174_v40, %v649_v39 }
 0x158   : > { %651 = vst [vmem:[#allocation5] sm:$0x1] %v650_v41  ;;  %v653_v43 = vmul.f32 %v650_v41, %v642_v33 }
 0x15a   : > { %v654_v44 = vsub.f32 %v652_v42, %v653_v43 }
 0x15c   : > { %655 = vst [vmem:[#allocation6] sm:$0x1] %v654_v44 }
 0x15d PF: > { %s1337_s22 = scalar_lea.vmem [#allocation2], %s943_s25 }
 0x15e   : > { %v657_v47 = vld [vmem:[%s1337_s22] sm:$0xff]  ;;  %v658_v48 = vld [vmem:[%s1337_s22 + $0x8] sm:$0xff]  ;;  %v659_v49 = vld [vmem:[%s1337_s22 + $0x10] sm:$0xff] }
 0x15f   : > { %v1331_v45 = vld [vmem:[#allocation5] ss:$0 sm:$0xff]  ;;  %v660_v52 = vld [vmem:[%s1337_s22 + $0x18] sm:$0xff]  ;;  %v661_v54 = vld [vmem:[%s1337_s22 + $0x20] sm:$0xff] }
 0x160   : > { %v680_v50 = vmul.f32 %v1331_v45, %v657_v47  ;;  %v681_v51 = vmul.f32 %v1331_v45, %v658_v48  ;;  %v682_v53 = vmul.f32 %v1331_v45, %v659_v49  ;;  %v662_v55 = vld [vmem:[%s1337_s22 + $0x28] sm:$0xff]  ;;  %v683_v56 = vmul.f32 %v1331_v45, %v660_v52  ;;  %v663_v59 = vld [vmem:[%s1337_s22 + $0x30] sm:$0xff]  ;;  %v664_v60 = vld [vmem:[%s1337_s22 + $0x38] sm:$0xff] }
 0x161   : > { %v684_v57 = vmul.f32 %v1331_v45, %v661_v54  ;;  %v685_v58 = vmul.f32 %v1331_v45, %v662_v55  ;;  %v686_v0 = vmul.f32 %v1331_v45, %v663_v59  ;;  %v687_v4 = vmul.f32 %v1331_v45, %v664_v60  ;;  %v665_v5 = vld [vmem:[%s1337_s22 + $0x40] sm:$0xff]  ;;  %v666_v6 = vld [vmem:[%s1337_s22 + $0x48] sm:$0xff]  ;;  %v667_v11 = vld [vmem:[%s1337_s22 + $0x50] sm:$0xff] }
 0x162   : > { %v668_v16 = vld [vmem:[%s1337_s22 + $0x58] sm:$0xff]  ;;  %v669_v17 = vld [vmem:[%s1337_s22 + $0x60] sm:$0xff]  ;;  %v688_v20 = vmul.f32 %v1331_v45, %v665_v5  ;;  %v689_v21 = vmul.f32 %v1331_v45, %v666_v6  ;;  %v670_v22 = vld [vmem:[%s1337_s22 + $0x68] sm:$0xff]  ;;  %v690_v27 = vmul.f32 %v1331_v45, %v667_v11 }
 0x163   : > { %v1333_v46 = vld [vmem:[#allocation6] ss:$0 sm:$0xff]  ;;  %v691_v30 = vmul.f32 %v1331_v45, %v668_v16  ;;  %v692_v31 = vmul.f32 %v1331_v45, %v669_v17  ;;  %v672_v32 = vld [vmem:[%s1337_s22 + $0x78] sm:$0xff]  ;;  %v693_v35 = vmul.f32 %v1331_v45, %v670_v22 }
 0x164   : > { %v703_v61 = vadd.f32 %v1333_v46, %v680_v50  ;;  %v704_v62 = vadd.f32 %v1333_v46, %v681_v51  ;;  %v705_v63 = vadd.f32 %v1333_v46, %v682_v53  ;;  %v706_v1 = vadd.f32 %v1333_v46, %v683_v56  ;;  %v671_v23 = vld [vmem:[%s1337_s22 + $0x70] sm:$0xff] }
 0x165   : > { %v707_v2 = vadd.f32 %v1333_v46, %v684_v57  ;;  %v708_v3 = vadd.f32 %v1333_v46, %v685_v58  ;;  %v709_v10 = vadd.f32 %v1333_v46, %v686_v0  ;;  %v710_v15 = vadd.f32 %v1333_v46, %v687_v4 }
 0x166   : > { %v719_v7 = vmax.f32 %v703_v61, 0.0  ;;  %v720_v8 = vmax.f32 %v704_v62, 0.0  ;;  %v721_v9 = vmax.f32 %v705_v63, 0.0  ;;  %v722_v12 = vmax.f32 %v706_v1, 0.0 }
 0x167   : > { %v723_v13 = vmax.f32 %v707_v2, 0.0  ;;  %v724_v14 = vmax.f32 %v708_v3, 0.0  ;;  %v725_v19 = vmax.f32 %v709_v10, 0.0  ;;  %v726_v26 = vmax.f32 %v710_v15, 0.0 }
 0x168   : > { %v1008_v18 = vpack.c.bf16 %v720_v8, %v719_v7  ;;  %v1013_v24 = vpack.c.bf16 %v722_v12, %v721_v9  ;;  %v711_v28 = vadd.f32 %v1333_v46, %v688_v20  ;;  %v712_v29 = vadd.f32 %v1333_v46, %v689_v21 }
 0x169   : > { %v1018_v25 = vpack.c.bf16 %v724_v14, %v723_v13  ;;  %v1023_v33 = vpack.c.bf16 %v726_v26, %v725_v19  ;;  %v713_v34 = vadd.f32 %v1333_v46, %v690_v27  ;;  %v694_v36 = vmul.f32 %v1331_v45, %v671_v23 }
 0x16a   : > { %1009 = vst [vmem:[%s1283_s30] sm:$0xff] %v1008_v18   ;;  %1045 = vst [vmem:[%s1283_s30 + $0x8] sm:$0xff] %v1013_v24   ;;  %v727_v37 = vmax.f32 %v711_v28, 0.0  ;;  %v728_v38 = vmax.f32 %v712_v29, 0.0  ;;  %v714_v39 = vadd.f32 %v1333_v46, %v691_v30  ;;  %v715_v40 = vadd.f32 %v1333_v46, %v692_v31 }
 0x16b   : > { %1046 = vst [vmem:[%s1283_s30 + $0x10] sm:$0xff] %v1018_v25   ;;  %1047 = vst [vmem:[%s1283_s30 + $0x18] sm:$0xff] %v1023_v33   ;;  %v729_v41 = vmax.f32 %v713_v34, 0.0  ;;  %v716_v42 = vadd.f32 %v1333_v46, %v693_v35  ;;  %v695_v43 = vmul.f32 %v1331_v45, %v672_v32  ;;  %v717_v44 = vadd.f32 %v1333_v46, %v694_v36 }
 0x16c   : > { %v1028_v47 = vpack.c.bf16 %v728_v38, %v727_v37  ;;  %v730_v48 = vmax.f32 %v714_v39, 0.0  ;;  %v731_v49 = vmax.f32 %v715_v40, 0.0 }
 0x16d   : > { %v732_v50 = vmax.f32 %v716_v42, 0.0  ;;  %v718_v51 = vadd.f32 %v1333_v46, %v695_v43  ;;  %v733_v52 = vmax.f32 %v717_v44, 0.0 }
 0x16e   : > { %1048 = vst [vmem:[%s1283_s30 + $0x20] sm:$0xff] %v1028_v47   ;;  %v1033_v53 = vpack.c.bf16 %v730_v48, %v729_v41 }
 0x16f   : > { %v1038_v54 = vpack.c.bf16 %v732_v50, %v731_v49  ;;  %v734_v55 = vmax.f32 %v718_v51, 0.0 }
 0x170   : > { %1049 = vst [vmem:[%s1283_s30 + $0x28] sm:$0xff] %v1033_v53  }
 0x171   : > { %1050 = vst [vmem:[%s1283_s30 + $0x30] sm:$0xff] %v1038_v54   ;;  %v1043_v56 = vpack.c.bf16 %v734_v55, %v733_v52 }
 0x173   : > { %1051 = vst [vmem:[%s1283_s30 + $0x38] sm:$0xff] %v1043_v56  }
 0x174 PF: > { %s14_s19 = sadd.s32 1, %s1213_s19   ;;  %s1415_s15 = smov %s1205_s17 }
 0x175   : > { %p11_p11 = scmp.ge.s32.totalorder %s14_s19, 10   ;;  %s1416_s16 = smov %s1209_s18 }
 0x176   : > { %s1417_s17 = smov %s1420_s20  ;;  %s1418_s18 = smov %s1424_s21 }
 0x177   :  { %13 = sbr.rel (!%p11_p11) target bundleno = 3 (0x3), region = 87 }

// kernel: generator_forward.8
= control target key start
LH: loop header
LB: loop body
LE: loop exit
PB: predicated region body
PF: predicated region fallthrough
CT: control target
= control target key end

     0   :  { %s2609_s15 = smov 0   ;;  %s2611_s16 = smov 0   ;;  %s3414_s0 = inlined_call_operand.vmem [shape: bf16[4,512,128], index: 0, kind: input, shape index: {}]   ;;  %s3415_s1 = inlined_call_operand.vmem [shape: bf16[4,128,128], index: 1, kind: input, shape index: {}]   ;;  %s3416_s2 = inlined_call_operand.vmem [shape: f32[1,128], index: 2, kind: input, shape index: {}]   ;;  %s3417_s3 = inlined_call_operand.vmem [shape: f32[1,128], index: 3, kind: input, shape index: {}]   ;;  %s3418_s4 = inlined_call_operand.vmem [shape: bf16[4,512,128], index: 4, kind: output, shape index: {}]  }
   0x1   :  { %s2613_s17 = smov 0   ;;  %s2615_s18 = smov 0  }
   0x2   :  { %s2617_s19 = smov 0  }
   0x3 LB: > { %s29_s20 = sadd.s32 1, %s2573_s17  ;;  %s33_s21 = sadd.s32 1, %s2577_s18  ;;  %s2581_s19 = sphi %s2617_s19, %s14_s19   ;;  %s2577_s18 = sphi %s2615_s18, %s3470_s18   ;;  %s2573_s17 = sphi %s2613_s17, %s3469_s17   ;;  %s2569_s16 = sphi %s2611_s16, %s3468_s16   ;;  %s2565_s15 = sphi %s2609_s15, %s3467_s15  }
   0x4   : > { %p31_p0 = scmp.ge.s32.totalorder %s29_s20, 4  ;;  %p1944_p1 = scmp.ge.s32.totalorder %s2581_s19, 1 }
   0x5   : > { %p224_p2 = scmp.lt.s32.totalorder %s2581_s19, 9 }
   0x6   : > { %s3472_s20 = smov (%p31_p0, %s29_s20), 0  ;;  %s3474_s21 = smov (!%p31_p0, %s33_s21), %s2577_s18 }
   0x7   : > { %p225_p3 = pnand %p1944_p1, %p224_p2  ;;  %p35_p4 = scmp.ge.s32.totalorder %s3474_s21, 2 }
   0x8   : > { %s270_s22 = ssub.s32 (!%p225_p3), 1, %s2569_s16  ;;  %s295_s23 = smul.u32 (!%p225_p3), %s2565_s15, %s2569_s16 }
   0x9   : > { %s3476_s21 = smov (%p35_p4, %s3474_s21), 0  ;;  %228 = sbr.rel (%p225_p3) target bundleno = 570 (0x23a), region = 36 }
   0xa   : > { %s271_s24 = smul.u32 (!%p225_p3), %s2565_s15, %s270_s22  ;;  %s1951_s25 = sshll.u32 (!%p225_p3), %s2565_s15, 9 }
   0xb   : > { %p298_p5 = scmp.lt.s32.totalorder (!%p225_p3), %s295_s23, 3  ;;  %p1952_p7 = scmp.ne.s32.totalorder (!%p225_p3), %s2569_s16, 0 }
   0xc   : > { %p274_p6 = scmp.lt.s32.totalorder (!%p225_p3), %s271_s24, 3 }
   0xe   : > { %s3478_s23 = smov (!%p298_p5, %s295_s23), 3  ;;  %s3480_s24 = smov (!%p274_p6, %s271_s24), 3 }
   0xf   : > { %s2066_s26 = sshll.u32 %s3478_s23, 8  ;;  %s2064_s27 = sshll.u32 %s3480_s24, 8 }
  0x10   : > { %s2065_s28 = sshll.u32 %s3480_s24, 6  ;;  %s2651_s5 = scalar_lea.vmem %s3414_s0, %s2064_s27 }
  0x11   : > { %s2656_s8 = scalar_lea.vmem %s3415_s1, %s2065_s28  ;;  %s2661_s11 = scalar_lea.vmem %s3418_s4, %s2066_s26 }
  0x12   : > { %315 = sbr.rel (%p1952_p7) target bundleno = 454 (0x1c6), region = 40 }
  0x17   : > { %v2501_v0 = vld [vmem:[%s2656_s8 + $0x38] sm:$0xff]   ;;  %v2502_v1 = vld [vmem:[%s2656_s8 + $0x30] sm:$0xff]   ;;  %v2503_v2 = vld [vmem:[%s2656_s8 + $0x28] sm:$0xff]   ;;  %p990_p8 = scmp.eq.s32.totalorder %s2565_s15, 0  ;;  %s2711_s12 = scalar_lea.vmem [#allocation2], %s1951_s25 }
  0x18   : > { %2364 = vmatprep.subr.bf16.mxu0 %v2501_v0  ;;  %2444 = vmatprep.subr.bf16.mxu1 %v2501_v0  ;;  %v2504_v3 = vld [vmem:[%s2656_s8 + $0x20] sm:$0xff]   ;;  %v2505_v6 = vld [vmem:[%s2656_s8 + $0x18] sm:$0xff]   ;;  %v2506_v7 = vld [vmem:[%s2656_s8 + $0x10] sm:$0xff]  }
  0x19   : > { %2365 = vmatpush3.bf16.msra.mxu0 %v2501_v0  ;;  %2452 = vmatpush3.bf16.msra.mxu1 %v2501_v0  ;;  %v2509_v4 = vld [vmem:[%s2651_s5] sm:$0xff]   ;;  %v2507_v8 = vld [vmem:[%s2656_s8 + $0x8] sm:$0xff]   ;;  %v2513_v12 = vld [vmem:[%s2651_s5 + $0x10] sm:$0xff]  }
  0x1a   : > { %2366 = vmatprep.subr.bf16.mxu0 %v2502_v1  ;;  %2445 = vmatprep.subr.bf16.mxu1 %v2502_v1  ;;  %v2510_v5 = vld [vmem:[%s2651_s5 + $0x80] sm:$0xff]   ;;  %v2511_v10 = vld [vmem:[%s2651_s5 + $0x8] sm:$0xff]   ;;  %v2514_v13 = vld [vmem:[%s2651_s5 + $0x90] sm:$0xff]  }
  0x1b   : > { %2380 = vmatprep.mubr.bf16.mxu0 %v2509_v4  ;;  %2412 = vmatprep.mubr.bf16.mxu1 %v2510_v5  ;;  %v2508_v9 = vld [vmem:[%s2656_s8] sm:$0xff]   ;;  %v2512_v11 = vld [vmem:[%s2651_s5 + $0x88] sm:$0xff]   ;;  %v2515_v14 = vld [vmem:[%s2651_s5 + $0x18] sm:$0xff]  }
  0x1c   : > { %v2516_v15 = vld [vmem:[%s2651_s5 + $0x98] sm:$0xff]   ;;  %v2517_v16 = vld [vmem:[%s2651_s5 + $0x20] sm:$0xff]   ;;  %v2519_v18 = vld [vmem:[%s2651_s5 + $0x28] sm:$0xff]  }
  0x1d   : > { %2367 = vmatpush3.bf16.msra.mxu0 %v2502_v1  ;;  %2453 = vmatpush3.bf16.msra.mxu1 %v2502_v1  ;;  %v2518_v17 = vld [vmem:[%s2651_s5 + $0xa0] sm:$0xff]   ;;  %v2520_v19 = vld [vmem:[%s2651_s5 + $0xa8] sm:$0xff]   ;;  %v2521_v20 = vld [vmem:[%s2651_s5 + $0x30] sm:$0xff]  }
  0x1e   : > { %2368 = vmatprep.subr.bf16.mxu0 %v2503_v2  ;;  %2446 = vmatprep.subr.bf16.mxu1 %v2503_v2  ;;  %v2522_v21 = vld [vmem:[%s2651_s5 + $0xb0] sm:$0xff]   ;;  %v2523_v22 = vld [vmem:[%s2651_s5 + $0x38] sm:$0xff]   ;;  %v2525_v24 = vld [vmem:[%s2651_s5 + $0x40] sm:$0xff]  }
  0x1f   : > { %v2524_v23 = vld [vmem:[%s2651_s5 + $0xb8] sm:$0xff]   ;;  %v2526_v25 = vld [vmem:[%s2651_s5 + $0xc0] sm:$0xff]   ;;  %v2527_v26 = vld [vmem:[%s2651_s5 + $0x48] sm:$0xff]  }
  0x20   : > { %v2528_v27 = vld [vmem:[%s2651_s5 + $0xc8] sm:$0xff]   ;;  %v2529_v28 = vld [vmem:[%s2651_s5 + $0x50] sm:$0xff]   ;;  %v2531_v30 = vld [vmem:[%s2651_s5 + $0x58] sm:$0xff]  }
  0x21   : > { %2369 = vmatpush3.bf16.msra.mxu0 %v2503_v2  ;;  %2454 = vmatpush3.bf16.msra.mxu1 %v2503_v2  ;;  %v2530_v29 = vld [vmem:[%s2651_s5 + $0xd0] sm:$0xff]   ;;  %v2532_v31 = vld [vmem:[%s2651_s5 + $0xd8] sm:$0xff]   ;;  %v2533_v32 = vld [vmem:[%s2651_s5 + $0x60] sm:$0xff]  }
  0x22   : > { %2370 = vmatprep.subr.bf16.mxu0 %v2504_v3  ;;  %2447 = vmatprep.subr.bf16.mxu1 %v2504_v3  ;;  %v2534_v33 = vld [vmem:[%s2651_s5 + $0xe0] sm:$0xff]   ;;  %v2535_v34 = vld [vmem:[%s2651_s5 + $0x68] sm:$0xff]   ;;  %v2537_v36 = vld [vmem:[%s2651_s5 + $0x70] sm:$0xff]  }
  0x23   : > { %v2536_v35 = vld [vmem:[%s2651_s5 + $0xe8] sm:$0xff]   ;;  %v2538_v37 = vld [vmem:[%s2651_s5 + $0xf0] sm:$0xff]   ;;  %v2539_v38 = vld [vmem:[%s2651_s5 + $0x78] sm:$0xff]  }
  0x24   : > { %v2540_v39 = vld [vmem:[%s2651_s5 + $0xf8] sm:$0xff]  }
  0x25   : > { %2371 = vmatpush3.bf16.msra.mxu0 %v2504_v3  ;;  %2455 = vmatpush3.bf16.msra.mxu1 %v2504_v3 }
  0x26   : > { %2372 = vmatprep.subr.bf16.mxu0 %v2505_v6  ;;  %2448 = vmatprep.subr.bf16.mxu1 %v2505_v6 }
  0x29   : > { %2373 = vmatpush3.bf16.msra.mxu0 %v2505_v6  ;;  %2456 = vmatpush3.bf16.msra.mxu1 %v2505_v6 }
  0x2a   : > { %2374 = vmatprep.subr.bf16.mxu0 %v2506_v7  ;;  %2449 = vmatprep.subr.bf16.mxu1 %v2506_v7 }
  0x2d   : > { %2375 = vmatpush3.bf16.msra.mxu0 %v2506_v7  ;;  %2457 = vmatpush3.bf16.msra.mxu1 %v2506_v7 }
  0x2e   : > { %2376 = vmatprep.subr.bf16.mxu0 %v2507_v8  ;;  %2450 = vmatprep.subr.bf16.mxu1 %v2507_v8 }
  0x31   : > { %2377 = vmatpush3.bf16.msra.mxu0 %v2507_v8  ;;  %2458 = vmatpush3.bf16.msra.mxu1 %v2507_v8 }
  0x32   : > { %2378 = vmatprep.subr.bf16.mxu0 %v2508_v9  ;;  %2451 = vmatprep.subr.bf16.mxu1 %v2508_v9 }
  0x35   : > { %2379 = vmatpush3.bf16.msra.mxu0 %v2508_v9  ;;  %2459 = vmatpush3.bf16.msra.mxu1 %v2508_v9 }
  0x38   : > { %2381 = vmatmul.mubr.bf16.vlgmr.msra.gmra.mxu0 %v2511_v10  ;;  %2413 = vmatmul.mubr.bf16.vlgmr.msra.gmra.mxu1 %v2512_v11 }
  0x39   : > { %2384 = vmatprep.mubr.bf16.mxu0 %v2513_v12  ;;  %2416 = vmatprep.mubr.bf16.mxu1 %v2514_v13 }
  0x40   : > { %2385 = vmatmul.mubr.bf16.gmra.mxu0 %v2515_v14  ;;  %2417 = vmatmul.mubr.bf16.gmra.mxu1 %v2516_v15 }
  0x41   : > { %2388 = vmatprep.mubr.bf16.mxu0 %v2517_v16  ;;  %2420 = vmatprep.mubr.bf16.mxu1 %v2518_v17 }
  0x48   : > { %2389 = vmatmul.mubr.bf16.gmra.mxu0 %v2519_v18  ;;  %2421 = vmatmul.mubr.bf16.gmra.mxu1 %v2520_v19 }
  0x49   : > { %2392 = vmatprep.mubr.bf16.mxu0 %v2521_v20  ;;  %2424 = vmatprep.mubr.bf16.mxu1 %v2522_v21 }
  0x50   : > { %2393 = vmatmul.mubr.bf16.gmra.mxu0 %v2523_v22  ;;  %2425 = vmatmul.mubr.bf16.gmra.mxu1 %v2524_v23 }
  0x51   : > { %2396 = vmatprep.mubr.bf16.mxu0 %v2525_v24  ;;  %2428 = vmatprep.mubr.bf16.mxu1 %v2526_v25 }
  0x58   : > { %2397 = vmatmul.mubr.bf16.gmra.mxu0 %v2527_v26  ;;  %2429 = vmatmul.mubr.bf16.gmra.mxu1 %v2528_v27 }
  0x59   : > { %2400 = vmatprep.mubr.bf16.mxu0 %v2529_v28  ;;  %2432 = vmatprep.mubr.bf16.mxu1 %v2530_v29 }
  0x60   : > { %2401 = vmatmul.mubr.bf16.gmra.mxu0 %v2531_v30  ;;  %2433 = vmatmul.mubr.bf16.gmra.mxu1 %v2532_v31 }
  0x61   : > { %2404 = vmatprep.mubr.bf16.mxu0 %v2533_v32  ;;  %2436 = vmatprep.mubr.bf16.mxu1 %v2534_v33 }
  0x68   : > { %2405 = vmatmul.mubr.bf16.gmra.mxu0 %v2535_v34  ;;  %2437 = vmatmul.mubr.bf16.gmra.mxu1 %v2536_v35 }
  0x69   : > { %2408 = vmatprep.mubr.bf16.mxu0 %v2537_v36  ;;  %2440 = vmatprep.mubr.bf16.mxu1 %v2538_v37 }
  0x70   : > { %2409 = vmatmul.mubr.bf16.gmra.mxu0 %v2539_v38  ;;  %2441 = vmatmul.mubr.bf16.gmra.mxu1 %v2540_v39 }
  0xf8   : > { %v2705_v40 = vpop.f32.mrf.mxu0  ;;  %v2707_v41 = vpop.f32.mrf.mxu1 }
  0xf9   : > { %928 = vst [vmem:[%s2711_s12 + $0x10] sm:$0xff] %v2705_v40  ;;  %960 = vst [vmem:[%s2711_s12 + $0x110] sm:$0xff] %v2707_v41 }
  0xfa   : > { %v2717_v42 = vpop.f32.mrf.mxu0  ;;  %v2719_v43 = vpop.f32.mrf.mxu1 }
  0xfb   : > { %926 = vst [vmem:[%s2711_s12] sm:$0xff] %v2717_v42  ;;  %958 = vst [vmem:[%s2711_s12 + $0x100] sm:$0xff] %v2719_v43 }
  0xfc   : > { %v2725_v44 = vpop.f32.mrf.mxu0  ;;  %v2727_v45 = vpop.f32.mrf.mxu1 }
  0xfd   : > { %929 = vst [vmem:[%s2711_s12 + $0x18] sm:$0xff] %v2725_v44  ;;  %961 = vst [vmem:[%s2711_s12 + $0x118] sm:$0xff] %v2727_v45 }
  0xfe   : > { %v2733_v46 = vpop.f32.mrf.mxu0  ;;  %v2735_v47 = vpop.f32.mrf.mxu1 }
  0xff   : > { %927 = vst [vmem:[%s2711_s12 + $0x8] sm:$0xff] %v2733_v46  ;;  %959 = vst [vmem:[%s2711_s12 + $0x108] sm:$0xff] %v2735_v47 }
 0x100   : > { %v2741_v48 = vpop.f32.mrf.mxu0  ;;  %v2743_v49 = vpop.f32.mrf.mxu1 }
 0x101   : > { %932 = vst [vmem:[%s2711_s12 + $0x30] sm:$0xff] %v2741_v48  ;;  %964 = vst [vmem:[%s2711_s12 + $0x130] sm:$0xff] %v2743_v49 }
 0x102   : > { %v2749_v50 = vpop.f32.mrf.mxu0  ;;  %v2751_v51 = vpop.f32.mrf.mxu1 }
 0x103   : > { %930 = vst [vmem:[%s2711_s12 + $0x20] sm:$0xff] %v2749_v50  ;;  %962 = vst [vmem:[%s2711_s12 + $0x120] sm:$0xff] %v2751_v51 }
 0x104   : > { %v2757_v52 = vpop.f32.mrf.mxu0  ;;  %v2759_v53 = vpop.f32.mrf.mxu1 }
 0x105   : > { %933 = vst [vmem:[%s2711_s12 + $0x38] sm:$0xff] %v2757_v52  ;;  %965 = vst [vmem:[%s2711_s12 + $0x138] sm:$0xff] %v2759_v53 }
 0x106   : > { %v2765_v54 = vpop.f32.mrf.mxu0  ;;  %v2767_v55 = vpop.f32.mrf.mxu1 }
 0x107   : > { %931 = vst [vmem:[%s2711_s12 + $0x28] sm:$0xff] %v2765_v54  ;;  %963 = vst [vmem:[%s2711_s12 + $0x128] sm:$0xff] %v2767_v55 }
 0x108   : > { %v2773_v56 = vpop.f32.mrf.mxu0  ;;  %v2775_v57 = vpop.f32.mrf.mxu1 }
 0x109   : > { %936 = vst [vmem:[%s2711_s12 + $0x50] sm:$0xff] %v2773_v56  ;;  %968 = vst [vmem:[%s2711_s12 + $0x150] sm:$0xff] %v2775_v57 }
 0x10a   : > { %v2781_v58 = vpop.f32.mrf.mxu0  ;;  %v2783_v59 = vpop.f32.mrf.mxu1 }
 0x10b   : > { %934 = vst [vmem:[%s2711_s12 + $0x40] sm:$0xff] %v2781_v58  ;;  %966 = vst [vmem:[%s2711_s12 + $0x140] sm:$0xff] %v2783_v59 }
 0x10c   : > { %v2789_v60 = vpop.f32.mrf.mxu0  ;;  %v2791_v61 = vpop.f32.mrf.mxu1 }
 0x10d   : > { %937 = vst [vmem:[%s2711_s12 + $0x58] sm:$0xff] %v2789_v60  ;;  %969 = vst [vmem:[%s2711_s12 + $0x158] sm:$0xff] %v2791_v61 }
 0x10e   : > { %v2797_v62 = vpop.f32.mrf.mxu0  ;;  %v2799_v63 = vpop.f32.mrf.mxu1 }
 0x10f   : > { %935 = vst [vmem:[%s2711_s12 + $0x48] sm:$0xff] %v2797_v62  ;;  %967 = vst [vmem:[%s2711_s12 + $0x148] sm:$0xff] %v2799_v63 }
 0x110   : > { %v2805_v0 = vpop.f32.mrf.mxu0  ;;  %v2807_v1 = vpop.f32.mrf.mxu1 }
 0x111   : > { %940 = vst [vmem:[%s2711_s12 + $0x70] sm:$0xff] %v2805_v0  ;;  %972 = vst [vmem:[%s2711_s12 + $0x170] sm:$0xff] %v2807_v1 }
 0x112   : > { %v2813_v2 = vpop.f32.mrf.mxu0  ;;  %v2815_v3 = vpop.f32.mrf.mxu1 }
 0x113   : > { %938 = vst [vmem:[%s2711_s12 + $0x60] sm:$0xff] %v2813_v2  ;;  %970 = vst [vmem:[%s2711_s12 + $0x160] sm:$0xff] %v2815_v3 }
 0x114   : > { %v2821_v4 = vpop.f32.mrf.mxu0  ;;  %v2823_v5 = vpop.f32.mrf.mxu1 }
 0x115   : > { %941 = vst [vmem:[%s2711_s12 + $0x78] sm:$0xff] %v2821_v4  ;;  %973 = vst [vmem:[%s2711_s12 + $0x178] sm:$0xff] %v2823_v5 }
 0x116   : > { %v2829_v6 = vpop.f32.mrf.mxu0  ;;  %v2831_v7 = vpop.f32.mrf.mxu1 }
 0x117   : > { %939 = vst [vmem:[%s2711_s12 + $0x68] sm:$0xff] %v2829_v6  ;;  %971 = vst [vmem:[%s2711_s12 + $0x168] sm:$0xff] %v2831_v7 }
 0x118   : > { %v2837_v8 = vpop.f32.mrf.mxu0  ;;  %v2839_v9 = vpop.f32.mrf.mxu1 }
 0x119   : > { %944 = vst [vmem:[%s2711_s12 + $0x90] sm:$0xff] %v2837_v8  ;;  %976 = vst [vmem:[%s2711_s12 + $0x190] sm:$0xff] %v2839_v9 }
 0x11a   : > { %v2845_v10 = vpop.f32.mrf.mxu0  ;;  %v2847_v11 = vpop.f32.mrf.mxu1 }
 0x11b   : > { %942 = vst [vmem:[%s2711_s12 + $0x80] sm:$0xff] %v2845_v10  ;;  %974 = vst [vmem:[%s2711_s12 + $0x180] sm:$0xff] %v2847_v11 }
 0x11c   : > { %v2853_v12 = vpop.f32.mrf.mxu0  ;;  %v2855_v13 = vpop.f32.mrf.mxu1 }
 0x11d   : > { %945 = vst [vmem:[%s2711_s12 + $0x98] sm:$0xff] %v2853_v12  ;;  %977 = vst [vmem:[%s2711_s12 + $0x198] sm:$0xff] %v2855_v13 }
 0x11e   : > { %v2861_v14 = vpop.f32.mrf.mxu0  ;;  %v2863_v15 = vpop.f32.mrf.mxu1 }
 0x11f   : > { %943 = vst [vmem:[%s2711_s12 + $0x88] sm:$0xff] %v2861_v14  ;;  %975 = vst [vmem:[%s2711_s12 + $0x188] sm:$0xff] %v2863_v15 }
 0x120   : > { %v2869_v16 = vpop.f32.mrf.mxu0  ;;  %v2871_v17 = vpop.f32.mrf.mxu1 }
 0x121   : > { %3443 = vst [vmem:[#allocation7_spill] sm:$0xff] %v2871_v17  ;;  %948 = vst [vmem:[%s2711_s12 + $0xb0] sm:$0xff] %v2869_v16 }
 0x122   : > { %980 = vst [vmem:[%s2711_s12 + $0x1b0] sm:$0xff] %v2871_v17  ;;  %v2877_v18 = vpop.f32.mrf.mxu0  ;;  %v2879_v19 = vpop.f32.mrf.mxu1 }
 0x123   : > { %3444 = vst [vmem:[#allocation8_spill] sm:$0xff] %v2879_v19  ;;  %946 = vst [vmem:[%s2711_s12 + $0xa0] sm:$0xff] %v2877_v18 }
 0x124   : > { %978 = vst [vmem:[%s2711_s12 + $0x1a0] sm:$0xff] %v2879_v19  ;;  %v2885_v20 = vpop.f32.mrf.mxu0  ;;  %v2887_v21 = vpop.f32.mrf.mxu1 }
 0x125   : > { %3445 = vst [vmem:[#allocation9_spill] sm:$0xff] %v2887_v21  ;;  %949 = vst [vmem:[%s2711_s12 + $0xb8] sm:$0xff] %v2885_v20 }
 0x126   : > { %981 = vst [vmem:[%s2711_s12 + $0x1b8] sm:$0xff] %v2887_v21  ;;  %v2893_v22 = vpop.f32.mrf.mxu0  ;;  %v2895_v23 = vpop.f32.mrf.mxu1 }
 0x127   : > { %3446 = vst [vmem:[#allocation10_spill] sm:$0xff] %v2895_v23  ;;  %947 = vst [vmem:[%s2711_s12 + $0xa8] sm:$0xff] %v2893_v22 }
 0x128   : > { %979 = vst [vmem:[%s2711_s12 + $0x1a8] sm:$0xff] %v2895_v23  ;;  %v2901_v24 = vpop.f32.mrf.mxu0  ;;  %v2903_v25 = vpop.f32.mrf.mxu1 }
 0x129   : > { %3447 = vst [vmem:[#allocation11_spill] sm:$0xff] %v2903_v25  ;;  %952 = vst [vmem:[%s2711_s12 + $0xd0] sm:$0xff] %v2901_v24 }
 0x12a   : > { %984 = vst [vmem:[%s2711_s12 + $0x1d0] sm:$0xff] %v2903_v25  ;;  %v2909_v26 = vpop.f32.mrf.mxu0  ;;  %v2911_v27 = vpop.f32.mrf.mxu1 }
 0x12b   : > { %3448 = vst [vmem:[#allocation12_spill] sm:$0xff] %v2911_v27  ;;  %950 = vst [vmem:[%s2711_s12 + $0xc0] sm:$0xff] %v2909_v26 }
 0x12c   : > { %982 = vst [vmem:[%s2711_s12 + $0x1c0] sm:$0xff] %v2911_v27  ;;  %v2917_v28 = vpop.f32.mrf.mxu0  ;;  %v2919_v29 = vpop.f32.mrf.mxu1 }
 0x12d   : > { %3449 = vst [vmem:[#allocation13_spill] sm:$0xff] %v2919_v29  ;;  %953 = vst [vmem:[%s2711_s12 + $0xd8] sm:$0xff] %v2917_v28 }
 0x12e   : > { %985 = vst [vmem:[%s2711_s12 + $0x1d8] sm:$0xff] %v2919_v29  ;;  %v2925_v30 = vpop.f32.mrf.mxu0  ;;  %v2927_v31 = vpop.f32.mrf.mxu1 }
 0x12f   : > { %3450 = vst [vmem:[#allocation14_spill] sm:$0xff] %v2927_v31  ;;  %951 = vst [vmem:[%s2711_s12 + $0xc8] sm:$0xff] %v2925_v30 }
 0x130   : > { %983 = vst [vmem:[%s2711_s12 + $0x1c8] sm:$0xff] %v2927_v31  ;;  %v2933_v32 = vpop.f32.mrf.mxu0  ;;  %v2935_v33 = vpop.f32.mrf.mxu1 }
 0x131   : > { %3451 = vst [vmem:[#allocation15_spill] sm:$0xff] %v2935_v33  ;;  %956 = vst [vmem:[%s2711_s12 + $0xf0] sm:$0xff] %v2933_v32 }
 0x132   : > { %988 = vst [vmem:[%s2711_s12 + $0x1f0] sm:$0xff] %v2935_v33  ;;  %v2941_v34 = vpop.f32.mrf.mxu0  ;;  %v2943_v35 = vpop.f32.mrf.mxu1  ;;  %v2583_v33 = vmov (%p990_p8), 0.0  }
 0x133   : > { %3452 = vst [vmem:[#allocation16_spill] sm:$0xff] %v2943_v35  ;;  %954 = vst [vmem:[%s2711_s12 + $0xe0] sm:$0xff] %v2941_v34 }
 0x134   : > { %986 = vst [vmem:[%s2711_s12 + $0x1e0] sm:$0xff] %v2943_v35  ;;  %v2949_v36 = vpop.f32.mrf.mxu0  ;;  %v2951_v37 = vpop.f32.mrf.mxu1  ;;  %995 = sbr.rel (!%p990_p8) target bundleno = 313 (0x139), region = 44  ;;  %996 = vst [vmem:[#allocation3] sm:$0xff] (%p990_p8), %v2583_v33 }
 0x135   : > { %3453 = vst [vmem:[#allocation17_spill] sm:$0xff] %v2951_v37  ;;  %957 = vst [vmem:[%s2711_s12 + $0xf8] sm:$0xff] %v2949_v36 }
 0x136   : > { %989 = vst [vmem:[%s2711_s12 + $0x1f8] sm:$0xff] %v2951_v37  ;;  %v2957_v38 = vpop.f32.mrf.mxu0  ;;  %v2959_v39 = vpop.f32.mrf.mxu1  ;;  %997 = vst [vmem:[#allocation4] sm:$0xff] (%p990_p8), %v2583_v33 }
 0x137   : > { %3454 = vst [vmem:[#allocation18_spill] sm:$0xff] %v2959_v39  ;;  %955 = vst [vmem:[%s2711_s12 + $0xe8] sm:$0xff] %v2957_v38 }
 0x138   : > { %987 = vst [vmem:[%s2711_s12 + $0x1e8] sm:$0xff] %v2959_v39 }
 0x139 PF: > { %v999_v35 = vadd.f32 %v2733_v46, %v2717_v42  ;;  %v1065_v33 = vmul.f32 %v2717_v42, %v2717_v42  ;;  %v1066_v17 = vmul.f32 %v2733_v46, %v2733_v46  ;;  %v1070_v46 = vmul.f32 %v2765_v54, %v2765_v54 }
 0x13b   : > { %v1000_v37 = vadd.f32 %v2705_v40, %v999_v35 }
 0x13d   : > { %v1001_v29 = vadd.f32 %v2725_v44, %v1000_v37  ;;  %v1067_v37 = vmul.f32 %v2705_v40, %v2705_v40 }
 0x13f   : > { %v1002_v25 = vadd.f32 %v1001_v29, %v2749_v50 }
 0x141   : > { %v1003_v31 = vadd.f32 %v1002_v25, %v2765_v54  ;;  %v1068_v25 = vmul.f32 %v2725_v44, %v2725_v44 }
 0x143   : > { %v1004_v39 = vadd.f32 %v2741_v48, %v1003_v31  ;;  %v1129_v31 = vadd.f32 %v1066_v17, %v1065_v33  ;;  %v1072_v17 = vmul.f32 %v2757_v52, %v2757_v52 }
 0x145   : > { %v1005_v27 = vadd.f32 %v2757_v52, %v1004_v39  ;;  %v1130_v42 = vadd.f32 %v1129_v31, %v1067_v37  ;;  %v1073_v37 = vmul.f32 %v2781_v58, %v2781_v58  ;;  %v1075_v31 = vmul.f32 %v2773_v56, %v2773_v56 }
 0x147   : > { %v1006_v21 = vadd.f32 %v1005_v27, %v2781_v58  ;;  %v1069_v27 = vmul.f32 %v2749_v50, %v2749_v50 }
 0x149   : > { %v1007_v35 = vadd.f32 %v1006_v21, %v2797_v62  ;;  %v1131_v21 = vadd.f32 %v1130_v42, %v1068_v25  ;;  %v1077_v42 = vmul.f32 %v2813_v2, %v2813_v2 }
 0x14b   : > { %v1008_v29 = vadd.f32 %v2773_v56, %v1007_v35  ;;  %v1071_v35 = vmul.f32 %v2741_v48, %v2741_v48  ;;  %v1132_v19 = vadd.f32 %v1131_v21, %v1069_v27  ;;  %v1078_v21 = vmul.f32 %v2829_v6, %v2829_v6 }
 0x14d   : > { %v1009_v39 = vadd.f32 %v2789_v60, %v1008_v29  ;;  %v1133_v33 = vadd.f32 %v1132_v19, %v1070_v46  ;;  %v1076_v19 = vmul.f32 %v2789_v60, %v2789_v60 }
 0x14f   : > { %v1010_v23 = vadd.f32 %v1009_v39, %v2813_v2  ;;  %v1134_v29 = vadd.f32 %v1133_v33, %v1071_v35  ;;  %v1079_v35 = vmul.f32 %v2805_v0, %v2805_v0 }
 0x151   : > { %v1011_v40 = vadd.f32 %v1010_v23, %v2829_v6  ;;  %v1074_v23 = vmul.f32 %v2797_v62, %v2797_v62  ;;  %v1135_v25 = vadd.f32 %v1134_v29, %v1072_v17  ;;  %v1080_v17 = vmul.f32 %v2821_v4, %v2821_v4 }
 0x152   : > { %v1082_v29 = vmul.f32 %v2861_v14, %v2861_v14 }
 0x153   : > { %v1012_v44 = vadd.f32 %v2805_v0, %v1011_v40  ;;  %v1136_v39 = vadd.f32 %v1135_v25, %v1073_v37 }
 0x155   : > { %v1013_v50 = vadd.f32 %v2821_v4, %v1012_v44  ;;  %v1137_v27 = vadd.f32 %v1136_v39, %v1074_v23  ;;  %v1083_v23 = vmul.f32 %v2837_v8, %v2837_v8  ;;  %v1085_v39 = vmul.f32 %v2877_v18, %v2877_v18 }
 0x157   : > { %v1014_v54 = vadd.f32 %v1013_v50, %v2845_v10  ;;  %v1138_v46 = vadd.f32 %v1137_v27, %v1075_v31  ;;  %v1081_v50 = vmul.f32 %v2845_v10, %v2845_v10 }
 0x159   : > { %v1015_v48 = vadd.f32 %v1014_v54, %v2861_v14  ;;  %v1139_v40 = vadd.f32 %v1138_v46, %v1076_v19  ;;  %v1086_v19 = vmul.f32 %v2893_v22, %v2893_v22  ;;  %v1088_v46 = vmul.f32 %v2885_v20, %v2885_v20 }
 0x15b   : > { %v1016_v52 = vadd.f32 %v2837_v8, %v1015_v48  ;;  %v1140_v44 = vadd.f32 %v1139_v40, %v1077_v42  ;;  %v1084_v48 = vmul.f32 %v2853_v12, %v2853_v12 }
 0x15d   : > { %v1017_v58 = vadd.f32 %v2853_v12, %v1016_v52  ;;  %v1141_v33 = vadd.f32 %v1140_v44, %v1078_v21  ;;  %v1089_v21 = vmul.f32 %v2909_v26, %v2909_v26  ;;  %v1091_v44 = vmul.f32 %v2901_v24, %v2901_v24 }
 0x15f   : > { %v1018_v62 = vadd.f32 %v1017_v58, %v2877_v18  ;;  %v1142_v37 = vadd.f32 %v1141_v33, %v1079_v35  ;;  %v1087_v58 = vmul.f32 %v2869_v16, %v2869_v16 }
 0x161   : > { %v1019_v56 = vadd.f32 %v1018_v62, %v2893_v22  ;;  %v1143_v54 = vadd.f32 %v1142_v37, %v1080_v17  ;;  %v1092_v17 = vmul.f32 %v2917_v28, %v2917_v28  ;;  %v1094_v37 = vmul.f32 %v2957_v38, %v2957_v38 }
 0x163   : > { %v1020_v60 = vadd.f32 %v2869_v16, %v1019_v56  ;;  %v1144_v25 = vadd.f32 %v1143_v54, %v1081_v50  ;;  %v1090_v56 = vmul.f32 %v2925_v30, %v2925_v30 }
 0x165   : > { %v1021_v2 = vadd.f32 %v2885_v20, %v1020_v60  ;;  %v1145_v31 = vadd.f32 %v1144_v25, %v1082_v29  ;;  %v1095_v29 = vmul.f32 %v2933_v32, %v2933_v32  ;;  %v1097_v25 = vmul.f32 %v2719_v43, %v2719_v43 }
 0x167   : > { %v1022_v6 = vadd.f32 %v1021_v2, %v2909_v26  ;;  %v1146_v52 = vadd.f32 %v1145_v31, %v1083_v23  ;;  %v1093_v2 = vmul.f32 %v2941_v34, %v2941_v34 }
 0x169   : > { %v1023_v0 = vadd.f32 %v1022_v6, %v2925_v30  ;;  %v1147_v27 = vadd.f32 %v1146_v52, %v1084_v48  ;;  %v1098_v48 = vmul.f32 %v2735_v47, %v2735_v47  ;;  %v1100_v52 = vmul.f32 %v2727_v45, %v2727_v45 }
 0x16b   : > { %v1024_v4 = vadd.f32 %v2901_v24, %v1023_v0  ;;  %v1148_v42 = vadd.f32 %v1147_v27, %v1085_v39  ;;  %v1096_v0 = vmul.f32 %v2949_v36, %v2949_v36 }
 0x16d   : > { %v1025_v10 = vadd.f32 %v2917_v28, %v1024_v4  ;;  %v1149_v62 = vadd.f32 %v1148_v42, %v1086_v19  ;;  %v1101_v19 = vmul.f32 %v2751_v51, %v2751_v51  ;;  %v1103_v42 = vmul.f32 %v2743_v49, %v2743_v49 }
 0x16f   : > { %v1026_v14 = vadd.f32 %v1025_v10, %v2941_v34  ;;  %v1150_v40 = vadd.f32 %v1149_v62, %v1087_v58  ;;  %v1099_v10 = vmul.f32 %v2707_v41, %v2707_v41 }
 0x171   : > { %v1027_v8 = vadd.f32 %v1026_v14, %v2957_v38  ;;  %v1151_v35 = vadd.f32 %v1150_v40, %v1088_v46  ;;  %v1104_v46 = vmul.f32 %v2759_v53, %v2759_v53  ;;  %v1106_v40 = vmul.f32 %v2799_v63, %v2799_v63 }
 0x173   : > { %v1028_v12 = vadd.f32 %v2933_v32, %v1027_v8  ;;  %v1152_v60 = vadd.f32 %v1151_v35, %v1089_v21  ;;  %v1102_v8 = vmul.f32 %v2767_v55, %v2767_v55 }
 0x175   : > { %v1029_v18 = vadd.f32 %v2949_v36, %v1028_v12  ;;  %v1153_v33 = vadd.f32 %v1152_v60, %v1090_v56  ;;  %v1107_v56 = vmul.f32 %v2775_v57, %v2775_v57  ;;  %v1109_v60 = vmul.f32 %v2815_v3, %v2815_v3 }
 0x177   : > { %v1030_v22 = vadd.f32 %v1029_v18, %v2719_v43  ;;  %v1154_v50 = vadd.f32 %v1153_v33, %v1091_v44  ;;  %v1105_v18 = vmul.f32 %v2783_v59, %v2783_v59  ;;  %v1110_v33 = vmul.f32 %v2831_v7, %v2831_v7 }
 0x179   : > { %v1031_v16 = vadd.f32 %v1030_v22, %v2735_v47  ;;  %v1155_v6 = vadd.f32 %v1154_v50, %v1092_v17  ;;  %v1111_v50 = vmul.f32 %v2807_v1, %v2807_v1 }
 0x17b   : > { %v1032_v20 = vadd.f32 %v2707_v41, %v1031_v16  ;;  %v1156_v54 = vadd.f32 %v1155_v6, %v1093_v2  ;;  %v1108_v16 = vmul.f32 %v2791_v61, %v2791_v61  ;;  %v1112_v6 = vmul.f32 %v2823_v5, %v2823_v5 }
 0x17d   : > { %v1033_v26 = vadd.f32 %v2727_v45, %v1032_v20  ;;  %v1157_v23 = vadd.f32 %v1156_v54, %v1094_v37  ;;  %v1113_v54 = vmul.f32 %v2847_v11, %v2847_v11 }
 0x17f   : > { %v1034_v30 = vadd.f32 %v1033_v26, %v2751_v51  ;;  %v1158_v4 = vadd.f32 %v1157_v23, %v1095_v29  ;;  %v1114_v23 = vmul.f32 %v2863_v15, %v2863_v15 }
 0x181   : > { %v1035_v24 = vadd.f32 %v1034_v30, %v2767_v55  ;;  %v1159_v31 = vadd.f32 %v1158_v4, %v1096_v0  ;;  %v1115_v4 = vmul.f32 %v2839_v9, %v2839_v9 }
 0x183   : > { %v1036_v28 = vadd.f32 %v2743_v49, %v1035_v24  ;;  %v1160_v39 = vadd.f32 %v1159_v31, %v1097_v25  ;;  %v1116_v31 = vmul.f32 %v2855_v13, %v2855_v13 }
 0x185   : > { %v1037_v34 = vadd.f32 %v2759_v53, %v1036_v28  ;;  %v1161_v14 = vadd.f32 %v1160_v39, %v1098_v48 }
 0x187   : > { %v1038_v38 = vadd.f32 %v1037_v34, %v2783_v59  ;;  %v1162_v27 = vadd.f32 %v1161_v14, %v1099_v10 }
 0x189   : > { %v1039_v32 = vadd.f32 %v1038_v38, %v2799_v63  ;;  %v1163_v58 = vadd.f32 %v1162_v27, %v1100_v52  ;;  %v3455_v63 = vld [vmem:[#allocation8_spill] sm:$0xff] }
 0x18a   : > { %v1117_v39 = vmul.f32 %v3455_v63, %v3455_v63 }
 0x18b   : > { %v1040_v36 = vadd.f32 %v2775_v57, %v1039_v32  ;;  %v1164_v12 = vadd.f32 %v1163_v58, %v1101_v19  ;;  %v3456_v57 = vld [vmem:[#allocation10_spill] sm:$0xff] }
 0x18c   : > { %v1118_v14 = vmul.f32 %v3456_v57, %v3456_v57 }
 0x18d   : > { %v1041_v43 = vadd.f32 %v2791_v61, %v1040_v36  ;;  %v1165_v62 = vadd.f32 %v1164_v12, %v1102_v8  ;;  %v3457_v61 = vld [vmem:[#allocation7_spill] sm:$0xff]  ;;  %v3466_v12 = vld [vmem:[#allocation17_spill] sm:$0xff] }
 0x18e   : > { %v1119_v27 = vmul.f32 %v3457_v61, %v3457_v61 }
 0x18f   : > { %v1042_v47 = vadd.f32 %v1041_v43, %v2815_v3  ;;  %v1166_v21 = vadd.f32 %v1165_v62, %v1103_v42  ;;  %v3458_v3 = vld [vmem:[#allocation9_spill] sm:$0xff] }
 0x190   : > { %v1120_v58 = vmul.f32 %v3458_v3, %v3458_v3  ;;  %v998_v42 = vld [vmem:[#allocation3] sm:$0xff] }
 0x191   : > { %v1043_v41 = vadd.f32 %v1042_v47, %v2831_v7  ;;  %v1167_v22 = vadd.f32 %v1166_v21, %v1104_v46  ;;  %v3459_v7 = vld [vmem:[#allocation12_spill] sm:$0xff] }
 0x192   : > { %v1121_v46 = vmul.f32 %v3459_v7, %v3459_v7 }
 0x193   : > { %v1044_v45 = vadd.f32 %v2807_v1, %v1043_v41  ;;  %v1168_v35 = vadd.f32 %v1167_v22, %v1105_v18  ;;  %v3460_v1 = vld [vmem:[#allocation14_spill] sm:$0xff] }
 0x194   : > { %v1122_v18 = vmul.f32 %v3460_v1, %v3460_v1 }
 0x195   : > { %v1045_v51 = vadd.f32 %v2823_v5, %v1044_v45  ;;  %v1169_v44 = vadd.f32 %v1168_v35, %v1106_v40  ;;  %v3461_v5 = vld [vmem:[#allocation11_spill] sm:$0xff] }
 0x197   : > { %v1046_v55 = vadd.f32 %v1045_v51, %v2847_v11  ;;  %v1170_v20 = vadd.f32 %v1169_v44, %v1107_v56  ;;  %v3462_v11 = vld [vmem:[#allocation13_spill] sm:$0xff] }
 0x198   : > { %v1124_v22 = vmul.f32 %v3462_v11, %v3462_v11 }
 0x199   : > { %v1047_v49 = vadd.f32 %v1046_v55, %v2863_v15  ;;  %v1171_v26 = vadd.f32 %v1170_v20, %v1108_v16  ;;  %v3463_v15 = vld [vmem:[#allocation16_spill] sm:$0xff]  ;;  %v1123_v55 = vmul.f32 %v3461_v5, %v3461_v5 }
 0x19a   : > { %v1125_v56 = vmul.f32 %v3463_v15, %v3463_v15 }
 0x19b   : > { %v1048_v53 = vadd.f32 %v2839_v9, %v1047_v49  ;;  %v1172_v30 = vadd.f32 %v1171_v26, %v1109_v60  ;;  %v3464_v9 = vld [vmem:[#allocation18_spill] sm:$0xff]  ;;  %v1128_v60 = vmul.f32 %v3466_v12, %v3466_v12 }
 0x19d   : > { %v1049_v59 = vadd.f32 %v2855_v13, %v1048_v53  ;;  %v1173_v24 = vadd.f32 %v1172_v30, %v1110_v33  ;;  %v3465_v13 = vld [vmem:[#allocation15_spill] sm:$0xff]  ;;  %v1126_v53 = vmul.f32 %v3464_v9, %v3464_v9 }
 0x19e   : > { %v1127_v44 = vmul.f32 %v3465_v13, %v3465_v13 }
 0x19f   : > { %v1050_v17 = vadd.f32 %v1049_v59, %v3455_v63  ;;  %v1174_v28 = vadd.f32 %v1173_v24, %v1111_v50 }
 0x1a1   : > { %v1051_v2 = vadd.f32 %v1050_v17, %v3456_v57  ;;  %v1175_v34 = vadd.f32 %v1174_v28, %v1112_v6  ;;  %v1064_v17 = vld [vmem:[#allocation4] sm:$0xff] }
 0x1a3   : > { %v1052_v37 = vadd.f32 %v3457_v61, %v1051_v2  ;;  %v1176_v38 = vadd.f32 %v1175_v34, %v1113_v54 }
 0x1a5   : > { %v1053_v29 = vadd.f32 %v3458_v3, %v1052_v37  ;;  %v1177_v32 = vadd.f32 %v1176_v38, %v1114_v23 }
 0x1a7   : > { %v1054_v0 = vadd.f32 %v1053_v29, %v3459_v7  ;;  %v1178_v36 = vadd.f32 %v1177_v32, %v1115_v4 }
 0x1a9   : > { %v1055_v25 = vadd.f32 %v1054_v0, %v3460_v1  ;;  %v1179_v43 = vadd.f32 %v1178_v36, %v1116_v31 }
 0x1ab   : > { %v1056_v48 = vadd.f32 %v3461_v5, %v1055_v25  ;;  %v1180_v47 = vadd.f32 %v1179_v43, %v1117_v39 }
 0x1ad   : > { %v1057_v10 = vadd.f32 %v3462_v11, %v1056_v48  ;;  %v1181_v41 = vadd.f32 %v1180_v47, %v1118_v14 }
 0x1af   : > { %v1058_v52 = vadd.f32 %v1057_v10, %v3463_v15  ;;  %v1182_v62 = vadd.f32 %v1181_v41, %v1119_v27 }
 0x1b1   : > { %v1059_v19 = vadd.f32 %v1058_v52, %v3464_v9  ;;  %v1183_v21 = vadd.f32 %v1182_v62, %v1120_v58 }
 0x1b3   : > { %v1060_v8 = vadd.f32 %v3465_v13, %v1059_v19  ;;  %v1184_v40 = vadd.f32 %v1183_v21, %v1121_v46 }
 0x1b5   : > { %v1061_v45 = vadd.f32 %v3466_v12, %v1060_v8  ;;  %v1185_v49 = vadd.f32 %v1184_v40, %v1122_v18 }
 0x1b7   : > { %v1062_v51 = vadd.f32 %v1061_v45, %v998_v42  ;;  %v1186_v35 = vadd.f32 %v1185_v49, %v1123_v55 }
 0x1b9   : > { %1063 = vst [vmem:[#allocation3] sm:$0xff] %v1062_v51  ;;  %v1187_v16 = vadd.f32 %v1186_v35, %v1124_v22 }
 0x1bb   : > { %v1188_v59 = vadd.f32 %v1187_v16, %v1125_v56 }
 0x1bd   : > { %v1189_v20 = vadd.f32 %v1188_v59, %v1126_v53 }
 0x1bf   : > { %v1190_v63 = vadd.f32 %v1189_v20, %v1127_v44 }
 0x1c1   : > { %v1191_v33 = vadd.f32 %v1190_v63, %v1128_v60 }
 0x1c3   : > { %v1192_v26 = vadd.f32 %v1191_v33, %v1064_v17 }
 0x1c5   : > { %1193 = vst [vmem:[#allocation4] sm:$0xff] %v1192_v26 }
 0x1c6 PF: > { %p1994_p9 = scmp.ne.s32.totalorder %s2569_s16, 1 }
 0x1c7   : > { %p1198_p10 = scmp.eq.s32.totalorder (!%p1994_p9), %s2565_s15, 0 }
 0x1c8   : > { %1197 = sbr.rel (%p1994_p9) target bundleno = 570 (0x23a), region = 48 }
 0x1cd   : > { %1203 = sbr.rel (!%p1198_p10) target bundleno = 505 (0x1f9), region = 52  ;;  %v1204_v57 = vld [vmem:[#allocation3] sm:$0xff] (%p1198_p10)  ;;  %v1211_v2 = vld [vmem:[#allocation4] sm:$0xff] (%p1198_p10) }
 0x1ce   : > { %v1205_v50 = vrot.slane (%p1198_p10), %v1204_v57, 4  ;;  %v1212_v30 = vrot.slane (%p1198_p10), %v1211_v2, 4  ;;  %v1225_v5 = vld [vmem:[%s3416_s2] sm:$0x1] (%p1198_p10) }
 0x1cf   : > { %v1228_v32 = vld [vmem:[%s3417_s3] sm:$0x1] (%p1198_p10) }
 0x1d0   : > { %v1206_v61 = vadd.f32 (%p1198_p10), %v1205_v50, %v1204_v57  ;;  %v1213_v37 = vadd.f32 (%p1198_p10), %v1212_v30, %v1211_v2 }
 0x1d2   : > { %v1207_v6 = vrot.slane %v1206_v61, 2  ;;  %v1214_v24 = vrot.slane %v1213_v37, 2 }
 0x1d4   : > { %v1208_v3 = vadd.f32 %v1207_v6, %v1206_v61  ;;  %v1215_v29 = vadd.f32 %v1214_v24, %v1213_v37 }
 0x1d6   : > { %v1209_v54 = vrot.slane %v1208_v3, 1  ;;  %v1216_v28 = vrot.slane %v1215_v29, 1 }
 0x1d8   : > { %v1210_v7 = vadd.f32 %v1209_v54, %v1208_v3  ;;  %v1217_v0 = vadd.f32 %v1216_v28, %v1215_v29 }
 0x1da   : > { %v1218_v23 = vmul.f32 0.00048828125, %v1210_v7  ;;  %v1219_v34 = vmul.f32 0.00048828125, %v1217_v0 }
 0x1dc   : > { %v1220_v1 = vmul.f32 %v1218_v23, %v1218_v23 }
 0x1de   : > { %v1221_v25 = vsub.f32 %v1219_v34, %v1220_v1 }
 0x1e0   : > { %v1222_v4 = vmax.f32 %v1221_v25, 0.0 }
 0x1e2   : > { %v1223_v38 = vadd.f32 1e-05, %v1222_v4 }
 0x1e4   : > { %2541 = vrsqrt.f32 %v1223_v38 }
 0x1f1   : > { %v2542_v48 = vpop.eup %2541 }
 0x1f2   : > { %v1226_v31 = vmul.f32 %v2542_v48, %v1225_v5 }
 0x1f4   : > { %1227 = vst [vmem:[#allocation5] sm:$0x1] %v1226_v31  ;;  %v1229_v11 = vmul.f32 %v1226_v31, %v1218_v23 }
 0x1f6   : > { %v1230_v10 = vsub.f32 %v1228_v32, %v1229_v11 }
 0x1f8   : > { %1231 = vst [vmem:[#allocation6] sm:$0x1] %v1230_v10 }
 0x1f9 PF: > { %s3173_s23 = scalar_lea.vmem [#allocation2], %s1951_s25 }
 0x1fa   : > { %v1233_v15 = vld [vmem:[%s3173_s23] sm:$0xff]  ;;  %v1234_v52 = vld [vmem:[%s3173_s23 + $0x8] sm:$0xff]  ;;  %v1235_v14 = vld [vmem:[%s3173_s23 + $0x10] sm:$0xff] }
 0x1fb   : > { %v3167_v39 = vld [vmem:[#allocation5] ss:$0 sm:$0xff]  ;;  %v1236_v19 = vld [vmem:[%s3173_s23 + $0x18] sm:$0xff]  ;;  %v1237_v47 = vld [vmem:[%s3173_s23 + $0x20] sm:$0xff] }
 0x1fc   : > { %v1304_v43 = vmul.f32 %v3167_v39, %v1233_v15  ;;  %v1305_v9 = vmul.f32 %v3167_v39, %v1234_v52  ;;  %v1306_v27 = vmul.f32 %v3167_v39, %v1235_v14  ;;  %v1238_v13 = vld [vmem:[%s3173_s23 + $0x28] sm:$0xff]  ;;  %v1307_v8 = vmul.f32 %v3167_v39, %v1236_v19  ;;  %v1239_v42 = vld [vmem:[%s3173_s23 + $0x30] sm:$0xff]  ;;  %v1240_v12 = vld [vmem:[%s3173_s23 + $0x38] sm:$0xff] }
 0x1fd   : > { %v1308_v58 = vmul.f32 %v3167_v39, %v1237_v47  ;;  %v1309_v41 = vmul.f32 %v3167_v39, %v1238_v13  ;;  %v1310_v51 = vmul.f32 %v3167_v39, %v1239_v42  ;;  %v1311_v40 = vmul.f32 %v3167_v39, %v1240_v12  ;;  %v1241_v22 = vld [vmem:[%s3173_s23 + $0x40] sm:$0xff]  ;;  %v1242_v49 = vld [vmem:[%s3173_s23 + $0x48] sm:$0xff]  ;;  %v1243_v44 = vld [vmem:[%s3173_s23 + $0x50] sm:$0xff] }
 0x1fe   : > { %v1244_v17 = vld [vmem:[%s3173_s23 + $0x58] sm:$0xff]  ;;  %v1245_v33 = vld [vmem:[%s3173_s23 + $0x60] sm:$0xff]  ;;  %v1312_v2 = vmul.f32 %v3167_v39, %v1241_v22  ;;  %v1313_v50 = vmul.f32 %v3167_v39, %v1242_v49  ;;  %v1246_v30 = vld [vmem:[%s3173_s23 + $0x68] sm:$0xff]  ;;  %v1314_v3 = vmul.f32 %v3167_v39, %v1243_v44 }
 0x1ff   : > { %v3169_v36 = vld [vmem:[#allocation6] ss:$0 sm:$0xff]  ;;  %v1315_v28 = vmul.f32 %v3167_v39, %v1244_v17  ;;  %v1316_v7 = vmul.f32 %v3167_v39, %v1245_v33  ;;  %v1248_v0 = vld [vmem:[%s3173_s23 + $0x78] sm:$0xff]  ;;  %v1317_v1 = vmul.f32 %v3167_v39, %v1246_v30  ;;  %v1249_v4 = vld [vmem:[%s3173_s23 + $0x80] sm:$0xff] }
 0x200   : > { %v1375_v45 = vadd.f32 %v3169_v36, %v1304_v43  ;;  %v1376_v46 = vadd.f32 %v3169_v36, %v1305_v9  ;;  %v1377_v62 = vadd.f32 %v3169_v36, %v1306_v27  ;;  %v1378_v18 = vadd.f32 %v3169_v36, %v1307_v8  ;;  %v1247_v61 = vld [vmem:[%s3173_s23 + $0x70] sm:$0xff]  ;;  %v1250_v32 = vld [vmem:[%s3173_s23 + $0x88] sm:$0xff]  ;;  %v1252_v43 = vld [vmem:[%s3173_s23 + $0x98] sm:$0xff] }
 0x201   : > { %v1379_v21 = vadd.f32 %v3169_v36, %v1308_v58  ;;  %v1380_v55 = vadd.f32 %v3169_v36, %v1309_v41  ;;  %v1381_v16 = vadd.f32 %v3169_v36, %v1310_v51  ;;  %v1382_v63 = vadd.f32 %v3169_v36, %v1311_v40  ;;  %v1251_v14 = vld [vmem:[%s3173_s23 + $0x90] sm:$0xff]  ;;  %v1253_v13 = vld [vmem:[%s3173_s23 + $0xa0] sm:$0xff]  ;;  %v1254_v12 = vld [vmem:[%s3173_s23 + $0xa8] sm:$0xff] }
 0x202   : > { %v1439_v56 = vmax.f32 %v1375_v45, 0.0  ;;  %v1440_v35 = vmax.f32 %v1376_v46, 0.0  ;;  %v1441_v53 = vmax.f32 %v1377_v62, 0.0  ;;  %v1442_v59 = vmax.f32 %v1378_v18, 0.0  ;;  %v1255_v18 = vld [vmem:[%s3173_s23 + $0xb0] sm:$0xff]  ;;  %v1256_v49 = vld [vmem:[%s3173_s23 + $0xb8] sm:$0xff] }
 0x203   : > { %v1443_v60 = vmax.f32 %v1379_v21, 0.0  ;;  %v1444_v20 = vmax.f32 %v1380_v55, 0.0  ;;  %v1445_v57 = vmax.f32 %v1381_v16, 0.0  ;;  %v1446_v24 = vmax.f32 %v1382_v63, 0.0  ;;  %v1257_v44 = vld [vmem:[%s3173_s23 + $0xc0] sm:$0xff]  ;;  %v1258_v17 = vld [vmem:[%s3173_s23 + $0xc8] sm:$0xff] }
 0x204   : > { %v2136_v26 = vpack.c.bf16 %v1440_v35, %v1439_v56  ;;  %v2141_v37 = vpack.c.bf16 %v1442_v59, %v1441_v53  ;;  %v1383_v29 = vadd.f32 %v3169_v36, %v1312_v2  ;;  %v1384_v54 = vadd.f32 %v3169_v36, %v1313_v50  ;;  %v1259_v50 = vld [vmem:[%s3173_s23 + $0xd0] sm:$0xff]  ;;  %v1260_v30 = vld [vmem:[%s3173_s23 + $0xd8] sm:$0xff] }
 0x205   : > { %v2146_v6 = vpack.c.bf16 %v1444_v20, %v1443_v60  ;;  %v2151_v23 = vpack.c.bf16 %v1446_v24, %v1445_v57  ;;  %v1385_v34 = vadd.f32 %v3169_v36, %v1314_v3  ;;  %v1318_v25 = vmul.f32 %v3167_v39, %v1247_v61  ;;  %v1261_v3 = vld [vmem:[%s3173_s23 + $0xe0] sm:$0xff] }
 0x206   : > { %2137 = vst [vmem:[%s2661_s11] sm:$0xff] %v2136_v26   ;;  %2293 = vst [vmem:[%s2661_s11 + $0x8] sm:$0xff] %v2141_v37   ;;  %v1447_v38 = vmax.f32 %v1383_v29, 0.0  ;;  %v1448_v5 = vmax.f32 %v1384_v54, 0.0  ;;  %v1386_v48 = vadd.f32 %v3169_v36, %v1315_v28  ;;  %v1387_v31 = vadd.f32 %v3169_v36, %v1316_v7 }
 0x207   : > { %2294 = vst [vmem:[%s2661_s11 + $0x10] sm:$0xff] %v2146_v6   ;;  %2295 = vst [vmem:[%s2661_s11 + $0x18] sm:$0xff] %v2151_v23   ;;  %v1449_v11 = vmax.f32 %v1385_v34, 0.0  ;;  %v1388_v10 = vadd.f32 %v3169_v36, %v1317_v1  ;;  %v1319_v15 = vmul.f32 %v3167_v39, %v1248_v0  ;;  %v1389_v52 = vadd.f32 %v3169_v36, %v1318_v25  ;;  %v1262_v0 = vld [vmem:[%s3173_s23 + $0xe8] sm:$0xff] }
 0x208   : > { %v2156_v9 = vpack.c.bf16 %v1448_v5, %v1447_v38  ;;  %v1450_v19 = vmax.f32 %v1386_v48, 0.0  ;;  %v1451_v27 = vmax.f32 %v1387_v31, 0.0  ;;  %v1320_v47 = vmul.f32 %v3167_v39, %v1249_v4  ;;  %v1263_v4 = vld [vmem:[%s3173_s23 + $0xf0] sm:$0xff] }
 0x209   : > { %v1452_v8 = vmax.f32 %v1388_v10, 0.0  ;;  %v1390_v58 = vadd.f32 %v3169_v36, %v1319_v15  ;;  %v1453_v41 = vmax.f32 %v1389_v52, 0.0  ;;  %v1321_v42 = vmul.f32 %v3167_v39, %v1250_v32  ;;  %v1264_v32 = vld [vmem:[%s3173_s23 + $0xf8] sm:$0xff] }
 0x20a   : > { %2296 = vst [vmem:[%s2661_s11 + $0x20] sm:$0xff] %v2156_v9   ;;  %v2161_v45 = vpack.c.bf16 %v1450_v19, %v1449_v11  ;;  %v1391_v46 = vadd.f32 %v3169_v36, %v1320_v47  ;;  %v1322_v62 = vmul.f32 %v3167_v39, %v1251_v14  ;;  %v1323_v51 = vmul.f32 %v3167_v39, %v1252_v43  ;;  %v1265_v14 = vld [vmem:[%s3173_s23 + $0x100] sm:$0xff]  ;;  %v1266_v47 = vld [vmem:[%s3173_s23 + $0x108] sm:$0xff] }
 0x20b   : > { %v2166_v21 = vpack.c.bf16 %v1452_v8, %v1451_v27  ;;  %v1454_v55 = vmax.f32 %v1390_v58, 0.0  ;;  %v1392_v40 = vadd.f32 %v3169_v36, %v1321_v42  ;;  %v1324_v22 = vmul.f32 %v3167_v39, %v1253_v13  ;;  %v1267_v42 = vld [vmem:[%s3173_s23 + $0x110] sm:$0xff] }
 0x20c   : > { %2297 = vst [vmem:[%s2661_s11 + $0x28] sm:$0xff] %v2161_v45   ;;  %v1455_v56 = vmax.f32 %v1391_v46, 0.0  ;;  %v1393_v35 = vadd.f32 %v3169_v36, %v1322_v62  ;;  %v1394_v53 = vadd.f32 %v3169_v36, %v1323_v51  ;;  %v1325_v16 = vmul.f32 %v3167_v39, %v1254_v12  ;;  %v1268_v12 = vld [vmem:[%s3173_s23 + $0x118] sm:$0xff] }
 0x20d   : > { %2298 = vst [vmem:[%s2661_s11 + $0x30] sm:$0xff] %v2166_v21   ;;  %v2171_v59 = vpack.c.bf16 %v1454_v55, %v1453_v41  ;;  %v1456_v60 = vmax.f32 %v1392_v40, 0.0  ;;  %v1395_v20 = vadd.f32 %v3169_v36, %v1324_v22  ;;  %v1326_v63 = vmul.f32 %v3167_v39, %v1255_v18  ;;  %v1269_v18 = vld [vmem:[%s3173_s23 + $0x120] sm:$0xff] }
 0x20e   : > { %v1457_v33 = vmax.f32 %v1393_v35, 0.0  ;;  %v1458_v26 = vmax.f32 %v1394_v53, 0.0  ;;  %v1396_v57 = vadd.f32 %v3169_v36, %v1325_v16  ;;  %v1327_v2 = vmul.f32 %v3167_v39, %v1256_v49  ;;  %v1270_v49 = vld [vmem:[%s3173_s23 + $0x128] sm:$0xff] }
 0x20f   : > { %2299 = vst [vmem:[%s2661_s11 + $0x38] sm:$0xff] %v2171_v59   ;;  %v2176_v61 = vpack.c.bf16 %v1456_v60, %v1455_v56  ;;  %v1459_v37 = vmax.f32 %v1395_v20, 0.0  ;;  %v1397_v6 = vadd.f32 %v3169_v36, %v1326_v63  ;;  %v1328_v24 = vmul.f32 %v3167_v39, %v1257_v44  ;;  %v1271_v44 = vld [vmem:[%s3173_s23 + $0x130] sm:$0xff] }
 0x210   : > { %v2181_v29 = vpack.c.bf16 %v1458_v26, %v1457_v33  ;;  %v1460_v54 = vmax.f32 %v1396_v57, 0.0  ;;  %v1398_v28 = vadd.f32 %v3169_v36, %v1327_v2  ;;  %v1329_v7 = vmul.f32 %v3167_v39, %v1258_v17  ;;  %v1272_v17 = vld [vmem:[%s3173_s23 + $0x138] sm:$0xff] }
 0x211   : > { %2300 = vst [vmem:[%s2661_s11 + $0x40] sm:$0xff] %v2176_v61   ;;  %v1461_v23 = vmax.f32 %v1397_v6, 0.0  ;;  %v1399_v34 = vadd.f32 %v3169_v36, %v1328_v24  ;;  %v1330_v1 = vmul.f32 %v3167_v39, %v1259_v50  ;;  %v1331_v25 = vmul.f32 %v3167_v39, %v1260_v30  ;;  %v1273_v50 = vld [vmem:[%s3173_s23 + $0x140] sm:$0xff]  ;;  %v1274_v24 = vld [vmem:[%s3173_s23 + $0x148] sm:$0xff] }
 0x212   : > { %2301 = vst [vmem:[%s2661_s11 + $0x48] sm:$0xff] %v2181_v29   ;;  %v2186_v38 = vpack.c.bf16 %v1460_v54, %v1459_v37  ;;  %v1462_v5 = vmax.f32 %v1398_v28, 0.0  ;;  %v1400_v48 = vadd.f32 %v3169_v36, %v1329_v7  ;;  %v1332_v31 = vmul.f32 %v3167_v39, %v1261_v3  ;;  %v1275_v7 = vld [vmem:[%s3173_s23 + $0x150] sm:$0xff] }
 0x213   : > { %v1463_v11 = vmax.f32 %v1399_v34, 0.0  ;;  %v1401_v10 = vadd.f32 %v3169_v36, %v1330_v1  ;;  %v1402_v15 = vadd.f32 %v3169_v36, %v1331_v25  ;;  %v1333_v52 = vmul.f32 %v3167_v39, %v1262_v0  ;;  %v1276_v0 = vld [vmem:[%s3173_s23 + $0x158] sm:$0xff] }
 0x214   : > { %2302 = vst [vmem:[%s2661_s11 + $0x50] sm:$0xff] %v2186_v38   ;;  %v2191_v43 = vpack.c.bf16 %v1462_v5, %v1461_v23  ;;  %v1464_v9 = vmax.f32 %v1400_v48, 0.0  ;;  %v1403_v19 = vadd.f32 %v3169_v36, %v1332_v31  ;;  %v1334_v27 = vmul.f32 %v3167_v39, %v1263_v4  ;;  %v1277_v4 = vld [vmem:[%s3173_s23 + $0x160] sm:$0xff] }
 0x215   : > { %v1465_v13 = vmax.f32 %v1401_v10, 0.0  ;;  %v1466_v8 = vmax.f32 %v1402_v15, 0.0  ;;  %v1404_v58 = vadd.f32 %v3169_v36, %v1333_v52  ;;  %v1335_v41 = vmul.f32 %v3167_v39, %v1264_v32  ;;  %v1278_v32 = vld [vmem:[%s3173_s23 + $0x168] sm:$0xff] }
 0x216   : > { %2303 = vst [vmem:[%s2661_s11 + $0x58] sm:$0xff] %v2191_v43   ;;  %v2196_v45 = vpack.c.bf16 %v1464_v9, %v1463_v11  ;;  %v1467_v46 = vmax.f32 %v1403_v19, 0.0  ;;  %v1405_v62 = vadd.f32 %v3169_v36, %v1334_v27  ;;  %v1336_v51 = vmul.f32 %v3167_v39, %v1265_v14  ;;  %v1279_v14 = vld [vmem:[%s3173_s23 + $0x170] sm:$0xff] }
 0x217   : > { %v2201_v21 = vpack.c.bf16 %v1466_v8, %v1465_v13  ;;  %v1468_v55 = vmax.f32 %v1404_v58, 0.0  ;;  %v1406_v40 = vadd.f32 %v3169_v36, %v1335_v41  ;;  %v1337_v22 = vmul.f32 %v3167_v39, %v1266_v47  ;;  %v1280_v47 = vld [vmem:[%s3173_s23 + $0x178] sm:$0xff] }
 0x218   : > { %2304 = vst [vmem:[%s2661_s11 + $0x60] sm:$0xff] %v2196_v45   ;;  %v1469_v56 = vmax.f32 %v1405_v62, 0.0  ;;  %v1407_v35 = vadd.f32 %v3169_v36, %v1336_v51  ;;  %v1338_v53 = vmul.f32 %v3167_v39, %v1267_v42  ;;  %v1339_v16 = vmul.f32 %v3167_v39, %v1268_v12  ;;  %v1281_v42 = vld [vmem:[%s3173_s23 + $0x180] sm:$0xff]  ;;  %v1282_v51 = vld [vmem:[%s3173_s23 + $0x188] sm:$0xff] }
 0x219   : > { %2305 = vst [vmem:[%s2661_s11 + $0x68] sm:$0xff] %v2201_v21   ;;  %v2206_v59 = vpack.c.bf16 %v1468_v55, %v1467_v46  ;;  %v1470_v60 = vmax.f32 %v1406_v40, 0.0  ;;  %v1408_v20 = vadd.f32 %v3169_v36, %v1337_v22  ;;  %v1340_v63 = vmul.f32 %v3167_v39, %v1269_v18  ;;  %v1283_v22 = vld [vmem:[%s3173_s23 + $0x190] sm:$0xff] }
 0x21a   : > { %v1471_v33 = vmax.f32 %v1407_v35, 0.0  ;;  %v1409_v26 = vadd.f32 %v3169_v36, %v1338_v53  ;;  %v1410_v57 = vadd.f32 %v3169_v36, %v1339_v16  ;;  %v1341_v2 = vmul.f32 %v3167_v39, %v1270_v49  ;;  %v1284_v49 = vld [vmem:[%s3173_s23 + $0x198] sm:$0xff] }
 0x21b   : > { %2306 = vst [vmem:[%s2661_s11 + $0x70] sm:$0xff] %v2206_v59   ;;  %v2211_v30 = vpack.c.bf16 %v1470_v60, %v1469_v56  ;;  %v1472_v61 = vmax.f32 %v1408_v20, 0.0  ;;  %v1411_v37 = vadd.f32 %v3169_v36, %v1340_v63  ;;  %v1342_v6 = vmul.f32 %v3167_v39, %v1271_v44  ;;  %v1285_v44 = vld [vmem:[%s3173_s23 + $0x1a0] sm:$0xff] }
 0x21c   : > { %v1473_v3 = vmax.f32 %v1409_v26, 0.0  ;;  %v1474_v29 = vmax.f32 %v1410_v57, 0.0  ;;  %v1412_v54 = vadd.f32 %v3169_v36, %v1341_v2  ;;  %v1343_v28 = vmul.f32 %v3167_v39, %v1272_v17  ;;  %v1286_v17 = vld [vmem:[%s3173_s23 + $0x1a8] sm:$0xff] }
 0x21d   : > { %2307 = vst [vmem:[%s2661_s11 + $0x78] sm:$0xff] %v2211_v30   ;;  %v2216_v23 = vpack.c.bf16 %v1472_v61, %v1471_v33  ;;  %v1475_v34 = vmax.f32 %v1411_v37, 0.0  ;;  %v1413_v1 = vadd.f32 %v3169_v36, %v1342_v6  ;;  %v1344_v25 = vmul.f32 %v3167_v39, %v1273_v50  ;;  %v1287_v50 = vld [vmem:[%s3173_s23 + $0x1b0] sm:$0xff] }
 0x21e   : > { %v2221_v38 = vpack.c.bf16 %v1474_v29, %v1473_v3  ;;  %v1476_v5 = vmax.f32 %v1412_v54, 0.0  ;;  %v1414_v48 = vadd.f32 %v3169_v36, %v1343_v28  ;;  %v1345_v31 = vmul.f32 %v3167_v39, %v1274_v24  ;;  %v1288_v24 = vld [vmem:[%s3173_s23 + $0x1b8] sm:$0xff] }
 0x21f   : > { %2308 = vst [vmem:[%s2661_s11 + $0x80] sm:$0xff] %v2216_v23   ;;  %v1477_v11 = vmax.f32 %v1413_v1, 0.0  ;;  %v1415_v10 = vadd.f32 %v3169_v36, %v1344_v25  ;;  %v1346_v15 = vmul.f32 %v3167_v39, %v1275_v7  ;;  %v1347_v52 = vmul.f32 %v3167_v39, %v1276_v0  ;;  %v1289_v7 = vld [vmem:[%s3173_s23 + $0x1c0] sm:$0xff]  ;;  %v1290_v25 = vld [vmem:[%s3173_s23 + $0x1c8] sm:$0xff] }
 0x220   : > { %2309 = vst [vmem:[%s2661_s11 + $0x88] sm:$0xff] %v2221_v38   ;;  %v2226_v43 = vpack.c.bf16 %v1476_v5, %v1475_v34  ;;  %v1478_v9 = vmax.f32 %v1414_v48, 0.0  ;;  %v1416_v19 = vadd.f32 %v3169_v36, %v1345_v31  ;;  %v1348_v27 = vmul.f32 %v3167_v39, %v1277_v4  ;;  %v1291_v31 = vld [vmem:[%s3173_s23 + $0x1d0] sm:$0xff] }
 0x221   : > { %v1479_v13 = vmax.f32 %v1415_v10, 0.0  ;;  %v1417_v8 = vadd.f32 %v3169_v36, %v1346_v15  ;;  %v1418_v58 = vadd.f32 %v3169_v36, %v1347_v52  ;;  %v1349_v41 = vmul.f32 %v3167_v39, %v1278_v32  ;;  %v1292_v32 = vld [vmem:[%s3173_s23 + $0x1d8] sm:$0xff] }
 0x222   : > { %2310 = vst [vmem:[%s2661_s11 + $0x90] sm:$0xff] %v2226_v43   ;;  %v2231_v12 = vpack.c.bf16 %v1478_v9, %v1477_v11  ;;  %v1480_v45 = vmax.f32 %v1416_v19, 0.0  ;;  %v1419_v46 = vadd.f32 %v3169_v36, %v1348_v27  ;;  %v1350_v62 = vmul.f32 %v3167_v39, %v1279_v14  ;;  %v1293_v14 = vld [vmem:[%s3173_s23 + $0x1e0] sm:$0xff] }
 0x223   : > { %v1481_v18 = vmax.f32 %v1417_v8, 0.0  ;;  %v1482_v21 = vmax.f32 %v1418_v58, 0.0  ;;  %v1420_v55 = vadd.f32 %v3169_v36, %v1349_v41  ;;  %v1351_v40 = vmul.f32 %v3167_v39, %v1280_v47  ;;  %v1294_v47 = vld [vmem:[%s3173_s23 + $0x1e8] sm:$0xff] }
 0x224   : > { %2311 = vst [vmem:[%s2661_s11 + $0x98] sm:$0xff] %v2231_v12   ;;  %v2236_v56 = vpack.c.bf16 %v1480_v45, %v1479_v13  ;;  %v1483_v35 = vmax.f32 %v1419_v46, 0.0  ;;  %v1421_v53 = vadd.f32 %v3169_v36, %v1350_v62  ;;  %v1352_v16 = vmul.f32 %v3167_v39, %v1281_v42  ;;  %v1295_v42 = vld [vmem:[%s3173_s23 + $0x1f0] sm:$0xff] }
 0x225   : > { %v2241_v59 = vpack.c.bf16 %v1482_v21, %v1481_v18  ;;  %v1484_v60 = vmax.f32 %v1420_v55, 0.0  ;;  %v1422_v20 = vadd.f32 %v3169_v36, %v1351_v40  ;;  %v1353_v63 = vmul.f32 %v3167_v39, %v1282_v51  ;;  %v1296_v51 = vld [vmem:[%s3173_s23 + $0x1f8] sm:$0xff] }
 0x226   : > { %2312 = vst [vmem:[%s2661_s11 + $0xa0] sm:$0xff] %v2236_v56   ;;  %v1485_v33 = vmax.f32 %v1421_v53, 0.0  ;;  %v1423_v26 = vadd.f32 %v3169_v36, %v1352_v16  ;;  %v1354_v57 = vmul.f32 %v3167_v39, %v1283_v22  ;;  %v1355_v2 = vmul.f32 %v3167_v39, %v1284_v49 }
 0x227   : > { %2313 = vst [vmem:[%s2661_s11 + $0xa8] sm:$0xff] %v2241_v59   ;;  %v2246_v30 = vpack.c.bf16 %v1484_v60, %v1483_v35  ;;  %v1486_v61 = vmax.f32 %v1422_v20, 0.0  ;;  %v1424_v37 = vadd.f32 %v3169_v36, %v1353_v63  ;;  %v1356_v6 = vmul.f32 %v3167_v39, %v1285_v44 }
 0x228   : > { %v1487_v3 = vmax.f32 %v1423_v26, 0.0  ;;  %v1425_v29 = vadd.f32 %v3169_v36, %v1354_v57  ;;  %v1426_v54 = vadd.f32 %v3169_v36, %v1355_v2  ;;  %v1357_v28 = vmul.f32 %v3167_v39, %v1286_v17 }
 0x229   : > { %2314 = vst [vmem:[%s2661_s11 + $0xb0] sm:$0xff] %v2246_v30   ;;  %v2251_v0 = vpack.c.bf16 %v1486_v61, %v1485_v33  ;;  %v1488_v23 = vmax.f32 %v1424_v37, 0.0  ;;  %v1427_v34 = vadd.f32 %v3169_v36, %v1356_v6  ;;  %v1358_v1 = vmul.f32 %v3167_v39, %v1287_v50 }
 0x22a   : > { %v1489_v4 = vmax.f32 %v1425_v29, 0.0  ;;  %v1490_v38 = vmax.f32 %v1426_v54, 0.0  ;;  %v1428_v5 = vadd.f32 %v3169_v36, %v1357_v28  ;;  %v1359_v48 = vmul.f32 %v3167_v39, %v1288_v24 }
 0x22b   : > { %2315 = vst [vmem:[%s2661_s11 + $0xb8] sm:$0xff] %v2251_v0   ;;  %v2256_v11 = vpack.c.bf16 %v1488_v23, %v1487_v3  ;;  %v1491_v10 = vmax.f32 %v1427_v34, 0.0  ;;  %v1429_v15 = vadd.f32 %v3169_v36, %v1358_v1  ;;  %v1360_v52 = vmul.f32 %v3167_v39, %v1289_v7 }
 0x22c   : > { %v2261_v43 = vpack.c.bf16 %v1490_v38, %v1489_v4  ;;  %v1492_v9 = vmax.f32 %v1428_v5, 0.0  ;;  %v1430_v19 = vadd.f32 %v3169_v36, %v1359_v48  ;;  %v1361_v27 = vmul.f32 %v3167_v39, %v1290_v25 }
 0x22d   : > { %2316 = vst [vmem:[%s2661_s11 + $0xc0] sm:$0xff] %v2256_v11   ;;  %v1493_v13 = vmax.f32 %v1429_v15, 0.0  ;;  %v1431_v8 = vadd.f32 %v3169_v36, %v1360_v52  ;;  %v1362_v58 = vmul.f32 %v3167_v39, %v1291_v31  ;;  %v1363_v41 = vmul.f32 %v3167_v39, %v1292_v32 }
 0x22e   : > { %2317 = vst [vmem:[%s2661_s11 + $0xc8] sm:$0xff] %v2261_v43   ;;  %v2266_v12 = vpack.c.bf16 %v1492_v9, %v1491_v10  ;;  %v1494_v45 = vmax.f32 %v1430_v19, 0.0  ;;  %v1432_v46 = vadd.f32 %v3169_v36, %v1361_v27  ;;  %v1364_v62 = vmul.f32 %v3167_v39, %v1293_v14 }
 0x22f   : > { %v1495_v18 = vmax.f32 %v1431_v8, 0.0  ;;  %v1433_v21 = vadd.f32 %v3169_v36, %v1362_v58  ;;  %v1434_v55 = vadd.f32 %v3169_v36, %v1363_v41  ;;  %v1365_v40 = vmul.f32 %v3167_v39, %v1294_v47 }
 0x230   : > { %2318 = vst [vmem:[%s2661_s11 + $0xd0] sm:$0xff] %v2266_v12   ;;  %v2271_v22 = vpack.c.bf16 %v1494_v45, %v1493_v13  ;;  %v1496_v49 = vmax.f32 %v1432_v46, 0.0  ;;  %v1435_v56 = vadd.f32 %v3169_v36, %v1364_v62  ;;  %v1366_v35 = vmul.f32 %v3167_v39, %v1295_v42 }
 0x231   : > { %v1497_v53 = vmax.f32 %v1433_v21, 0.0  ;;  %v1498_v16 = vmax.f32 %v1434_v55, 0.0  ;;  %v1436_v44 = vadd.f32 %v3169_v36, %v1365_v40  ;;  %v1367_v59 = vmul.f32 %v3167_v39, %v1296_v51 }
 0x232   : > { %2319 = vst [vmem:[%s2661_s11 + $0xd8] sm:$0xff] %v2271_v22   ;;  %v2276_v60 = vpack.c.bf16 %v1496_v49, %v1495_v18  ;;  %v1499_v20 = vmax.f32 %v1435_v56, 0.0  ;;  %v1437_v63 = vadd.f32 %v3169_v36, %v1366_v35 }
 0x233   : > { %v2281_v17 = vpack.c.bf16 %v1498_v16, %v1497_v53  ;;  %v1500_v33 = vmax.f32 %v1436_v44, 0.0  ;;  %v1438_v26 = vadd.f32 %v3169_v36, %v1367_v59 }
 0x234   : > { %2320 = vst [vmem:[%s2661_s11 + $0xe0] sm:$0xff] %v2276_v60   ;;  %v1501_v57 = vmax.f32 %v1437_v63, 0.0 }
 0x235   : > { %2321 = vst [vmem:[%s2661_s11 + $0xe8] sm:$0xff] %v2281_v17   ;;  %v2286_v2 = vpack.c.bf16 %v1500_v33, %v1499_v20  ;;  %v1502_v50 = vmax.f32 %v1438_v26, 0.0 }
 0x237   : > { %2322 = vst [vmem:[%s2661_s11 + $0xf0] sm:$0xff] %v2286_v2   ;;  %v2291_v30 = vpack.c.bf16 %v1502_v50, %v1501_v57 }
 0x239   : > { %2323 = vst [vmem:[%s2661_s11 + $0xf8] sm:$0xff] %v2291_v30  }
 0x23a PF: > { %s14_s19 = sadd.s32 1, %s2581_s19   ;;  %s3467_s15 = smov %s2573_s17 }
 0x23b   : > { %p11_p11 = scmp.ge.s32.totalorder %s14_s19, 10   ;;  %s3468_s16 = smov %s2577_s18 }
 0x23c   : > { %s3469_s17 = smov %s3472_s20  ;;  %s3470_s18 = smov %s3476_s21 }
 0x23d   :  { %13 = sbr.rel (!%p11_p11) target bundleno = 3 (0x3), region = 87 }

// kernel: generator_forward.9
= control target key start
LH: loop header
LB: loop body
LE: loop exit
PB: predicated region body
PF: predicated region fallthrough
CT: control target
= control target key end

     0   :  { %s8085_s15 = smov 0   ;;  %s8087_s16 = smov 0   ;;  %s11010_s0 = inlined_call_operand.vmem [shape: bf16[4,2048,128], index: 0, kind: input, shape index: {}]   ;;  %s11011_s1 = inlined_call_operand.vmem [shape: bf16[4,128,128], index: 1, kind: input, shape index: {}]   ;;  %s11012_s2 = inlined_call_operand.vmem [shape: f32[1,128], index: 2, kind: input, shape index: {}]   ;;  %s11013_s3 = inlined_call_operand.vmem [shape: f32[1,128], index: 3, kind: input, shape index: {}]   ;;  %s11014_s4 = inlined_call_operand.vmem [shape: bf16[4,2048,128], index: 4, kind: output, shape index: {}]  }
   0x1   :  { %s8089_s17 = smov 0   ;;  %s8091_s18 = smov 0  }
   0x2   :  { %s8093_s19 = smov 0  }
   0x3 LB: > { %s29_s20 = sadd.s32 1, %s8049_s17  ;;  %s33_s21 = sadd.s32 1, %s8053_s18  ;;  %s8057_s19 = sphi %s8093_s19, %s14_s19   ;;  %s8053_s18 = sphi %s8091_s18, %s11834_s18   ;;  %s8049_s17 = sphi %s8089_s17, %s11833_s17   ;;  %s8045_s16 = sphi %s8087_s16, %s11832_s16   ;;  %s8041_s15 = sphi %s8085_s15, %s11831_s15  }
   0x4   : > { %p31_p0 = scmp.ge.s32.totalorder %s29_s20, 4  ;;  %p5976_p1 = scmp.ge.s32.totalorder %s8057_s19, 1 }
   0x5   : > { %p224_p2 = scmp.lt.s32.totalorder %s8057_s19, 9 }
   0x6   : > { %s11836_s20 = smov (%p31_p0, %s29_s20), 0  ;;  %s11838_s21 = smov (!%p31_p0, %s33_s21), %s8053_s18 }
   0x7   : > { %p225_p3 = pnand %p5976_p1, %p224_p2  ;;  %p35_p4 = scmp.ge.s32.totalorder %s11838_s21, 2 }
   0x8   : > { %s270_s22 = ssub.s32 (!%p225_p3), 1, %s8045_s16  ;;  %s295_s23 = smul.u32 (!%p225_p3), %s8041_s15, %s8045_s16 }
   0x9   : > { %s11840_s21 = smov (%p35_p4, %s11838_s21), 0  ;;  %228 = sbr.rel (%p225_p3) target bundleno = 1317 (0x525), region = 36 }
   0xa   : > { %s271_s24 = smul.u32 (!%p225_p3), %s8041_s15, %s270_s22  ;;  %s5983_s25 = sshll.u32 (!%p225_p3), %s8041_s15, 11 }
   0xb   : > { %p298_p5 = scmp.lt.s32.totalorder (!%p225_p3), %s295_s23, 3  ;;  %p5984_p7 = scmp.ne.s32.totalorder (!%p225_p3), %s8045_s16, 0 }
   0xc   : > { %p274_p6 = scmp.lt.s32.totalorder (!%p225_p3), %s271_s24, 3 }
   0xe   : > { %s11842_s23 = smov (!%p298_p5, %s295_s23), 3  ;;  %s11844_s24 = smov (!%p274_p6, %s271_s24), 3 }
   0xf   : > { %s6386_s26 = sshll.u32 %s11842_s23, 10  ;;  %s6384_s27 = sshll.u32 %s11844_s24, 10 }
  0x10   : > { %s6385_s28 = sshll.u32 %s11844_s24, 6  ;;  %s8127_s5 = scalar_lea.vmem %s11010_s0, %s6384_s27 }
  0x11   : > { %s8132_s8 = scalar_lea.vmem %s11011_s1, %s6385_s28  ;;  %s8137_s11 = scalar_lea.vmem %s11014_s4, %s6386_s26 }
  0x12   : > { %315 = sbr.rel (%p5984_p7) target bundleno = 1033 (0x409), region = 40 }
  0x17   : > { %v7877_v0 = vld [vmem:[%s8132_s8 + $0x38] sm:$0xff]   ;;  %v7878_v1 = vld [vmem:[%s8132_s8 + $0x30] sm:$0xff]   ;;  %v7879_v2 = vld [vmem:[%s8132_s8 + $0x28] sm:$0xff]   ;;  %s8256_s12 = scalar_lea.vmem [#allocation2], %s5983_s25  ;;  %p2718_p8 = scmp.eq.s32.totalorder %s8041_s15, 0 }
  0x18   : > { %7548 = vmatprep.subr.bf16.mxu0 %v7877_v0  ;;  %7820 = vmatprep.subr.bf16.mxu1 %v7877_v0  ;;  %v7880_v3 = vld [vmem:[%s8132_s8 + $0x20] sm:$0xff]   ;;  %v7881_v6 = vld [vmem:[%s8132_s8 + $0x18] sm:$0xff]   ;;  %v7882_v7 = vld [vmem:[%s8132_s8 + $0x10] sm:$0xff]  }
  0x19   : > { %7549 = vmatpush3.bf16.msra.mxu0 %v7877_v0  ;;  %7828 = vmatpush3.bf16.msra.mxu1 %v7877_v0  ;;  %v7885_v4 = vld [vmem:[%s8127_s5] sm:$0xff]   ;;  %v7883_v8 = vld [vmem:[%s8132_s8 + $0x8] sm:$0xff]   ;;  %v7889_v12 = vld [vmem:[%s8127_s5 + $0x10] sm:$0xff]  }
  0x1a   : > { %7550 = vmatprep.subr.bf16.mxu0 %v7878_v1  ;;  %7821 = vmatprep.subr.bf16.mxu1 %v7878_v1  ;;  %v7886_v5 = vld [vmem:[%s8127_s5 + $0x200] sm:$0xff]   ;;  %v7887_v10 = vld [vmem:[%s8127_s5 + $0x8] sm:$0xff]   ;;  %v7890_v13 = vld [vmem:[%s8127_s5 + $0x210] sm:$0xff]  }
  0x1b   : > { %7564 = vmatprep.mubr.bf16.mxu0 %v7885_v4  ;;  %7692 = vmatprep.mubr.bf16.mxu1 %v7886_v5  ;;  %v7884_v9 = vld [vmem:[%s8132_s8] sm:$0xff]   ;;  %v7888_v11 = vld [vmem:[%s8127_s5 + $0x208] sm:$0xff]   ;;  %v7891_v14 = vld [vmem:[%s8127_s5 + $0x18] sm:$0xff]  }
  0x1c   : > { %v7892_v15 = vld [vmem:[%s8127_s5 + $0x218] sm:$0xff]   ;;  %v7893_v16 = vld [vmem:[%s8127_s5 + $0x20] sm:$0xff]   ;;  %v7895_v18 = vld [vmem:[%s8127_s5 + $0x28] sm:$0xff]  }
  0x1d   : > { %7551 = vmatpush3.bf16.msra.mxu0 %v7878_v1  ;;  %7829 = vmatpush3.bf16.msra.mxu1 %v7878_v1  ;;  %v7894_v17 = vld [vmem:[%s8127_s5 + $0x220] sm:$0xff]   ;;  %v7896_v19 = vld [vmem:[%s8127_s5 + $0x228] sm:$0xff]   ;;  %v7897_v20 = vld [vmem:[%s8127_s5 + $0x30] sm:$0xff]  }
  0x1e   : > { %7552 = vmatprep.subr.bf16.mxu0 %v7879_v2  ;;  %7822 = vmatprep.subr.bf16.mxu1 %v7879_v2  ;;  %v7898_v21 = vld [vmem:[%s8127_s5 + $0x230] sm:$0xff]   ;;  %v7899_v22 = vld [vmem:[%s8127_s5 + $0x38] sm:$0xff]   ;;  %v7901_v24 = vld [vmem:[%s8127_s5 + $0x40] sm:$0xff]  }
  0x1f   : > { %v7900_v23 = vld [vmem:[%s8127_s5 + $0x238] sm:$0xff]   ;;  %v7902_v25 = vld [vmem:[%s8127_s5 + $0x240] sm:$0xff]   ;;  %v7903_v26 = vld [vmem:[%s8127_s5 + $0x48] sm:$0xff]  }
  0x20   : > { %v7904_v27 = vld [vmem:[%s8127_s5 + $0x248] sm:$0xff]   ;;  %v7905_v28 = vld [vmem:[%s8127_s5 + $0x50] sm:$0xff]   ;;  %v7907_v30 = vld [vmem:[%s8127_s5 + $0x58] sm:$0xff]  }
  0x21   : > { %7553 = vmatpush3.bf16.msra.mxu0 %v7879_v2  ;;  %7830 = vmatpush3.bf16.msra.mxu1 %v7879_v2  ;;  %v7906_v29 = vld [vmem:[%s8127_s5 + $0x250] sm:$0xff]   ;;  %v7908_v31 = vld [vmem:[%s8127_s5 + $0x258] sm:$0xff]   ;;  %v7909_v32 = vld [vmem:[%s8127_s5 + $0x60] sm:$0xff]  }
  0x22   : > { %7554 = vmatprep.subr.bf16.mxu0 %v7880_v3  ;;  %7823 = vmatprep.subr.bf16.mxu1 %v7880_v3  ;;  %v7910_v33 = vld [vmem:[%s8127_s5 + $0x260] sm:$0xff]   ;;  %v7911_v34 = vld [vmem:[%s8127_s5 + $0x68] sm:$0xff]   ;;  %v7913_v36 = vld [vmem:[%s8127_s5 + $0x70] sm:$0xff]  }
  0x23   : > { %v7912_v35 = vld [vmem:[%s8127_s5 + $0x268] sm:$0xff]   ;;  %v7914_v37 = vld [vmem:[%s8127_s5 + $0x270] sm:$0xff]   ;;  %v7915_v38 = vld [vmem:[%s8127_s5 + $0x78] sm:$0xff]  }
  0x24   : > { %v7916_v39 = vld [vmem:[%s8127_s5 + $0x278] sm:$0xff]   ;;  %v7917_v40 = vld [vmem:[%s8127_s5 + $0x80] sm:$0xff]   ;;  %v7919_v42 = vld [vmem:[%s8127_s5 + $0x88] sm:$0xff]  }
  0x25   : > { %7555 = vmatpush3.bf16.msra.mxu0 %v7880_v3  ;;  %7831 = vmatpush3.bf16.msra.mxu1 %v7880_v3  ;;  %v7918_v41 = vld [vmem:[%s8127_s5 + $0x280] sm:$0xff]   ;;  %v7920_v43 = vld [vmem:[%s8127_s5 + $0x288] sm:$0xff]   ;;  %v7921_v44 = vld [vmem:[%s8127_s5 + $0x90] sm:$0xff]  }
  0x26   : > { %7556 = vmatprep.subr.bf16.mxu0 %v7881_v6  ;;  %7824 = vmatprep.subr.bf16.mxu1 %v7881_v6  ;;  %v7922_v45 = vld [vmem:[%s8127_s5 + $0x290] sm:$0xff]   ;;  %v7923_v46 = vld [vmem:[%s8127_s5 + $0x98] sm:$0xff]   ;;  %v7925_v48 = vld [vmem:[%s8127_s5 + $0xa0] sm:$0xff]  }
  0x27   : > { %v7924_v47 = vld [vmem:[%s8127_s5 + $0x298] sm:$0xff]   ;;  %v7926_v49 = vld [vmem:[%s8127_s5 + $0x2a0] sm:$0xff]   ;;  %v7927_v50 = vld [vmem:[%s8127_s5 + $0xa8] sm:$0xff]  }
  0x28   : > { %v7928_v51 = vld [vmem:[%s8127_s5 + $0x2a8] sm:$0xff]   ;;  %v7929_v52 = vld [vmem:[%s8127_s5 + $0xb0] sm:$0xff]   ;;  %v7931_v54 = vld [vmem:[%s8127_s5 + $0xb8] sm:$0xff]  }
  0x29   : > { %7557 = vmatpush3.bf16.msra.mxu0 %v7881_v6  ;;  %7832 = vmatpush3.bf16.msra.mxu1 %v7881_v6  ;;  %v7930_v53 = vld [vmem:[%s8127_s5 + $0x2b0] sm:$0xff]   ;;  %v7932_v55 = vld [vmem:[%s8127_s5 + $0x2b8] sm:$0xff]   ;;  %v7933_v56 = vld [vmem:[%s8127_s5 + $0xc0] sm:$0xff]  }
  0x2a   : > { %7558 = vmatprep.subr.bf16.mxu0 %v7882_v7  ;;  %7825 = vmatprep.subr.bf16.mxu1 %v7882_v7  ;;  %v7934_v57 = vld [vmem:[%s8127_s5 + $0x2c0] sm:$0xff]   ;;  %v7935_v58 = vld [vmem:[%s8127_s5 + $0xc8] sm:$0xff]   ;;  %v7937_v60 = vld [vmem:[%s8127_s5 + $0xd0] sm:$0xff]  }
  0x2b   : > { %v7936_v59 = vld [vmem:[%s8127_s5 + $0x2c8] sm:$0xff]   ;;  %v7938_v61 = vld [vmem:[%s8127_s5 + $0x2d0] sm:$0xff]   ;;  %v7939_v62 = vld [vmem:[%s8127_s5 + $0xd8] sm:$0xff]  }
  0x2c   : > { %v7940_v63 = vld [vmem:[%s8127_s5 + $0x2d8] sm:$0xff]   ;;  %v7941_v0 = vld [vmem:[%s8127_s5 + $0xe0] sm:$0xff]   ;;  %v7943_v2 = vld [vmem:[%s8127_s5 + $0xe8] sm:$0xff]  }
  0x2d   : > { %7559 = vmatpush3.bf16.msra.mxu0 %v7882_v7  ;;  %7833 = vmatpush3.bf16.msra.mxu1 %v7882_v7  ;;  %v7942_v1 = vld [vmem:[%s8127_s5 + $0x2e0] sm:$0xff]   ;;  %v7944_v3 = vld [vmem:[%s8127_s5 + $0x2e8] sm:$0xff]   ;;  %v7945_v4 = vld [vmem:[%s8127_s5 + $0xf0] sm:$0xff]  }
  0x2e   : > { %7560 = vmatprep.subr.bf16.mxu0 %v7883_v8  ;;  %7826 = vmatprep.subr.bf16.mxu1 %v7883_v8  ;;  %v7946_v5 = vld [vmem:[%s8127_s5 + $0x2f0] sm:$0xff]   ;;  %v7947_v6 = vld [vmem:[%s8127_s5 + $0xf8] sm:$0xff]  }
  0x2f   : > { %v7948_v7 = vld [vmem:[%s8127_s5 + $0x2f8] sm:$0xff]  }
  0x31   : > { %7561 = vmatpush3.bf16.msra.mxu0 %v7883_v8  ;;  %7834 = vmatpush3.bf16.msra.mxu1 %v7883_v8  ;;  %v7949_v8 = vld [vmem:[%s8127_s5 + $0x100] sm:$0xff]  }
  0x32   : > { %7562 = vmatprep.subr.bf16.mxu0 %v7884_v9  ;;  %7827 = vmatprep.subr.bf16.mxu1 %v7884_v9 }
  0x35   : > { %7563 = vmatpush3.bf16.msra.mxu0 %v7884_v9  ;;  %7835 = vmatpush3.bf16.msra.mxu1 %v7884_v9  ;;  %v7950_v9 = vld [vmem:[%s8127_s5 + $0x300] sm:$0xff]  }
  0x38   : > { %7565 = vmatmul.mubr.bf16.vlgmr.msra.gmra.mxu0 %v7887_v10  ;;  %7693 = vmatmul.mubr.bf16.vlgmr.msra.gmra.mxu1 %v7888_v11  ;;  %v7951_v10 = vld [vmem:[%s8127_s5 + $0x108] sm:$0xff]  }
  0x39   : > { %7568 = vmatprep.mubr.bf16.mxu0 %v7889_v12  ;;  %7696 = vmatprep.mubr.bf16.mxu1 %v7890_v13  ;;  %v7952_v11 = vld [vmem:[%s8127_s5 + $0x308] sm:$0xff]   ;;  %v7953_v12 = vld [vmem:[%s8127_s5 + $0x110] sm:$0xff]  }
  0x3a   : > { %v7954_v13 = vld [vmem:[%s8127_s5 + $0x310] sm:$0xff]  }
  0x40   : > { %7569 = vmatmul.mubr.bf16.gmra.mxu0 %v7891_v14  ;;  %7697 = vmatmul.mubr.bf16.gmra.mxu1 %v7892_v15  ;;  %v7955_v14 = vld [vmem:[%s8127_s5 + $0x118] sm:$0xff]  }
  0x41   : > { %7572 = vmatprep.mubr.bf16.mxu0 %v7893_v16  ;;  %7700 = vmatprep.mubr.bf16.mxu1 %v7894_v17  ;;  %v7956_v15 = vld [vmem:[%s8127_s5 + $0x318] sm:$0xff]   ;;  %v7957_v16 = vld [vmem:[%s8127_s5 + $0x120] sm:$0xff]  }
  0x42   : > { %v7958_v17 = vld [vmem:[%s8127_s5 + $0x320] sm:$0xff]  }
  0x48   : > { %7573 = vmatmul.mubr.bf16.gmra.mxu0 %v7895_v18  ;;  %7701 = vmatmul.mubr.bf16.gmra.mxu1 %v7896_v19  ;;  %v7959_v18 = vld [vmem:[%s8127_s5 + $0x128] sm:$0xff]  }
  0x49   : > { %7576 = vmatprep.mubr.bf16.mxu0 %v7897_v20  ;;  %7704 = vmatprep.mubr.bf16.mxu1 %v7898_v21  ;;  %v7960_v19 = vld [vmem:[%s8127_s5 + $0x328] sm:$0xff]   ;;  %v7961_v20 = vld [vmem:[%s8127_s5 + $0x130] sm:$0xff]  }
  0x4a   : > { %v7962_v21 = vld [vmem:[%s8127_s5 + $0x330] sm:$0xff]  }
  0x50   : > { %7577 = vmatmul.mubr.bf16.gmra.mxu0 %v7899_v22  ;;  %7705 = vmatmul.mubr.bf16.gmra.mxu1 %v7900_v23  ;;  %v7963_v22 = vld [vmem:[%s8127_s5 + $0x138] sm:$0xff]  }
  0x51   : > { %7580 = vmatprep.mubr.bf16.mxu0 %v7901_v24  ;;  %7708 = vmatprep.mubr.bf16.mxu1 %v7902_v25  ;;  %v7964_v23 = vld [vmem:[%s8127_s5 + $0x338] sm:$0xff]   ;;  %v7965_v24 = vld [vmem:[%s8127_s5 + $0x140] sm:$0xff]  }
  0x52   : > { %v7966_v25 = vld [vmem:[%s8127_s5 + $0x340] sm:$0xff]  }
  0x58   : > { %7581 = vmatmul.mubr.bf16.gmra.mxu0 %v7903_v26  ;;  %7709 = vmatmul.mubr.bf16.gmra.mxu1 %v7904_v27  ;;  %v7967_v26 = vld [vmem:[%s8127_s5 + $0x148] sm:$0xff]  }
  0x59   : > { %7584 = vmatprep.mubr.bf16.mxu0 %v7905_v28  ;;  %7712 = vmatprep.mubr.bf16.mxu1 %v7906_v29  ;;  %v7968_v27 = vld [vmem:[%s8127_s5 + $0x348] sm:$0xff]   ;;  %v7969_v28 = vld [vmem:[%s8127_s5 + $0x150] sm:$0xff]  }
  0x5a   : > { %v7970_v29 = vld [vmem:[%s8127_s5 + $0x350] sm:$0xff]  }
  0x60   : > { %7585 = vmatmul.mubr.bf16.gmra.mxu0 %v7907_v30  ;;  %7713 = vmatmul.mubr.bf16.gmra.mxu1 %v7908_v31  ;;  %v7971_v30 = vld [vmem:[%s8127_s5 + $0x158] sm:$0xff]  }
  0x61   : > { %7588 = vmatprep.mubr.bf16.mxu0 %v7909_v32  ;;  %7716 = vmatprep.mubr.bf16.mxu1 %v7910_v33  ;;  %v7972_v31 = vld [vmem:[%s8127_s5 + $0x358] sm:$0xff]   ;;  %v7973_v32 = vld [vmem:[%s8127_s5 + $0x160] sm:$0xff]  }
  0x62   : > { %v7974_v33 = vld [vmem:[%s8127_s5 + $0x360] sm:$0xff]  }
  0x68   : > { %7589 = vmatmul.mubr.bf16.gmra.mxu0 %v7911_v34  ;;  %7717 = vmatmul.mubr.bf16.gmra.mxu1 %v7912_v35  ;;  %v7975_v34 = vld [vmem:[%s8127_s5 + $0x168] sm:$0xff]  }
  0x69   : > { %7592 = vmatprep.mubr.bf16.mxu0 %v7913_v36  ;;  %7720 = vmatprep.mubr.bf16.mxu1 %v7914_v37  ;;  %v7976_v35 = vld [vmem:[%s8127_s5 + $0x368] sm:$0xff]   ;;  %v7977_v36 = vld [vmem:[%s8127_s5 + $0x170] sm:$0xff]  }
  0x6a   : > { %v7978_v37 = vld [vmem:[%s8127_s5 + $0x370] sm:$0xff]  }
  0x70   : > { %7593 = vmatmul.mubr.bf16.gmra.mxu0 %v7915_v38  ;;  %7721 = vmatmul.mubr.bf16.gmra.mxu1 %v7916_v39  ;;  %v7979_v38 = vld [vmem:[%s8127_s5 + $0x178] sm:$0xff]  }
  0x71   : > { %7596 = vmatprep.mubr.bf16.mxu0 %v7917_v40  ;;  %7724 = vmatprep.mubr.bf16.mxu1 %v7918_v41  ;;  %v7980_v39 = vld [vmem:[%s8127_s5 + $0x378] sm:$0xff]   ;;  %v7981_v40 = vld [vmem:[%s8127_s5 + $0x180] sm:$0xff]  }
  0x72   : > { %v7982_v41 = vld [vmem:[%s8127_s5 + $0x380] sm:$0xff]  }
  0x78   : > { %7597 = vmatmul.mubr.bf16.gmra.mxu0 %v7919_v42  ;;  %7725 = vmatmul.mubr.bf16.gmra.mxu1 %v7920_v43  ;;  %v7983_v42 = vld [vmem:[%s8127_s5 + $0x188] sm:$0xff]  }
  0x79   : > { %7600 = vmatprep.mubr.bf16.mxu0 %v7921_v44  ;;  %7728 = vmatprep.mubr.bf16.mxu1 %v7922_v45  ;;  %v7984_v43 = vld [vmem:[%s8127_s5 + $0x388] sm:$0xff]   ;;  %v7985_v44 = vld [vmem:[%s8127_s5 + $0x190] sm:$0xff]  }
  0x7a   : > { %v7986_v45 = vld [vmem:[%s8127_s5 + $0x390] sm:$0xff]  }
  0x80   : > { %7601 = vmatmul.mubr.bf16.gmra.mxu0 %v7923_v46  ;;  %7729 = vmatmul.mubr.bf16.gmra.mxu1 %v7924_v47 }
  0x81   : > { %7604 = vmatprep.mubr.bf16.mxu0 %v7925_v48  ;;  %7732 = vmatprep.mubr.bf16.mxu1 %v7926_v49 }
  0x88   : > { %7605 = vmatmul.mubr.bf16.gmra.mxu0 %v7927_v50  ;;  %7733 = vmatmul.mubr.bf16.gmra.mxu1 %v7928_v51 }
  0x89   : > { %7608 = vmatprep.mubr.bf16.mxu0 %v7929_v52  ;;  %7736 = vmatprep.mubr.bf16.mxu1 %v7930_v53  ;;  %v7987_v52 = vld [vmem:[%s8127_s5 + $0x198] sm:$0xff]  }
  0x8a   : > { %v7988_v53 = vld [vmem:[%s8127_s5 + $0x398] sm:$0xff]  }
  0x90   : > { %7609 = vmatmul.mubr.bf16.gmra.mxu0 %v7931_v54  ;;  %7737 = vmatmul.mubr.bf16.gmra.mxu1 %v7932_v55  ;;  %v7989_v54 = vld [vmem:[%s8127_s5 + $0x1a0] sm:$0xff]  }
  0x91   : > { %7612 = vmatprep.mubr.bf16.mxu0 %v7933_v56  ;;  %7740 = vmatprep.mubr.bf16.mxu1 %v7934_v57  ;;  %v7990_v55 = vld [vmem:[%s8127_s5 + $0x3a0] sm:$0xff]  }
  0x98   : > { %7613 = vmatmul.mubr.bf16.gmra.mxu0 %v7935_v58  ;;  %7741 = vmatmul.mubr.bf16.gmra.mxu1 %v7936_v59 }
  0x99   : > { %7616 = vmatprep.mubr.bf16.mxu0 %v7937_v60  ;;  %7744 = vmatprep.mubr.bf16.mxu1 %v7938_v61 }
  0xa0   : > { %7617 = vmatmul.mubr.bf16.gmra.mxu0 %v7939_v62  ;;  %7745 = vmatmul.mubr.bf16.gmra.mxu1 %v7940_v63 }
  0xa1   : > { %7620 = vmatprep.mubr.bf16.mxu0 %v7941_v0  ;;  %7748 = vmatprep.mubr.bf16.mxu1 %v7942_v1  ;;  %v7991_v0 = vld [vmem:[%s8127_s5 + $0x1a8] sm:$0xff]  }
  0xa2   : > { %v7992_v1 = vld [vmem:[%s8127_s5 + $0x3a8] sm:$0xff]  }
  0xa8   : > { %7621 = vmatmul.mubr.bf16.gmra.mxu0 %v7943_v2  ;;  %7749 = vmatmul.mubr.bf16.gmra.mxu1 %v7944_v3  ;;  %v7993_v2 = vld [vmem:[%s8127_s5 + $0x1b0] sm:$0xff]  }
  0xa9   : > { %7624 = vmatprep.mubr.bf16.mxu0 %v7945_v4  ;;  %7752 = vmatprep.mubr.bf16.mxu1 %v7946_v5  ;;  %v7994_v3 = vld [vmem:[%s8127_s5 + $0x3b0] sm:$0xff]  }
  0xb0   : > { %7625 = vmatmul.mubr.bf16.gmra.mxu0 %v7947_v6  ;;  %7753 = vmatmul.mubr.bf16.gmra.mxu1 %v7948_v7 }
  0xb1   : > { %7628 = vmatprep.mubr.bf16.mxu0 %v7949_v8  ;;  %7756 = vmatprep.mubr.bf16.mxu1 %v7950_v9 }
  0xb8   : > { %7629 = vmatmul.mubr.bf16.gmra.mxu0 %v7951_v10  ;;  %7757 = vmatmul.mubr.bf16.gmra.mxu1 %v7952_v11 }
  0xb9   : > { %7632 = vmatprep.mubr.bf16.mxu0 %v7953_v12  ;;  %7760 = vmatprep.mubr.bf16.mxu1 %v7954_v13  ;;  %v7995_v12 = vld [vmem:[%s8127_s5 + $0x1b8] sm:$0xff]  }
  0xba   : > { %v7996_v13 = vld [vmem:[%s8127_s5 + $0x3b8] sm:$0xff]  }
  0xc0   : > { %7633 = vmatmul.mubr.bf16.gmra.mxu0 %v7955_v14  ;;  %7761 = vmatmul.mubr.bf16.gmra.mxu1 %v7956_v15  ;;  %v7997_v14 = vld [vmem:[%s8127_s5 + $0x1c0] sm:$0xff]  }
  0xc1   : > { %7636 = vmatprep.mubr.bf16.mxu0 %v7957_v16  ;;  %7764 = vmatprep.mubr.bf16.mxu1 %v7958_v17  ;;  %v7998_v15 = vld [vmem:[%s8127_s5 + $0x3c0] sm:$0xff]  }
  0xc8   : > { %7637 = vmatmul.mubr.bf16.gmra.mxu0 %v7959_v18  ;;  %7765 = vmatmul.mubr.bf16.gmra.mxu1 %v7960_v19 }
  0xc9   : > { %7640 = vmatprep.mubr.bf16.mxu0 %v7961_v20  ;;  %7768 = vmatprep.mubr.bf16.mxu1 %v7962_v21 }
  0xd0   : > { %7641 = vmatmul.mubr.bf16.gmra.mxu0 %v7963_v22  ;;  %7769 = vmatmul.mubr.bf16.gmra.mxu1 %v7964_v23 }
  0xd1   : > { %7644 = vmatprep.mubr.bf16.mxu0 %v7965_v24  ;;  %7772 = vmatprep.mubr.bf16.mxu1 %v7966_v25  ;;  %v7999_v24 = vld [vmem:[%s8127_s5 + $0x1c8] sm:$0xff]  }
  0xd2   : > { %v8000_v25 = vld [vmem:[%s8127_s5 + $0x3c8] sm:$0xff]  }
  0xd8   : > { %7645 = vmatmul.mubr.bf16.gmra.mxu0 %v7967_v26  ;;  %7773 = vmatmul.mubr.bf16.gmra.mxu1 %v7968_v27  ;;  %v8001_v26 = vld [vmem:[%s8127_s5 + $0x1d0] sm:$0xff]  }
  0xd9   : > { %7648 = vmatprep.mubr.bf16.mxu0 %v7969_v28  ;;  %7776 = vmatprep.mubr.bf16.mxu1 %v7970_v29  ;;  %v8002_v27 = vld [vmem:[%s8127_s5 + $0x3d0] sm:$0xff]  }
  0xe0   : > { %7649 = vmatmul.mubr.bf16.gmra.mxu0 %v7971_v30  ;;  %7777 = vmatmul.mubr.bf16.gmra.mxu1 %v7972_v31 }
  0xe1   : > { %7652 = vmatprep.mubr.bf16.mxu0 %v7973_v32  ;;  %7780 = vmatprep.mubr.bf16.mxu1 %v7974_v33 }
  0xe8   : > { %7653 = vmatmul.mubr.bf16.gmra.mxu0 %v7975_v34  ;;  %7781 = vmatmul.mubr.bf16.gmra.mxu1 %v7976_v35 }
  0xe9   : > { %7656 = vmatprep.mubr.bf16.mxu0 %v7977_v36  ;;  %7784 = vmatprep.mubr.bf16.mxu1 %v7978_v37  ;;  %v8003_v36 = vld [vmem:[%s8127_s5 + $0x1d8] sm:$0xff]  }
  0xea   : > { %v8004_v37 = vld [vmem:[%s8127_s5 + $0x3d8] sm:$0xff]  }
  0xf0   : > { %7657 = vmatmul.mubr.bf16.gmra.mxu0 %v7979_v38  ;;  %7785 = vmatmul.mubr.bf16.gmra.mxu1 %v7980_v39  ;;  %v8005_v38 = vld [vmem:[%s8127_s5 + $0x1e0] sm:$0xff]  }
  0xf1   : > { %7660 = vmatprep.mubr.bf16.mxu0 %v7981_v40  ;;  %7788 = vmatprep.mubr.bf16.mxu1 %v7982_v41  ;;  %v8006_v39 = vld [vmem:[%s8127_s5 + $0x3e0] sm:$0xff]  }
  0xf8   : > { %v8250_v46 = vpop.f32.mrf.mxu0  ;;  %7661 = vmatmul.mubr.bf16.gmra.mxu0 %v7983_v42  ;;  %v8252_v47 = vpop.f32.mrf.mxu1  ;;  %7789 = vmatmul.mubr.bf16.gmra.mxu1 %v7984_v43 }
  0xf9   : > { %11423 = vst [vmem:[#allocation7_spill] sm:$0xff] %v8252_v47  ;;  %2464 = vst [vmem:[%s8256_s12 + $0x10] sm:$0xff] %v8250_v46  ;;  %7664 = vmatprep.mubr.bf16.mxu0 %v7985_v44  ;;  %7792 = vmatprep.mubr.bf16.mxu1 %v7986_v45 }
  0xfa   : > { %2592 = vst [vmem:[%s8256_s12 + $0x410] sm:$0xff] %v8252_v47  ;;  %v8262_v48 = vpop.f32.mrf.mxu0  ;;  %v8264_v49 = vpop.f32.mrf.mxu1 }
  0xfb   : > { %11424 = vst [vmem:[#allocation8_spill] sm:$0xff] %v8264_v49  ;;  %2462 = vst [vmem:[%s8256_s12] sm:$0xff] %v8262_v48 }
  0xfc   : > { %2590 = vst [vmem:[%s8256_s12 + $0x400] sm:$0xff] %v8264_v49  ;;  %v8270_v50 = vpop.f32.mrf.mxu0  ;;  %v8272_v51 = vpop.f32.mrf.mxu1 }
  0xfd   : > { %11425 = vst [vmem:[#allocation9_spill] sm:$0xff] %v8272_v51  ;;  %2465 = vst [vmem:[%s8256_s12 + $0x18] sm:$0xff] %v8270_v50 }
  0xfe   : > { %2593 = vst [vmem:[%s8256_s12 + $0x418] sm:$0xff] %v8272_v51  ;;  %v8282_v56 = vpop.f32.mrf.mxu0  ;;  %v8284_v57 = vpop.f32.mrf.mxu1 }
  0xff   : > { %11426 = vst [vmem:[#allocation10_spill] sm:$0xff] %v8284_v57  ;;  %2463 = vst [vmem:[%s8256_s12 + $0x8] sm:$0xff] %v8282_v56 }
 0x100   : > { %2591 = vst [vmem:[%s8256_s12 + $0x408] sm:$0xff] %v8284_v57  ;;  %v8290_v58 = vpop.f32.mrf.mxu0  ;;  %7665 = vmatmul.mubr.bf16.gmra.mxu0 %v7987_v52  ;;  %v8292_v59 = vpop.f32.mrf.mxu1  ;;  %7793 = vmatmul.mubr.bf16.gmra.mxu1 %v7988_v53 }
 0x101   : > { %11427 = vst [vmem:[#allocation11_spill] sm:$0xff] %v8292_v59  ;;  %2468 = vst [vmem:[%s8256_s12 + $0x30] sm:$0xff] %v8290_v58  ;;  %7668 = vmatprep.mubr.bf16.mxu0 %v7989_v54  ;;  %7796 = vmatprep.mubr.bf16.mxu1 %v7990_v55  ;;  %v8007_v54 = vld [vmem:[%s8127_s5 + $0x1e8] sm:$0xff]  }
 0x102   : > { %2596 = vst [vmem:[%s8256_s12 + $0x430] sm:$0xff] %v8292_v59  ;;  %v8298_v60 = vpop.f32.mrf.mxu0  ;;  %v8300_v61 = vpop.f32.mrf.mxu1  ;;  %v8008_v55 = vld [vmem:[%s8127_s5 + $0x3e8] sm:$0xff]  }
 0x103   : > { %11428 = vst [vmem:[#allocation12_spill] sm:$0xff] %v8300_v61  ;;  %2466 = vst [vmem:[%s8256_s12 + $0x20] sm:$0xff] %v8298_v60 }
 0x104   : > { %2594 = vst [vmem:[%s8256_s12 + $0x420] sm:$0xff] %v8300_v61  ;;  %v8306_v62 = vpop.f32.mrf.mxu0  ;;  %v8308_v63 = vpop.f32.mrf.mxu1 }
 0x105   : > { %11429 = vst [vmem:[#allocation13_spill] sm:$0xff] %v8308_v63  ;;  %2469 = vst [vmem:[%s8256_s12 + $0x38] sm:$0xff] %v8306_v62 }
 0x106   : > { %2597 = vst [vmem:[%s8256_s12 + $0x438] sm:$0xff] %v8308_v63  ;;  %v8318_v4 = vpop.f32.mrf.mxu0  ;;  %v8320_v5 = vpop.f32.mrf.mxu1 }
 0x107   : > { %11430 = vst [vmem:[#allocation14_spill] sm:$0xff] %v8320_v5  ;;  %2467 = vst [vmem:[%s8256_s12 + $0x28] sm:$0xff] %v8318_v4 }
 0x108   : > { %2595 = vst [vmem:[%s8256_s12 + $0x428] sm:$0xff] %v8320_v5  ;;  %v8326_v6 = vpop.f32.mrf.mxu0  ;;  %7669 = vmatmul.mubr.bf16.gmra.mxu0 %v7991_v0  ;;  %v8328_v7 = vpop.f32.mrf.mxu1  ;;  %7797 = vmatmul.mubr.bf16.gmra.mxu1 %v7992_v1  ;;  %v8009_v0 = vld [vmem:[%s8127_s5 + $0x1f0] sm:$0xff]  }
 0x109   : > { %11431 = vst [vmem:[#allocation15_spill] sm:$0xff] %v8328_v7  ;;  %2472 = vst [vmem:[%s8256_s12 + $0x50] sm:$0xff] %v8326_v6  ;;  %7672 = vmatprep.mubr.bf16.mxu0 %v7993_v2  ;;  %7800 = vmatprep.mubr.bf16.mxu1 %v7994_v3  ;;  %v8010_v1 = vld [vmem:[%s8127_s5 + $0x3f0] sm:$0xff]  }
 0x10a   : > { %2600 = vst [vmem:[%s8256_s12 + $0x450] sm:$0xff] %v8328_v7  ;;  %v8334_v8 = vpop.f32.mrf.mxu0  ;;  %v8336_v9 = vpop.f32.mrf.mxu1 }
 0x10b   : > { %11432 = vst [vmem:[#allocation16_spill] sm:$0xff] %v8336_v9  ;;  %2470 = vst [vmem:[%s8256_s12 + $0x40] sm:$0xff] %v8334_v8 }
 0x10c   : > { %2598 = vst [vmem:[%s8256_s12 + $0x440] sm:$0xff] %v8336_v9  ;;  %v8342_v10 = vpop.f32.mrf.mxu0  ;;  %v8344_v11 = vpop.f32.mrf.mxu1 }
 0x10d   : > { %11433 = vst [vmem:[#allocation17_spill] sm:$0xff] %v8344_v11  ;;  %2473 = vst [vmem:[%s8256_s12 + $0x58] sm:$0xff] %v8342_v10 }
 0x10e   : > { %2601 = vst [vmem:[%s8256_s12 + $0x458] sm:$0xff] %v8344_v11  ;;  %v8354_v16 = vpop.f32.mrf.mxu0  ;;  %v8356_v17 = vpop.f32.mrf.mxu1 }
 0x10f   : > { %11434 = vst [vmem:[#allocation18_spill] sm:$0xff] %v8356_v17  ;;  %2471 = vst [vmem:[%s8256_s12 + $0x48] sm:$0xff] %v8354_v16 }
 0x110   : > { %2599 = vst [vmem:[%s8256_s12 + $0x448] sm:$0xff] %v8356_v17  ;;  %v8362_v18 = vpop.f32.mrf.mxu0  ;;  %7673 = vmatmul.mubr.bf16.gmra.mxu0 %v7995_v12  ;;  %v8364_v19 = vpop.f32.mrf.mxu1  ;;  %7801 = vmatmul.mubr.bf16.gmra.mxu1 %v7996_v13 }
 0x111   : > { %11435 = vst [vmem:[#allocation19_spill] sm:$0xff] %v8364_v19  ;;  %2476 = vst [vmem:[%s8256_s12 + $0x70] sm:$0xff] %v8362_v18  ;;  %7676 = vmatprep.mubr.bf16.mxu0 %v7997_v14  ;;  %7804 = vmatprep.mubr.bf16.mxu1 %v7998_v15 }
 0x112   : > { %2604 = vst [vmem:[%s8256_s12 + $0x470] sm:$0xff] %v8364_v19  ;;  %v8370_v20 = vpop.f32.mrf.mxu0  ;;  %v8372_v21 = vpop.f32.mrf.mxu1 }
 0x113   : > { %11436 = vst [vmem:[#allocation20_spill] sm:$0xff] %v8372_v21  ;;  %2474 = vst [vmem:[%s8256_s12 + $0x60] sm:$0xff] %v8370_v20 }
 0x114   : > { %2602 = vst [vmem:[%s8256_s12 + $0x460] sm:$0xff] %v8372_v21  ;;  %v8378_v22 = vpop.f32.mrf.mxu0  ;;  %v8380_v23 = vpop.f32.mrf.mxu1 }
 0x115   : > { %11437 = vst [vmem:[#allocation21_spill] sm:$0xff] %v8380_v23  ;;  %2477 = vst [vmem:[%s8256_s12 + $0x78] sm:$0xff] %v8378_v22 }
 0x116   : > { %2605 = vst [vmem:[%s8256_s12 + $0x478] sm:$0xff] %v8380_v23  ;;  %v8390_v28 = vpop.f32.mrf.mxu0  ;;  %v8392_v29 = vpop.f32.mrf.mxu1 }
 0x117   : > { %11438 = vst [vmem:[#allocation22_spill] sm:$0xff] %v8392_v29  ;;  %2475 = vst [vmem:[%s8256_s12 + $0x68] sm:$0xff] %v8390_v28 }
 0x118   : > { %2603 = vst [vmem:[%s8256_s12 + $0x468] sm:$0xff] %v8392_v29  ;;  %v8398_v30 = vpop.f32.mrf.mxu0  ;;  %7677 = vmatmul.mubr.bf16.gmra.mxu0 %v7999_v24  ;;  %v8400_v31 = vpop.f32.mrf.mxu1  ;;  %7805 = vmatmul.mubr.bf16.gmra.mxu1 %v8000_v25 }
 0x119   : > { %11439 = vst [vmem:[#allocation23_spill] sm:$0xff] %v8400_v31  ;;  %2480 = vst [vmem:[%s8256_s12 + $0x90] sm:$0xff] %v8398_v30  ;;  %7680 = vmatprep.mubr.bf16.mxu0 %v8001_v26  ;;  %7808 = vmatprep.mubr.bf16.mxu1 %v8002_v27  ;;  %v8011_v26 = vld [vmem:[%s8127_s5 + $0x1f8] sm:$0xff]  }
 0x11a   : > { %2608 = vst [vmem:[%s8256_s12 + $0x490] sm:$0xff] %v8400_v31  ;;  %v8406_v32 = vpop.f32.mrf.mxu0  ;;  %v8408_v33 = vpop.f32.mrf.mxu1  ;;  %v8012_v27 = vld [vmem:[%s8127_s5 + $0x3f8] sm:$0xff]  }
 0x11b   : > { %11440 = vst [vmem:[#allocation24_spill] sm:$0xff] %v8408_v33  ;;  %2478 = vst [vmem:[%s8256_s12 + $0x80] sm:$0xff] %v8406_v32 }
 0x11c   : > { %2606 = vst [vmem:[%s8256_s12 + $0x480] sm:$0xff] %v8408_v33  ;;  %v8414_v34 = vpop.f32.mrf.mxu0  ;;  %v8416_v35 = vpop.f32.mrf.mxu1 }
 0x11d   : > { %11441 = vst [vmem:[#allocation25_spill] sm:$0xff] %v8416_v35  ;;  %2481 = vst [vmem:[%s8256_s12 + $0x98] sm:$0xff] %v8414_v34 }
 0x11e   : > { %2609 = vst [vmem:[%s8256_s12 + $0x498] sm:$0xff] %v8416_v35  ;;  %v8426_v40 = vpop.f32.mrf.mxu0  ;;  %v8428_v41 = vpop.f32.mrf.mxu1 }
 0x11f   : > { %11442 = vst [vmem:[#allocation26_spill] sm:$0xff] %v8428_v41  ;;  %2479 = vst [vmem:[%s8256_s12 + $0x88] sm:$0xff] %v8426_v40 }
 0x120   : > { %2607 = vst [vmem:[%s8256_s12 + $0x488] sm:$0xff] %v8428_v41  ;;  %v8434_v42 = vpop.f32.mrf.mxu0  ;;  %7681 = vmatmul.mubr.bf16.gmra.mxu0 %v8003_v36  ;;  %v8436_v43 = vpop.f32.mrf.mxu1  ;;  %7809 = vmatmul.mubr.bf16.gmra.mxu1 %v8004_v37 }
 0x121   : > { %11443 = vst [vmem:[#allocation27_spill] sm:$0xff] %v8436_v43  ;;  %2484 = vst [vmem:[%s8256_s12 + $0xb0] sm:$0xff] %v8434_v42  ;;  %7684 = vmatprep.mubr.bf16.mxu0 %v8005_v38  ;;  %7812 = vmatprep.mubr.bf16.mxu1 %v8006_v39 }
 0x122   : > { %2612 = vst [vmem:[%s8256_s12 + $0x4b0] sm:$0xff] %v8436_v43  ;;  %v8442_v44 = vpop.f32.mrf.mxu0  ;;  %v8444_v45 = vpop.f32.mrf.mxu1 }
 0x123   : > { %11444 = vst [vmem:[#allocation28_spill] sm:$0xff] %v8444_v45  ;;  %2482 = vst [vmem:[%s8256_s12 + $0xa0] sm:$0xff] %v8442_v44 }
 0x124   : > { %2610 = vst [vmem:[%s8256_s12 + $0x4a0] sm:$0xff] %v8444_v45  ;;  %v8450_v52 = vpop.f32.mrf.mxu0  ;;  %v8452_v53 = vpop.f32.mrf.mxu1 }
 0x125   : > { %11445 = vst [vmem:[#allocation29_spill] sm:$0xff] %v8452_v53  ;;  %2485 = vst [vmem:[%s8256_s12 + $0xb8] sm:$0xff] %v8450_v52 }
 0x126   : > { %2613 = vst [vmem:[%s8256_s12 + $0x4b8] sm:$0xff] %v8452_v53  ;;  %v8462_v2 = vpop.f32.mrf.mxu0  ;;  %v8464_v3 = vpop.f32.mrf.mxu1 }
 0x127   : > { %11446 = vst [vmem:[#allocation30_spill] sm:$0xff] %v8464_v3  ;;  %2483 = vst [vmem:[%s8256_s12 + $0xa8] sm:$0xff] %v8462_v2 }
 0x128   : > { %2611 = vst [vmem:[%s8256_s12 + $0x4a8] sm:$0xff] %v8464_v3  ;;  %v8470_v12 = vpop.f32.mrf.mxu0  ;;  %7685 = vmatmul.mubr.bf16.gmra.mxu0 %v8007_v54  ;;  %v8472_v13 = vpop.f32.mrf.mxu1  ;;  %7813 = vmatmul.mubr.bf16.gmra.mxu1 %v8008_v55 }
 0x129   : > { %11447 = vst [vmem:[#allocation31_spill] sm:$0xff] %v8472_v13  ;;  %2488 = vst [vmem:[%s8256_s12 + $0xd0] sm:$0xff] %v8470_v12  ;;  %7688 = vmatprep.mubr.bf16.mxu0 %v8009_v0  ;;  %7816 = vmatprep.mubr.bf16.mxu1 %v8010_v1 }
 0x12a   : > { %2616 = vst [vmem:[%s8256_s12 + $0x4d0] sm:$0xff] %v8472_v13  ;;  %v8478_v14 = vpop.f32.mrf.mxu0  ;;  %v8480_v15 = vpop.f32.mrf.mxu1 }
 0x12b   : > { %11448 = vst [vmem:[#allocation32_spill] sm:$0xff] %v8480_v15  ;;  %2486 = vst [vmem:[%s8256_s12 + $0xc0] sm:$0xff] %v8478_v14 }
 0x12c   : > { %2614 = vst [vmem:[%s8256_s12 + $0x4c0] sm:$0xff] %v8480_v15  ;;  %v8486_v24 = vpop.f32.mrf.mxu0  ;;  %v8488_v25 = vpop.f32.mrf.mxu1 }
 0x12d   : > { %11449 = vst [vmem:[#allocation33_spill] sm:$0xff] %v8488_v25  ;;  %2489 = vst [vmem:[%s8256_s12 + $0xd8] sm:$0xff] %v8486_v24 }
 0x12e   : > { %2617 = vst [vmem:[%s8256_s12 + $0x4d8] sm:$0xff] %v8488_v25  ;;  %v8496_v36 = vpop.f32.mrf.mxu0  ;;  %v8498_v37 = vpop.f32.mrf.mxu1 }
 0x12f   : > { %11450 = vst [vmem:[#allocation34_spill] sm:$0xff] %v8498_v37  ;;  %2487 = vst [vmem:[%s8256_s12 + $0xc8] sm:$0xff] %v8496_v36 }
 0x130   : > { %2615 = vst [vmem:[%s8256_s12 + $0x4c8] sm:$0xff] %v8498_v37  ;;  %v8504_v38 = vpop.f32.mrf.mxu0  ;;  %7689 = vmatmul.mubr.bf16.gmra.mxu0 %v8011_v26  ;;  %v8506_v39 = vpop.f32.mrf.mxu1  ;;  %7817 = vmatmul.mubr.bf16.gmra.mxu1 %v8012_v27 }
 0x131   : > { %11451 = vst [vmem:[#allocation35_spill] sm:$0xff] %v8506_v39  ;;  %2492 = vst [vmem:[%s8256_s12 + $0xf0] sm:$0xff] %v8504_v38 }
 0x132   : > { %2620 = vst [vmem:[%s8256_s12 + $0x4f0] sm:$0xff] %v8506_v39  ;;  %v8512_v54 = vpop.f32.mrf.mxu0  ;;  %v8514_v55 = vpop.f32.mrf.mxu1 }
 0x133   : > { %11452 = vst [vmem:[#allocation36_spill] sm:$0xff] %v8514_v55  ;;  %2490 = vst [vmem:[%s8256_s12 + $0xe0] sm:$0xff] %v8512_v54 }
 0x134   : > { %2618 = vst [vmem:[%s8256_s12 + $0x4e0] sm:$0xff] %v8514_v55  ;;  %v8520_v0 = vpop.f32.mrf.mxu0  ;;  %v8522_v1 = vpop.f32.mrf.mxu1 }
 0x135   : > { %11453 = vst [vmem:[#allocation37_spill] sm:$0xff] %v8522_v1  ;;  %2493 = vst [vmem:[%s8256_s12 + $0xf8] sm:$0xff] %v8520_v0 }
 0x136   : > { %2621 = vst [vmem:[%s8256_s12 + $0x4f8] sm:$0xff] %v8522_v1  ;;  %v8528_v26 = vpop.f32.mrf.mxu0  ;;  %v8530_v27 = vpop.f32.mrf.mxu1 }
 0x137   : > { %11454 = vst [vmem:[#allocation38_spill] sm:$0xff] %v8530_v27  ;;  %2491 = vst [vmem:[%s8256_s12 + $0xe8] sm:$0xff] %v8528_v26 }
 0x138   : > { %2619 = vst [vmem:[%s8256_s12 + $0x4e8] sm:$0xff] %v8530_v27  ;;  %v8536_v39 = vpop.f32.mrf.mxu0  ;;  %v8538_v55 = vpop.f32.mrf.mxu1 }
 0x139   : > { %11455 = vst [vmem:[#allocation39_spill] sm:$0xff] %v8538_v55  ;;  %2496 = vst [vmem:[%s8256_s12 + $0x110] sm:$0xff] %v8536_v39 }
 0x13a   : > { %2624 = vst [vmem:[%s8256_s12 + $0x510] sm:$0xff] %v8538_v55  ;;  %v8544_v1 = vpop.f32.mrf.mxu0  ;;  %v8546_v25 = vpop.f32.mrf.mxu1 }
 0x13b   : > { %11456 = vst [vmem:[#allocation40_spill] sm:$0xff] %v8546_v25  ;;  %2494 = vst [vmem:[%s8256_s12 + $0x100] sm:$0xff] %v8544_v1 }
 0x13c   : > { %2622 = vst [vmem:[%s8256_s12 + $0x500] sm:$0xff] %v8546_v25  ;;  %v8552_v27 = vpop.f32.mrf.mxu0  ;;  %v8554_v13 = vpop.f32.mrf.mxu1 }
 0x13d   : > { %11457 = vst [vmem:[#allocation41_spill] sm:$0xff] %v8554_v13  ;;  %2497 = vst [vmem:[%s8256_s12 + $0x118] sm:$0xff] %v8552_v27 }
 0x13e   : > { %2625 = vst [vmem:[%s8256_s12 + $0x518] sm:$0xff] %v8554_v13  ;;  %v8560_v55 = vpop.f32.mrf.mxu0  ;;  %v8562_v37 = vpop.f32.mrf.mxu1 }
 0x13f   : > { %11458 = vst [vmem:[#allocation42_spill] sm:$0xff] %v8562_v37  ;;  %2495 = vst [vmem:[%s8256_s12 + $0x108] sm:$0xff] %v8560_v55 }
 0x140   : > { %2623 = vst [vmem:[%s8256_s12 + $0x508] sm:$0xff] %v8562_v37  ;;  %v8568_v25 = vpop.f32.mrf.mxu0  ;;  %v8570_v15 = vpop.f32.mrf.mxu1 }
 0x141   : > { %11459 = vst [vmem:[#allocation43_spill] sm:$0xff] %v8570_v15  ;;  %2500 = vst [vmem:[%s8256_s12 + $0x130] sm:$0xff] %v8568_v25 }
 0x142   : > { %2628 = vst [vmem:[%s8256_s12 + $0x530] sm:$0xff] %v8570_v15  ;;  %v8576_v13 = vpop.f32.mrf.mxu0  ;;  %v8578_v53 = vpop.f32.mrf.mxu1 }
 0x143   : > { %11460 = vst [vmem:[#allocation44_spill] sm:$0xff] %v8578_v53  ;;  %2498 = vst [vmem:[%s8256_s12 + $0x120] sm:$0xff] %v8576_v13 }
 0x144   : > { %2626 = vst [vmem:[%s8256_s12 + $0x520] sm:$0xff] %v8578_v53  ;;  %v8584_v37 = vpop.f32.mrf.mxu0  ;;  %v8586_v43 = vpop.f32.mrf.mxu1 }
 0x145   : > { %11461 = vst [vmem:[#allocation45_spill] sm:$0xff] %v8586_v43  ;;  %2501 = vst [vmem:[%s8256_s12 + $0x138] sm:$0xff] %v8584_v37 }
 0x146   : > { %2629 = vst [vmem:[%s8256_s12 + $0x538] sm:$0xff] %v8586_v43  ;;  %v8592_v15 = vpop.f32.mrf.mxu0  ;;  %v8594_v3 = vpop.f32.mrf.mxu1 }
 0x147   : > { %11462 = vst [vmem:[#allocation46_spill] sm:$0xff] %v8594_v3  ;;  %2499 = vst [vmem:[%s8256_s12 + $0x128] sm:$0xff] %v8592_v15 }
 0x148   : > { %2627 = vst [vmem:[%s8256_s12 + $0x528] sm:$0xff] %v8594_v3  ;;  %v8600_v53 = vpop.f32.mrf.mxu0  ;;  %v8602_v45 = vpop.f32.mrf.mxu1 }
 0x149   : > { %11463 = vst [vmem:[#allocation47_spill] sm:$0xff] %v8602_v45  ;;  %2504 = vst [vmem:[%s8256_s12 + $0x150] sm:$0xff] %v8600_v53 }
 0x14a   : > { %2632 = vst [vmem:[%s8256_s12 + $0x550] sm:$0xff] %v8602_v45  ;;  %v8608_v43 = vpop.f32.mrf.mxu0  ;;  %v8610_v35 = vpop.f32.mrf.mxu1 }
 0x14b   : > { %11464 = vst [vmem:[#allocation48_spill] sm:$0xff] %v8610_v35  ;;  %2502 = vst [vmem:[%s8256_s12 + $0x140] sm:$0xff] %v8608_v43 }
 0x14c   : > { %2630 = vst [vmem:[%s8256_s12 + $0x540] sm:$0xff] %v8610_v35  ;;  %v8616_v3 = vpop.f32.mrf.mxu0  ;;  %v8618_v31 = vpop.f32.mrf.mxu1 }
 0x14d   : > { %11465 = vst [vmem:[#allocation49_spill] sm:$0xff] %v8618_v31  ;;  %2505 = vst [vmem:[%s8256_s12 + $0x158] sm:$0xff] %v8616_v3 }
 0x14e   : > { %2633 = vst [vmem:[%s8256_s12 + $0x558] sm:$0xff] %v8618_v31  ;;  %v8624_v45 = vpop.f32.mrf.mxu0  ;;  %v8626_v41 = vpop.f32.mrf.mxu1 }
 0x14f   : > { %11466 = vst [vmem:[#allocation50_spill] sm:$0xff] %v8626_v41  ;;  %2503 = vst [vmem:[%s8256_s12 + $0x148] sm:$0xff] %v8624_v45 }
 0x150   : > { %2631 = vst [vmem:[%s8256_s12 + $0x548] sm:$0xff] %v8626_v41  ;;  %v8632_v35 = vpop.f32.mrf.mxu0  ;;  %v8634_v33 = vpop.f32.mrf.mxu1 }
 0x151   : > { %11467 = vst [vmem:[#allocation51_spill] sm:$0xff] %v8634_v33  ;;  %2508 = vst [vmem:[%s8256_s12 + $0x170] sm:$0xff] %v8632_v35 }
 0x152   : > { %2636 = vst [vmem:[%s8256_s12 + $0x570] sm:$0xff] %v8634_v33  ;;  %v8640_v31 = vpop.f32.mrf.mxu0  ;;  %v8642_v23 = vpop.f32.mrf.mxu1 }
 0x153   : > { %11468 = vst [vmem:[#allocation52_spill] sm:$0xff] %v8642_v23  ;;  %2506 = vst [vmem:[%s8256_s12 + $0x160] sm:$0xff] %v8640_v31 }
 0x154   : > { %2634 = vst [vmem:[%s8256_s12 + $0x560] sm:$0xff] %v8642_v23  ;;  %v8648_v41 = vpop.f32.mrf.mxu0  ;;  %v8650_v19 = vpop.f32.mrf.mxu1 }
 0x155   : > { %11469 = vst [vmem:[#allocation53_spill] sm:$0xff] %v8650_v19  ;;  %2509 = vst [vmem:[%s8256_s12 + $0x178] sm:$0xff] %v8648_v41 }
 0x156   : > { %2637 = vst [vmem:[%s8256_s12 + $0x578] sm:$0xff] %v8650_v19  ;;  %v8656_v33 = vpop.f32.mrf.mxu0  ;;  %v8658_v29 = vpop.f32.mrf.mxu1 }
 0x157   : > { %11470 = vst [vmem:[#allocation54_spill] sm:$0xff] %v8658_v29  ;;  %2507 = vst [vmem:[%s8256_s12 + $0x168] sm:$0xff] %v8656_v33 }
 0x158   : > { %2635 = vst [vmem:[%s8256_s12 + $0x568] sm:$0xff] %v8658_v29  ;;  %v8664_v23 = vpop.f32.mrf.mxu0  ;;  %v8666_v21 = vpop.f32.mrf.mxu1 }
 0x159   : > { %11471 = vst [vmem:[#allocation55_spill] sm:$0xff] %v8666_v21  ;;  %2512 = vst [vmem:[%s8256_s12 + $0x190] sm:$0xff] %v8664_v23 }
 0x15a   : > { %2640 = vst [vmem:[%s8256_s12 + $0x590] sm:$0xff] %v8666_v21  ;;  %v8672_v19 = vpop.f32.mrf.mxu0  ;;  %v8674_v11 = vpop.f32.mrf.mxu1 }
 0x15b   : > { %11472 = vst [vmem:[#allocation56_spill] sm:$0xff] %v8674_v11  ;;  %2510 = vst [vmem:[%s8256_s12 + $0x180] sm:$0xff] %v8672_v19 }
 0x15c   : > { %2638 = vst [vmem:[%s8256_s12 + $0x580] sm:$0xff] %v8674_v11  ;;  %v8680_v29 = vpop.f32.mrf.mxu0  ;;  %v8682_v7 = vpop.f32.mrf.mxu1 }
 0x15d   : > { %11473 = vst [vmem:[#allocation57_spill] sm:$0xff] %v8682_v7  ;;  %2513 = vst [vmem:[%s8256_s12 + $0x198] sm:$0xff] %v8680_v29 }
 0x15e   : > { %2641 = vst [vmem:[%s8256_s12 + $0x598] sm:$0xff] %v8682_v7  ;;  %v8688_v21 = vpop.f32.mrf.mxu0  ;;  %v8690_v17 = vpop.f32.mrf.mxu1 }
 0x15f   : > { %11474 = vst [vmem:[#allocation58_spill] sm:$0xff] %v8690_v17  ;;  %2511 = vst [vmem:[%s8256_s12 + $0x188] sm:$0xff] %v8688_v21 }
 0x160   : > { %2639 = vst [vmem:[%s8256_s12 + $0x588] sm:$0xff] %v8690_v17  ;;  %v8696_v11 = vpop.f32.mrf.mxu0  ;;  %v8698_v9 = vpop.f32.mrf.mxu1 }
 0x161   : > { %11475 = vst [vmem:[#allocation59_spill] sm:$0xff] %v8696_v11  ;;  %11476 = vst [vmem:[#allocation60_spill] sm:$0xff] %v8698_v9 }
 0x162   : > { %2516 = vst [vmem:[%s8256_s12 + $0x1b0] sm:$0xff] %v8696_v11  ;;  %2644 = vst [vmem:[%s8256_s12 + $0x5b0] sm:$0xff] %v8698_v9  ;;  %v8704_v7 = vpop.f32.mrf.mxu0  ;;  %v8706_v63 = vpop.f32.mrf.mxu1 }
 0x163   : > { %11477 = vst [vmem:[#allocation61_spill] sm:$0xff] %v8704_v7  ;;  %11478 = vst [vmem:[#allocation62_spill] sm:$0xff] %v8706_v63 }
 0x164   : > { %2514 = vst [vmem:[%s8256_s12 + $0x1a0] sm:$0xff] %v8704_v7  ;;  %2642 = vst [vmem:[%s8256_s12 + $0x5a0] sm:$0xff] %v8706_v63  ;;  %v8712_v17 = vpop.f32.mrf.mxu0  ;;  %v8714_v59 = vpop.f32.mrf.mxu1 }
 0x165   : > { %11479 = vst [vmem:[#allocation63_spill] sm:$0xff] %v8712_v17  ;;  %11480 = vst [vmem:[#allocation64_spill] sm:$0xff] %v8714_v59 }
 0x166   : > { %2517 = vst [vmem:[%s8256_s12 + $0x1b8] sm:$0xff] %v8712_v17  ;;  %2645 = vst [vmem:[%s8256_s12 + $0x5b8] sm:$0xff] %v8714_v59  ;;  %v8720_v9 = vpop.f32.mrf.mxu0  ;;  %v8722_v5 = vpop.f32.mrf.mxu1 }
 0x167   : > { %11481 = vst [vmem:[#allocation65_spill] sm:$0xff] %v8720_v9  ;;  %11482 = vst [vmem:[#allocation66_spill] sm:$0xff] %v8722_v5 }
 0x168   : > { %2515 = vst [vmem:[%s8256_s12 + $0x1a8] sm:$0xff] %v8720_v9  ;;  %2643 = vst [vmem:[%s8256_s12 + $0x5a8] sm:$0xff] %v8722_v5  ;;  %v8728_v63 = vpop.f32.mrf.mxu0  ;;  %v8730_v61 = vpop.f32.mrf.mxu1 }
 0x169   : > { %11483 = vst [vmem:[#allocation67_spill] sm:$0xff] %v8728_v63  ;;  %11484 = vst [vmem:[#allocation68_spill] sm:$0xff] %v8730_v61 }
 0x16a   : > { %2520 = vst [vmem:[%s8256_s12 + $0x1d0] sm:$0xff] %v8728_v63  ;;  %2648 = vst [vmem:[%s8256_s12 + $0x5d0] sm:$0xff] %v8730_v61  ;;  %v8736_v59 = vpop.f32.mrf.mxu0  ;;  %v8738_v51 = vpop.f32.mrf.mxu1 }
 0x16b   : > { %11485 = vst [vmem:[#allocation69_spill] sm:$0xff] %v8736_v59  ;;  %11486 = vst [vmem:[#allocation70_spill] sm:$0xff] %v8738_v51 }
 0x16c   : > { %2518 = vst [vmem:[%s8256_s12 + $0x1c0] sm:$0xff] %v8736_v59  ;;  %2646 = vst [vmem:[%s8256_s12 + $0x5c0] sm:$0xff] %v8738_v51  ;;  %v8744_v5 = vpop.f32.mrf.mxu0  ;;  %v8746_v47 = vpop.f32.mrf.mxu1 }
 0x16d   : > { %11487 = vst [vmem:[#allocation71_spill] sm:$0xff] %v8744_v5  ;;  %11488 = vst [vmem:[#allocation72_spill] sm:$0xff] %v8746_v47 }
 0x16e   : > { %2521 = vst [vmem:[%s8256_s12 + $0x1d8] sm:$0xff] %v8744_v5  ;;  %2649 = vst [vmem:[%s8256_s12 + $0x5d8] sm:$0xff] %v8746_v47  ;;  %v8752_v61 = vpop.f32.mrf.mxu0  ;;  %v8754_v57 = vpop.f32.mrf.mxu1 }
 0x16f   : > { %11489 = vst [vmem:[#allocation73_spill] sm:$0xff] %v8752_v61  ;;  %11490 = vst [vmem:[#allocation74_spill] sm:$0xff] %v8754_v57 }
 0x170   : > { %2519 = vst [vmem:[%s8256_s12 + $0x1c8] sm:$0xff] %v8752_v61  ;;  %2647 = vst [vmem:[%s8256_s12 + $0x5c8] sm:$0xff] %v8754_v57  ;;  %v8760_v51 = vpop.f32.mrf.mxu0  ;;  %v8762_v49 = vpop.f32.mrf.mxu1 }
 0x171   : > { %11491 = vst [vmem:[#allocation75_spill] sm:$0xff] %v8760_v51  ;;  %11492 = vst [vmem:[#allocation76_spill] sm:$0xff] %v8762_v49 }
 0x172   : > { %2524 = vst [vmem:[%s8256_s12 + $0x1f0] sm:$0xff] %v8760_v51  ;;  %2652 = vst [vmem:[%s8256_s12 + $0x5f0] sm:$0xff] %v8762_v49  ;;  %v8768_v47 = vpop.f32.mrf.mxu0  ;;  %v8770_v5 = vpop.f32.mrf.mxu1 }
 0x173   : > { %11493 = vst [vmem:[#allocation77_spill] sm:$0xff] %v8768_v47  ;;  %11494 = vst [vmem:[#allocation78_spill] sm:$0xff] %v8770_v5 }
 0x174   : > { %2522 = vst [vmem:[%s8256_s12 + $0x1e0] sm:$0xff] %v8768_v47  ;;  %2650 = vst [vmem:[%s8256_s12 + $0x5e0] sm:$0xff] %v8770_v5  ;;  %v8776_v57 = vpop.f32.mrf.mxu0  ;;  %v8778_v63 = vpop.f32.mrf.mxu1 }
 0x175   : > { %11495 = vst [vmem:[#allocation79_spill] sm:$0xff] %v8776_v57  ;;  %11496 = vst [vmem:[#allocation80_spill] sm:$0xff] %v8778_v63 }
 0x176   : > { %2525 = vst [vmem:[%s8256_s12 + $0x1f8] sm:$0xff] %v8776_v57  ;;  %2653 = vst [vmem:[%s8256_s12 + $0x5f8] sm:$0xff] %v8778_v63  ;;  %v8784_v49 = vpop.f32.mrf.mxu0  ;;  %v8786_v51 = vpop.f32.mrf.mxu1 }
 0x177   : > { %11497 = vst [vmem:[#allocation81_spill] sm:$0xff] %v8784_v49  ;;  %11498 = vst [vmem:[#allocation82_spill] sm:$0xff] %v8786_v51 }
 0x178   : > { %2523 = vst [vmem:[%s8256_s12 + $0x1e8] sm:$0xff] %v8784_v49  ;;  %2651 = vst [vmem:[%s8256_s12 + $0x5e8] sm:$0xff] %v8786_v51  ;;  %v8793_v5 = vpop.f32.mrf.mxu0  ;;  %v8795_v47 = vpop.f32.mrf.mxu1 }
 0x179   : > { %11499 = vst [vmem:[#allocation83_spill] sm:$0xff] %v8793_v5  ;;  %11500 = vst [vmem:[#allocation84_spill] sm:$0xff] %v8795_v47 }
 0x17a   : > { %2528 = vst [vmem:[%s8256_s12 + $0x210] sm:$0xff] %v8793_v5  ;;  %2656 = vst [vmem:[%s8256_s12 + $0x610] sm:$0xff] %v8795_v47  ;;  %v8801_v63 = vpop.f32.mrf.mxu0  ;;  %v8803_v57 = vpop.f32.mrf.mxu1 }
 0x17b   : > { %11501 = vst [vmem:[#allocation85_spill] sm:$0xff] %v8801_v63  ;;  %11502 = vst [vmem:[#allocation86_spill] sm:$0xff] %v8803_v57 }
 0x17c   : > { %2526 = vst [vmem:[%s8256_s12 + $0x200] sm:$0xff] %v8801_v63  ;;  %2654 = vst [vmem:[%s8256_s12 + $0x600] sm:$0xff] %v8803_v57  ;;  %v8809_v51 = vpop.f32.mrf.mxu0  ;;  %v8811_v49 = vpop.f32.mrf.mxu1 }
 0x17d   : > { %11503 = vst [vmem:[#allocation87_spill] sm:$0xff] %v8809_v51  ;;  %11504 = vst [vmem:[#allocation88_spill] sm:$0xff] %v8811_v49 }
 0x17e   : > { %2529 = vst [vmem:[%s8256_s12 + $0x218] sm:$0xff] %v8809_v51  ;;  %2657 = vst [vmem:[%s8256_s12 + $0x618] sm:$0xff] %v8811_v49  ;;  %v8817_v47 = vpop.f32.mrf.mxu0  ;;  %v8819_v5 = vpop.f32.mrf.mxu1 }
 0x17f   : > { %11505 = vst [vmem:[#allocation89_spill] sm:$0xff] %v8817_v47  ;;  %11506 = vst [vmem:[#allocation90_spill] sm:$0xff] %v8819_v5 }
 0x180   : > { %2527 = vst [vmem:[%s8256_s12 + $0x208] sm:$0xff] %v8817_v47  ;;  %2655 = vst [vmem:[%s8256_s12 + $0x608] sm:$0xff] %v8819_v5  ;;  %v8825_v57 = vpop.f32.mrf.mxu0  ;;  %v8827_v63 = vpop.f32.mrf.mxu1 }
 0x181   : > { %11507 = vst [vmem:[#allocation91_spill] sm:$0xff] %v8825_v57  ;;  %11508 = vst [vmem:[#allocation92_spill] sm:$0xff] %v8827_v63 }
 0x182   : > { %2532 = vst [vmem:[%s8256_s12 + $0x230] sm:$0xff] %v8825_v57  ;;  %2660 = vst [vmem:[%s8256_s12 + $0x630] sm:$0xff] %v8827_v63  ;;  %v8833_v49 = vpop.f32.mrf.mxu0  ;;  %v8835_v51 = vpop.f32.mrf.mxu1 }
 0x183   : > { %11509 = vst [vmem:[#allocation93_spill] sm:$0xff] %v8833_v49  ;;  %11510 = vst [vmem:[#allocation94_spill] sm:$0xff] %v8835_v51 }
 0x184   : > { %2530 = vst [vmem:[%s8256_s12 + $0x220] sm:$0xff] %v8833_v49  ;;  %2658 = vst [vmem:[%s8256_s12 + $0x620] sm:$0xff] %v8835_v51  ;;  %v8841_v5 = vpop.f32.mrf.mxu0  ;;  %v8843_v47 = vpop.f32.mrf.mxu1 }
 0x185   : > { %11511 = vst [vmem:[#allocation95_spill] sm:$0xff] %v8841_v5  ;;  %11512 = vst [vmem:[#allocation96_spill] sm:$0xff] %v8843_v47 }
 0x186   : > { %2533 = vst [vmem:[%s8256_s12 + $0x238] sm:$0xff] %v8841_v5  ;;  %2661 = vst [vmem:[%s8256_s12 + $0x638] sm:$0xff] %v8843_v47  ;;  %v8849_v63 = vpop.f32.mrf.mxu0  ;;  %v8851_v57 = vpop.f32.mrf.mxu1 }
 0x187   : > { %11513 = vst [vmem:[#allocation97_spill] sm:$0xff] %v8849_v63  ;;  %11514 = vst [vmem:[#allocation98_spill] sm:$0xff] %v8851_v57 }
 0x188   : > { %2531 = vst [vmem:[%s8256_s12 + $0x228] sm:$0xff] %v8849_v63  ;;  %2659 = vst [vmem:[%s8256_s12 + $0x628] sm:$0xff] %v8851_v57  ;;  %v8857_v51 = vpop.f32.mrf.mxu0  ;;  %v8859_v49 = vpop.f32.mrf.mxu1 }
 0x189   : > { %11515 = vst [vmem:[#allocation99_spill] sm:$0xff] %v8857_v51  ;;  %11516 = vst [vmem:[#allocation100_spill] sm:$0xff] %v8859_v49 }
 0x18a   : > { %2536 = vst [vmem:[%s8256_s12 + $0x250] sm:$0xff] %v8857_v51  ;;  %2664 = vst [vmem:[%s8256_s12 + $0x650] sm:$0xff] %v8859_v49  ;;  %v8865_v47 = vpop.f32.mrf.mxu0  ;;  %v8867_v5 = vpop.f32.mrf.mxu1 }
 0x18b   : > { %11517 = vst [vmem:[#allocation101_spill] sm:$0xff] %v8865_v47  ;;  %11518 = vst [vmem:[#allocation102_spill] sm:$0xff] %v8867_v5 }
 0x18c   : > { %2534 = vst [vmem:[%s8256_s12 + $0x240] sm:$0xff] %v8865_v47  ;;  %2662 = vst [vmem:[%s8256_s12 + $0x640] sm:$0xff] %v8867_v5  ;;  %v8873_v57 = vpop.f32.mrf.mxu0  ;;  %v8875_v63 = vpop.f32.mrf.mxu1 }
 0x18d   : > { %11519 = vst [vmem:[#allocation103_spill] sm:$0xff] %v8873_v57  ;;  %11520 = vst [vmem:[#allocation104_spill] sm:$0xff] %v8875_v63 }
 0x18e   : > { %2537 = vst [vmem:[%s8256_s12 + $0x258] sm:$0xff] %v8873_v57  ;;  %2665 = vst [vmem:[%s8256_s12 + $0x658] sm:$0xff] %v8875_v63  ;;  %v8881_v49 = vpop.f32.mrf.mxu0  ;;  %v8883_v51 = vpop.f32.mrf.mxu1 }
 0x18f   : > { %11521 = vst [vmem:[#allocation105_spill] sm:$0xff] %v8881_v49  ;;  %11522 = vst [vmem:[#allocation106_spill] sm:$0xff] %v8883_v51 }
 0x190   : > { %2535 = vst [vmem:[%s8256_s12 + $0x248] sm:$0xff] %v8881_v49  ;;  %2663 = vst [vmem:[%s8256_s12 + $0x648] sm:$0xff] %v8883_v51  ;;  %v8889_v5 = vpop.f32.mrf.mxu0  ;;  %v8891_v47 = vpop.f32.mrf.mxu1 }
 0x191   : > { %11523 = vst [vmem:[#allocation107_spill] sm:$0xff] %v8889_v5  ;;  %11524 = vst [vmem:[#allocation108_spill] sm:$0xff] %v8891_v47 }
 0x192   : > { %2540 = vst [vmem:[%s8256_s12 + $0x270] sm:$0xff] %v8889_v5  ;;  %2668 = vst [vmem:[%s8256_s12 + $0x670] sm:$0xff] %v8891_v47  ;;  %v8897_v63 = vpop.f32.mrf.mxu0  ;;  %v8899_v57 = vpop.f32.mrf.mxu1 }
 0x193   : > { %11525 = vst [vmem:[#allocation109_spill] sm:$0xff] %v8897_v63  ;;  %11526 = vst [vmem:[#allocation110_spill] sm:$0xff] %v8899_v57 }
 0x194   : > { %2538 = vst [vmem:[%s8256_s12 + $0x260] sm:$0xff] %v8897_v63  ;;  %2666 = vst [vmem:[%s8256_s12 + $0x660] sm:$0xff] %v8899_v57  ;;  %v8905_v51 = vpop.f32.mrf.mxu0  ;;  %v8907_v49 = vpop.f32.mrf.mxu1 }
 0x195   : > { %11527 = vst [vmem:[#allocation111_spill] sm:$0xff] %v8905_v51  ;;  %11528 = vst [vmem:[#allocation112_spill] sm:$0xff] %v8907_v49 }
 0x196   : > { %2541 = vst [vmem:[%s8256_s12 + $0x278] sm:$0xff] %v8905_v51  ;;  %2669 = vst [vmem:[%s8256_s12 + $0x678] sm:$0xff] %v8907_v49  ;;  %v8913_v47 = vpop.f32.mrf.mxu0  ;;  %v8915_v5 = vpop.f32.mrf.mxu1 }
 0x197   : > { %11529 = vst [vmem:[#allocation113_spill] sm:$0xff] %v8913_v47  ;;  %11530 = vst [vmem:[#allocation114_spill] sm:$0xff] %v8915_v5 }
 0x198   : > { %2539 = vst [vmem:[%s8256_s12 + $0x268] sm:$0xff] %v8913_v47  ;;  %2667 = vst [vmem:[%s8256_s12 + $0x668] sm:$0xff] %v8915_v5  ;;  %v8921_v57 = vpop.f32.mrf.mxu0  ;;  %v8923_v63 = vpop.f32.mrf.mxu1 }
 0x199   : > { %11531 = vst [vmem:[#allocation115_spill] sm:$0xff] %v8921_v57  ;;  %11532 = vst [vmem:[#allocation116_spill] sm:$0xff] %v8923_v63 }
 0x19a   : > { %2544 = vst [vmem:[%s8256_s12 + $0x290] sm:$0xff] %v8921_v57  ;;  %2672 = vst [vmem:[%s8256_s12 + $0x690] sm:$0xff] %v8923_v63  ;;  %v8929_v49 = vpop.f32.mrf.mxu0  ;;  %v8931_v51 = vpop.f32.mrf.mxu1 }
 0x19b   : > { %11533 = vst [vmem:[#allocation117_spill] sm:$0xff] %v8929_v49  ;;  %11534 = vst [vmem:[#allocation118_spill] sm:$0xff] %v8931_v51 }
 0x19c   : > { %2542 = vst [vmem:[%s8256_s12 + $0x280] sm:$0xff] %v8929_v49  ;;  %2670 = vst [vmem:[%s8256_s12 + $0x680] sm:$0xff] %v8931_v51  ;;  %v8937_v5 = vpop.f32.mrf.mxu0  ;;  %v8939_v47 = vpop.f32.mrf.mxu1 }
 0x19d   : > { %11535 = vst [vmem:[#allocation119_spill] sm:$0xff] %v8937_v5  ;;  %11536 = vst [vmem:[#allocation120_spill] sm:$0xff] %v8939_v47 }
 0x19e   : > { %2545 = vst [vmem:[%s8256_s12 + $0x298] sm:$0xff] %v8937_v5  ;;  %2673 = vst [vmem:[%s8256_s12 + $0x698] sm:$0xff] %v8939_v47  ;;  %v8945_v63 = vpop.f32.mrf.mxu0  ;;  %v8947_v57 = vpop.f32.mrf.mxu1 }
 0x19f   : > { %11537 = vst [vmem:[#allocation121_spill] sm:$0xff] %v8945_v63  ;;  %11538 = vst [vmem:[#allocation122_spill] sm:$0xff] %v8947_v57 }
 0x1a0   : > { %2543 = vst [vmem:[%s8256_s12 + $0x288] sm:$0xff] %v8945_v63  ;;  %2671 = vst [vmem:[%s8256_s12 + $0x688] sm:$0xff] %v8947_v57  ;;  %v8953_v51 = vpop.f32.mrf.mxu0  ;;  %v8955_v49 = vpop.f32.mrf.mxu1 }
 0x1a1   : > { %11539 = vst [vmem:[#allocation123_spill] sm:$0xff] %v8953_v51  ;;  %11540 = vst [vmem:[#allocation124_spill] sm:$0xff] %v8955_v49 }
 0x1a2   : > { %2548 = vst [vmem:[%s8256_s12 + $0x2b0] sm:$0xff] %v8953_v51  ;;  %2676 = vst [vmem:[%s8256_s12 + $0x6b0] sm:$0xff] %v8955_v49  ;;  %v8961_v47 = vpop.f32.mrf.mxu0  ;;  %v8963_v5 = vpop.f32.mrf.mxu1 }
 0x1a3   : > { %11541 = vst [vmem:[#allocation125_spill] sm:$0xff] %v8961_v47  ;;  %11542 = vst [vmem:[#allocation126_spill] sm:$0xff] %v8963_v5 }
 0x1a4   : > { %2546 = vst [vmem:[%s8256_s12 + $0x2a0] sm:$0xff] %v8961_v47  ;;  %2674 = vst [vmem:[%s8256_s12 + $0x6a0] sm:$0xff] %v8963_v5  ;;  %v8969_v57 = vpop.f32.mrf.mxu0  ;;  %v8971_v63 = vpop.f32.mrf.mxu1 }
 0x1a5   : > { %11543 = vst [vmem:[#allocation127_spill] sm:$0xff] %v8969_v57  ;;  %11544 = vst [vmem:[#allocation128_spill] sm:$0xff] %v8971_v63 }
 0x1a6   : > { %2549 = vst [vmem:[%s8256_s12 + $0x2b8] sm:$0xff] %v8969_v57  ;;  %2677 = vst [vmem:[%s8256_s12 + $0x6b8] sm:$0xff] %v8971_v63  ;;  %v8977_v49 = vpop.f32.mrf.mxu0  ;;  %v8979_v51 = vpop.f32.mrf.mxu1 }
 0x1a7   : > { %11545 = vst [vmem:[#allocation129_spill] sm:$0xff] %v8977_v49  ;;  %11546 = vst [vmem:[#allocation130_spill] sm:$0xff] %v8979_v51 }
 0x1a8   : > { %2547 = vst [vmem:[%s8256_s12 + $0x2a8] sm:$0xff] %v8977_v49  ;;  %2675 = vst [vmem:[%s8256_s12 + $0x6a8] sm:$0xff] %v8979_v51  ;;  %v8985_v5 = vpop.f32.mrf.mxu0  ;;  %v8987_v47 = vpop.f32.mrf.mxu1 }
 0x1a9   : > { %11547 = vst [vmem:[#allocation131_spill] sm:$0xff] %v8985_v5  ;;  %11548 = vst [vmem:[#allocation132_spill] sm:$0xff] %v8987_v47 }
 0x1aa   : > { %2552 = vst [vmem:[%s8256_s12 + $0x2d0] sm:$0xff] %v8985_v5  ;;  %2680 = vst [vmem:[%s8256_s12 + $0x6d0] sm:$0xff] %v8987_v47  ;;  %v8993_v63 = vpop.f32.mrf.mxu0  ;;  %v8995_v57 = vpop.f32.mrf.mxu1 }
 0x1ab   : > { %11549 = vst [vmem:[#allocation133_spill] sm:$0xff] %v8993_v63  ;;  %11550 = vst [vmem:[#allocation134_spill] sm:$0xff] %v8995_v57 }
 0x1ac   : > { %2550 = vst [vmem:[%s8256_s12 + $0x2c0] sm:$0xff] %v8993_v63  ;;  %2678 = vst [vmem:[%s8256_s12 + $0x6c0] sm:$0xff] %v8995_v57  ;;  %v9001_v51 = vpop.f32.mrf.mxu0  ;;  %v9003_v49 = vpop.f32.mrf.mxu1 }
 0x1ad   : > { %11551 = vst [vmem:[#allocation135_spill] sm:$0xff] %v9001_v51  ;;  %11552 = vst [vmem:[#allocation136_spill] sm:$0xff] %v9003_v49 }
 0x1ae   : > { %2553 = vst [vmem:[%s8256_s12 + $0x2d8] sm:$0xff] %v9001_v51  ;;  %2681 = vst [vmem:[%s8256_s12 + $0x6d8] sm:$0xff] %v9003_v49  ;;  %v9009_v47 = vpop.f32.mrf.mxu0  ;;  %v9011_v5 = vpop.f32.mrf.mxu1 }
 0x1af   : > { %11553 = vst [vmem:[#allocation137_spill] sm:$0xff] %v9009_v47  ;;  %11554 = vst [vmem:[#allocation138_spill] sm:$0xff] %v9011_v5 }
 0x1b0   : > { %2551 = vst [vmem:[%s8256_s12 + $0x2c8] sm:$0xff] %v9009_v47  ;;  %2679 = vst [vmem:[%s8256_s12 + $0x6c8] sm:$0xff] %v9011_v5  ;;  %v9017_v57 = vpop.f32.mrf.mxu0  ;;  %v9019_v63 = vpop.f32.mrf.mxu1 }
 0x1b1   : > { %11555 = vst [vmem:[#allocation139_spill] sm:$0xff] %v9017_v57  ;;  %11556 = vst [vmem:[#allocation140_spill] sm:$0xff] %v9019_v63 }
 0x1b2   : > { %2556 = vst [vmem:[%s8256_s12 + $0x2f0] sm:$0xff] %v9017_v57  ;;  %2684 = vst [vmem:[%s8256_s12 + $0x6f0] sm:$0xff] %v9019_v63  ;;  %v9025_v49 = vpop.f32.mrf.mxu0  ;;  %v9027_v51 = vpop.f32.mrf.mxu1 }
 0x1b3   : > { %11557 = vst [vmem:[#allocation141_spill] sm:$0xff] %v9025_v49  ;;  %11558 = vst [vmem:[#allocation142_spill] sm:$0xff] %v9027_v51 }
 0x1b4   : > { %2554 = vst [vmem:[%s8256_s12 + $0x2e0] sm:$0xff] %v9025_v49  ;;  %2682 = vst [vmem:[%s8256_s12 + $0x6e0] sm:$0xff] %v9027_v51  ;;  %v9033_v5 = vpop.f32.mrf.mxu0  ;;  %v9035_v47 = vpop.f32.mrf.mxu1 }
 0x1b5   : > { %11559 = vst [vmem:[#allocation143_spill] sm:$0xff] %v9033_v5  ;;  %11560 = vst [vmem:[#allocation144_spill] sm:$0xff] %v9035_v47 }
 0x1b6   : > { %2557 = vst [vmem:[%s8256_s12 + $0x2f8] sm:$0xff] %v9033_v5  ;;  %2685 = vst [vmem:[%s8256_s12 + $0x6f8] sm:$0xff] %v9035_v47  ;;  %v9041_v63 = vpop.f32.mrf.mxu0  ;;  %v9043_v57 = vpop.f32.mrf.mxu1 }
 0x1b7   : > { %11561 = vst [vmem:[#allocation145_spill] sm:$0xff] %v9041_v63  ;;  %11562 = vst [vmem:[#allocation146_spill] sm:$0xff] %v9043_v57 }
 0x1b8   : > { %2555 = vst [vmem:[%s8256_s12 + $0x2e8] sm:$0xff] %v9041_v63  ;;  %2683 = vst [vmem:[%s8256_s12 + $0x6e8] sm:$0xff] %v9043_v57  ;;  %v9049_v51 = vpop.f32.mrf.mxu0  ;;  %v9051_v49 = vpop.f32.mrf.mxu1 }
 0x1b9   : > { %11563 = vst [vmem:[#allocation147_spill] sm:$0xff] %v9049_v51  ;;  %11564 = vst [vmem:[#allocation148_spill] sm:$0xff] %v9051_v49 }
 0x1ba   : > { %2560 = vst [vmem:[%s8256_s12 + $0x310] sm:$0xff] %v9049_v51  ;;  %2688 = vst [vmem:[%s8256_s12 + $0x710] sm:$0xff] %v9051_v49  ;;  %v9057_v47 = vpop.f32.mrf.mxu0  ;;  %v9059_v5 = vpop.f32.mrf.mxu1 }
 0x1bb   : > { %11565 = vst [vmem:[#allocation149_spill] sm:$0xff] %v9057_v47  ;;  %11566 = vst [vmem:[#allocation150_spill] sm:$0xff] %v9059_v5 }
 0x1bc   : > { %2558 = vst [vmem:[%s8256_s12 + $0x300] sm:$0xff] %v9057_v47  ;;  %2686 = vst [vmem:[%s8256_s12 + $0x700] sm:$0xff] %v9059_v5  ;;  %v9065_v57 = vpop.f32.mrf.mxu0  ;;  %v9067_v63 = vpop.f32.mrf.mxu1 }
 0x1bd   : > { %11567 = vst [vmem:[#allocation151_spill] sm:$0xff] %v9065_v57  ;;  %11568 = vst [vmem:[#allocation152_spill] sm:$0xff] %v9067_v63 }
 0x1be   : > { %2561 = vst [vmem:[%s8256_s12 + $0x318] sm:$0xff] %v9065_v57  ;;  %2689 = vst [vmem:[%s8256_s12 + $0x718] sm:$0xff] %v9067_v63  ;;  %v9073_v49 = vpop.f32.mrf.mxu0  ;;  %v9075_v51 = vpop.f32.mrf.mxu1 }
 0x1bf   : > { %11569 = vst [vmem:[#allocation153_spill] sm:$0xff] %v9073_v49  ;;  %11570 = vst [vmem:[#allocation154_spill] sm:$0xff] %v9075_v51 }
 0x1c0   : > { %2559 = vst [vmem:[%s8256_s12 + $0x308] sm:$0xff] %v9073_v49  ;;  %2687 = vst [vmem:[%s8256_s12 + $0x708] sm:$0xff] %v9075_v51  ;;  %v9081_v5 = vpop.f32.mrf.mxu0  ;;  %v9083_v47 = vpop.f32.mrf.mxu1 }
 0x1c1   : > { %11571 = vst [vmem:[#allocation155_spill] sm:$0xff] %v9081_v5  ;;  %11572 = vst [vmem:[#allocation156_spill] sm:$0xff] %v9083_v47 }
 0x1c2   : > { %2564 = vst [vmem:[%s8256_s12 + $0x330] sm:$0xff] %v9081_v5  ;;  %2692 = vst [vmem:[%s8256_s12 + $0x730] sm:$0xff] %v9083_v47  ;;  %v9089_v63 = vpop.f32.mrf.mxu0  ;;  %v9091_v57 = vpop.f32.mrf.mxu1 }
 0x1c3   : > { %11573 = vst [vmem:[#allocation157_spill] sm:$0xff] %v9089_v63  ;;  %11574 = vst [vmem:[#allocation158_spill] sm:$0xff] %v9091_v57 }
 0x1c4   : > { %2562 = vst [vmem:[%s8256_s12 + $0x320] sm:$0xff] %v9089_v63  ;;  %2690 = vst [vmem:[%s8256_s12 + $0x720] sm:$0xff] %v9091_v57  ;;  %v9097_v51 = vpop.f32.mrf.mxu0  ;;  %v9099_v49 = vpop.f32.mrf.mxu1 }
 0x1c5   : > { %11575 = vst [vmem:[#allocation159_spill] sm:$0xff] %v9097_v51  ;;  %11576 = vst [vmem:[#allocation160_spill] sm:$0xff] %v9099_v49 }
 0x1c6   : > { %2565 = vst [vmem:[%s8256_s12 + $0x338] sm:$0xff] %v9097_v51  ;;  %2693 = vst [vmem:[%s8256_s12 + $0x738] sm:$0xff] %v9099_v49  ;;  %v9105_v47 = vpop.f32.mrf.mxu0  ;;  %v9107_v5 = vpop.f32.mrf.mxu1 }
 0x1c7   : > { %11577 = vst [vmem:[#allocation161_spill] sm:$0xff] %v9105_v47  ;;  %11578 = vst [vmem:[#allocation162_spill] sm:$0xff] %v9107_v5 }
 0x1c8   : > { %2563 = vst [vmem:[%s8256_s12 + $0x328] sm:$0xff] %v9105_v47  ;;  %2691 = vst [vmem:[%s8256_s12 + $0x728] sm:$0xff] %v9107_v5  ;;  %v9113_v57 = vpop.f32.mrf.mxu0  ;;  %v9115_v63 = vpop.f32.mrf.mxu1 }
 0x1c9   : > { %11579 = vst [vmem:[#allocation163_spill] sm:$0xff] %v9113_v57  ;;  %11580 = vst [vmem:[#allocation164_spill] sm:$0xff] %v9115_v63 }
 0x1ca   : > { %2568 = vst [vmem:[%s8256_s12 + $0x350] sm:$0xff] %v9113_v57  ;;  %2696 = vst [vmem:[%s8256_s12 + $0x750] sm:$0xff] %v9115_v63  ;;  %v9121_v49 = vpop.f32.mrf.mxu0  ;;  %v9123_v51 = vpop.f32.mrf.mxu1 }
 0x1cb   : > { %11581 = vst [vmem:[#allocation165_spill] sm:$0xff] %v9121_v49  ;;  %11582 = vst [vmem:[#allocation166_spill] sm:$0xff] %v9123_v51 }
 0x1cc   : > { %2566 = vst [vmem:[%s8256_s12 + $0x340] sm:$0xff] %v9121_v49  ;;  %2694 = vst [vmem:[%s8256_s12 + $0x740] sm:$0xff] %v9123_v51  ;;  %v9129_v5 = vpop.f32.mrf.mxu0  ;;  %v9131_v47 = vpop.f32.mrf.mxu1 }
 0x1cd   : > { %11583 = vst [vmem:[#allocation167_spill] sm:$0xff] %v9129_v5  ;;  %11584 = vst [vmem:[#allocation168_spill] sm:$0xff] %v9131_v47 }
 0x1ce   : > { %2569 = vst [vmem:[%s8256_s12 + $0x358] sm:$0xff] %v9129_v5  ;;  %2697 = vst [vmem:[%s8256_s12 + $0x758] sm:$0xff] %v9131_v47  ;;  %v9137_v63 = vpop.f32.mrf.mxu0  ;;  %v9139_v57 = vpop.f32.mrf.mxu1 }
 0x1cf   : > { %11585 = vst [vmem:[#allocation169_spill] sm:$0xff] %v9137_v63  ;;  %11586 = vst [vmem:[#allocation170_spill] sm:$0xff] %v9139_v57 }
 0x1d0   : > { %2567 = vst [vmem:[%s8256_s12 + $0x348] sm:$0xff] %v9137_v63  ;;  %2695 = vst [vmem:[%s8256_s12 + $0x748] sm:$0xff] %v9139_v57  ;;  %v9145_v51 = vpop.f32.mrf.mxu0  ;;  %v9147_v49 = vpop.f32.mrf.mxu1 }
 0x1d1   : > { %11587 = vst [vmem:[#allocation171_spill] sm:$0xff] %v9145_v51  ;;  %11588 = vst [vmem:[#allocation172_spill] sm:$0xff] %v9147_v49 }
 0x1d2   : > { %2572 = vst [vmem:[%s8256_s12 + $0x370] sm:$0xff] %v9145_v51  ;;  %2700 = vst [vmem:[%s8256_s12 + $0x770] sm:$0xff] %v9147_v49  ;;  %v9153_v47 = vpop.f32.mrf.mxu0  ;;  %v9155_v5 = vpop.f32.mrf.mxu1 }
 0x1d3   : > { %11589 = vst [vmem:[#allocation173_spill] sm:$0xff] %v9153_v47  ;;  %11590 = vst [vmem:[#allocation174_spill] sm:$0xff] %v9155_v5 }
 0x1d4   : > { %2570 = vst [vmem:[%s8256_s12 + $0x360] sm:$0xff] %v9153_v47  ;;  %2698 = vst [vmem:[%s8256_s12 + $0x760] sm:$0xff] %v9155_v5  ;;  %v9161_v57 = vpop.f32.mrf.mxu0  ;;  %v9163_v63 = vpop.f32.mrf.mxu1 }
 0x1d5   : > { %11591 = vst [vmem:[#allocation175_spill] sm:$0xff] %v9161_v57  ;;  %11592 = vst [vmem:[#allocation176_spill] sm:$0xff] %v9163_v63 }
 0x1d6   : > { %2573 = vst [vmem:[%s8256_s12 + $0x378] sm:$0xff] %v9161_v57  ;;  %2701 = vst [vmem:[%s8256_s12 + $0x778] sm:$0xff] %v9163_v63  ;;  %v9169_v49 = vpop.f32.mrf.mxu0  ;;  %v9171_v51 = vpop.f32.mrf.mxu1 }
 0x1d7   : > { %11593 = vst [vmem:[#allocation177_spill] sm:$0xff] %v9169_v49  ;;  %11594 = vst [vmem:[#allocation178_spill] sm:$0xff] %v9171_v51 }
 0x1d8   : > { %2571 = vst [vmem:[%s8256_s12 + $0x368] sm:$0xff] %v9169_v49  ;;  %2699 = vst [vmem:[%s8256_s12 + $0x768] sm:$0xff] %v9171_v51  ;;  %v9177_v5 = vpop.f32.mrf.mxu0  ;;  %v9179_v47 = vpop.f32.mrf.mxu1 }
 0x1d9   : > { %11595 = vst [vmem:[#allocation179_spill] sm:$0xff] %v9177_v5  ;;  %11596 = vst [vmem:[#allocation180_spill] sm:$0xff] %v9179_v47 }
 0x1da   : > { %2576 = vst [vmem:[%s8256_s12 + $0x390] sm:$0xff] %v9177_v5  ;;  %2704 = vst [vmem:[%s8256_s12 + $0x790] sm:$0xff] %v9179_v47  ;;  %v9185_v63 = vpop.f32.mrf.mxu0  ;;  %v9187_v57 = vpop.f32.mrf.mxu1 }
 0x1db   : > { %11597 = vst [vmem:[#allocation181_spill] sm:$0xff] %v9185_v63  ;;  %11598 = vst [vmem:[#allocation182_spill] sm:$0xff] %v9187_v57 }
 0x1dc   : > { %2574 = vst [vmem:[%s8256_s12 + $0x380] sm:$0xff] %v9185_v63  ;;  %2702 = vst [vmem:[%s8256_s12 + $0x780] sm:$0xff] %v9187_v57  ;;  %v9193_v51 = vpop.f32.mrf.mxu0  ;;  %v9195_v49 = vpop.f32.mrf.mxu1 }
 0x1dd   : > { %11599 = vst [vmem:[#allocation183_spill] sm:$0xff] %v9193_v51  ;;  %11600 = vst [vmem:[#allocation184_spill] sm:$0xff] %v9195_v49 }
 0x1de   : > { %2577 = vst [vmem:[%s8256_s12 + $0x398] sm:$0xff] %v9193_v51  ;;  %2705 = vst [vmem:[%s8256_s12 + $0x798] sm:$0xff] %v9195_v49  ;;  %v9201_v47 = vpop.f32.mrf.mxu0  ;;  %v9203_v5 = vpop.f32.mrf.mxu1 }
 0x1df   : > { %11601 = vst [vmem:[#allocation185_spill] sm:$0xff] %v9201_v47  ;;  %11602 = vst [vmem:[#allocation186_spill] sm:$0xff] %v9203_v5 }
 0x1e0   : > { %2575 = vst [vmem:[%s8256_s12 + $0x388] sm:$0xff] %v9201_v47  ;;  %2703 = vst [vmem:[%s8256_s12 + $0x788] sm:$0xff] %v9203_v5  ;;  %v9209_v57 = vpop.f32.mrf.mxu0  ;;  %v9211_v63 = vpop.f32.mrf.mxu1 }
 0x1e1   : > { %11603 = vst [vmem:[#allocation187_spill] sm:$0xff] %v9209_v57  ;;  %11604 = vst [vmem:[#allocation188_spill] sm:$0xff] %v9211_v63 }
 0x1e2   : > { %2580 = vst [vmem:[%s8256_s12 + $0x3b0] sm:$0xff] %v9209_v57  ;;  %2708 = vst [vmem:[%s8256_s12 + $0x7b0] sm:$0xff] %v9211_v63  ;;  %v9217_v49 = vpop.f32.mrf.mxu0  ;;  %v9219_v51 = vpop.f32.mrf.mxu1 }
 0x1e3   : > { %11605 = vst [vmem:[#allocation189_spill] sm:$0xff] %v9217_v49  ;;  %11606 = vst [vmem:[#allocation190_spill] sm:$0xff] %v9219_v51 }
 0x1e4   : > { %2578 = vst [vmem:[%s8256_s12 + $0x3a0] sm:$0xff] %v9217_v49  ;;  %2706 = vst [vmem:[%s8256_s12 + $0x7a0] sm:$0xff] %v9219_v51  ;;  %v9225_v5 = vpop.f32.mrf.mxu0  ;;  %v9227_v47 = vpop.f32.mrf.mxu1 }
 0x1e5   : > { %11607 = vst [vmem:[#allocation191_spill] sm:$0xff] %v9225_v5  ;;  %11608 = vst [vmem:[#allocation192_spill] sm:$0xff] %v9227_v47 }
 0x1e6   : > { %2581 = vst [vmem:[%s8256_s12 + $0x3b8] sm:$0xff] %v9225_v5  ;;  %2709 = vst [vmem:[%s8256_s12 + $0x7b8] sm:$0xff] %v9227_v47  ;;  %v9233_v63 = vpop.f32.mrf.mxu0  ;;  %v9235_v57 = vpop.f32.mrf.mxu1 }
 0x1e7   : > { %11609 = vst [vmem:[#allocation193_spill] sm:$0xff] %v9233_v63  ;;  %11610 = vst [vmem:[#allocation194_spill] sm:$0xff] %v9235_v57 }
 0x1e8   : > { %2579 = vst [vmem:[%s8256_s12 + $0x3a8] sm:$0xff] %v9233_v63  ;;  %2707 = vst [vmem:[%s8256_s12 + $0x7a8] sm:$0xff] %v9235_v57  ;;  %v9241_v51 = vpop.f32.mrf.mxu0  ;;  %v9243_v49 = vpop.f32.mrf.mxu1 }
 0x1e9   : > { %11611 = vst [vmem:[#allocation195_spill] sm:$0xff] %v9241_v51  ;;  %11612 = vst [vmem:[#allocation196_spill] sm:$0xff] %v9243_v49 }
 0x1ea   : > { %2584 = vst [vmem:[%s8256_s12 + $0x3d0] sm:$0xff] %v9241_v51  ;;  %2712 = vst [vmem:[%s8256_s12 + $0x7d0] sm:$0xff] %v9243_v49  ;;  %v9249_v47 = vpop.f32.mrf.mxu0  ;;  %v9251_v5 = vpop.f32.mrf.mxu1 }
 0x1eb   : > { %11613 = vst [vmem:[#allocation197_spill] sm:$0xff] %v9249_v47  ;;  %11614 = vst [vmem:[#allocation198_spill] sm:$0xff] %v9251_v5 }
 0x1ec   : > { %2582 = vst [vmem:[%s8256_s12 + $0x3c0] sm:$0xff] %v9249_v47  ;;  %2710 = vst [vmem:[%s8256_s12 + $0x7c0] sm:$0xff] %v9251_v5  ;;  %v9257_v57 = vpop.f32.mrf.mxu0  ;;  %v9259_v63 = vpop.f32.mrf.mxu1 }
 0x1ed   : > { %11615 = vst [vmem:[#allocation199_spill] sm:$0xff] %v9257_v57  ;;  %11616 = vst [vmem:[#allocation200_spill] sm:$0xff] %v9259_v63 }
 0x1ee   : > { %2585 = vst [vmem:[%s8256_s12 + $0x3d8] sm:$0xff] %v9257_v57  ;;  %2713 = vst [vmem:[%s8256_s12 + $0x7d8] sm:$0xff] %v9259_v63  ;;  %v9265_v49 = vpop.f32.mrf.mxu0  ;;  %v9267_v51 = vpop.f32.mrf.mxu1 }
 0x1ef   : > { %11617 = vst [vmem:[#allocation201_spill] sm:$0xff] %v9265_v49  ;;  %11618 = vst [vmem:[#allocation202_spill] sm:$0xff] %v9267_v51 }
 0x1f0   : > { %2583 = vst [vmem:[%s8256_s12 + $0x3c8] sm:$0xff] %v9265_v49  ;;  %2711 = vst [vmem:[%s8256_s12 + $0x7c8] sm:$0xff] %v9267_v51  ;;  %v9273_v5 = vpop.f32.mrf.mxu0  ;;  %v9275_v47 = vpop.f32.mrf.mxu1 }
 0x1f1   : > { %11619 = vst [vmem:[#allocation203_spill] sm:$0xff] %v9273_v5  ;;  %11620 = vst [vmem:[#allocation204_spill] sm:$0xff] %v9275_v47 }
 0x1f2   : > { %2588 = vst [vmem:[%s8256_s12 + $0x3f0] sm:$0xff] %v9273_v5  ;;  %2716 = vst [vmem:[%s8256_s12 + $0x7f0] sm:$0xff] %v9275_v47  ;;  %v9281_v63 = vpop.f32.mrf.mxu0  ;;  %v9283_v57 = vpop.f32.mrf.mxu1  ;;  %v8059_v47 = vmov (%p2718_p8), 0.0  }
 0x1f3   : > { %11621 = vst [vmem:[#allocation205_spill] sm:$0xff] %v9281_v63  ;;  %11622 = vst [vmem:[#allocation206_spill] sm:$0xff] %v9283_v57 }
 0x1f4   : > { %2586 = vst [vmem:[%s8256_s12 + $0x3e0] sm:$0xff] %v9281_v63  ;;  %2714 = vst [vmem:[%s8256_s12 + $0x7e0] sm:$0xff] %v9283_v57  ;;  %v9289_v49 = vpop.f32.mrf.mxu0  ;;  %v9291_v51 = vpop.f32.mrf.mxu1  ;;  %2723 = sbr.rel (!%p2718_p8) target bundleno = 506 (0x1fa), region = 44 }
 0x1f5   : > { %11623 = vst [vmem:[#allocation207_spill] sm:$0xff] %v9289_v49  ;;  %11624 = vst [vmem:[#allocation208_spill] sm:$0xff] %v9291_v51 }
 0x1f6   : > { %2589 = vst [vmem:[%s8256_s12 + $0x3f8] sm:$0xff] %v9289_v49  ;;  %2717 = vst [vmem:[%s8256_s12 + $0x7f8] sm:$0xff] %v9291_v51  ;;  %v9297_v61 = vpop.f32.mrf.mxu0  ;;  %v9299_v5 = vpop.f32.mrf.mxu1 }
 0x1f7   : > { %11625 = vst [vmem:[#allocation209_spill] sm:$0xff] %v9297_v61  ;;  %11626 = vst [vmem:[#allocation210_spill] sm:$0xff] %v9299_v5 }
 0x1f8   : > { %2587 = vst [vmem:[%s8256_s12 + $0x3e8] sm:$0xff] %v9297_v61  ;;  %2715 = vst [vmem:[%s8256_s12 + $0x7e8] sm:$0xff] %v9299_v5 }
 0x1f9   : > { %2724 = vst [vmem:[#allocation3] sm:$0xff] %v8059_v47  ;;  %2725 = vst [vmem:[#allocation4] sm:$0xff] %v8059_v47 }
 0x1fa PF: > { %v2727_v57 = vadd.f32 %v8282_v56, %v8262_v48  ;;  %v2985_v11 = vmul.f32 %v8262_v48, %v8262_v48 }
 0x1fc   : > { %v2728_v51 = vadd.f32 %v8250_v46, %v2727_v57  ;;  %v2986_v57 = vmul.f32 %v8282_v56, %v8282_v56  ;;  %v2990_v56 = vmul.f32 %v8318_v4, %v8318_v4 }
 0x1fe   : > { %v2729_v49 = vadd.f32 %v8270_v50, %v2728_v51 }
 0x200   : > { %v2730_v63 = vadd.f32 %v2729_v49, %v8298_v60  ;;  %v2987_v49 = vmul.f32 %v8250_v46, %v8250_v46 }
 0x202   : > { %v2731_v61 = vadd.f32 %v2730_v63, %v8318_v4 }
 0x204   : > { %v2732_v5 = vadd.f32 %v8290_v58, %v2731_v61  ;;  %v2988_v61 = vmul.f32 %v8270_v50, %v8270_v50 }
 0x206   : > { %v2733_v59 = vadd.f32 %v8306_v62, %v2732_v5  ;;  %v3241_v5 = vadd.f32 %v2986_v57, %v2985_v11  ;;  %v2992_v11 = vmul.f32 %v8306_v62, %v8306_v62 }
 0x208   : > { %v2734_v17 = vadd.f32 %v2733_v59, %v8334_v8  ;;  %v3242_v48 = vadd.f32 %v3241_v5, %v2987_v49  ;;  %v2993_v49 = vmul.f32 %v8334_v8, %v8334_v8  ;;  %v2995_v5 = vmul.f32 %v8326_v6, %v8326_v6 }
 0x20a   : > { %v2735_v47 = vadd.f32 %v2734_v17, %v8354_v16  ;;  %v2989_v17 = vmul.f32 %v8298_v60, %v8298_v60 }
 0x20c   : > { %v2736_v51 = vadd.f32 %v8326_v6, %v2735_v47  ;;  %v3243_v47 = vadd.f32 %v3242_v48, %v2988_v61  ;;  %v2997_v48 = vmul.f32 %v8370_v20, %v8370_v20 }
 0x20e   : > { %v2737_v63 = vadd.f32 %v8342_v10, %v2736_v51  ;;  %v2991_v51 = vmul.f32 %v8290_v58, %v8290_v58  ;;  %v3244_v7 = vadd.f32 %v3243_v47, %v2989_v17  ;;  %v2998_v47 = vmul.f32 %v8390_v28, %v8390_v28 }
 0x210   : > { %v2738_v59 = vadd.f32 %v2737_v63, %v8370_v20  ;;  %v3245_v57 = vadd.f32 %v3244_v7, %v2990_v56  ;;  %v2996_v7 = vmul.f32 %v8342_v10, %v8342_v10 }
 0x212   : > { %v2739_v9 = vadd.f32 %v2738_v59, %v8390_v28  ;;  %v3246_v63 = vadd.f32 %v3245_v57, %v2991_v51  ;;  %v2999_v51 = vmul.f32 %v8362_v18, %v8362_v18 }
 0x214   : > { %v2740_v46 = vadd.f32 %v8362_v18, %v2739_v9  ;;  %v2994_v9 = vmul.f32 %v8354_v16, %v8354_v16  ;;  %v3247_v61 = vadd.f32 %v3246_v63, %v2992_v11  ;;  %v3000_v11 = vmul.f32 %v8378_v22, %v8378_v22 }
 0x215   : > { %v3002_v63 = vmul.f32 %v8426_v40, %v8426_v40 }
 0x216   : > { %v2741_v50 = vadd.f32 %v8378_v22, %v2740_v46  ;;  %v3248_v59 = vadd.f32 %v3247_v61, %v2993_v49 }
 0x218   : > { %v2742_v60 = vadd.f32 %v2741_v50, %v8406_v32  ;;  %v3249_v17 = vadd.f32 %v3248_v59, %v2994_v9  ;;  %v3003_v9 = vmul.f32 %v8398_v30, %v8398_v30  ;;  %v3005_v59 = vmul.f32 %v8442_v44, %v8442_v44 }
 0x21a   : > { %v2743_v4 = vadd.f32 %v2742_v60, %v8426_v40  ;;  %v3250_v56 = vadd.f32 %v3249_v17, %v2995_v5  ;;  %v3001_v60 = vmul.f32 %v8406_v32, %v8406_v32 }
 0x21c   : > { %v2744_v58 = vadd.f32 %v8398_v30, %v2743_v4  ;;  %v3251_v46 = vadd.f32 %v3250_v56, %v2996_v7  ;;  %v3006_v7 = vmul.f32 %v8462_v2, %v8462_v2  ;;  %v3008_v56 = vmul.f32 %v8450_v52, %v8450_v52 }
 0x21e   : > { %v2745_v62 = vadd.f32 %v8414_v34, %v2744_v58  ;;  %v3252_v50 = vadd.f32 %v3251_v46, %v2997_v48  ;;  %v3004_v58 = vmul.f32 %v8414_v34, %v8414_v34 }
 0x220   : > { %v2746_v8 = vadd.f32 %v2745_v62, %v8442_v44  ;;  %v3253_v57 = vadd.f32 %v3252_v50, %v2998_v47  ;;  %v3009_v47 = vmul.f32 %v8478_v14, %v8478_v14  ;;  %v3011_v50 = vmul.f32 %v8470_v12, %v8470_v12 }
 0x222   : > { %v2747_v16 = vadd.f32 %v2746_v8, %v8462_v2  ;;  %v3254_v49 = vadd.f32 %v3253_v57, %v2999_v51  ;;  %v3007_v8 = vmul.f32 %v8434_v42, %v8434_v42 }
 0x224   : > { %v2748_v6 = vadd.f32 %v8434_v42, %v2747_v16  ;;  %v3255_v4 = vadd.f32 %v3254_v49, %v3000_v11  ;;  %v3012_v11 = vmul.f32 %v8486_v24, %v8486_v24  ;;  %v3014_v49 = vmul.f32 %v8528_v26, %v8528_v26 }
 0x226   : > { %v2749_v10 = vadd.f32 %v8450_v52, %v2748_v6  ;;  %v3256_v61 = vadd.f32 %v3255_v4, %v3001_v60  ;;  %v3010_v6 = vmul.f32 %v8496_v36, %v8496_v36 }
 0x228   : > { %v2750_v20 = vadd.f32 %v2749_v10, %v8478_v14  ;;  %v3257_v5 = vadd.f32 %v3256_v61, %v3002_v63  ;;  %v3015_v63 = vmul.f32 %v8504_v38, %v8504_v38  ;;  %v3017_v61 = vmul.f32 %v8544_v1, %v8544_v1 }
 0x22a   : > { %v2751_v28 = vadd.f32 %v2750_v20, %v8496_v36  ;;  %v3258_v62 = vadd.f32 %v3257_v5, %v3003_v9  ;;  %v3013_v20 = vmul.f32 %v8512_v54, %v8512_v54 }
 0x22c   : > { %v2752_v18 = vadd.f32 %v8470_v12, %v2751_v28  ;;  %v3259_v17 = vadd.f32 %v3258_v62, %v3004_v58  ;;  %v3018_v58 = vmul.f32 %v8560_v55, %v8560_v55  ;;  %v3020_v62 = vmul.f32 %v8552_v27, %v8552_v27 }
 0x22e   : > { %v2753_v22 = vadd.f32 %v8486_v24, %v2752_v18  ;;  %v3260_v48 = vadd.f32 %v3259_v17, %v3005_v59  ;;  %v3016_v18 = vmul.f32 %v8520_v0, %v8520_v0 }
 0x230   : > { %v2754_v32 = vadd.f32 %v2753_v22, %v8512_v54  ;;  %v3261_v16 = vadd.f32 %v3260_v48, %v3006_v7  ;;  %v3021_v7 = vmul.f32 %v8576_v13, %v8576_v13  ;;  %v3023_v48 = vmul.f32 %v8568_v25, %v8568_v25 }
 0x232   : > { %v2755_v40 = vadd.f32 %v2754_v32, %v8528_v26  ;;  %v3262_v46 = vadd.f32 %v3261_v16, %v3007_v8  ;;  %v3019_v32 = vmul.f32 %v8536_v39, %v8536_v39 }
 0x234   : > { %v2756_v30 = vadd.f32 %v8504_v38, %v2755_v40  ;;  %v3263_v51 = vadd.f32 %v3262_v46, %v3008_v56  ;;  %v3024_v56 = vmul.f32 %v8584_v37, %v8584_v37  ;;  %v3026_v46 = vmul.f32 %v8624_v45, %v8624_v45 }
 0x236   : > { %v2757_v34 = vadd.f32 %v8520_v0, %v2756_v30  ;;  %v3264_v10 = vadd.f32 %v3263_v51, %v3009_v47  ;;  %v3022_v30 = vmul.f32 %v8592_v15, %v8592_v15 }
 0x238   : > { %v2758_v44 = vadd.f32 %v2757_v34, %v8544_v1  ;;  %v3265_v57 = vadd.f32 %v3264_v10, %v3010_v6  ;;  %v3027_v6 = vmul.f32 %v8600_v53, %v8600_v53 }
 0x23a   : > { %v2759_v2 = vadd.f32 %v2758_v44, %v8560_v55  ;;  %v3266_v60 = vadd.f32 %v3265_v57, %v3011_v50  ;;  %v3025_v44 = vmul.f32 %v8608_v43, %v8608_v43 }
 0x23c   : > { %v2760_v42 = vadd.f32 %v8536_v39, %v2759_v2  ;;  %v3267_v28 = vadd.f32 %v3266_v60, %v3012_v11 }
 0x23e   : > { %v2761_v52 = vadd.f32 %v8552_v27, %v2760_v42  ;;  %v3268_v4 = vadd.f32 %v3267_v28, %v3013_v20  ;;  %v3028_v42 = vmul.f32 %v8616_v3, %v8616_v3 }
 0x240   : > { %v2762_v14 = vadd.f32 %v2761_v52, %v8576_v13  ;;  %v3269_v9 = vadd.f32 %v3268_v4, %v3014_v49  ;;  %v3029_v52 = vmul.f32 %v8640_v31, %v8640_v31 }
 0x242   : > { %v2763_v36 = vadd.f32 %v2762_v14, %v8592_v15  ;;  %v3270_v22 = vadd.f32 %v3269_v9, %v3015_v63  ;;  %v3030_v14 = vmul.f32 %v8656_v33, %v8656_v33 }
 0x244   : > { %v2764_v12 = vadd.f32 %v8568_v25, %v2763_v36  ;;  %v3271_v5 = vadd.f32 %v3270_v22, %v3016_v18  ;;  %v3031_v36 = vmul.f32 %v8632_v35, %v8632_v35 }
 0x246   : > { %v2765_v24 = vadd.f32 %v8584_v37, %v2764_v12  ;;  %v3272_v59 = vadd.f32 %v3271_v5, %v3017_v61  ;;  %v3032_v12 = vmul.f32 %v8648_v41, %v8648_v41 }
 0x248   : > { %v2766_v54 = vadd.f32 %v2765_v24, %v8608_v43  ;;  %v3273_v40 = vadd.f32 %v3272_v59, %v3018_v58  ;;  %v11627_v43 = vld [vmem:[#allocation61_spill] sm:$0xff]  ;;  %v3033_v24 = vmul.f32 %v8672_v19, %v8672_v19 }
 0x24a   : > { %v2767_v26 = vadd.f32 %v2766_v54, %v8624_v45  ;;  %v3274_v17 = vadd.f32 %v3273_v40, %v3019_v32  ;;  %v11628_v45 = vld [vmem:[#allocation65_spill] sm:$0xff]  ;;  %v3034_v54 = vmul.f32 %v8688_v21, %v8688_v21 }
 0x24c   : > { %v2768_v38 = vadd.f32 %v8600_v53, %v2767_v26  ;;  %v3275_v8 = vadd.f32 %v3274_v17, %v3020_v62  ;;  %v11629_v53 = vld [vmem:[#allocation59_spill] sm:$0xff]  ;;  %v3035_v26 = vmul.f32 %v8664_v23, %v8664_v23 }
 0x24e   : > { %v2769_v0 = vadd.f32 %v8616_v3, %v2768_v38  ;;  %v3276_v34 = vadd.f32 %v3275_v8, %v3021_v7  ;;  %v11630_v3 = vld [vmem:[#allocation63_spill] sm:$0xff]  ;;  %v3036_v38 = vmul.f32 %v8680_v29, %v8680_v29 }
 0x250   : > { %v2770_v1 = vadd.f32 %v2769_v0, %v8640_v31  ;;  %v3277_v16 = vadd.f32 %v3276_v34, %v3022_v30  ;;  %v11631_v31 = vld [vmem:[#allocation69_spill] sm:$0xff]  ;;  %v3037_v0 = vmul.f32 %v11627_v43, %v11627_v43 }
 0x251   : > { %v11639_v34 = vld [vmem:[#allocation85_spill] sm:$0xff] }
 0x252   : > { %v2771_v55 = vadd.f32 %v2770_v1, %v8656_v33  ;;  %v3278_v47 = vadd.f32 %v3277_v16, %v3023_v48  ;;  %v11632_v33 = vld [vmem:[#allocation73_spill] sm:$0xff]  ;;  %v3038_v1 = vmul.f32 %v11628_v45, %v11628_v45 }
 0x254   : > { %v2772_v39 = vadd.f32 %v8632_v35, %v2771_v55  ;;  %v3279_v2 = vadd.f32 %v3278_v47, %v3024_v56  ;;  %v11633_v35 = vld [vmem:[#allocation67_spill] sm:$0xff]  ;;  %v3039_v55 = vmul.f32 %v11629_v53, %v11629_v53  ;;  %v3041_v56 = vmul.f32 %v11631_v31, %v11631_v31 }
 0x255   : > { %v3042_v47 = vmul.f32 %v11632_v33, %v11632_v33 }
 0x256   : > { %v2773_v27 = vadd.f32 %v8648_v41, %v2772_v39  ;;  %v3280_v51 = vadd.f32 %v3279_v2, %v3025_v44  ;;  %v11634_v41 = vld [vmem:[#allocation71_spill] sm:$0xff]  ;;  %v3040_v39 = vmul.f32 %v11630_v3, %v11630_v3 }
 0x258   : > { %v2774_v13 = vadd.f32 %v2773_v27, %v8672_v19  ;;  %v3281_v50 = vadd.f32 %v3280_v51, %v3026_v46  ;;  %v11635_v19 = vld [vmem:[#allocation77_spill] sm:$0xff]  ;;  %v11641_v46 = vld [vmem:[#allocation83_spill] sm:$0xff] }
 0x259   : > { %v11642_v51 = vld [vmem:[#allocation87_spill] sm:$0xff] }
 0x25a   : > { %v2775_v15 = vadd.f32 %v2774_v13, %v8688_v21  ;;  %v3282_v11 = vadd.f32 %v3281_v50, %v3027_v6  ;;  %v11636_v21 = vld [vmem:[#allocation81_spill] sm:$0xff] }
 0x25b   : > { %v11640_v13 = vld [vmem:[#allocation89_spill] sm:$0xff] }
 0x25c   : > { %v2776_v25 = vadd.f32 %v8664_v23, %v2775_v15  ;;  %v3283_v20 = vadd.f32 %v3282_v11, %v3028_v42  ;;  %v11637_v23 = vld [vmem:[#allocation75_spill] sm:$0xff]  ;;  %v3044_v42 = vmul.f32 %v11634_v41, %v11634_v41 }
 0x25e   : > { %v2777_v37 = vadd.f32 %v8680_v29, %v2776_v25  ;;  %v3284_v49 = vadd.f32 %v3283_v20, %v3029_v52  ;;  %v11638_v29 = vld [vmem:[#allocation79_spill] sm:$0xff]  ;;  %v3043_v25 = vmul.f32 %v11633_v35, %v11633_v35  ;;  %v3045_v52 = vmul.f32 %v11635_v19, %v11635_v19 }
 0x260   : > { %v2778_v10 = vadd.f32 %v2777_v37, %v11627_v43  ;;  %v3285_v63 = vadd.f32 %v3284_v49, %v3030_v14  ;;  %v11643_v43 = vld [vmem:[#allocation93_spill] sm:$0xff]  ;;  %v3046_v14 = vmul.f32 %v11636_v21, %v11636_v21 }
 0x262   : > { %v2779_v57 = vadd.f32 %v2778_v10, %v11628_v45  ;;  %v3286_v18 = vadd.f32 %v3285_v63, %v3031_v36  ;;  %v11644_v45 = vld [vmem:[#allocation97_spill] sm:$0xff]  ;;  %v3047_v36 = vmul.f32 %v11637_v23, %v11637_v23 }
 0x264   : > { %v2780_v60 = vadd.f32 %v11629_v53, %v2779_v57  ;;  %v3287_v61 = vadd.f32 %v3286_v18, %v3032_v12  ;;  %v11645_v53 = vld [vmem:[#allocation91_spill] sm:$0xff]  ;;  %v3048_v12 = vmul.f32 %v11638_v29, %v11638_v29 }
 0x266   : > { %v2781_v28 = vadd.f32 %v11630_v3, %v2780_v60  ;;  %v3288_v58 = vadd.f32 %v3287_v61, %v3033_v24  ;;  %v11646_v3 = vld [vmem:[#allocation95_spill] sm:$0xff]  ;;  %v3049_v24 = vmul.f32 %v11639_v34, %v11639_v34 }
 0x268   : > { %v2782_v4 = vadd.f32 %v2781_v28, %v11631_v31  ;;  %v3289_v32 = vadd.f32 %v3288_v58, %v3034_v54  ;;  %v11647_v31 = vld [vmem:[#allocation101_spill] sm:$0xff]  ;;  %v3050_v54 = vmul.f32 %v11640_v13, %v11640_v13 }
 0x26a   : > { %v2783_v9 = vadd.f32 %v2782_v4, %v11632_v33  ;;  %v3290_v62 = vadd.f32 %v3289_v32, %v3035_v26  ;;  %v11648_v33 = vld [vmem:[#allocation105_spill] sm:$0xff]  ;;  %v3051_v26 = vmul.f32 %v11641_v46, %v11641_v46 }
 0x26c   : > { %v2784_v22 = vadd.f32 %v11633_v35, %v2783_v9  ;;  %v3291_v7 = vadd.f32 %v3290_v62, %v3036_v38  ;;  %v11649_v35 = vld [vmem:[#allocation99_spill] sm:$0xff]  ;;  %v3052_v38 = vmul.f32 %v11642_v51, %v11642_v51 }
 0x26e   : > { %v2785_v5 = vadd.f32 %v11634_v41, %v2784_v22  ;;  %v3292_v30 = vadd.f32 %v3291_v7, %v3037_v0  ;;  %v11650_v41 = vld [vmem:[#allocation103_spill] sm:$0xff]  ;;  %v3053_v0 = vmul.f32 %v11643_v43, %v11643_v43 }
 0x270   : > { %v2786_v59 = vadd.f32 %v2785_v5, %v11635_v19  ;;  %v3293_v48 = vadd.f32 %v3292_v30, %v3038_v1  ;;  %v11651_v19 = vld [vmem:[#allocation109_spill] sm:$0xff]  ;;  %v3054_v1 = vmul.f32 %v11644_v45, %v11644_v45 }
 0x272   : > { %v2787_v40 = vadd.f32 %v2786_v59, %v11636_v21  ;;  %v3294_v16 = vadd.f32 %v3293_v48, %v3039_v55  ;;  %v11652_v21 = vld [vmem:[#allocation113_spill] sm:$0xff]  ;;  %v3055_v55 = vmul.f32 %v11645_v53, %v11645_v53 }
 0x274   : > { %v2788_v17 = vadd.f32 %v11637_v23, %v2787_v40  ;;  %v3295_v15 = vadd.f32 %v3294_v16, %v3040_v39  ;;  %v11653_v23 = vld [vmem:[#allocation107_spill] sm:$0xff]  ;;  %v3056_v39 = vmul.f32 %v11646_v3, %v11646_v3 }
 0x276   : > { %v2789_v8 = vadd.f32 %v11638_v29, %v2788_v17  ;;  %v3296_v6 = vadd.f32 %v3295_v15, %v3041_v56  ;;  %v11654_v29 = vld [vmem:[#allocation111_spill] sm:$0xff]  ;;  %v3057_v56 = vmul.f32 %v11647_v31, %v11647_v31 }
 0x278   : > { %v2790_v27 = vadd.f32 %v2789_v8, %v11639_v34  ;;  %v3297_v50 = vadd.f32 %v3296_v6, %v3042_v47  ;;  %v11655_v34 = vld [vmem:[#allocation117_spill] sm:$0xff]  ;;  %v3058_v47 = vmul.f32 %v11648_v33, %v11648_v33 }
 0x27a   : > { %v2791_v44 = vadd.f32 %v2790_v27, %v11640_v13  ;;  %v3298_v11 = vadd.f32 %v3297_v50, %v3043_v25  ;;  %v11656_v13 = vld [vmem:[#allocation121_spill] sm:$0xff]  ;;  %v3059_v25 = vmul.f32 %v11649_v35, %v11649_v35 }
 0x27c   : > { %v2792_v2 = vadd.f32 %v11641_v46, %v2791_v44  ;;  %v3299_v20 = vadd.f32 %v3298_v11, %v3044_v42  ;;  %v11657_v46 = vld [vmem:[#allocation115_spill] sm:$0xff]  ;;  %v3060_v42 = vmul.f32 %v11650_v41, %v11650_v41 }
 0x27e   : > { %v2793_v37 = vadd.f32 %v11642_v51, %v2792_v2  ;;  %v3300_v49 = vadd.f32 %v3299_v20, %v3045_v52  ;;  %v11658_v51 = vld [vmem:[#allocation119_spill] sm:$0xff]  ;;  %v3061_v52 = vmul.f32 %v11651_v19, %v11651_v19 }
 0x280   : > { %v2794_v10 = vadd.f32 %v2793_v37, %v11643_v43  ;;  %v3301_v63 = vadd.f32 %v3300_v49, %v3046_v14  ;;  %v11659_v43 = vld [vmem:[#allocation125_spill] sm:$0xff]  ;;  %v3062_v14 = vmul.f32 %v11652_v21, %v11652_v21 }
 0x282   : > { %v2795_v57 = vadd.f32 %v2794_v10, %v11644_v45  ;;  %v3302_v18 = vadd.f32 %v3301_v63, %v3047_v36  ;;  %v11660_v45 = vld [vmem:[#allocation129_spill] sm:$0xff]  ;;  %v3063_v36 = vmul.f32 %v11653_v23, %v11653_v23 }
 0x284   : > { %v2796_v60 = vadd.f32 %v11645_v53, %v2795_v57  ;;  %v3303_v61 = vadd.f32 %v3302_v18, %v3048_v12  ;;  %v11661_v53 = vld [vmem:[#allocation123_spill] sm:$0xff]  ;;  %v3064_v12 = vmul.f32 %v11654_v29, %v11654_v29 }
 0x286   : > { %v2797_v28 = vadd.f32 %v11646_v3, %v2796_v60  ;;  %v3304_v58 = vadd.f32 %v3303_v61, %v3049_v24  ;;  %v11662_v3 = vld [vmem:[#allocation127_spill] sm:$0xff]  ;;  %v3065_v24 = vmul.f32 %v11655_v34, %v11655_v34 }
 0x288   : > { %v2798_v4 = vadd.f32 %v2797_v28, %v11647_v31  ;;  %v3305_v32 = vadd.f32 %v3304_v58, %v3050_v54  ;;  %v11663_v31 = vld [vmem:[#allocation133_spill] sm:$0xff]  ;;  %v3066_v54 = vmul.f32 %v11656_v13, %v11656_v13 }
 0x28a   : > { %v2799_v9 = vadd.f32 %v2798_v4, %v11648_v33  ;;  %v3306_v62 = vadd.f32 %v3305_v32, %v3051_v26  ;;  %v11664_v33 = vld [vmem:[#allocation137_spill] sm:$0xff]  ;;  %v3067_v26 = vmul.f32 %v11657_v46, %v11657_v46 }
 0x28c   : > { %v2800_v22 = vadd.f32 %v11649_v35, %v2799_v9  ;;  %v3307_v7 = vadd.f32 %v3306_v62, %v3052_v38  ;;  %v11665_v35 = vld [vmem:[#allocation131_spill] sm:$0xff]  ;;  %v3068_v38 = vmul.f32 %v11658_v51, %v11658_v51 }
 0x28e   : > { %v2801_v5 = vadd.f32 %v11650_v41, %v2800_v22  ;;  %v3308_v30 = vadd.f32 %v3307_v7, %v3053_v0  ;;  %v11666_v41 = vld [vmem:[#allocation135_spill] sm:$0xff]  ;;  %v3069_v0 = vmul.f32 %v11659_v43, %v11659_v43 }
 0x290   : > { %v2802_v59 = vadd.f32 %v2801_v5, %v11651_v19  ;;  %v3309_v48 = vadd.f32 %v3308_v30, %v3054_v1  ;;  %v11667_v19 = vld [vmem:[#allocation141_spill] sm:$0xff]  ;;  %v3070_v1 = vmul.f32 %v11660_v45, %v11660_v45 }
 0x292   : > { %v2803_v40 = vadd.f32 %v2802_v59, %v11652_v21  ;;  %v3310_v16 = vadd.f32 %v3309_v48, %v3055_v55  ;;  %v11668_v21 = vld [vmem:[#allocation145_spill] sm:$0xff]  ;;  %v3071_v55 = vmul.f32 %v11661_v53, %v11661_v53 }
 0x294   : > { %v2804_v17 = vadd.f32 %v11653_v23, %v2803_v40  ;;  %v3311_v15 = vadd.f32 %v3310_v16, %v3056_v39  ;;  %v11669_v23 = vld [vmem:[#allocation139_spill] sm:$0xff]  ;;  %v3072_v39 = vmul.f32 %v11662_v3, %v11662_v3 }
 0x296   : > { %v2805_v8 = vadd.f32 %v11654_v29, %v2804_v17  ;;  %v3312_v6 = vadd.f32 %v3311_v15, %v3057_v56  ;;  %v11670_v29 = vld [vmem:[#allocation143_spill] sm:$0xff]  ;;  %v3073_v56 = vmul.f32 %v11663_v31, %v11663_v31 }
 0x298   : > { %v2806_v27 = vadd.f32 %v2805_v8, %v11655_v34  ;;  %v3313_v50 = vadd.f32 %v3312_v6, %v3058_v47  ;;  %v11671_v34 = vld [vmem:[#allocation149_spill] sm:$0xff]  ;;  %v3074_v47 = vmul.f32 %v11664_v33, %v11664_v33 }
 0x29a   : > { %v2807_v44 = vadd.f32 %v2806_v27, %v11656_v13  ;;  %v3314_v11 = vadd.f32 %v3313_v50, %v3059_v25  ;;  %v11672_v13 = vld [vmem:[#allocation153_spill] sm:$0xff]  ;;  %v3075_v25 = vmul.f32 %v11665_v35, %v11665_v35 }
 0x29c   : > { %v2808_v2 = vadd.f32 %v11657_v46, %v2807_v44  ;;  %v3315_v20 = vadd.f32 %v3314_v11, %v3060_v42  ;;  %v11673_v46 = vld [vmem:[#allocation147_spill] sm:$0xff]  ;;  %v3076_v42 = vmul.f32 %v11666_v41, %v11666_v41 }
 0x29e   : > { %v2809_v37 = vadd.f32 %v11658_v51, %v2808_v2  ;;  %v3316_v49 = vadd.f32 %v3315_v20, %v3061_v52  ;;  %v11674_v51 = vld [vmem:[#allocation151_spill] sm:$0xff]  ;;  %v3077_v52 = vmul.f32 %v11667_v19, %v11667_v19 }
 0x2a0   : > { %v2810_v10 = vadd.f32 %v2809_v37, %v11659_v43  ;;  %v3317_v63 = vadd.f32 %v3316_v49, %v3062_v14  ;;  %v11675_v43 = vld [vmem:[#allocation157_spill] sm:$0xff]  ;;  %v3078_v14 = vmul.f32 %v11668_v21, %v11668_v21 }
 0x2a2   : > { %v2811_v57 = vadd.f32 %v2810_v10, %v11660_v45  ;;  %v3318_v18 = vadd.f32 %v3317_v63, %v3063_v36  ;;  %v11676_v45 = vld [vmem:[#allocation161_spill] sm:$0xff]  ;;  %v3079_v36 = vmul.f32 %v11669_v23, %v11669_v23 }
 0x2a4   : > { %v2812_v60 = vadd.f32 %v11661_v53, %v2811_v57  ;;  %v3319_v61 = vadd.f32 %v3318_v18, %v3064_v12  ;;  %v11677_v53 = vld [vmem:[#allocation155_spill] sm:$0xff]  ;;  %v3080_v12 = vmul.f32 %v11670_v29, %v11670_v29 }
 0x2a6   : > { %v2813_v28 = vadd.f32 %v11662_v3, %v2812_v60  ;;  %v3320_v58 = vadd.f32 %v3319_v61, %v3065_v24  ;;  %v11678_v3 = vld [vmem:[#allocation159_spill] sm:$0xff]  ;;  %v3081_v24 = vmul.f32 %v11671_v34, %v11671_v34 }
 0x2a8   : > { %v2814_v4 = vadd.f32 %v2813_v28, %v11663_v31  ;;  %v3321_v32 = vadd.f32 %v3320_v58, %v3066_v54  ;;  %v11679_v31 = vld [vmem:[#allocation165_spill] sm:$0xff]  ;;  %v3082_v54 = vmul.f32 %v11672_v13, %v11672_v13 }
 0x2aa   : > { %v2815_v9 = vadd.f32 %v2814_v4, %v11664_v33  ;;  %v3322_v62 = vadd.f32 %v3321_v32, %v3067_v26  ;;  %v11680_v33 = vld [vmem:[#allocation169_spill] sm:$0xff]  ;;  %v3083_v26 = vmul.f32 %v11673_v46, %v11673_v46 }
 0x2ac   : > { %v2816_v22 = vadd.f32 %v11665_v35, %v2815_v9  ;;  %v3323_v7 = vadd.f32 %v3322_v62, %v3068_v38  ;;  %v11681_v35 = vld [vmem:[#allocation163_spill] sm:$0xff]  ;;  %v3084_v38 = vmul.f32 %v11674_v51, %v11674_v51 }
 0x2ae   : > { %v2817_v5 = vadd.f32 %v11666_v41, %v2816_v22  ;;  %v3324_v30 = vadd.f32 %v3323_v7, %v3069_v0  ;;  %v11682_v41 = vld [vmem:[#allocation167_spill] sm:$0xff]  ;;  %v3085_v0 = vmul.f32 %v11675_v43, %v11675_v43 }
 0x2b0   : > { %v2818_v59 = vadd.f32 %v2817_v5, %v11667_v19  ;;  %v3325_v48 = vadd.f32 %v3324_v30, %v3070_v1  ;;  %v11683_v19 = vld [vmem:[#allocation173_spill] sm:$0xff]  ;;  %v3086_v1 = vmul.f32 %v11676_v45, %v11676_v45 }
 0x2b2   : > { %v2819_v40 = vadd.f32 %v2818_v59, %v11668_v21  ;;  %v3326_v16 = vadd.f32 %v3325_v48, %v3071_v55  ;;  %v11684_v21 = vld [vmem:[#allocation177_spill] sm:$0xff]  ;;  %v3087_v55 = vmul.f32 %v11677_v53, %v11677_v53 }
 0x2b4   : > { %v2820_v17 = vadd.f32 %v11669_v23, %v2819_v40  ;;  %v3327_v15 = vadd.f32 %v3326_v16, %v3072_v39  ;;  %v11685_v23 = vld [vmem:[#allocation171_spill] sm:$0xff]  ;;  %v3088_v39 = vmul.f32 %v11678_v3, %v11678_v3 }
 0x2b6   : > { %v2821_v8 = vadd.f32 %v11670_v29, %v2820_v17  ;;  %v3328_v6 = vadd.f32 %v3327_v15, %v3073_v56  ;;  %v11686_v29 = vld [vmem:[#allocation175_spill] sm:$0xff]  ;;  %v3089_v56 = vmul.f32 %v11679_v31, %v11679_v31 }
 0x2b8   : > { %v2822_v27 = vadd.f32 %v2821_v8, %v11671_v34  ;;  %v3329_v50 = vadd.f32 %v3328_v6, %v3074_v47  ;;  %v11687_v34 = vld [vmem:[#allocation181_spill] sm:$0xff]  ;;  %v3090_v47 = vmul.f32 %v11680_v33, %v11680_v33 }
 0x2ba   : > { %v2823_v44 = vadd.f32 %v2822_v27, %v11672_v13  ;;  %v3330_v11 = vadd.f32 %v3329_v50, %v3075_v25  ;;  %v11688_v13 = vld [vmem:[#allocation185_spill] sm:$0xff]  ;;  %v3091_v25 = vmul.f32 %v11681_v35, %v11681_v35 }
 0x2bc   : > { %v2824_v2 = vadd.f32 %v11673_v46, %v2823_v44  ;;  %v3331_v20 = vadd.f32 %v3330_v11, %v3076_v42  ;;  %v11689_v46 = vld [vmem:[#allocation179_spill] sm:$0xff]  ;;  %v3092_v42 = vmul.f32 %v11682_v41, %v11682_v41 }
 0x2be   : > { %v2825_v37 = vadd.f32 %v11674_v51, %v2824_v2  ;;  %v3332_v49 = vadd.f32 %v3331_v20, %v3077_v52  ;;  %v11690_v51 = vld [vmem:[#allocation183_spill] sm:$0xff]  ;;  %v3093_v52 = vmul.f32 %v11683_v19, %v11683_v19 }
 0x2c0   : > { %v2826_v10 = vadd.f32 %v2825_v37, %v11675_v43  ;;  %v3333_v63 = vadd.f32 %v3332_v49, %v3078_v14  ;;  %v11691_v43 = vld [vmem:[#allocation189_spill] sm:$0xff]  ;;  %v3094_v14 = vmul.f32 %v11684_v21, %v11684_v21 }
 0x2c2   : > { %v2827_v57 = vadd.f32 %v2826_v10, %v11676_v45  ;;  %v3334_v18 = vadd.f32 %v3333_v63, %v3079_v36  ;;  %v11692_v45 = vld [vmem:[#allocation193_spill] sm:$0xff]  ;;  %v3095_v36 = vmul.f32 %v11685_v23, %v11685_v23 }
 0x2c4   : > { %v2828_v60 = vadd.f32 %v11677_v53, %v2827_v57  ;;  %v3335_v61 = vadd.f32 %v3334_v18, %v3080_v12  ;;  %v11693_v53 = vld [vmem:[#allocation187_spill] sm:$0xff]  ;;  %v3096_v12 = vmul.f32 %v11686_v29, %v11686_v29 }
 0x2c6   : > { %v2829_v28 = vadd.f32 %v11678_v3, %v2828_v60  ;;  %v3336_v58 = vadd.f32 %v3335_v61, %v3081_v24  ;;  %v11694_v3 = vld [vmem:[#allocation191_spill] sm:$0xff]  ;;  %v3097_v24 = vmul.f32 %v11687_v34, %v11687_v34 }
 0x2c8   : > { %v2830_v4 = vadd.f32 %v2829_v28, %v11679_v31  ;;  %v3337_v32 = vadd.f32 %v3336_v58, %v3082_v54  ;;  %v11695_v31 = vld [vmem:[#allocation197_spill] sm:$0xff]  ;;  %v3098_v54 = vmul.f32 %v11688_v13, %v11688_v13 }
 0x2ca   : > { %v2831_v9 = vadd.f32 %v2830_v4, %v11680_v33  ;;  %v3338_v62 = vadd.f32 %v3337_v32, %v3083_v26  ;;  %v11696_v33 = vld [vmem:[#allocation201_spill] sm:$0xff]  ;;  %v3099_v26 = vmul.f32 %v11689_v46, %v11689_v46 }
 0x2cc   : > { %v2832_v22 = vadd.f32 %v11681_v35, %v2831_v9  ;;  %v3339_v7 = vadd.f32 %v3338_v62, %v3084_v38  ;;  %v11697_v35 = vld [vmem:[#allocation195_spill] sm:$0xff]  ;;  %v3100_v38 = vmul.f32 %v11690_v51, %v11690_v51 }
 0x2ce   : > { %v2833_v5 = vadd.f32 %v11682_v41, %v2832_v22  ;;  %v3340_v30 = vadd.f32 %v3339_v7, %v3085_v0  ;;  %v11698_v41 = vld [vmem:[#allocation199_spill] sm:$0xff]  ;;  %v3101_v0 = vmul.f32 %v11691_v43, %v11691_v43 }
 0x2d0   : > { %v2834_v59 = vadd.f32 %v2833_v5, %v11683_v19  ;;  %v3341_v48 = vadd.f32 %v3340_v30, %v3086_v1  ;;  %v11699_v19 = vld [vmem:[#allocation205_spill] sm:$0xff]  ;;  %v3102_v1 = vmul.f32 %v11692_v45, %v11692_v45 }
 0x2d2   : > { %v2835_v40 = vadd.f32 %v2834_v59, %v11684_v21  ;;  %v3342_v16 = vadd.f32 %v3341_v48, %v3087_v55  ;;  %v11700_v21 = vld [vmem:[#allocation209_spill] sm:$0xff]  ;;  %v3103_v55 = vmul.f32 %v11693_v53, %v11693_v53 }
 0x2d4   : > { %v2836_v17 = vadd.f32 %v11685_v23, %v2835_v40  ;;  %v3343_v15 = vadd.f32 %v3342_v16, %v3088_v39  ;;  %v11701_v23 = vld [vmem:[#allocation203_spill] sm:$0xff]  ;;  %v3104_v39 = vmul.f32 %v11694_v3, %v11694_v3 }
 0x2d6   : > { %v2837_v8 = vadd.f32 %v11686_v29, %v2836_v17  ;;  %v3344_v6 = vadd.f32 %v3343_v15, %v3089_v56  ;;  %v11702_v29 = vld [vmem:[#allocation207_spill] sm:$0xff]  ;;  %v3105_v56 = vmul.f32 %v11695_v31, %v11695_v31 }
 0x2d8   : > { %v2838_v27 = vadd.f32 %v2837_v8, %v11687_v34  ;;  %v3345_v50 = vadd.f32 %v3344_v6, %v3090_v47  ;;  %v11703_v34 = vld [vmem:[#allocation8_spill] sm:$0xff]  ;;  %v3106_v47 = vmul.f32 %v11696_v33, %v11696_v33 }
 0x2da   : > { %v2839_v44 = vadd.f32 %v2838_v27, %v11688_v13  ;;  %v3346_v11 = vadd.f32 %v3345_v50, %v3091_v25  ;;  %v11704_v13 = vld [vmem:[#allocation10_spill] sm:$0xff]  ;;  %v3107_v25 = vmul.f32 %v11697_v35, %v11697_v35 }
 0x2dc   : > { %v2840_v2 = vadd.f32 %v11689_v46, %v2839_v44  ;;  %v3347_v20 = vadd.f32 %v3346_v11, %v3092_v42  ;;  %v11705_v46 = vld [vmem:[#allocation7_spill] sm:$0xff]  ;;  %v3108_v42 = vmul.f32 %v11698_v41, %v11698_v41 }
 0x2de   : > { %v2841_v37 = vadd.f32 %v11690_v51, %v2840_v2  ;;  %v3348_v49 = vadd.f32 %v3347_v20, %v3093_v52  ;;  %v11706_v51 = vld [vmem:[#allocation9_spill] sm:$0xff]  ;;  %v3109_v52 = vmul.f32 %v11699_v19, %v11699_v19 }
 0x2e0   : > { %v2842_v10 = vadd.f32 %v2841_v37, %v11691_v43  ;;  %v3349_v63 = vadd.f32 %v3348_v49, %v3094_v14  ;;  %v11707_v43 = vld [vmem:[#allocation12_spill] sm:$0xff]  ;;  %v3110_v14 = vmul.f32 %v11700_v21, %v11700_v21 }
 0x2e2   : > { %v2843_v57 = vadd.f32 %v2842_v10, %v11692_v45  ;;  %v3350_v18 = vadd.f32 %v3349_v63, %v3095_v36  ;;  %v11708_v45 = vld [vmem:[#allocation14_spill] sm:$0xff]  ;;  %v3111_v36 = vmul.f32 %v11701_v23, %v11701_v23 }
 0x2e4   : > { %v2844_v60 = vadd.f32 %v11693_v53, %v2843_v57  ;;  %v3351_v61 = vadd.f32 %v3350_v18, %v3096_v12  ;;  %v11709_v53 = vld [vmem:[#allocation11_spill] sm:$0xff]  ;;  %v3112_v12 = vmul.f32 %v11702_v29, %v11702_v29 }
 0x2e6   : > { %v2845_v28 = vadd.f32 %v11694_v3, %v2844_v60  ;;  %v3352_v58 = vadd.f32 %v3351_v61, %v3097_v24  ;;  %v11710_v3 = vld [vmem:[#allocation13_spill] sm:$0xff]  ;;  %v3113_v24 = vmul.f32 %v11703_v34, %v11703_v34 }
 0x2e8   : > { %v2846_v4 = vadd.f32 %v2845_v28, %v11695_v31  ;;  %v3353_v32 = vadd.f32 %v3352_v58, %v3098_v54  ;;  %v11711_v31 = vld [vmem:[#allocation16_spill] sm:$0xff]  ;;  %v3114_v54 = vmul.f32 %v11704_v13, %v11704_v13 }
 0x2ea   : > { %v2847_v9 = vadd.f32 %v2846_v4, %v11696_v33  ;;  %v3354_v62 = vadd.f32 %v3353_v32, %v3099_v26  ;;  %v11712_v33 = vld [vmem:[#allocation18_spill] sm:$0xff]  ;;  %v3115_v26 = vmul.f32 %v11705_v46, %v11705_v46 }
 0x2ec   : > { %v2848_v22 = vadd.f32 %v11697_v35, %v2847_v9  ;;  %v3355_v7 = vadd.f32 %v3354_v62, %v3100_v38  ;;  %v11713_v35 = vld [vmem:[#allocation15_spill] sm:$0xff]  ;;  %v3116_v38 = vmul.f32 %v11706_v51, %v11706_v51 }
 0x2ee   : > { %v2849_v5 = vadd.f32 %v11698_v41, %v2848_v22  ;;  %v3356_v30 = vadd.f32 %v3355_v7, %v3101_v0  ;;  %v11714_v41 = vld [vmem:[#allocation17_spill] sm:$0xff]  ;;  %v3117_v0 = vmul.f32 %v11707_v43, %v11707_v43 }
 0x2f0   : > { %v2850_v59 = vadd.f32 %v2849_v5, %v11699_v19  ;;  %v3357_v48 = vadd.f32 %v3356_v30, %v3102_v1  ;;  %v11715_v19 = vld [vmem:[#allocation20_spill] sm:$0xff]  ;;  %v3118_v1 = vmul.f32 %v11708_v45, %v11708_v45 }
 0x2f2   : > { %v2851_v40 = vadd.f32 %v2850_v59, %v11700_v21  ;;  %v3358_v16 = vadd.f32 %v3357_v48, %v3103_v55  ;;  %v11716_v21 = vld [vmem:[#allocation22_spill] sm:$0xff]  ;;  %v3119_v55 = vmul.f32 %v11709_v53, %v11709_v53 }
 0x2f4   : > { %v2852_v17 = vadd.f32 %v11701_v23, %v2851_v40  ;;  %v3359_v15 = vadd.f32 %v3358_v16, %v3104_v39  ;;  %v11717_v23 = vld [vmem:[#allocation19_spill] sm:$0xff]  ;;  %v3120_v39 = vmul.f32 %v11710_v3, %v11710_v3 }
 0x2f6   : > { %v2853_v8 = vadd.f32 %v11702_v29, %v2852_v17  ;;  %v3360_v6 = vadd.f32 %v3359_v15, %v3105_v56  ;;  %v11718_v29 = vld [vmem:[#allocation21_spill] sm:$0xff]  ;;  %v3121_v56 = vmul.f32 %v11711_v31, %v11711_v31 }
 0x2f8   : > { %v2854_v27 = vadd.f32 %v2853_v8, %v11703_v34  ;;  %v3361_v50 = vadd.f32 %v3360_v6, %v3106_v47  ;;  %v11719_v34 = vld [vmem:[#allocation24_spill] sm:$0xff]  ;;  %v3122_v47 = vmul.f32 %v11712_v33, %v11712_v33 }
 0x2fa   : > { %v2855_v44 = vadd.f32 %v2854_v27, %v11704_v13  ;;  %v3362_v11 = vadd.f32 %v3361_v50, %v3107_v25  ;;  %v11720_v13 = vld [vmem:[#allocation26_spill] sm:$0xff]  ;;  %v3123_v25 = vmul.f32 %v11713_v35, %v11713_v35 }
 0x2fc   : > { %v2856_v2 = vadd.f32 %v11705_v46, %v2855_v44  ;;  %v3363_v20 = vadd.f32 %v3362_v11, %v3108_v42  ;;  %v11721_v46 = vld [vmem:[#allocation23_spill] sm:$0xff]  ;;  %v3124_v42 = vmul.f32 %v11714_v41, %v11714_v41 }
 0x2fe   : > { %v2857_v37 = vadd.f32 %v11706_v51, %v2856_v2  ;;  %v3364_v49 = vadd.f32 %v3363_v20, %v3109_v52  ;;  %v11722_v51 = vld [vmem:[#allocation25_spill] sm:$0xff]  ;;  %v3125_v52 = vmul.f32 %v11715_v19, %v11715_v19 }
 0x300   : > { %v2858_v10 = vadd.f32 %v2857_v37, %v11707_v43  ;;  %v3365_v63 = vadd.f32 %v3364_v49, %v3110_v14  ;;  %v11723_v43 = vld [vmem:[#allocation28_spill] sm:$0xff]  ;;  %v3126_v14 = vmul.f32 %v11716_v21, %v11716_v21 }
 0x302   : > { %v2859_v57 = vadd.f32 %v2858_v10, %v11708_v45  ;;  %v3366_v18 = vadd.f32 %v3365_v63, %v3111_v36  ;;  %v11724_v45 = vld [vmem:[#allocation30_spill] sm:$0xff]  ;;  %v3127_v36 = vmul.f32 %v11717_v23, %v11717_v23 }
 0x304   : > { %v2860_v60 = vadd.f32 %v11709_v53, %v2859_v57  ;;  %v3367_v61 = vadd.f32 %v3366_v18, %v3112_v12  ;;  %v11725_v53 = vld [vmem:[#allocation27_spill] sm:$0xff]  ;;  %v3128_v12 = vmul.f32 %v11718_v29, %v11718_v29 }
 0x306   : > { %v2861_v28 = vadd.f32 %v11710_v3, %v2860_v60  ;;  %v3368_v58 = vadd.f32 %v3367_v61, %v3113_v24  ;;  %v11726_v3 = vld [vmem:[#allocation29_spill] sm:$0xff]  ;;  %v3129_v24 = vmul.f32 %v11719_v34, %v11719_v34 }
 0x308   : > { %v2862_v4 = vadd.f32 %v2861_v28, %v11711_v31  ;;  %v3369_v32 = vadd.f32 %v3368_v58, %v3114_v54  ;;  %v11727_v31 = vld [vmem:[#allocation32_spill] sm:$0xff]  ;;  %v3130_v54 = vmul.f32 %v11720_v13, %v11720_v13 }
 0x30a   : > { %v2863_v9 = vadd.f32 %v2862_v4, %v11712_v33  ;;  %v3370_v62 = vadd.f32 %v3369_v32, %v3115_v26  ;;  %v11728_v33 = vld [vmem:[#allocation34_spill] sm:$0xff]  ;;  %v3131_v26 = vmul.f32 %v11721_v46, %v11721_v46 }
 0x30c   : > { %v2864_v22 = vadd.f32 %v11713_v35, %v2863_v9  ;;  %v3371_v7 = vadd.f32 %v3370_v62, %v3116_v38  ;;  %v11729_v35 = vld [vmem:[#allocation31_spill] sm:$0xff]  ;;  %v3132_v38 = vmul.f32 %v11722_v51, %v11722_v51 }
 0x30e   : > { %v2865_v5 = vadd.f32 %v11714_v41, %v2864_v22  ;;  %v3372_v30 = vadd.f32 %v3371_v7, %v3117_v0  ;;  %v11730_v41 = vld [vmem:[#allocation33_spill] sm:$0xff]  ;;  %v3133_v0 = vmul.f32 %v11723_v43, %v11723_v43 }
 0x310   : > { %v2866_v59 = vadd.f32 %v2865_v5, %v11715_v19  ;;  %v3373_v48 = vadd.f32 %v3372_v30, %v3118_v1  ;;  %v11731_v19 = vld [vmem:[#allocation36_spill] sm:$0xff]  ;;  %v3134_v1 = vmul.f32 %v11724_v45, %v11724_v45 }
 0x312   : > { %v2867_v40 = vadd.f32 %v2866_v59, %v11716_v21  ;;  %v3374_v16 = vadd.f32 %v3373_v48, %v3119_v55  ;;  %v11732_v21 = vld [vmem:[#allocation38_spill] sm:$0xff]  ;;  %v3135_v55 = vmul.f32 %v11725_v53, %v11725_v53 }
 0x314   : > { %v2868_v17 = vadd.f32 %v11717_v23, %v2867_v40  ;;  %v3375_v15 = vadd.f32 %v3374_v16, %v3120_v39  ;;  %v11733_v23 = vld [vmem:[#allocation35_spill] sm:$0xff]  ;;  %v3136_v39 = vmul.f32 %v11726_v3, %v11726_v3 }
 0x316   : > { %v2869_v8 = vadd.f32 %v11718_v29, %v2868_v17  ;;  %v3376_v6 = vadd.f32 %v3375_v15, %v3121_v56  ;;  %v11734_v29 = vld [vmem:[#allocation37_spill] sm:$0xff]  ;;  %v3137_v56 = vmul.f32 %v11727_v31, %v11727_v31 }
 0x318   : > { %v2870_v27 = vadd.f32 %v2869_v8, %v11719_v34  ;;  %v3377_v50 = vadd.f32 %v3376_v6, %v3122_v47  ;;  %v11735_v34 = vld [vmem:[#allocation40_spill] sm:$0xff]  ;;  %v3138_v47 = vmul.f32 %v11728_v33, %v11728_v33 }
 0x31a   : > { %v2871_v44 = vadd.f32 %v2870_v27, %v11720_v13  ;;  %v3378_v11 = vadd.f32 %v3377_v50, %v3123_v25  ;;  %v11736_v13 = vld [vmem:[#allocation42_spill] sm:$0xff]  ;;  %v3139_v25 = vmul.f32 %v11729_v35, %v11729_v35 }
 0x31c   : > { %v2872_v2 = vadd.f32 %v11721_v46, %v2871_v44  ;;  %v3379_v20 = vadd.f32 %v3378_v11, %v3124_v42  ;;  %v11737_v46 = vld [vmem:[#allocation39_spill] sm:$0xff]  ;;  %v3140_v42 = vmul.f32 %v11730_v41, %v11730_v41 }
 0x31e   : > { %v2873_v37 = vadd.f32 %v11722_v51, %v2872_v2  ;;  %v3380_v49 = vadd.f32 %v3379_v20, %v3125_v52  ;;  %v11738_v51 = vld [vmem:[#allocation41_spill] sm:$0xff]  ;;  %v3141_v52 = vmul.f32 %v11731_v19, %v11731_v19 }
 0x320   : > { %v2874_v10 = vadd.f32 %v2873_v37, %v11723_v43  ;;  %v3381_v63 = vadd.f32 %v3380_v49, %v3126_v14  ;;  %v11739_v43 = vld [vmem:[#allocation44_spill] sm:$0xff]  ;;  %v3142_v14 = vmul.f32 %v11732_v21, %v11732_v21 }
 0x322   : > { %v2875_v57 = vadd.f32 %v2874_v10, %v11724_v45  ;;  %v3382_v18 = vadd.f32 %v3381_v63, %v3127_v36  ;;  %v11740_v45 = vld [vmem:[#allocation46_spill] sm:$0xff]  ;;  %v3143_v36 = vmul.f32 %v11733_v23, %v11733_v23 }
 0x324   : > { %v2876_v60 = vadd.f32 %v11725_v53, %v2875_v57  ;;  %v3383_v61 = vadd.f32 %v3382_v18, %v3128_v12  ;;  %v11741_v53 = vld [vmem:[#allocation43_spill] sm:$0xff]  ;;  %v3144_v12 = vmul.f32 %v11734_v29, %v11734_v29 }
 0x326   : > { %v2877_v28 = vadd.f32 %v11726_v3, %v2876_v60  ;;  %v3384_v58 = vadd.f32 %v3383_v61, %v3129_v24  ;;  %v11742_v3 = vld [vmem:[#allocation45_spill] sm:$0xff]  ;;  %v3145_v24 = vmul.f32 %v11735_v34, %v11735_v34 }
 0x328   : > { %v2878_v4 = vadd.f32 %v2877_v28, %v11727_v31  ;;  %v3385_v32 = vadd.f32 %v3384_v58, %v3130_v54  ;;  %v11743_v31 = vld [vmem:[#allocation48_spill] sm:$0xff]  ;;  %v3146_v54 = vmul.f32 %v11736_v13, %v11736_v13 }
 0x32a   : > { %v2879_v9 = vadd.f32 %v2878_v4, %v11728_v33  ;;  %v3386_v62 = vadd.f32 %v3385_v32, %v3131_v26  ;;  %v11744_v33 = vld [vmem:[#allocation50_spill] sm:$0xff]  ;;  %v3147_v26 = vmul.f32 %v11737_v46, %v11737_v46 }
 0x32c   : > { %v2880_v22 = vadd.f32 %v11729_v35, %v2879_v9  ;;  %v3387_v7 = vadd.f32 %v3386_v62, %v3132_v38  ;;  %v11745_v35 = vld [vmem:[#allocation47_spill] sm:$0xff]  ;;  %v3148_v38 = vmul.f32 %v11738_v51, %v11738_v51 }
 0x32e   : > { %v2881_v5 = vadd.f32 %v11730_v41, %v2880_v22  ;;  %v3388_v30 = vadd.f32 %v3387_v7, %v3133_v0  ;;  %v11746_v41 = vld [vmem:[#allocation49_spill] sm:$0xff]  ;;  %v3149_v0 = vmul.f32 %v11739_v43, %v11739_v43 }
 0x330   : > { %v2882_v59 = vadd.f32 %v2881_v5, %v11731_v19  ;;  %v3389_v48 = vadd.f32 %v3388_v30, %v3134_v1  ;;  %v11747_v19 = vld [vmem:[#allocation52_spill] sm:$0xff]  ;;  %v3150_v1 = vmul.f32 %v11740_v45, %v11740_v45 }
 0x332   : > { %v2883_v40 = vadd.f32 %v2882_v59, %v11732_v21  ;;  %v3390_v16 = vadd.f32 %v3389_v48, %v3135_v55  ;;  %v11748_v21 = vld [vmem:[#allocation54_spill] sm:$0xff]  ;;  %v3151_v55 = vmul.f32 %v11741_v53, %v11741_v53 }
 0x334   : > { %v2884_v17 = vadd.f32 %v11733_v23, %v2883_v40  ;;  %v3391_v15 = vadd.f32 %v3390_v16, %v3136_v39  ;;  %v11749_v23 = vld [vmem:[#allocation51_spill] sm:$0xff]  ;;  %v3152_v39 = vmul.f32 %v11742_v3, %v11742_v3 }
 0x336   : > { %v2885_v8 = vadd.f32 %v11734_v29, %v2884_v17  ;;  %v3392_v6 = vadd.f32 %v3391_v15, %v3137_v56  ;;  %v11750_v29 = vld [vmem:[#allocation53_spill] sm:$0xff]  ;;  %v3153_v56 = vmul.f32 %v11743_v31, %v11743_v31 }
 0x338   : > { %v2886_v27 = vadd.f32 %v2885_v8, %v11735_v34  ;;  %v3393_v50 = vadd.f32 %v3392_v6, %v3138_v47  ;;  %v11751_v34 = vld [vmem:[#allocation56_spill] sm:$0xff]  ;;  %v3154_v47 = vmul.f32 %v11744_v33, %v11744_v33 }
 0x33a   : > { %v2887_v44 = vadd.f32 %v2886_v27, %v11736_v13  ;;  %v3394_v11 = vadd.f32 %v3393_v50, %v3139_v25  ;;  %v11752_v13 = vld [vmem:[#allocation58_spill] sm:$0xff]  ;;  %v3155_v25 = vmul.f32 %v11745_v35, %v11745_v35 }
 0x33c   : > { %v2888_v2 = vadd.f32 %v11737_v46, %v2887_v44  ;;  %v3395_v20 = vadd.f32 %v3394_v11, %v3140_v42  ;;  %v11753_v46 = vld [vmem:[#allocation55_spill] sm:$0xff]  ;;  %v3156_v42 = vmul.f32 %v11746_v41, %v11746_v41 }
 0x33e   : > { %v2889_v37 = vadd.f32 %v11738_v51, %v2888_v2  ;;  %v3396_v49 = vadd.f32 %v3395_v20, %v3141_v52  ;;  %v11754_v51 = vld [vmem:[#allocation57_spill] sm:$0xff]  ;;  %v3157_v52 = vmul.f32 %v11747_v19, %v11747_v19 }
 0x340   : > { %v2890_v10 = vadd.f32 %v2889_v37, %v11739_v43  ;;  %v3397_v63 = vadd.f32 %v3396_v49, %v3142_v14  ;;  %v11755_v43 = vld [vmem:[#allocation62_spill] sm:$0xff]  ;;  %v3158_v14 = vmul.f32 %v11748_v21, %v11748_v21 }
 0x342   : > { %v2891_v57 = vadd.f32 %v2890_v10, %v11740_v45  ;;  %v3398_v18 = vadd.f32 %v3397_v63, %v3143_v36  ;;  %v11756_v45 = vld [vmem:[#allocation66_spill] sm:$0xff]  ;;  %v3159_v36 = vmul.f32 %v11749_v23, %v11749_v23 }
 0x344   : > { %v2892_v60 = vadd.f32 %v11741_v53, %v2891_v57  ;;  %v3399_v61 = vadd.f32 %v3398_v18, %v3144_v12  ;;  %v11757_v53 = vld [vmem:[#allocation60_spill] sm:$0xff]  ;;  %v3160_v12 = vmul.f32 %v11750_v29, %v11750_v29 }
 0x346   : > { %v2893_v28 = vadd.f32 %v11742_v3, %v2892_v60  ;;  %v3400_v58 = vadd.f32 %v3399_v61, %v3145_v24  ;;  %v11758_v3 = vld [vmem:[#allocation64_spill] sm:$0xff]  ;;  %v3161_v24 = vmul.f32 %v11751_v34, %v11751_v34 }
 0x348   : > { %v2894_v4 = vadd.f32 %v2893_v28, %v11743_v31  ;;  %v3401_v32 = vadd.f32 %v3400_v58, %v3146_v54  ;;  %v11759_v31 = vld [vmem:[#allocation70_spill] sm:$0xff]  ;;  %v3162_v54 = vmul.f32 %v11752_v13, %v11752_v13 }
 0x34a   : > { %v2895_v9 = vadd.f32 %v2894_v4, %v11744_v33  ;;  %v3402_v62 = vadd.f32 %v3401_v32, %v3147_v26  ;;  %v11760_v33 = vld [vmem:[#allocation74_spill] sm:$0xff]  ;;  %v3163_v26 = vmul.f32 %v11753_v46, %v11753_v46 }
 0x34c   : > { %v2896_v22 = vadd.f32 %v11745_v35, %v2895_v9  ;;  %v3403_v7 = vadd.f32 %v3402_v62, %v3148_v38  ;;  %v11761_v35 = vld [vmem:[#allocation68_spill] sm:$0xff]  ;;  %v3164_v38 = vmul.f32 %v11754_v51, %v11754_v51 }
 0x34e   : > { %v2897_v5 = vadd.f32 %v11746_v41, %v2896_v22  ;;  %v3404_v30 = vadd.f32 %v3403_v7, %v3149_v0  ;;  %v11762_v41 = vld [vmem:[#allocation72_spill] sm:$0xff]  ;;  %v3165_v0 = vmul.f32 %v11755_v43, %v11755_v43 }
 0x350   : > { %v2898_v59 = vadd.f32 %v2897_v5, %v11747_v19  ;;  %v3405_v48 = vadd.f32 %v3404_v30, %v3150_v1  ;;  %v11763_v19 = vld [vmem:[#allocation78_spill] sm:$0xff]  ;;  %v3166_v1 = vmul.f32 %v11756_v45, %v11756_v45 }
 0x352   : > { %v2899_v40 = vadd.f32 %v2898_v59, %v11748_v21  ;;  %v3406_v16 = vadd.f32 %v3405_v48, %v3151_v55  ;;  %v11764_v21 = vld [vmem:[#allocation82_spill] sm:$0xff]  ;;  %v3167_v55 = vmul.f32 %v11757_v53, %v11757_v53 }
 0x354   : > { %v2900_v17 = vadd.f32 %v11749_v23, %v2899_v40  ;;  %v3407_v15 = vadd.f32 %v3406_v16, %v3152_v39  ;;  %v11765_v23 = vld [vmem:[#allocation76_spill] sm:$0xff]  ;;  %v3168_v39 = vmul.f32 %v11758_v3, %v11758_v3 }
 0x356   : > { %v2901_v8 = vadd.f32 %v11750_v29, %v2900_v17  ;;  %v3408_v6 = vadd.f32 %v3407_v15, %v3153_v56  ;;  %v11766_v29 = vld [vmem:[#allocation80_spill] sm:$0xff]  ;;  %v3169_v56 = vmul.f32 %v11759_v31, %v11759_v31 }
 0x358   : > { %v2902_v27 = vadd.f32 %v2901_v8, %v11751_v34  ;;  %v3409_v50 = vadd.f32 %v3408_v6, %v3154_v47  ;;  %v11767_v34 = vld [vmem:[#allocation86_spill] sm:$0xff]  ;;  %v3170_v47 = vmul.f32 %v11760_v33, %v11760_v33 }
 0x35a   : > { %v2903_v44 = vadd.f32 %v2902_v27, %v11752_v13  ;;  %v3410_v11 = vadd.f32 %v3409_v50, %v3155_v25  ;;  %v11768_v13 = vld [vmem:[#allocation90_spill] sm:$0xff]  ;;  %v3171_v25 = vmul.f32 %v11761_v35, %v11761_v35 }
 0x35c   : > { %v2904_v2 = vadd.f32 %v11753_v46, %v2903_v44  ;;  %v3411_v20 = vadd.f32 %v3410_v11, %v3156_v42  ;;  %v11769_v46 = vld [vmem:[#allocation84_spill] sm:$0xff]  ;;  %v3172_v42 = vmul.f32 %v11762_v41, %v11762_v41 }
 0x35e   : > { %v2905_v37 = vadd.f32 %v11754_v51, %v2904_v2  ;;  %v3412_v49 = vadd.f32 %v3411_v20, %v3157_v52  ;;  %v11770_v51 = vld [vmem:[#allocation88_spill] sm:$0xff]  ;;  %v3173_v52 = vmul.f32 %v11763_v19, %v11763_v19 }
 0x360   : > { %v2906_v10 = vadd.f32 %v2905_v37, %v11755_v43  ;;  %v3413_v63 = vadd.f32 %v3412_v49, %v3158_v14  ;;  %v11771_v43 = vld [vmem:[#allocation94_spill] sm:$0xff]  ;;  %v3174_v14 = vmul.f32 %v11764_v21, %v11764_v21 }
 0x362   : > { %v2907_v57 = vadd.f32 %v2906_v10, %v11756_v45  ;;  %v3414_v18 = vadd.f32 %v3413_v63, %v3159_v36  ;;  %v11772_v45 = vld [vmem:[#allocation98_spill] sm:$0xff]  ;;  %v3175_v36 = vmul.f32 %v11765_v23, %v11765_v23 }
 0x364   : > { %v2908_v60 = vadd.f32 %v11757_v53, %v2907_v57  ;;  %v3415_v61 = vadd.f32 %v3414_v18, %v3160_v12  ;;  %v11773_v53 = vld [vmem:[#allocation92_spill] sm:$0xff]  ;;  %v3176_v12 = vmul.f32 %v11766_v29, %v11766_v29 }
 0x366   : > { %v2909_v28 = vadd.f32 %v11758_v3, %v2908_v60  ;;  %v3416_v58 = vadd.f32 %v3415_v61, %v3161_v24  ;;  %v11774_v3 = vld [vmem:[#allocation96_spill] sm:$0xff]  ;;  %v3177_v24 = vmul.f32 %v11767_v34, %v11767_v34 }
 0x368   : > { %v2910_v4 = vadd.f32 %v2909_v28, %v11759_v31  ;;  %v3417_v32 = vadd.f32 %v3416_v58, %v3162_v54  ;;  %v11775_v31 = vld [vmem:[#allocation102_spill] sm:$0xff]  ;;  %v3178_v54 = vmul.f32 %v11768_v13, %v11768_v13 }
 0x36a   : > { %v2911_v9 = vadd.f32 %v2910_v4, %v11760_v33  ;;  %v3418_v62 = vadd.f32 %v3417_v32, %v3163_v26  ;;  %v11776_v33 = vld [vmem:[#allocation106_spill] sm:$0xff]  ;;  %v3179_v26 = vmul.f32 %v11769_v46, %v11769_v46 }
 0x36c   : > { %v2912_v22 = vadd.f32 %v11761_v35, %v2911_v9  ;;  %v3419_v7 = vadd.f32 %v3418_v62, %v3164_v38  ;;  %v11777_v35 = vld [vmem:[#allocation100_spill] sm:$0xff]  ;;  %v3180_v38 = vmul.f32 %v11770_v51, %v11770_v51 }
 0x36e   : > { %v2913_v5 = vadd.f32 %v11762_v41, %v2912_v22  ;;  %v3420_v30 = vadd.f32 %v3419_v7, %v3165_v0  ;;  %v11778_v41 = vld [vmem:[#allocation104_spill] sm:$0xff]  ;;  %v3181_v0 = vmul.f32 %v11771_v43, %v11771_v43 }
 0x370   : > { %v2914_v59 = vadd.f32 %v2913_v5, %v11763_v19  ;;  %v3421_v48 = vadd.f32 %v3420_v30, %v3166_v1  ;;  %v11779_v19 = vld [vmem:[#allocation110_spill] sm:$0xff]  ;;  %v3182_v1 = vmul.f32 %v11772_v45, %v11772_v45 }
 0x372   : > { %v2915_v40 = vadd.f32 %v2914_v59, %v11764_v21  ;;  %v3422_v16 = vadd.f32 %v3421_v48, %v3167_v55  ;;  %v11780_v21 = vld [vmem:[#allocation114_spill] sm:$0xff]  ;;  %v3183_v55 = vmul.f32 %v11773_v53, %v11773_v53 }
 0x374   : > { %v2916_v17 = vadd.f32 %v11765_v23, %v2915_v40  ;;  %v3423_v15 = vadd.f32 %v3422_v16, %v3168_v39  ;;  %v11781_v23 = vld [vmem:[#allocation108_spill] sm:$0xff]  ;;  %v3184_v39 = vmul.f32 %v11774_v3, %v11774_v3 }
 0x376   : > { %v2917_v8 = vadd.f32 %v11766_v29, %v2916_v17  ;;  %v3424_v6 = vadd.f32 %v3423_v15, %v3169_v56  ;;  %v11782_v29 = vld [vmem:[#allocation112_spill] sm:$0xff]  ;;  %v3185_v56 = vmul.f32 %v11775_v31, %v11775_v31 }
 0x378   : > { %v2918_v27 = vadd.f32 %v2917_v8, %v11767_v34  ;;  %v3425_v50 = vadd.f32 %v3424_v6, %v3170_v47  ;;  %v11783_v34 = vld [vmem:[#allocation118_spill] sm:$0xff]  ;;  %v3186_v47 = vmul.f32 %v11776_v33, %v11776_v33 }
 0x37a   : > { %v2919_v44 = vadd.f32 %v2918_v27, %v11768_v13  ;;  %v3426_v11 = vadd.f32 %v3425_v50, %v3171_v25  ;;  %v11784_v13 = vld [vmem:[#allocation122_spill] sm:$0xff]  ;;  %v3187_v25 = vmul.f32 %v11777_v35, %v11777_v35 }
 0x37c   : > { %v2920_v2 = vadd.f32 %v11769_v46, %v2919_v44  ;;  %v3427_v20 = vadd.f32 %v3426_v11, %v3172_v42  ;;  %v11785_v46 = vld [vmem:[#allocation116_spill] sm:$0xff]  ;;  %v3188_v42 = vmul.f32 %v11778_v41, %v11778_v41 }
 0x37e   : > { %v2921_v37 = vadd.f32 %v11770_v51, %v2920_v2  ;;  %v3428_v49 = vadd.f32 %v3427_v20, %v3173_v52  ;;  %v11786_v51 = vld [vmem:[#allocation120_spill] sm:$0xff]  ;;  %v3189_v52 = vmul.f32 %v11779_v19, %v11779_v19 }
 0x380   : > { %v2922_v10 = vadd.f32 %v2921_v37, %v11771_v43  ;;  %v3429_v63 = vadd.f32 %v3428_v49, %v3174_v14  ;;  %v11787_v43 = vld [vmem:[#allocation126_spill] sm:$0xff]  ;;  %v3190_v14 = vmul.f32 %v11780_v21, %v11780_v21 }
 0x382   : > { %v2923_v57 = vadd.f32 %v2922_v10, %v11772_v45  ;;  %v3430_v18 = vadd.f32 %v3429_v63, %v3175_v36  ;;  %v11788_v45 = vld [vmem:[#allocation130_spill] sm:$0xff]  ;;  %v3191_v36 = vmul.f32 %v11781_v23, %v11781_v23 }
 0x384   : > { %v2924_v60 = vadd.f32 %v11773_v53, %v2923_v57  ;;  %v3431_v61 = vadd.f32 %v3430_v18, %v3176_v12  ;;  %v11789_v53 = vld [vmem:[#allocation124_spill] sm:$0xff]  ;;  %v3192_v12 = vmul.f32 %v11782_v29, %v11782_v29 }
 0x386   : > { %v2925_v28 = vadd.f32 %v11774_v3, %v2924_v60  ;;  %v3432_v58 = vadd.f32 %v3431_v61, %v3177_v24  ;;  %v11790_v3 = vld [vmem:[#allocation128_spill] sm:$0xff]  ;;  %v3193_v24 = vmul.f32 %v11783_v34, %v11783_v34 }
 0x388   : > { %v2926_v4 = vadd.f32 %v2925_v28, %v11775_v31  ;;  %v3433_v32 = vadd.f32 %v3432_v58, %v3178_v54  ;;  %v11791_v31 = vld [vmem:[#allocation134_spill] sm:$0xff]  ;;  %v3194_v54 = vmul.f32 %v11784_v13, %v11784_v13 }
 0x38a   : > { %v2927_v9 = vadd.f32 %v2926_v4, %v11776_v33  ;;  %v3434_v62 = vadd.f32 %v3433_v32, %v3179_v26  ;;  %v11792_v33 = vld [vmem:[#allocation138_spill] sm:$0xff]  ;;  %v3195_v26 = vmul.f32 %v11785_v46, %v11785_v46 }
 0x38c   : > { %v2928_v22 = vadd.f32 %v11777_v35, %v2927_v9  ;;  %v3435_v7 = vadd.f32 %v3434_v62, %v3180_v38  ;;  %v11793_v35 = vld [vmem:[#allocation132_spill] sm:$0xff]  ;;  %v3196_v38 = vmul.f32 %v11786_v51, %v11786_v51 }
 0x38e   : > { %v2929_v5 = vadd.f32 %v11778_v41, %v2928_v22  ;;  %v3436_v30 = vadd.f32 %v3435_v7, %v3181_v0  ;;  %v11794_v41 = vld [vmem:[#allocation136_spill] sm:$0xff]  ;;  %v3197_v0 = vmul.f32 %v11787_v43, %v11787_v43 }
 0x390   : > { %v2930_v59 = vadd.f32 %v2929_v5, %v11779_v19  ;;  %v3437_v48 = vadd.f32 %v3436_v30, %v3182_v1  ;;  %v11795_v19 = vld [vmem:[#allocation142_spill] sm:$0xff]  ;;  %v3198_v1 = vmul.f32 %v11788_v45, %v11788_v45 }
 0x392   : > { %v2931_v40 = vadd.f32 %v2930_v59, %v11780_v21  ;;  %v3438_v16 = vadd.f32 %v3437_v48, %v3183_v55  ;;  %v11796_v21 = vld [vmem:[#allocation146_spill] sm:$0xff]  ;;  %v3199_v55 = vmul.f32 %v11789_v53, %v11789_v53 }
 0x394   : > { %v2932_v17 = vadd.f32 %v11781_v23, %v2931_v40  ;;  %v3439_v15 = vadd.f32 %v3438_v16, %v3184_v39  ;;  %v11797_v23 = vld [vmem:[#allocation140_spill] sm:$0xff]  ;;  %v3200_v39 = vmul.f32 %v11790_v3, %v11790_v3 }
 0x396   : > { %v2933_v8 = vadd.f32 %v11782_v29, %v2932_v17  ;;  %v3440_v6 = vadd.f32 %v3439_v15, %v3185_v56  ;;  %v11798_v29 = vld [vmem:[#allocation144_spill] sm:$0xff]  ;;  %v3201_v56 = vmul.f32 %v11791_v31, %v11791_v31 }
 0x398   : > { %v2934_v27 = vadd.f32 %v2933_v8, %v11783_v34  ;;  %v3441_v50 = vadd.f32 %v3440_v6, %v3186_v47  ;;  %v11799_v34 = vld [vmem:[#allocation150_spill] sm:$0xff]  ;;  %v3202_v47 = vmul.f32 %v11792_v33, %v11792_v33 }
 0x39a   : > { %v2935_v44 = vadd.f32 %v2934_v27, %v11784_v13  ;;  %v3442_v11 = vadd.f32 %v3441_v50, %v3187_v25  ;;  %v11800_v13 = vld [vmem:[#allocation154_spill] sm:$0xff]  ;;  %v3203_v25 = vmul.f32 %v11793_v35, %v11793_v35 }
 0x39c   : > { %v2936_v2 = vadd.f32 %v11785_v46, %v2935_v44  ;;  %v3443_v20 = vadd.f32 %v3442_v11, %v3188_v42  ;;  %v11801_v46 = vld [vmem:[#allocation148_spill] sm:$0xff]  ;;  %v3204_v42 = vmul.f32 %v11794_v41, %v11794_v41 }
 0x39e   : > { %v2937_v37 = vadd.f32 %v11786_v51, %v2936_v2  ;;  %v3444_v49 = vadd.f32 %v3443_v20, %v3189_v52  ;;  %v11802_v51 = vld [vmem:[#allocation152_spill] sm:$0xff]  ;;  %v3205_v52 = vmul.f32 %v11795_v19, %v11795_v19 }
 0x3a0   : > { %v2938_v10 = vadd.f32 %v2937_v37, %v11787_v43  ;;  %v3445_v63 = vadd.f32 %v3444_v49, %v3190_v14  ;;  %v11803_v43 = vld [vmem:[#allocation158_spill] sm:$0xff]  ;;  %v3206_v14 = vmul.f32 %v11796_v21, %v11796_v21 }
 0x3a2   : > { %v2939_v57 = vadd.f32 %v2938_v10, %v11788_v45  ;;  %v3446_v18 = vadd.f32 %v3445_v63, %v3191_v36  ;;  %v11804_v45 = vld [vmem:[#allocation162_spill] sm:$0xff]  ;;  %v3207_v36 = vmul.f32 %v11797_v23, %v11797_v23 }
 0x3a4   : > { %v2940_v60 = vadd.f32 %v11789_v53, %v2939_v57  ;;  %v3447_v61 = vadd.f32 %v3446_v18, %v3192_v12  ;;  %v11805_v53 = vld [vmem:[#allocation156_spill] sm:$0xff]  ;;  %v3208_v12 = vmul.f32 %v11798_v29, %v11798_v29 }
 0x3a6   : > { %v2941_v28 = vadd.f32 %v11790_v3, %v2940_v60  ;;  %v3448_v58 = vadd.f32 %v3447_v61, %v3193_v24  ;;  %v11806_v3 = vld [vmem:[#allocation160_spill] sm:$0xff]  ;;  %v3209_v24 = vmul.f32 %v11799_v34, %v11799_v34 }
 0x3a8   : > { %v2942_v4 = vadd.f32 %v2941_v28, %v11791_v31  ;;  %v3449_v32 = vadd.f32 %v3448_v58, %v3194_v54  ;;  %v11807_v31 = vld [vmem:[#allocation166_spill] sm:$0xff]  ;;  %v3210_v54 = vmul.f32 %v11800_v13, %v11800_v13 }
 0x3aa   : > { %v2943_v9 = vadd.f32 %v2942_v4, %v11792_v33  ;;  %v3450_v62 = vadd.f32 %v3449_v32, %v3195_v26  ;;  %v11808_v33 = vld [vmem:[#allocation170_spill] sm:$0xff]  ;;  %v3211_v26 = vmul.f32 %v11801_v46, %v11801_v46 }
 0x3ac   : > { %v2944_v22 = vadd.f32 %v11793_v35, %v2943_v9  ;;  %v3451_v7 = vadd.f32 %v3450_v62, %v3196_v38  ;;  %v11809_v35 = vld [vmem:[#allocation164_spill] sm:$0xff]  ;;  %v3212_v38 = vmul.f32 %v11802_v51, %v11802_v51 }
 0x3ae   : > { %v2945_v5 = vadd.f32 %v11794_v41, %v2944_v22  ;;  %v3452_v30 = vadd.f32 %v3451_v7, %v3197_v0  ;;  %v11810_v41 = vld [vmem:[#allocation168_spill] sm:$0xff]  ;;  %v3213_v0 = vmul.f32 %v11803_v43, %v11803_v43 }
 0x3b0   : > { %v2946_v59 = vadd.f32 %v2945_v5, %v11795_v19  ;;  %v3453_v48 = vadd.f32 %v3452_v30, %v3198_v1  ;;  %v11811_v19 = vld [vmem:[#allocation174_spill] sm:$0xff]  ;;  %v3214_v1 = vmul.f32 %v11804_v45, %v11804_v45 }
 0x3b2   : > { %v2947_v40 = vadd.f32 %v2946_v59, %v11796_v21  ;;  %v3454_v16 = vadd.f32 %v3453_v48, %v3199_v55  ;;  %v11812_v21 = vld [vmem:[#allocation178_spill] sm:$0xff]  ;;  %v3215_v55 = vmul.f32 %v11805_v53, %v11805_v53 }
 0x3b4   : > { %v2948_v17 = vadd.f32 %v11797_v23, %v2947_v40  ;;  %v3455_v15 = vadd.f32 %v3454_v16, %v3200_v39  ;;  %v11813_v23 = vld [vmem:[#allocation172_spill] sm:$0xff]  ;;  %v3216_v39 = vmul.f32 %v11806_v3, %v11806_v3 }
 0x3b6   : > { %v2949_v8 = vadd.f32 %v11798_v29, %v2948_v17  ;;  %v3456_v6 = vadd.f32 %v3455_v15, %v3201_v56  ;;  %v11814_v29 = vld [vmem:[#allocation176_spill] sm:$0xff]  ;;  %v3217_v56 = vmul.f32 %v11807_v31, %v11807_v31 }
 0x3b8   : > { %v2950_v27 = vadd.f32 %v2949_v8, %v11799_v34  ;;  %v3457_v50 = vadd.f32 %v3456_v6, %v3202_v47  ;;  %v11815_v34 = vld [vmem:[#allocation182_spill] sm:$0xff]  ;;  %v3218_v47 = vmul.f32 %v11808_v33, %v11808_v33 }
 0x3ba   : > { %v2951_v44 = vadd.f32 %v2950_v27, %v11800_v13  ;;  %v3458_v11 = vadd.f32 %v3457_v50, %v3203_v25  ;;  %v11816_v13 = vld [vmem:[#allocation186_spill] sm:$0xff]  ;;  %v3219_v25 = vmul.f32 %v11809_v35, %v11809_v35 }
 0x3bc   : > { %v2952_v2 = vadd.f32 %v11801_v46, %v2951_v44  ;;  %v3459_v20 = vadd.f32 %v3458_v11, %v3204_v42  ;;  %v11817_v46 = vld [vmem:[#allocation180_spill] sm:$0xff]  ;;  %v3220_v42 = vmul.f32 %v11810_v41, %v11810_v41 }
 0x3be   : > { %v2953_v37 = vadd.f32 %v11802_v51, %v2952_v2  ;;  %v3460_v49 = vadd.f32 %v3459_v20, %v3205_v52  ;;  %v11818_v51 = vld [vmem:[#allocation184_spill] sm:$0xff]  ;;  %v3221_v52 = vmul.f32 %v11811_v19, %v11811_v19 }
 0x3c0   : > { %v2954_v10 = vadd.f32 %v2953_v37, %v11803_v43  ;;  %v3461_v63 = vadd.f32 %v3460_v49, %v3206_v14  ;;  %v11819_v43 = vld [vmem:[#allocation190_spill] sm:$0xff]  ;;  %v3222_v14 = vmul.f32 %v11812_v21, %v11812_v21 }
 0x3c2   : > { %v2955_v57 = vadd.f32 %v2954_v10, %v11804_v45  ;;  %v3462_v18 = vadd.f32 %v3461_v63, %v3207_v36  ;;  %v11820_v45 = vld [vmem:[#allocation194_spill] sm:$0xff]  ;;  %v3223_v36 = vmul.f32 %v11813_v23, %v11813_v23 }
 0x3c4   : > { %v2956_v60 = vadd.f32 %v11805_v53, %v2955_v57  ;;  %v3463_v61 = vadd.f32 %v3462_v18, %v3208_v12  ;;  %v11821_v53 = vld [vmem:[#allocation188_spill] sm:$0xff]  ;;  %v3224_v12 = vmul.f32 %v11814_v29, %v11814_v29 }
 0x3c6   : > { %v2957_v28 = vadd.f32 %v11806_v3, %v2956_v60  ;;  %v3464_v58 = vadd.f32 %v3463_v61, %v3209_v24  ;;  %v11822_v3 = vld [vmem:[#allocation192_spill] sm:$0xff]  ;;  %v3225_v24 = vmul.f32 %v11815_v34, %v11815_v34 }
 0x3c8   : > { %v2958_v4 = vadd.f32 %v2957_v28, %v11807_v31  ;;  %v3465_v32 = vadd.f32 %v3464_v58, %v3210_v54  ;;  %v11823_v31 = vld [vmem:[#allocation198_spill] sm:$0xff]  ;;  %v3226_v54 = vmul.f32 %v11816_v13, %v11816_v13 }
 0x3ca   : > { %v2959_v9 = vadd.f32 %v2958_v4, %v11808_v33  ;;  %v3466_v62 = vadd.f32 %v3465_v32, %v3211_v26  ;;  %v11824_v33 = vld [vmem:[#allocation202_spill] sm:$0xff]  ;;  %v3227_v26 = vmul.f32 %v11817_v46, %v11817_v46 }
 0x3cc   : > { %v2960_v22 = vadd.f32 %v11809_v35, %v2959_v9  ;;  %v3467_v7 = vadd.f32 %v3466_v62, %v3212_v38  ;;  %v11825_v35 = vld [vmem:[#allocation196_spill] sm:$0xff]  ;;  %v3228_v38 = vmul.f32 %v11818_v51, %v11818_v51 }
 0x3ce   : > { %v2961_v5 = vadd.f32 %v11810_v41, %v2960_v22  ;;  %v3468_v30 = vadd.f32 %v3467_v7, %v3213_v0  ;;  %v11826_v41 = vld [vmem:[#allocation200_spill] sm:$0xff]  ;;  %v3229_v0 = vmul.f32 %v11819_v43, %v11819_v43 }
 0x3d0   : > { %v2962_v59 = vadd.f32 %v2961_v5, %v11811_v19  ;;  %v3469_v48 = vadd.f32 %v3468_v30, %v3214_v1  ;;  %v11827_v19 = vld [vmem:[#allocation206_spill] sm:$0xff]  ;;  %v3230_v1 = vmul.f32 %v11820_v45, %v11820_v45  ;;  %v3231_v30 = vmul.f32 %v11821_v53, %v11821_v53 }
 0x3d2   : > { %v2963_v40 = vadd.f32 %v2962_v59, %v11812_v21  ;;  %v3470_v16 = vadd.f32 %v3469_v48, %v3215_v55  ;;  %v11828_v21 = vld [vmem:[#allocation210_spill] sm:$0xff]  ;;  %v2726_v55 = vld [vmem:[#allocation3] sm:$0xff]  ;;  %v3232_v48 = vmul.f32 %v11822_v3, %v11822_v3 }
 0x3d4   : > { %v2964_v17 = vadd.f32 %v11813_v23, %v2963_v40  ;;  %v3471_v15 = vadd.f32 %v3470_v16, %v3216_v39  ;;  %v11829_v23 = vld [vmem:[#allocation204_spill] sm:$0xff] }
 0x3d6   : > { %v2965_v8 = vadd.f32 %v11814_v29, %v2964_v17  ;;  %v3472_v6 = vadd.f32 %v3471_v15, %v3217_v56  ;;  %v3233_v56 = vmul.f32 %v11823_v31, %v11823_v31 }
 0x3d8   : > { %v2966_v27 = vadd.f32 %v2965_v8, %v11815_v34  ;;  %v3473_v50 = vadd.f32 %v3472_v6, %v3218_v47  ;;  %v11830_v8 = vld [vmem:[#allocation208_spill] sm:$0xff]  ;;  %v3235_v47 = vmul.f32 %v11825_v35, %v11825_v35 }
 0x3da   : > { %v2967_v44 = vadd.f32 %v2966_v27, %v11816_v13  ;;  %v3474_v11 = vadd.f32 %v3473_v50, %v3219_v25  ;;  %v3234_v13 = vmul.f32 %v11824_v33, %v11824_v33  ;;  %v3237_v25 = vmul.f32 %v11827_v19, %v11827_v19 }
 0x3dc   : > { %v2968_v2 = vadd.f32 %v11817_v46, %v2967_v44  ;;  %v3475_v20 = vadd.f32 %v3474_v11, %v3220_v42  ;;  %v3236_v46 = vmul.f32 %v11826_v41, %v11826_v41  ;;  %v3239_v42 = vmul.f32 %v11829_v23, %v11829_v23  ;;  %v2984_v11 = vld [vmem:[#allocation4] sm:$0xff] }
 0x3de   : > { %v2969_v37 = vadd.f32 %v11818_v51, %v2968_v2  ;;  %v3476_v49 = vadd.f32 %v3475_v20, %v3221_v52  ;;  %v3238_v51 = vmul.f32 %v11828_v21, %v11828_v21 }
 0x3e0   : > { %v2970_v10 = vadd.f32 %v2969_v37, %v11819_v43  ;;  %v3477_v63 = vadd.f32 %v3476_v49, %v3222_v14  ;;  %v3240_v43 = vmul.f32 %v11830_v8, %v11830_v8 }
 0x3e2   : > { %v2971_v57 = vadd.f32 %v2970_v10, %v11820_v45  ;;  %v3478_v18 = vadd.f32 %v3477_v63, %v3223_v36 }
 0x3e4   : > { %v2972_v60 = vadd.f32 %v11821_v53, %v2971_v57  ;;  %v3479_v61 = vadd.f32 %v3478_v18, %v3224_v12 }
 0x3e6   : > { %v2973_v28 = vadd.f32 %v11822_v3, %v2972_v60  ;;  %v3480_v58 = vadd.f32 %v3479_v61, %v3225_v24 }
 0x3e8   : > { %v2974_v4 = vadd.f32 %v2973_v28, %v11823_v31  ;;  %v3481_v32 = vadd.f32 %v3480_v58, %v3226_v54 }
 0x3ea   : > { %v2975_v9 = vadd.f32 %v2974_v4, %v11824_v33  ;;  %v3482_v62 = vadd.f32 %v3481_v32, %v3227_v26 }
 0x3ec   : > { %v2976_v22 = vadd.f32 %v11825_v35, %v2975_v9  ;;  %v3483_v7 = vadd.f32 %v3482_v62, %v3228_v38 }
 0x3ee   : > { %v2977_v5 = vadd.f32 %v11826_v41, %v2976_v22  ;;  %v3484_v29 = vadd.f32 %v3483_v7, %v3229_v0 }
 0x3f0   : > { %v2978_v59 = vadd.f32 %v2977_v5, %v11827_v19  ;;  %v3485_v34 = vadd.f32 %v3484_v29, %v3230_v1 }
 0x3f2   : > { %v2979_v40 = vadd.f32 %v2978_v59, %v11828_v21  ;;  %v3486_v16 = vadd.f32 %v3485_v34, %v3231_v30 }
 0x3f4   : > { %v2980_v17 = vadd.f32 %v11829_v23, %v2979_v40  ;;  %v3487_v44 = vadd.f32 %v3486_v16, %v3232_v48 }
 0x3f6   : > { %v2981_v39 = vadd.f32 %v11830_v8, %v2980_v17  ;;  %v3488_v15 = vadd.f32 %v3487_v44, %v3233_v56 }
 0x3f8   : > { %v2982_v27 = vadd.f32 %v2981_v39, %v2726_v55  ;;  %v3489_v2 = vadd.f32 %v3488_v15, %v3234_v13 }
 0x3fa   : > { %2983 = vst [vmem:[#allocation3] sm:$0xff] %v2982_v27  ;;  %v3490_v6 = vadd.f32 %v3489_v2, %v3235_v47 }
 0x3fc   : > { %v3491_v37 = vadd.f32 %v3490_v6, %v3236_v46 }
 0x3fe   : > { %v3492_v50 = vadd.f32 %v3491_v37, %v3237_v25 }
 0x400   : > { %v3493_v10 = vadd.f32 %v3492_v50, %v3238_v51 }
 0x402   : > { %v3494_v52 = vadd.f32 %v3493_v10, %v3239_v42 }
 0x404   : > { %v3495_v45 = vadd.f32 %v3494_v52, %v3240_v43 }
 0x406   : > { %v3496_v57 = vadd.f32 %v3495_v45, %v2984_v11 }
 0x408   : > { %3497 = vst [vmem:[#allocation4] sm:$0xff] %v3496_v57 }
 0x409 PF: > { %p6122_p9 = scmp.ne.s32.totalorder %s8045_s16, 1 }
 0x40a   : > { %p3502_p10 = scmp.eq.s32.totalorder (!%p6122_p9), %s8041_s15, 0 }
 0x40b   : > { %3501 = sbr.rel (%p6122_p9) target bundleno = 1317 (0x525), region = 48 }
 0x410   : > { %3507 = sbr.rel (!%p3502_p10) target bundleno = 1084 (0x43c), region = 52  ;;  %v3508_v14 = vld [vmem:[#allocation3] sm:$0xff] (%p3502_p10)  ;;  %v3515_v20 = vld [vmem:[#allocation4] sm:$0xff] (%p3502_p10) }
 0x411   : > { %v3509_v53 = vrot.slane (%p3502_p10), %v3508_v14, 4  ;;  %v3516_v60 = vrot.slane (%p3502_p10), %v3515_v20, 4  ;;  %v3529_v26 = vld [vmem:[%s11012_s2] sm:$0x1] (%p3502_p10) }
 0x412   : > { %v3532_v5 = vld [vmem:[%s11013_s3] sm:$0x1] (%p3502_p10) }
 0x413   : > { %v3510_v36 = vadd.f32 (%p3502_p10), %v3509_v53, %v3508_v14  ;;  %v3517_v49 = vadd.f32 (%p3502_p10), %v3516_v60, %v3515_v20 }
 0x415   : > { %v3511_v3 = vrot.slane %v3510_v36, 2  ;;  %v3518_v28 = vrot.slane %v3517_v49, 2 }
 0x417   : > { %v3512_v12 = vadd.f32 %v3511_v3, %v3510_v36  ;;  %v3519_v63 = vadd.f32 %v3518_v28, %v3517_v49 }
 0x419   : > { %v3513_v31 = vrot.slane %v3512_v12, 1  ;;  %v3520_v4 = vrot.slane %v3519_v63, 1 }
 0x41b   : > { %v3514_v24 = vadd.f32 %v3513_v31, %v3512_v12  ;;  %v3521_v18 = vadd.f32 %v3520_v4, %v3519_v63 }
 0x41d   : > { %v3522_v33 = vmul.f32 0.00012207031, %v3514_v24  ;;  %v3523_v9 = vmul.f32 0.00012207031, %v3521_v18 }
 0x41f   : > { %v3524_v54 = vmul.f32 %v3522_v33, %v3522_v33 }
 0x421   : > { %v3525_v61 = vsub.f32 %v3523_v9, %v3524_v54 }
 0x423   : > { %v3526_v35 = vmax.f32 %v3525_v61, 0.0 }
 0x425   : > { %v3527_v22 = vadd.f32 1e-05, %v3526_v35 }
 0x427   : > { %8013 = vrsqrt.f32 %v3527_v22 }
 0x434   : > { %v8014_v58 = vpop.eup %8013 }
 0x435   : > { %v3530_v41 = vmul.f32 %v8014_v58, %v3529_v26 }
 0x437   : > { %3531 = vst [vmem:[#allocation5] sm:$0x1] %v3530_v41  ;;  %v3533_v38 = vmul.f32 %v3530_v41, %v3522_v33 }
 0x439   : > { %v3534_v32 = vsub.f32 %v3532_v5, %v3533_v38 }
 0x43b   : > { %3535 = vst [vmem:[#allocation6] sm:$0x1] %v3534_v32 }
 0x43c PF: > { %s10089_s23 = scalar_lea.vmem [#allocation2], %s5983_s25 }
 0x43d   : > { %v3537_v0 = vld [vmem:[%s10089_s23] sm:$0xff]  ;;  %v3538_v62 = vld [vmem:[%s10089_s23 + $0x8] sm:$0xff]  ;;  %v3539_v21 = vld [vmem:[%s10089_s23 + $0x10] sm:$0xff] }
 0x43e   : > { %v10083_v19 = vld [vmem:[#allocation5] ss:$0 sm:$0xff]  ;;  %v3540_v7 = vld [vmem:[%s10089_s23 + $0x18] sm:$0xff]  ;;  %v3541_v17 = vld [vmem:[%s10089_s23 + $0x20] sm:$0xff] }
 0x43f   : > { %v3800_v40 = vmul.f32 %v10083_v19, %v3537_v0  ;;  %v3801_v1 = vmul.f32 %v10083_v19, %v3538_v62  ;;  %v3802_v23 = vmul.f32 %v10083_v19, %v3539_v21  ;;  %v3542_v55 = vld [vmem:[%s10089_s23 + $0x28] sm:$0xff]  ;;  %v3803_v30 = vmul.f32 %v10083_v19, %v3540_v7  ;;  %v3543_v39 = vld [vmem:[%s10089_s23 + $0x30] sm:$0xff]  ;;  %v3544_v48 = vld [vmem:[%s10089_s23 + $0x38] sm:$0xff] }
 0x440   : > { %v3804_v29 = vmul.f32 %v10083_v19, %v3541_v17  ;;  %v3805_v8 = vmul.f32 %v10083_v19, %v3542_v55  ;;  %v3806_v16 = vmul.f32 %v10083_v19, %v3543_v39  ;;  %v3807_v15 = vmul.f32 %v10083_v19, %v3544_v48  ;;  %v3545_v46 = vld [vmem:[%s10089_s23 + $0x40] sm:$0xff]  ;;  %v3546_v2 = vld [vmem:[%s10089_s23 + $0x48] sm:$0xff]  ;;  %v3547_v42 = vld [vmem:[%s10089_s23 + $0x50] sm:$0xff] }
 0x441   : > { %v3548_v11 = vld [vmem:[%s10089_s23 + $0x58] sm:$0xff]  ;;  %v3549_v45 = vld [vmem:[%s10089_s23 + $0x60] sm:$0xff]  ;;  %v3808_v20 = vmul.f32 %v10083_v19, %v3545_v46  ;;  %v3809_v53 = vmul.f32 %v10083_v19, %v3546_v2  ;;  %v3550_v60 = vld [vmem:[%s10089_s23 + $0x68] sm:$0xff]  ;;  %v3810_v12 = vmul.f32 %v10083_v19, %v3547_v42 }
 0x442   : > { %v10085_v59 = vld [vmem:[#allocation6] ss:$0 sm:$0xff]  ;;  %v3811_v4 = vmul.f32 %v10083_v19, %v3548_v11  ;;  %v3812_v24 = vmul.f32 %v10083_v19, %v3549_v45  ;;  %v3552_v18 = vld [vmem:[%s10089_s23 + $0x78] sm:$0xff]  ;;  %v3813_v54 = vmul.f32 %v10083_v19, %v3550_v60  ;;  %v3553_v35 = vld [vmem:[%s10089_s23 + $0x80] sm:$0xff] }
 0x443   : > { %v4063_v34 = vadd.f32 %v10085_v59, %v3800_v40  ;;  %v4064_v27 = vadd.f32 %v10085_v59, %v3801_v1  ;;  %v4065_v56 = vadd.f32 %v10085_v59, %v3802_v23  ;;  %v4066_v13 = vadd.f32 %v10085_v59, %v3803_v30  ;;  %v3551_v36 = vld [vmem:[%s10089_s23 + $0x70] sm:$0xff]  ;;  %v3554_v5 = vld [vmem:[%s10089_s23 + $0x88] sm:$0xff]  ;;  %v3556_v40 = vld [vmem:[%s10089_s23 + $0x98] sm:$0xff] }
 0x444   : > { %v4067_v44 = vadd.f32 %v10085_v59, %v3804_v29  ;;  %v4068_v47 = vadd.f32 %v10085_v59, %v3805_v8  ;;  %v4069_v37 = vadd.f32 %v10085_v59, %v3806_v16  ;;  %v4070_v52 = vadd.f32 %v10085_v59, %v3807_v15  ;;  %v3555_v21 = vld [vmem:[%s10089_s23 + $0x90] sm:$0xff]  ;;  %v3557_v55 = vld [vmem:[%s10089_s23 + $0xa0] sm:$0xff]  ;;  %v3558_v48 = vld [vmem:[%s10089_s23 + $0xa8] sm:$0xff] }
 0x445   : > { %v4319_v25 = vmax.f32 %v4063_v34, 0.0  ;;  %v4320_v6 = vmax.f32 %v4064_v27, 0.0  ;;  %v4321_v51 = vmax.f32 %v4065_v56, 0.0  ;;  %v4322_v50 = vmax.f32 %v4066_v13, 0.0  ;;  %v3559_v13 = vld [vmem:[%s10089_s23 + $0xb0] sm:$0xff]  ;;  %v3560_v2 = vld [vmem:[%s10089_s23 + $0xb8] sm:$0xff] }
 0x446   : > { %v4323_v43 = vmax.f32 %v4067_v44, 0.0  ;;  %v4324_v10 = vmax.f32 %v4068_v47, 0.0  ;;  %v4325_v14 = vmax.f32 %v4069_v37, 0.0  ;;  %v4326_v28 = vmax.f32 %v4070_v52, 0.0  ;;  %v3561_v42 = vld [vmem:[%s10089_s23 + $0xc0] sm:$0xff]  ;;  %v3562_v11 = vld [vmem:[%s10089_s23 + $0xc8] sm:$0xff] }
 0x447   : > { %v6648_v57 = vpack.c.bf16 %v4320_v6, %v4319_v25  ;;  %v6653_v49 = vpack.c.bf16 %v4322_v50, %v4321_v51  ;;  %v4071_v63 = vadd.f32 %v10085_v59, %v3808_v20  ;;  %v4072_v31 = vadd.f32 %v10085_v59, %v3809_v53  ;;  %v3563_v53 = vld [vmem:[%s10089_s23 + $0xd0] sm:$0xff]  ;;  %v3564_v60 = vld [vmem:[%s10089_s23 + $0xd8] sm:$0xff] }
 0x448   : > { %v6658_v3 = vpack.c.bf16 %v4324_v10, %v4323_v43  ;;  %v6663_v33 = vpack.c.bf16 %v4326_v28, %v4325_v14  ;;  %v4073_v9 = vadd.f32 %v10085_v59, %v3810_v12  ;;  %v3814_v61 = vmul.f32 %v10083_v19, %v3551_v36  ;;  %v3565_v12 = vld [vmem:[%s10089_s23 + $0xe0] sm:$0xff] }
 0x449   : > { %6649 = vst [vmem:[%s8137_s11] sm:$0xff] %v6648_v57   ;;  %7285 = vst [vmem:[%s8137_s11 + $0x8] sm:$0xff] %v6653_v49   ;;  %v4327_v22 = vmax.f32 %v4071_v63, 0.0  ;;  %v4328_v26 = vmax.f32 %v4072_v31, 0.0  ;;  %v4074_v58 = vadd.f32 %v10085_v59, %v3811_v4  ;;  %v4075_v41 = vadd.f32 %v10085_v59, %v3812_v24 }
 0x44a   : > { %7286 = vst [vmem:[%s8137_s11 + $0x10] sm:$0xff] %v6658_v3   ;;  %7287 = vst [vmem:[%s8137_s11 + $0x18] sm:$0xff] %v6663_v33   ;;  %v4329_v38 = vmax.f32 %v4073_v9, 0.0  ;;  %v4076_v32 = vadd.f32 %v10085_v59, %v3813_v54  ;;  %v3815_v0 = vmul.f32 %v10083_v19, %v3552_v18  ;;  %v4077_v62 = vadd.f32 %v10085_v59, %v3814_v61  ;;  %v3566_v18 = vld [vmem:[%s10089_s23 + $0xe8] sm:$0xff] }
 0x44b   : > { %v6668_v1 = vpack.c.bf16 %v4328_v26, %v4327_v22  ;;  %v4330_v7 = vmax.f32 %v4074_v58, 0.0  ;;  %v4331_v23 = vmax.f32 %v4075_v41, 0.0  ;;  %v3816_v17 = vmul.f32 %v10083_v19, %v3553_v35  ;;  %v3567_v35 = vld [vmem:[%s10089_s23 + $0xf0] sm:$0xff] }
 0x44c   : > { %v4332_v30 = vmax.f32 %v4076_v32, 0.0  ;;  %v4078_v29 = vadd.f32 %v10085_v59, %v3815_v0  ;;  %v4333_v8 = vmax.f32 %v4077_v62, 0.0  ;;  %v3817_v39 = vmul.f32 %v10083_v19, %v3554_v5  ;;  %v3568_v5 = vld [vmem:[%s10089_s23 + $0xf8] sm:$0xff] }
 0x44d   : > { %7288 = vst [vmem:[%s8137_s11 + $0x20] sm:$0xff] %v6668_v1   ;;  %v6673_v34 = vpack.c.bf16 %v4330_v7, %v4329_v38  ;;  %v4079_v27 = vadd.f32 %v10085_v59, %v3816_v17  ;;  %v3818_v56 = vmul.f32 %v10083_v19, %v3555_v21  ;;  %v3819_v16 = vmul.f32 %v10083_v19, %v3556_v40  ;;  %v3569_v21 = vld [vmem:[%s10089_s23 + $0x100] sm:$0xff]  ;;  %v3570_v17 = vld [vmem:[%s10089_s23 + $0x108] sm:$0xff] }
 0x44e   : > { %v6678_v44 = vpack.c.bf16 %v4332_v30, %v4331_v23  ;;  %v4334_v47 = vmax.f32 %v4078_v29, 0.0  ;;  %v4080_v15 = vadd.f32 %v10085_v59, %v3817_v39  ;;  %v3820_v46 = vmul.f32 %v10083_v19, %v3557_v55  ;;  %v3571_v39 = vld [vmem:[%s10089_s23 + $0x110] sm:$0xff] }
 0x44f   : > { %7289 = vst [vmem:[%s8137_s11 + $0x28] sm:$0xff] %v6673_v34   ;;  %v4335_v25 = vmax.f32 %v4079_v27, 0.0  ;;  %v4081_v6 = vadd.f32 %v10085_v59, %v3818_v56  ;;  %v4082_v51 = vadd.f32 %v10085_v59, %v3819_v16  ;;  %v3821_v37 = vmul.f32 %v10083_v19, %v3558_v48  ;;  %v3572_v48 = vld [vmem:[%s10089_s23 + $0x118] sm:$0xff] }
 0x450   : > { %7290 = vst [vmem:[%s8137_s11 + $0x30] sm:$0xff] %v6678_v44   ;;  %v6683_v50 = vpack.c.bf16 %v4334_v47, %v4333_v8  ;;  %v4336_v43 = vmax.f32 %v4080_v15, 0.0  ;;  %v4083_v10 = vadd.f32 %v10085_v59, %v3820_v46  ;;  %v3822_v52 = vmul.f32 %v10083_v19, %v3559_v13  ;;  %v3573_v13 = vld [vmem:[%s10089_s23 + $0x120] sm:$0xff] }
 0x451   : > { %v4337_v45 = vmax.f32 %v4081_v6, 0.0  ;;  %v4338_v57 = vmax.f32 %v4082_v51, 0.0  ;;  %v4084_v14 = vadd.f32 %v10085_v59, %v3821_v37  ;;  %v3823_v20 = vmul.f32 %v10083_v19, %v3560_v2  ;;  %v3574_v2 = vld [vmem:[%s10089_s23 + $0x128] sm:$0xff] }
 0x452   : > { %7291 = vst [vmem:[%s8137_s11 + $0x38] sm:$0xff] %v6683_v50   ;;  %v6688_v36 = vpack.c.bf16 %v4336_v43, %v4335_v25  ;;  %v4339_v49 = vmax.f32 %v4083_v10, 0.0  ;;  %v4085_v3 = vadd.f32 %v10085_v59, %v3822_v52  ;;  %v3824_v28 = vmul.f32 %v10083_v19, %v3561_v42  ;;  %v3575_v42 = vld [vmem:[%s10089_s23 + $0x130] sm:$0xff] }
 0x453   : > { %v6693_v63 = vpack.c.bf16 %v4338_v57, %v4337_v45  ;;  %v4340_v31 = vmax.f32 %v4084_v14, 0.0  ;;  %v4086_v4 = vadd.f32 %v10085_v59, %v3823_v20  ;;  %v3825_v24 = vmul.f32 %v10083_v19, %v3562_v11  ;;  %v3576_v11 = vld [vmem:[%s10089_s23 + $0x138] sm:$0xff] }
 0x454   : > { %7292 = vst [vmem:[%s8137_s11 + $0x40] sm:$0xff] %v6688_v36   ;;  %v4341_v33 = vmax.f32 %v4085_v3, 0.0  ;;  %v4087_v9 = vadd.f32 %v10085_v59, %v3824_v28  ;;  %v3826_v54 = vmul.f32 %v10083_v19, %v3563_v53  ;;  %v3827_v61 = vmul.f32 %v10083_v19, %v3564_v60  ;;  %v3577_v53 = vld [vmem:[%s10089_s23 + $0x140] sm:$0xff]  ;;  %v3578_v28 = vld [vmem:[%s10089_s23 + $0x148] sm:$0xff] }
 0x455   : > { %7293 = vst [vmem:[%s8137_s11 + $0x48] sm:$0xff] %v6693_v63   ;;  %v6698_v22 = vpack.c.bf16 %v4340_v31, %v4339_v49  ;;  %v4342_v26 = vmax.f32 %v4086_v4, 0.0  ;;  %v4088_v58 = vadd.f32 %v10085_v59, %v3825_v24  ;;  %v3828_v41 = vmul.f32 %v10083_v19, %v3565_v12  ;;  %v3579_v24 = vld [vmem:[%s10089_s23 + $0x150] sm:$0xff] }
 0x456   : > { %v4343_v38 = vmax.f32 %v4087_v9, 0.0  ;;  %v4089_v32 = vadd.f32 %v10085_v59, %v3826_v54  ;;  %v4090_v0 = vadd.f32 %v10085_v59, %v3827_v61  ;;  %v3829_v62 = vmul.f32 %v10083_v19, %v3566_v18  ;;  %v3580_v18 = vld [vmem:[%s10089_s23 + $0x158] sm:$0xff] }
 0x457   : > { %7294 = vst [vmem:[%s8137_s11 + $0x50] sm:$0xff] %v6698_v22   ;;  %v6703_v40 = vpack.c.bf16 %v4342_v26, %v4341_v33  ;;  %v4344_v1 = vmax.f32 %v4088_v58, 0.0  ;;  %v4091_v7 = vadd.f32 %v10085_v59, %v3828_v41  ;;  %v3830_v23 = vmul.f32 %v10083_v19, %v3567_v35  ;;  %v3581_v35 = vld [vmem:[%s10089_s23 + $0x160] sm:$0xff] }
 0x458   : > { %v4345_v55 = vmax.f32 %v4089_v32, 0.0  ;;  %v4346_v30 = vmax.f32 %v4090_v0, 0.0  ;;  %v4092_v29 = vadd.f32 %v10085_v59, %v3829_v62  ;;  %v3831_v8 = vmul.f32 %v10083_v19, %v3568_v5  ;;  %v3582_v5 = vld [vmem:[%s10089_s23 + $0x168] sm:$0xff] }
 0x459   : > { %7295 = vst [vmem:[%s8137_s11 + $0x58] sm:$0xff] %v6703_v40   ;;  %v6708_v34 = vpack.c.bf16 %v4344_v1, %v4343_v38  ;;  %v4347_v27 = vmax.f32 %v4091_v7, 0.0  ;;  %v4093_v56 = vadd.f32 %v10085_v59, %v3830_v23  ;;  %v3832_v16 = vmul.f32 %v10083_v19, %v3569_v21  ;;  %v3583_v21 = vld [vmem:[%s10089_s23 + $0x170] sm:$0xff] }
 0x45a   : > { %v6713_v44 = vpack.c.bf16 %v4346_v30, %v4345_v55  ;;  %v4348_v47 = vmax.f32 %v4092_v29, 0.0  ;;  %v4094_v15 = vadd.f32 %v10085_v59, %v3831_v8  ;;  %v3833_v46 = vmul.f32 %v10083_v19, %v3570_v17  ;;  %v3584_v17 = vld [vmem:[%s10089_s23 + $0x178] sm:$0xff] }
 0x45b   : > { %7296 = vst [vmem:[%s8137_s11 + $0x60] sm:$0xff] %v6708_v34   ;;  %v4349_v25 = vmax.f32 %v4093_v56, 0.0  ;;  %v4095_v6 = vadd.f32 %v10085_v59, %v3832_v16  ;;  %v3834_v51 = vmul.f32 %v10083_v19, %v3571_v39  ;;  %v3835_v37 = vmul.f32 %v10083_v19, %v3572_v48  ;;  %v3585_v39 = vld [vmem:[%s10089_s23 + $0x180] sm:$0xff]  ;;  %v3586_v16 = vld [vmem:[%s10089_s23 + $0x188] sm:$0xff] }
 0x45c   : > { %7297 = vst [vmem:[%s8137_s11 + $0x68] sm:$0xff] %v6713_v44   ;;  %v6718_v50 = vpack.c.bf16 %v4348_v47, %v4347_v27  ;;  %v4350_v43 = vmax.f32 %v4094_v15, 0.0  ;;  %v4096_v10 = vadd.f32 %v10085_v59, %v3833_v46  ;;  %v3836_v52 = vmul.f32 %v10083_v19, %v3573_v13  ;;  %v3587_v46 = vld [vmem:[%s10089_s23 + $0x190] sm:$0xff] }
 0x45d   : > { %v4351_v45 = vmax.f32 %v4095_v6, 0.0  ;;  %v4097_v57 = vadd.f32 %v10085_v59, %v3834_v51  ;;  %v4098_v14 = vadd.f32 %v10085_v59, %v3835_v37  ;;  %v3837_v20 = vmul.f32 %v10083_v19, %v3574_v2  ;;  %v3588_v2 = vld [vmem:[%s10089_s23 + $0x198] sm:$0xff] }
 0x45e   : > { %7298 = vst [vmem:[%s8137_s11 + $0x70] sm:$0xff] %v6718_v50   ;;  %v6723_v60 = vpack.c.bf16 %v4350_v43, %v4349_v25  ;;  %v4352_v36 = vmax.f32 %v4096_v10, 0.0  ;;  %v4099_v49 = vadd.f32 %v10085_v59, %v3836_v52  ;;  %v3838_v3 = vmul.f32 %v10083_v19, %v3575_v42  ;;  %v3589_v42 = vld [vmem:[%s10089_s23 + $0x1a0] sm:$0xff] }
 0x45f   : > { %v4353_v12 = vmax.f32 %v4097_v57, 0.0  ;;  %v4354_v63 = vmax.f32 %v4098_v14, 0.0  ;;  %v4100_v31 = vadd.f32 %v10085_v59, %v3837_v20  ;;  %v3839_v4 = vmul.f32 %v10083_v19, %v3576_v11  ;;  %v3590_v11 = vld [vmem:[%s10089_s23 + $0x1a8] sm:$0xff] }
 0x460   : > { %7299 = vst [vmem:[%s8137_s11 + $0x78] sm:$0xff] %v6723_v60   ;;  %v6728_v33 = vpack.c.bf16 %v4352_v36, %v4351_v45  ;;  %v4355_v9 = vmax.f32 %v4099_v49, 0.0  ;;  %v4101_v54 = vadd.f32 %v10085_v59, %v3838_v3  ;;  %v3840_v61 = vmul.f32 %v10083_v19, %v3577_v53  ;;  %v3591_v53 = vld [vmem:[%s10089_s23 + $0x1b0] sm:$0xff] }
 0x461   : > { %v6733_v22 = vpack.c.bf16 %v4354_v63, %v4353_v12  ;;  %v4356_v26 = vmax.f32 %v4100_v31, 0.0  ;;  %v4102_v58 = vadd.f32 %v10085_v59, %v3839_v4  ;;  %v3841_v41 = vmul.f32 %v10083_v19, %v3578_v28  ;;  %v3592_v28 = vld [vmem:[%s10089_s23 + $0x1b8] sm:$0xff] }
 0x462   : > { %7300 = vst [vmem:[%s8137_s11 + $0x80] sm:$0xff] %v6728_v33   ;;  %v4357_v38 = vmax.f32 %v4101_v54, 0.0  ;;  %v4103_v32 = vadd.f32 %v10085_v59, %v3840_v61  ;;  %v3842_v0 = vmul.f32 %v10083_v19, %v3579_v24  ;;  %v3843_v62 = vmul.f32 %v10083_v19, %v3580_v18  ;;  %v3593_v24 = vld [vmem:[%s10089_s23 + $0x1c0] sm:$0xff]  ;;  %v3594_v61 = vld [vmem:[%s10089_s23 + $0x1c8] sm:$0xff] }
 0x463   : > { %7301 = vst [vmem:[%s8137_s11 + $0x88] sm:$0xff] %v6733_v22   ;;  %v6738_v40 = vpack.c.bf16 %v4356_v26, %v4355_v9  ;;  %v4358_v1 = vmax.f32 %v4102_v58, 0.0  ;;  %v4104_v7 = vadd.f32 %v10085_v59, %v3841_v41  ;;  %v3844_v23 = vmul.f32 %v10083_v19, %v3581_v35  ;;  %v3595_v41 = vld [vmem:[%s10089_s23 + $0x1d0] sm:$0xff] }
 0x464   : > { %v4359_v55 = vmax.f32 %v4103_v32, 0.0  ;;  %v4105_v30 = vadd.f32 %v10085_v59, %v3842_v0  ;;  %v4106_v29 = vadd.f32 %v10085_v59, %v3843_v62  ;;  %v3845_v8 = vmul.f32 %v10083_v19, %v3582_v5  ;;  %v3596_v5 = vld [vmem:[%s10089_s23 + $0x1d8] sm:$0xff] }
 0x465   : > { %7302 = vst [vmem:[%s8137_s11 + $0x90] sm:$0xff] %v6738_v40   ;;  %v6743_v48 = vpack.c.bf16 %v4358_v1, %v4357_v38  ;;  %v4360_v34 = vmax.f32 %v4104_v7, 0.0  ;;  %v4107_v27 = vadd.f32 %v10085_v59, %v3844_v23  ;;  %v3846_v56 = vmul.f32 %v10083_v19, %v3583_v21  ;;  %v3597_v21 = vld [vmem:[%s10089_s23 + $0x1e0] sm:$0xff] }
 0x466   : > { %v4361_v13 = vmax.f32 %v4105_v30, 0.0  ;;  %v4362_v44 = vmax.f32 %v4106_v29, 0.0  ;;  %v4108_v47 = vadd.f32 %v10085_v59, %v3845_v8  ;;  %v3847_v15 = vmul.f32 %v10083_v19, %v3584_v17  ;;  %v3598_v17 = vld [vmem:[%s10089_s23 + $0x1e8] sm:$0xff] }
 0x467   : > { %7303 = vst [vmem:[%s8137_s11 + $0x98] sm:$0xff] %v6743_v48   ;;  %v6748_v25 = vpack.c.bf16 %v4360_v34, %v4359_v55  ;;  %v4363_v6 = vmax.f32 %v4107_v27, 0.0  ;;  %v4109_v51 = vadd.f32 %v10085_v59, %v3846_v56  ;;  %v3848_v37 = vmul.f32 %v10083_v19, %v3585_v39  ;;  %v3599_v39 = vld [vmem:[%s10089_s23 + $0x1f0] sm:$0xff] }
 0x468   : > { %v6753_v50 = vpack.c.bf16 %v4362_v44, %v4361_v13  ;;  %v4364_v43 = vmax.f32 %v4108_v47, 0.0  ;;  %v4110_v10 = vadd.f32 %v10085_v59, %v3847_v15  ;;  %v3849_v52 = vmul.f32 %v10083_v19, %v3586_v16  ;;  %v3600_v16 = vld [vmem:[%s10089_s23 + $0x1f8] sm:$0xff] }
 0x469   : > { %7304 = vst [vmem:[%s8137_s11 + $0xa0] sm:$0xff] %v6748_v25   ;;  %v4365_v45 = vmax.f32 %v4109_v51, 0.0  ;;  %v4111_v57 = vadd.f32 %v10085_v59, %v3848_v37  ;;  %v3850_v14 = vmul.f32 %v10083_v19, %v3587_v46  ;;  %v3851_v20 = vmul.f32 %v10083_v19, %v3588_v2  ;;  %v3601_v46 = vld [vmem:[%s10089_s23 + $0x200] sm:$0xff]  ;;  %v3602_v37 = vld [vmem:[%s10089_s23 + $0x208] sm:$0xff] }
 0x46a   : > { %7305 = vst [vmem:[%s8137_s11 + $0xa8] sm:$0xff] %v6753_v50   ;;  %v6758_v60 = vpack.c.bf16 %v4364_v43, %v4363_v6  ;;  %v4366_v36 = vmax.f32 %v4110_v10, 0.0  ;;  %v4112_v49 = vadd.f32 %v10085_v59, %v3849_v52  ;;  %v3852_v3 = vmul.f32 %v10083_v19, %v3589_v42  ;;  %v3603_v52 = vld [vmem:[%s10089_s23 + $0x210] sm:$0xff] }
 0x46b   : > { %v4367_v12 = vmax.f32 %v4111_v57, 0.0  ;;  %v4113_v63 = vadd.f32 %v10085_v59, %v3850_v14  ;;  %v4114_v31 = vadd.f32 %v10085_v59, %v3851_v20  ;;  %v3853_v4 = vmul.f32 %v10083_v19, %v3590_v11  ;;  %v3604_v11 = vld [vmem:[%s10089_s23 + $0x218] sm:$0xff] }
 0x46c   : > { %7306 = vst [vmem:[%s8137_s11 + $0xb0] sm:$0xff] %v6758_v60   ;;  %v6763_v18 = vpack.c.bf16 %v4366_v36, %v4365_v45  ;;  %v4368_v33 = vmax.f32 %v4112_v49, 0.0  ;;  %v4115_v9 = vadd.f32 %v10085_v59, %v3852_v3  ;;  %v3854_v54 = vmul.f32 %v10083_v19, %v3591_v53  ;;  %v3605_v53 = vld [vmem:[%s10089_s23 + $0x220] sm:$0xff] }
 0x46d   : > { %v4369_v35 = vmax.f32 %v4113_v63, 0.0  ;;  %v4370_v22 = vmax.f32 %v4114_v31, 0.0  ;;  %v4116_v26 = vadd.f32 %v10085_v59, %v3853_v4  ;;  %v3855_v58 = vmul.f32 %v10083_v19, %v3592_v28  ;;  %v3606_v28 = vld [vmem:[%s10089_s23 + $0x228] sm:$0xff] }
 0x46e   : > { %7307 = vst [vmem:[%s8137_s11 + $0xb8] sm:$0xff] %v6763_v18   ;;  %v6768_v38 = vpack.c.bf16 %v4368_v33, %v4367_v12  ;;  %v4371_v32 = vmax.f32 %v4115_v9, 0.0  ;;  %v4117_v0 = vadd.f32 %v10085_v59, %v3854_v54  ;;  %v3856_v62 = vmul.f32 %v10083_v19, %v3593_v24  ;;  %v3607_v24 = vld [vmem:[%s10089_s23 + $0x230] sm:$0xff] }
 0x46f   : > { %v6773_v40 = vpack.c.bf16 %v4370_v22, %v4369_v35  ;;  %v4372_v1 = vmax.f32 %v4116_v26, 0.0  ;;  %v4118_v7 = vadd.f32 %v10085_v59, %v3855_v58  ;;  %v3857_v23 = vmul.f32 %v10083_v19, %v3594_v61  ;;  %v3608_v61 = vld [vmem:[%s10089_s23 + $0x238] sm:$0xff] }
 0x470   : > { %7308 = vst [vmem:[%s8137_s11 + $0xc0] sm:$0xff] %v6768_v38   ;;  %v4373_v55 = vmax.f32 %v4117_v0, 0.0  ;;  %v4119_v30 = vadd.f32 %v10085_v59, %v3856_v62  ;;  %v3858_v29 = vmul.f32 %v10083_v19, %v3595_v41  ;;  %v3859_v8 = vmul.f32 %v10083_v19, %v3596_v5  ;;  %v3609_v41 = vld [vmem:[%s10089_s23 + $0x240] sm:$0xff]  ;;  %v3610_v62 = vld [vmem:[%s10089_s23 + $0x248] sm:$0xff] }
 0x471   : > { %7309 = vst [vmem:[%s8137_s11 + $0xc8] sm:$0xff] %v6773_v40   ;;  %v6778_v48 = vpack.c.bf16 %v4372_v1, %v4371_v32  ;;  %v4374_v34 = vmax.f32 %v4118_v7, 0.0  ;;  %v4120_v27 = vadd.f32 %v10085_v59, %v3857_v23  ;;  %v3860_v56 = vmul.f32 %v10083_v19, %v3597_v21  ;;  %v3611_v23 = vld [vmem:[%s10089_s23 + $0x250] sm:$0xff] }
 0x472   : > { %v4375_v13 = vmax.f32 %v4119_v30, 0.0  ;;  %v4121_v44 = vadd.f32 %v10085_v59, %v3858_v29  ;;  %v4122_v47 = vadd.f32 %v10085_v59, %v3859_v8  ;;  %v3861_v15 = vmul.f32 %v10083_v19, %v3598_v17  ;;  %v3612_v17 = vld [vmem:[%s10089_s23 + $0x258] sm:$0xff] }
 0x473   : > { %7310 = vst [vmem:[%s8137_s11 + $0xd0] sm:$0xff] %v6778_v48   ;;  %v6783_v2 = vpack.c.bf16 %v4374_v34, %v4373_v55  ;;  %v4376_v25 = vmax.f32 %v4120_v27, 0.0  ;;  %v4123_v6 = vadd.f32 %v10085_v59, %v3860_v56  ;;  %v3862_v51 = vmul.f32 %v10083_v19, %v3599_v39  ;;  %v3613_v39 = vld [vmem:[%s10089_s23 + $0x260] sm:$0xff] }
 0x474   : > { %v4377_v42 = vmax.f32 %v4121_v44, 0.0  ;;  %v4378_v50 = vmax.f32 %v4122_v47, 0.0  ;;  %v4124_v43 = vadd.f32 %v10085_v59, %v3861_v15  ;;  %v3863_v10 = vmul.f32 %v10083_v19, %v3600_v16  ;;  %v3614_v16 = vld [vmem:[%s10089_s23 + $0x268] sm:$0xff] }
 0x475   : > { %7311 = vst [vmem:[%s8137_s11 + $0xd8] sm:$0xff] %v6783_v2   ;;  %v6788_v45 = vpack.c.bf16 %v4376_v25, %v4375_v13  ;;  %v4379_v57 = vmax.f32 %v4123_v6, 0.0  ;;  %v4125_v14 = vadd.f32 %v10085_v59, %v3862_v51  ;;  %v3864_v20 = vmul.f32 %v10083_v19, %v3601_v46  ;;  %v3615_v46 = vld [vmem:[%s10089_s23 + $0x270] sm:$0xff] }
 0x476   : > { %v6793_v60 = vpack.c.bf16 %v4378_v50, %v4377_v42  ;;  %v4380_v36 = vmax.f32 %v4124_v43, 0.0  ;;  %v4126_v49 = vadd.f32 %v10085_v59, %v3863_v10  ;;  %v3865_v3 = vmul.f32 %v10083_v19, %v3602_v37  ;;  %v3616_v37 = vld [vmem:[%s10089_s23 + $0x278] sm:$0xff] }
 0x477   : > { %7312 = vst [vmem:[%s8137_s11 + $0xe0] sm:$0xff] %v6788_v45   ;;  %v4381_v12 = vmax.f32 %v4125_v14, 0.0  ;;  %v4127_v63 = vadd.f32 %v10085_v59, %v3864_v20  ;;  %v3866_v31 = vmul.f32 %v10083_v19, %v3603_v52  ;;  %v3867_v4 = vmul.f32 %v10083_v19, %v3604_v11  ;;  %v3617_v52 = vld [vmem:[%s10089_s23 + $0x280] sm:$0xff]  ;;  %v3618_v20 = vld [vmem:[%s10089_s23 + $0x288] sm:$0xff] }
 0x478   : > { %7313 = vst [vmem:[%s8137_s11 + $0xe8] sm:$0xff] %v6793_v60   ;;  %v6798_v18 = vpack.c.bf16 %v4380_v36, %v4379_v57  ;;  %v4382_v33 = vmax.f32 %v4126_v49, 0.0  ;;  %v4128_v9 = vadd.f32 %v10085_v59, %v3865_v3  ;;  %v3868_v54 = vmul.f32 %v10083_v19, %v3605_v53  ;;  %v3619_v3 = vld [vmem:[%s10089_s23 + $0x290] sm:$0xff] }
 0x479   : > { %v4383_v35 = vmax.f32 %v4127_v63, 0.0  ;;  %v4129_v22 = vadd.f32 %v10085_v59, %v3866_v31  ;;  %v4130_v26 = vadd.f32 %v10085_v59, %v3867_v4  ;;  %v3869_v58 = vmul.f32 %v10083_v19, %v3606_v28  ;;  %v3620_v28 = vld [vmem:[%s10089_s23 + $0x298] sm:$0xff] }
 0x47a   : > { %7314 = vst [vmem:[%s8137_s11 + $0xf0] sm:$0xff] %v6798_v18   ;;  %v6803_v5 = vpack.c.bf16 %v4382_v33, %v4381_v12  ;;  %v4384_v38 = vmax.f32 %v4128_v9, 0.0  ;;  %v4131_v32 = vadd.f32 %v10085_v59, %v3868_v54  ;;  %v3870_v0 = vmul.f32 %v10083_v19, %v3607_v24  ;;  %v3621_v24 = vld [vmem:[%s10089_s23 + $0x2a0] sm:$0xff] }
 0x47b   : > { %v4385_v21 = vmax.f32 %v4129_v22, 0.0  ;;  %v4386_v40 = vmax.f32 %v4130_v26, 0.0  ;;  %v4132_v1 = vadd.f32 %v10085_v59, %v3869_v58  ;;  %v3871_v7 = vmul.f32 %v10083_v19, %v3608_v61  ;;  %v3622_v61 = vld [vmem:[%s10089_s23 + $0x2a8] sm:$0xff] }
 0x47c   : > { %7315 = vst [vmem:[%s8137_s11 + $0xf8] sm:$0xff] %v6803_v5   ;;  %v6808_v55 = vpack.c.bf16 %v4384_v38, %v4383_v35  ;;  %v4387_v30 = vmax.f32 %v4131_v32, 0.0  ;;  %v4133_v29 = vadd.f32 %v10085_v59, %v3870_v0  ;;  %v3872_v8 = vmul.f32 %v10083_v19, %v3609_v41  ;;  %v3623_v41 = vld [vmem:[%s10089_s23 + $0x2b0] sm:$0xff] }
 0x47d   : > { %v6813_v48 = vpack.c.bf16 %v4386_v40, %v4385_v21  ;;  %v4388_v34 = vmax.f32 %v4132_v1, 0.0  ;;  %v4134_v27 = vadd.f32 %v10085_v59, %v3871_v7  ;;  %v3873_v56 = vmul.f32 %v10083_v19, %v3610_v62  ;;  %v3624_v62 = vld [vmem:[%s10089_s23 + $0x2b8] sm:$0xff] }
 0x47e   : > { %7316 = vst [vmem:[%s8137_s11 + $0x100] sm:$0xff] %v6808_v55   ;;  %v4389_v13 = vmax.f32 %v4133_v29, 0.0  ;;  %v4135_v44 = vadd.f32 %v10085_v59, %v3872_v8  ;;  %v3874_v47 = vmul.f32 %v10083_v19, %v3611_v23  ;;  %v3875_v15 = vmul.f32 %v10083_v19, %v3612_v17  ;;  %v3625_v23 = vld [vmem:[%s10089_s23 + $0x2c0] sm:$0xff]  ;;  %v3626_v8 = vld [vmem:[%s10089_s23 + $0x2c8] sm:$0xff] }
 0x47f   : > { %7317 = vst [vmem:[%s8137_s11 + $0x108] sm:$0xff] %v6813_v48   ;;  %v6818_v2 = vpack.c.bf16 %v4388_v34, %v4387_v30  ;;  %v4390_v25 = vmax.f32 %v4134_v27, 0.0  ;;  %v4136_v6 = vadd.f32 %v10085_v59, %v3873_v56  ;;  %v3876_v51 = vmul.f32 %v10083_v19, %v3613_v39  ;;  %v3627_v56 = vld [vmem:[%s10089_s23 + $0x2d0] sm:$0xff] }
 0x480   : > { %v4391_v42 = vmax.f32 %v4135_v44, 0.0  ;;  %v4137_v50 = vadd.f32 %v10085_v59, %v3874_v47  ;;  %v4138_v43 = vadd.f32 %v10085_v59, %v3875_v15  ;;  %v3877_v10 = vmul.f32 %v10083_v19, %v3614_v16  ;;  %v3628_v16 = vld [vmem:[%s10089_s23 + $0x2d8] sm:$0xff] }
 0x481   : > { %7318 = vst [vmem:[%s8137_s11 + $0x110] sm:$0xff] %v6818_v2   ;;  %v6823_v11 = vpack.c.bf16 %v4390_v25, %v4389_v13  ;;  %v4392_v45 = vmax.f32 %v4136_v6, 0.0  ;;  %v4139_v57 = vadd.f32 %v10085_v59, %v3876_v51  ;;  %v3878_v14 = vmul.f32 %v10083_v19, %v3615_v46  ;;  %v3629_v46 = vld [vmem:[%s10089_s23 + $0x2e0] sm:$0xff] }
 0x482   : > { %v4393_v53 = vmax.f32 %v4137_v50, 0.0  ;;  %v4394_v60 = vmax.f32 %v4138_v43, 0.0  ;;  %v4140_v36 = vadd.f32 %v10085_v59, %v3877_v10  ;;  %v3879_v49 = vmul.f32 %v10083_v19, %v3616_v37  ;;  %v3630_v37 = vld [vmem:[%s10089_s23 + $0x2e8] sm:$0xff] }
 0x483   : > { %7319 = vst [vmem:[%s8137_s11 + $0x118] sm:$0xff] %v6823_v11   ;;  %v6828_v12 = vpack.c.bf16 %v4392_v45, %v4391_v42  ;;  %v4395_v63 = vmax.f32 %v4139_v57, 0.0  ;;  %v4141_v31 = vadd.f32 %v10085_v59, %v3878_v14  ;;  %v3880_v4 = vmul.f32 %v10083_v19, %v3617_v52  ;;  %v3631_v52 = vld [vmem:[%s10089_s23 + $0x2f0] sm:$0xff] }
 0x484   : > { %v6833_v18 = vpack.c.bf16 %v4394_v60, %v4393_v53  ;;  %v4396_v33 = vmax.f32 %v4140_v36, 0.0  ;;  %v4142_v9 = vadd.f32 %v10085_v59, %v3879_v49  ;;  %v3881_v54 = vmul.f32 %v10083_v19, %v3618_v20  ;;  %v3632_v20 = vld [vmem:[%s10089_s23 + $0x2f8] sm:$0xff] }
 0x485   : > { %7320 = vst [vmem:[%s8137_s11 + $0x120] sm:$0xff] %v6828_v12   ;;  %v4397_v35 = vmax.f32 %v4141_v31, 0.0  ;;  %v4143_v22 = vadd.f32 %v10085_v59, %v3880_v4  ;;  %v3882_v26 = vmul.f32 %v10083_v19, %v3619_v3  ;;  %v3883_v58 = vmul.f32 %v10083_v19, %v3620_v28  ;;  %v3633_v3 = vld [vmem:[%s10089_s23 + $0x300] sm:$0xff]  ;;  %v3634_v4 = vld [vmem:[%s10089_s23 + $0x308] sm:$0xff] }
 0x486   : > { %7321 = vst [vmem:[%s8137_s11 + $0x128] sm:$0xff] %v6833_v18   ;;  %v6838_v5 = vpack.c.bf16 %v4396_v33, %v4395_v63  ;;  %v4398_v38 = vmax.f32 %v4142_v9, 0.0  ;;  %v4144_v32 = vadd.f32 %v10085_v59, %v3881_v54  ;;  %v3884_v0 = vmul.f32 %v10083_v19, %v3621_v24  ;;  %v3635_v54 = vld [vmem:[%s10089_s23 + $0x310] sm:$0xff] }
 0x487   : > { %v4399_v21 = vmax.f32 %v4143_v22, 0.0  ;;  %v4145_v40 = vadd.f32 %v10085_v59, %v3882_v26  ;;  %v4146_v1 = vadd.f32 %v10085_v59, %v3883_v58  ;;  %v3885_v7 = vmul.f32 %v10083_v19, %v3622_v61  ;;  %v3636_v61 = vld [vmem:[%s10089_s23 + $0x318] sm:$0xff] }
 0x488   : > { %7322 = vst [vmem:[%s8137_s11 + $0x130] sm:$0xff] %v6838_v5   ;;  %v6843_v17 = vpack.c.bf16 %v4398_v38, %v4397_v35  ;;  %v4400_v55 = vmax.f32 %v4144_v32, 0.0  ;;  %v4147_v30 = vadd.f32 %v10085_v59, %v3884_v0  ;;  %v3886_v29 = vmul.f32 %v10083_v19, %v3623_v41  ;;  %v3637_v41 = vld [vmem:[%s10089_s23 + $0x320] sm:$0xff] }
 0x489   : > { %v4401_v39 = vmax.f32 %v4145_v40, 0.0  ;;  %v4402_v48 = vmax.f32 %v4146_v1, 0.0  ;;  %v4148_v34 = vadd.f32 %v10085_v59, %v3885_v7  ;;  %v3887_v27 = vmul.f32 %v10083_v19, %v3624_v62  ;;  %v3638_v62 = vld [vmem:[%s10089_s23 + $0x328] sm:$0xff] }
 0x48a   : > { %7323 = vst [vmem:[%s8137_s11 + $0x138] sm:$0xff] %v6843_v17   ;;  %v6848_v13 = vpack.c.bf16 %v4400_v55, %v4399_v21  ;;  %v4403_v44 = vmax.f32 %v4147_v30, 0.0  ;;  %v4149_v47 = vadd.f32 %v10085_v59, %v3886_v29  ;;  %v3888_v15 = vmul.f32 %v10083_v19, %v3625_v23  ;;  %v3639_v23 = vld [vmem:[%s10089_s23 + $0x330] sm:$0xff] }
 0x48b   : > { %v6853_v2 = vpack.c.bf16 %v4402_v48, %v4401_v39  ;;  %v4404_v25 = vmax.f32 %v4148_v34, 0.0  ;;  %v4150_v6 = vadd.f32 %v10085_v59, %v3887_v27  ;;  %v3889_v51 = vmul.f32 %v10083_v19, %v3626_v8  ;;  %v3640_v8 = vld [vmem:[%s10089_s23 + $0x338] sm:$0xff] }
 0x48c   : > { %7324 = vst [vmem:[%s8137_s11 + $0x140] sm:$0xff] %v6848_v13   ;;  %v4405_v42 = vmax.f32 %v4149_v47, 0.0  ;;  %v4151_v50 = vadd.f32 %v10085_v59, %v3888_v15  ;;  %v3890_v43 = vmul.f32 %v10083_v19, %v3627_v56  ;;  %v3891_v10 = vmul.f32 %v10083_v19, %v3628_v16  ;;  %v3641_v56 = vld [vmem:[%s10089_s23 + $0x340] sm:$0xff]  ;;  %v3642_v15 = vld [vmem:[%s10089_s23 + $0x348] sm:$0xff] }
 0x48d   : > { %7325 = vst [vmem:[%s8137_s11 + $0x148] sm:$0xff] %v6853_v2   ;;  %v6858_v11 = vpack.c.bf16 %v4404_v25, %v4403_v44  ;;  %v4406_v45 = vmax.f32 %v4150_v6, 0.0  ;;  %v4152_v57 = vadd.f32 %v10085_v59, %v3889_v51  ;;  %v3892_v14 = vmul.f32 %v10083_v19, %v3629_v46  ;;  %v3643_v51 = vld [vmem:[%s10089_s23 + $0x350] sm:$0xff] }
 0x48e   : > { %v4407_v53 = vmax.f32 %v4151_v50, 0.0  ;;  %v4153_v60 = vadd.f32 %v10085_v59, %v3890_v43  ;;  %v4154_v36 = vadd.f32 %v10085_v59, %v3891_v10  ;;  %v3893_v49 = vmul.f32 %v10083_v19, %v3630_v37  ;;  %v3644_v37 = vld [vmem:[%s10089_s23 + $0x358] sm:$0xff]  ;;  %v10453_v43 = vld [vmem:[#allocation6] ss:$0 sm:$0xff] }
 0x48f   : > { %7326 = vst [vmem:[%s8137_s11 + $0x150] sm:$0xff] %v6858_v11   ;;  %v6863_v28 = vpack.c.bf16 %v4406_v45, %v4405_v42  ;;  %v4408_v12 = vmax.f32 %v4152_v57, 0.0  ;;  %v4155_v63 = vadd.f32 %v10085_v59, %v3892_v14  ;;  %v3894_v31 = vmul.f32 %v10083_v19, %v3631_v52  ;;  %v10456_v52 = vld [vmem:[#allocation5] ss:$0 sm:$0xff] }
 0x490   : > { %v4409_v24 = vmax.f32 %v4153_v60, 0.0  ;;  %v4410_v18 = vmax.f32 %v4154_v36, 0.0  ;;  %v4156_v33 = vadd.f32 %v10085_v59, %v3893_v49  ;;  %v3895_v9 = vmul.f32 %v10083_v19, %v3632_v20  ;;  %v3646_v20 = vld [vmem:[%s10089_s23 + $0x368] sm:$0xff] }
 0x491   : > { %7327 = vst [vmem:[%s8137_s11 + $0x158] sm:$0xff] %v6863_v28   ;;  %v6868_v35 = vpack.c.bf16 %v4408_v12, %v4407_v53  ;;  %v4411_v22 = vmax.f32 %v4155_v63, 0.0  ;;  %v4157_v26 = vadd.f32 %v10085_v59, %v3894_v31  ;;  %v3896_v58 = vmul.f32 %v10083_v19, %v3633_v3  ;;  %v3647_v3 = vld [vmem:[%s10089_s23 + $0x370] sm:$0xff] }
 0x492   : > { %v6873_v5 = vpack.c.bf16 %v4410_v18, %v4409_v24  ;;  %v4412_v38 = vmax.f32 %v4156_v33, 0.0  ;;  %v4158_v32 = vadd.f32 %v10085_v59, %v3895_v9  ;;  %v3897_v0 = vmul.f32 %v10083_v19, %v3634_v4  ;;  %v3648_v4 = vld [vmem:[%s10089_s23 + $0x378] sm:$0xff] }
 0x493   : > { %7328 = vst [vmem:[%s8137_s11 + $0x160] sm:$0xff] %v6868_v35   ;;  %v4413_v21 = vmax.f32 %v4157_v26, 0.0  ;;  %v4159_v40 = vadd.f32 %v10085_v59, %v3896_v58  ;;  %v3898_v1 = vmul.f32 %v10083_v19, %v3635_v54  ;;  %v3899_v7 = vmul.f32 %v10083_v19, %v3636_v61  ;;  %v3649_v54 = vld [vmem:[%s10089_s23 + $0x380] sm:$0xff]  ;;  %v3650_v58 = vld [vmem:[%s10089_s23 + $0x388] sm:$0xff] }
 0x494   : > { %7329 = vst [vmem:[%s8137_s11 + $0x168] sm:$0xff] %v6873_v5   ;;  %v6878_v17 = vpack.c.bf16 %v4412_v38, %v4411_v22  ;;  %v4414_v55 = vmax.f32 %v4158_v32, 0.0  ;;  %v4160_v30 = vadd.f32 %v10085_v59, %v3897_v0  ;;  %v3900_v29 = vmul.f32 %v10083_v19, %v3637_v41  ;;  %v3651_v0 = vld [vmem:[%s10089_s23 + $0x390] sm:$0xff] }
 0x495   : > { %v4415_v39 = vmax.f32 %v4159_v40, 0.0  ;;  %v4161_v48 = vadd.f32 %v10085_v59, %v3898_v1  ;;  %v4162_v34 = vadd.f32 %v10085_v59, %v3899_v7  ;;  %v3901_v27 = vmul.f32 %v10083_v19, %v3638_v62  ;;  %v3652_v62 = vld [vmem:[%s10089_s23 + $0x398] sm:$0xff] }
 0x496   : > { %7330 = vst [vmem:[%s8137_s11 + $0x170] sm:$0xff] %v6878_v17   ;;  %v6883_v16 = vpack.c.bf16 %v4414_v55, %v4413_v21  ;;  %v4416_v13 = vmax.f32 %v4160_v30, 0.0  ;;  %v4163_v44 = vadd.f32 %v10085_v59, %v3900_v29  ;;  %v3902_v47 = vmul.f32 %v10083_v19, %v3639_v23  ;;  %v3653_v23 = vld [vmem:[%s10089_s23 + $0x3a0] sm:$0xff] }
 0x497   : > { %v4417_v46 = vmax.f32 %v4161_v48, 0.0  ;;  %v4418_v2 = vmax.f32 %v4162_v34, 0.0  ;;  %v4164_v25 = vadd.f32 %v10085_v59, %v3901_v27  ;;  %v3903_v6 = vmul.f32 %v10083_v19, %v3640_v8  ;;  %v3645_v59 = vld [vmem:[%s10089_s23 + $0x360] sm:$0xff]  ;;  %v3654_v8 = vld [vmem:[%s10089_s23 + $0x3a8] sm:$0xff] }
 0x498   : > { %7331 = vst [vmem:[%s8137_s11 + $0x178] sm:$0xff] %v6883_v16   ;;  %v6888_v42 = vpack.c.bf16 %v4416_v13, %v4415_v39  ;;  %v4419_v50 = vmax.f32 %v4163_v44, 0.0  ;;  %v4165_v10 = vadd.f32 %v10453_v43, %v3902_v47  ;;  %v3904_v11 = vmul.f32 %v10456_v52, %v3641_v56  ;;  %v3655_v56 = vld [vmem:[%s10089_s23 + $0x3b0] sm:$0xff] }
 0x499   : > { %v6893_v45 = vpack.c.bf16 %v4418_v2, %v4417_v46  ;;  %v4420_v19 = vmax.f32 %v4164_v25, 0.0  ;;  %v4166_v57 = vadd.f32 %v10453_v43, %v3903_v6  ;;  %v3905_v14 = vmul.f32 %v10456_v52, %v3642_v15  ;;  %v3656_v15 = vld [vmem:[%s10089_s23 + $0x3b8] sm:$0xff] }
 0x49a   : > { %7332 = vst [vmem:[%s8137_s11 + $0x180] sm:$0xff] %v6888_v42   ;;  %v4421_v53 = vmax.f32 %v4165_v10, 0.0  ;;  %v4167_v60 = vadd.f32 %v10453_v43, %v3904_v11  ;;  %v3906_v36 = vmul.f32 %v10456_v52, %v3643_v51  ;;  %v3907_v49 = vmul.f32 %v10456_v52, %v3644_v37  ;;  %v3657_v51 = vld [vmem:[%s10089_s23 + $0x3c0] sm:$0xff]  ;;  %v3658_v11 = vld [vmem:[%s10089_s23 + $0x3c8] sm:$0xff] }
 0x49b   : > { %7333 = vst [vmem:[%s8137_s11 + $0x188] sm:$0xff] %v6893_v45   ;;  %v6898_v28 = vpack.c.bf16 %v4420_v19, %v4419_v50  ;;  %v4422_v12 = vmax.f32 %v4166_v57, 0.0  ;;  %v4168_v63 = vadd.f32 %v10453_v43, %v3905_v14  ;;  %v3908_v31 = vmul.f32 %v10456_v52, %v3645_v59  ;;  %v3659_v14 = vld [vmem:[%s10089_s23 + $0x3d0] sm:$0xff] }
 0x49c   : > { %v4423_v24 = vmax.f32 %v4167_v60, 0.0  ;;  %v4169_v18 = vadd.f32 %v10453_v43, %v3906_v36  ;;  %v4170_v33 = vadd.f32 %v10453_v43, %v3907_v49  ;;  %v3909_v9 = vmul.f32 %v10456_v52, %v3646_v20  ;;  %v3660_v20 = vld [vmem:[%s10089_s23 + $0x3d8] sm:$0xff] }
 0x49d   : > { %7334 = vst [vmem:[%s8137_s11 + $0x190] sm:$0xff] %v6898_v28   ;;  %v6903_v61 = vpack.c.bf16 %v4422_v12, %v4421_v53  ;;  %v4424_v35 = vmax.f32 %v4168_v63, 0.0  ;;  %v4171_v22 = vadd.f32 %v10453_v43, %v3908_v31  ;;  %v3910_v26 = vmul.f32 %v10456_v52, %v3647_v3  ;;  %v3661_v3 = vld [vmem:[%s10089_s23 + $0x3e0] sm:$0xff] }
 0x49e   : > { %v4425_v41 = vmax.f32 %v4169_v18, 0.0  ;;  %v4426_v5 = vmax.f32 %v4170_v33, 0.0  ;;  %v4172_v38 = vadd.f32 %v10453_v43, %v3909_v9  ;;  %v3911_v32 = vmul.f32 %v10456_v52, %v3648_v4  ;;  %v3662_v4 = vld [vmem:[%s10089_s23 + $0x3e8] sm:$0xff] }
 0x49f   : > { %7335 = vst [vmem:[%s8137_s11 + $0x198] sm:$0xff] %v6903_v61   ;;  %v6908_v21 = vpack.c.bf16 %v4424_v35, %v4423_v24  ;;  %v4427_v40 = vmax.f32 %v4171_v22, 0.0  ;;  %v4173_v1 = vadd.f32 %v10453_v43, %v3910_v26  ;;  %v3912_v7 = vmul.f32 %v10456_v52, %v3649_v54  ;;  %v3663_v54 = vld [vmem:[%s10089_s23 + $0x3f0] sm:$0xff] }
 0x4a0   : > { %v6913_v17 = vpack.c.bf16 %v4426_v5, %v4425_v41  ;;  %v4428_v55 = vmax.f32 %v4172_v38, 0.0  ;;  %v4174_v30 = vadd.f32 %v10453_v43, %v3911_v32  ;;  %v3913_v29 = vmul.f32 %v10456_v52, %v3650_v58  ;;  %v3664_v58 = vld [vmem:[%s10089_s23 + $0x3f8] sm:$0xff] }
 0x4a1   : > { %7336 = vst [vmem:[%s8137_s11 + $0x1a0] sm:$0xff] %v6908_v21   ;;  %v4429_v39 = vmax.f32 %v4173_v1, 0.0  ;;  %v4175_v48 = vadd.f32 %v10453_v43, %v3912_v7  ;;  %v3914_v34 = vmul.f32 %v10456_v52, %v3651_v0  ;;  %v3915_v27 = vmul.f32 %v10456_v52, %v3652_v62  ;;  %v3665_v0 = vld [vmem:[%s10089_s23 + $0x400] sm:$0xff]  ;;  %v3666_v7 = vld [vmem:[%s10089_s23 + $0x408] sm:$0xff] }
 0x4a2   : > { %7337 = vst [vmem:[%s8137_s11 + $0x1a8] sm:$0xff] %v6913_v17   ;;  %v6918_v16 = vpack.c.bf16 %v4428_v55, %v4427_v40  ;;  %v4430_v13 = vmax.f32 %v4174_v30, 0.0  ;;  %v4176_v44 = vadd.f32 %v10453_v43, %v3913_v29  ;;  %v3916_v47 = vmul.f32 %v10456_v52, %v3653_v23  ;;  %v3667_v29 = vld [vmem:[%s10089_s23 + $0x410] sm:$0xff] }
 0x4a3   : > { %v4431_v46 = vmax.f32 %v4175_v48, 0.0  ;;  %v4177_v2 = vadd.f32 %v10453_v43, %v3914_v34  ;;  %v4178_v25 = vadd.f32 %v10453_v43, %v3915_v27  ;;  %v3917_v6 = vmul.f32 %v10456_v52, %v3654_v8  ;;  %v3668_v8 = vld [vmem:[%s10089_s23 + $0x418] sm:$0xff] }
 0x4a4   : > { %7338 = vst [vmem:[%s8137_s11 + $0x1b0] sm:$0xff] %v6918_v16   ;;  %v6923_v37 = vpack.c.bf16 %v4430_v13, %v4429_v39  ;;  %v4432_v42 = vmax.f32 %v4176_v44, 0.0  ;;  %v4179_v50 = vadd.f32 %v10453_v43, %v3916_v47  ;;  %v3918_v10 = vmul.f32 %v10456_v52, %v3655_v56  ;;  %v3669_v56 = vld [vmem:[%s10089_s23 + $0x420] sm:$0xff] }
 0x4a5   : > { %v4433_v59 = vmax.f32 %v4177_v2, 0.0  ;;  %v4434_v45 = vmax.f32 %v4178_v25, 0.0  ;;  %v4180_v19 = vadd.f32 %v10453_v43, %v3917_v6  ;;  %v3919_v57 = vmul.f32 %v10456_v52, %v3656_v15  ;;  %v3670_v15 = vld [vmem:[%s10089_s23 + $0x428] sm:$0xff] }
 0x4a6   : > { %7339 = vst [vmem:[%s8137_s11 + $0x1b8] sm:$0xff] %v6923_v37   ;;  %v6928_v53 = vpack.c.bf16 %v4432_v42, %v4431_v46  ;;  %v4435_v60 = vmax.f32 %v4179_v50, 0.0  ;;  %v4181_v36 = vadd.f32 %v10453_v43, %v3918_v10  ;;  %v3920_v49 = vmul.f32 %v10456_v52, %v3657_v51  ;;  %v3671_v51 = vld [vmem:[%s10089_s23 + $0x430] sm:$0xff] }
 0x4a7   : > { %v6933_v28 = vpack.c.bf16 %v4434_v45, %v4433_v59  ;;  %v4436_v12 = vmax.f32 %v4180_v19, 0.0  ;;  %v4182_v63 = vadd.f32 %v10453_v43, %v3919_v57  ;;  %v3921_v31 = vmul.f32 %v10456_v52, %v3658_v11  ;;  %v3672_v11 = vld [vmem:[%s10089_s23 + $0x438] sm:$0xff] }
 0x4a8   : > { %7340 = vst [vmem:[%s8137_s11 + $0x1c0] sm:$0xff] %v6928_v53   ;;  %v4437_v24 = vmax.f32 %v4181_v36, 0.0  ;;  %v4183_v18 = vadd.f32 %v10453_v43, %v3920_v49  ;;  %v3922_v33 = vmul.f32 %v10456_v52, %v3659_v14  ;;  %v3923_v9 = vmul.f32 %v10456_v52, %v3660_v20  ;;  %v3673_v14 = vld [vmem:[%s10089_s23 + $0x440] sm:$0xff]  ;;  %v3674_v49 = vld [vmem:[%s10089_s23 + $0x448] sm:$0xff] }
 0x4a9   : > { %7341 = vst [vmem:[%s8137_s11 + $0x1c8] sm:$0xff] %v6933_v28   ;;  %v6938_v61 = vpack.c.bf16 %v4436_v12, %v4435_v60  ;;  %v4438_v35 = vmax.f32 %v4182_v63, 0.0  ;;  %v4184_v22 = vadd.f32 %v10453_v43, %v3921_v31  ;;  %v3924_v26 = vmul.f32 %v10456_v52, %v3661_v3  ;;  %v3675_v31 = vld [vmem:[%s10089_s23 + $0x450] sm:$0xff] }
 0x4aa   : > { %v4439_v41 = vmax.f32 %v4183_v18, 0.0  ;;  %v4185_v5 = vadd.f32 %v10453_v43, %v3922_v33  ;;  %v4186_v38 = vadd.f32 %v10453_v43, %v3923_v9  ;;  %v3925_v32 = vmul.f32 %v10456_v52, %v3662_v4  ;;  %v3676_v4 = vld [vmem:[%s10089_s23 + $0x458] sm:$0xff] }
 0x4ab   : > { %7342 = vst [vmem:[%s8137_s11 + $0x1d0] sm:$0xff] %v6938_v61   ;;  %v6943_v62 = vpack.c.bf16 %v4438_v35, %v4437_v24  ;;  %v4440_v21 = vmax.f32 %v4184_v22, 0.0  ;;  %v4187_v40 = vadd.f32 %v10453_v43, %v3924_v26  ;;  %v3926_v1 = vmul.f32 %v10456_v52, %v3663_v54  ;;  %v3677_v54 = vld [vmem:[%s10089_s23 + $0x460] sm:$0xff] }
 0x4ac   : > { %v4441_v23 = vmax.f32 %v4185_v5, 0.0  ;;  %v4442_v17 = vmax.f32 %v4186_v38, 0.0  ;;  %v4188_v55 = vadd.f32 %v10453_v43, %v3925_v32  ;;  %v3927_v30 = vmul.f32 %v10456_v52, %v3664_v58  ;;  %v3678_v58 = vld [vmem:[%s10089_s23 + $0x468] sm:$0xff] }
 0x4ad   : > { %7343 = vst [vmem:[%s8137_s11 + $0x1d8] sm:$0xff] %v6943_v62   ;;  %v6948_v39 = vpack.c.bf16 %v4440_v21, %v4439_v41  ;;  %v4443_v48 = vmax.f32 %v4187_v40, 0.0  ;;  %v4189_v34 = vadd.f32 %v10453_v43, %v3926_v1  ;;  %v3928_v27 = vmul.f32 %v10456_v52, %v3665_v0  ;;  %v3679_v0 = vld [vmem:[%s10089_s23 + $0x470] sm:$0xff] }
 0x4ae   : > { %v6953_v16 = vpack.c.bf16 %v4442_v17, %v4441_v23  ;;  %v4444_v13 = vmax.f32 %v4188_v55, 0.0  ;;  %v4190_v44 = vadd.f32 %v10453_v43, %v3927_v30  ;;  %v3929_v47 = vmul.f32 %v10456_v52, %v3666_v7  ;;  %v3680_v7 = vld [vmem:[%s10089_s23 + $0x478] sm:$0xff] }
 0x4af   : > { %7344 = vst [vmem:[%s8137_s11 + $0x1e0] sm:$0xff] %v6948_v39   ;;  %v4445_v46 = vmax.f32 %v4189_v34, 0.0  ;;  %v4191_v2 = vadd.f32 %v10453_v43, %v3928_v27  ;;  %v3930_v25 = vmul.f32 %v10456_v52, %v3667_v29  ;;  %v3931_v6 = vmul.f32 %v10456_v52, %v3668_v8  ;;  %v3681_v29 = vld [vmem:[%s10089_s23 + $0x480] sm:$0xff]  ;;  %v3682_v27 = vld [vmem:[%s10089_s23 + $0x488] sm:$0xff] }
 0x4b0   : > { %7345 = vst [vmem:[%s8137_s11 + $0x1e8] sm:$0xff] %v6953_v16   ;;  %v6958_v37 = vpack.c.bf16 %v4444_v13, %v4443_v48  ;;  %v4446_v42 = vmax.f32 %v4190_v44, 0.0  ;;  %v4192_v50 = vadd.f32 %v10453_v43, %v3929_v47  ;;  %v3932_v10 = vmul.f32 %v10456_v52, %v3669_v56  ;;  %v3683_v47 = vld [vmem:[%s10089_s23 + $0x490] sm:$0xff] }
 0x4b1   : > { %v4447_v59 = vmax.f32 %v4191_v2, 0.0  ;;  %v4193_v45 = vadd.f32 %v10453_v43, %v3930_v25  ;;  %v4194_v19 = vadd.f32 %v10453_v43, %v3931_v6  ;;  %v3933_v57 = vmul.f32 %v10456_v52, %v3670_v15  ;;  %v3684_v15 = vld [vmem:[%s10089_s23 + $0x498] sm:$0xff] }
 0x4b2   : > { %7346 = vst [vmem:[%s8137_s11 + $0x1f0] sm:$0xff] %v6958_v37   ;;  %v6963_v20 = vpack.c.bf16 %v4446_v42, %v4445_v46  ;;  %v4448_v53 = vmax.f32 %v4192_v50, 0.0  ;;  %v4195_v60 = vadd.f32 %v10453_v43, %v3932_v10  ;;  %v3934_v36 = vmul.f32 %v10456_v52, %v3671_v51  ;;  %v3685_v51 = vld [vmem:[%s10089_s23 + $0x4a0] sm:$0xff] }
 0x4b3   : > { %v4449_v3 = vmax.f32 %v4193_v45, 0.0  ;;  %v4450_v28 = vmax.f32 %v4194_v19, 0.0  ;;  %v4196_v12 = vadd.f32 %v10453_v43, %v3933_v57  ;;  %v3935_v63 = vmul.f32 %v10456_v52, %v3672_v11  ;;  %v3686_v11 = vld [vmem:[%s10089_s23 + $0x4a8] sm:$0xff] }
 0x4b4   : > { %7347 = vst [vmem:[%s8137_s11 + $0x1f8] sm:$0xff] %v6963_v20   ;;  %v6968_v24 = vpack.c.bf16 %v4448_v53, %v4447_v59  ;;  %v4451_v18 = vmax.f32 %v4195_v60, 0.0  ;;  %v4197_v33 = vadd.f32 %v10453_v43, %v3934_v36  ;;  %v3936_v9 = vmul.f32 %v10456_v52, %v3673_v14  ;;  %v3687_v14 = vld [vmem:[%s10089_s23 + $0x4b0] sm:$0xff] }
 0x4b5   : > { %v6973_v61 = vpack.c.bf16 %v4450_v28, %v4449_v3  ;;  %v4452_v35 = vmax.f32 %v4196_v12, 0.0  ;;  %v4198_v22 = vadd.f32 %v10453_v43, %v3935_v63  ;;  %v3937_v26 = vmul.f32 %v10456_v52, %v3674_v49  ;;  %v3688_v49 = vld [vmem:[%s10089_s23 + $0x4b8] sm:$0xff] }
 0x4b6   : > { %7348 = vst [vmem:[%s8137_s11 + $0x200] sm:$0xff] %v6968_v24   ;;  %v4453_v41 = vmax.f32 %v4197_v33, 0.0  ;;  %v4199_v5 = vadd.f32 %v10453_v43, %v3936_v9  ;;  %v3938_v38 = vmul.f32 %v10456_v52, %v3675_v31  ;;  %v3939_v32 = vmul.f32 %v10456_v52, %v3676_v4  ;;  %v3689_v31 = vld [vmem:[%s10089_s23 + $0x4c0] sm:$0xff]  ;;  %v3690_v9 = vld [vmem:[%s10089_s23 + $0x4c8] sm:$0xff] }
 0x4b7   : > { %7349 = vst [vmem:[%s8137_s11 + $0x208] sm:$0xff] %v6973_v61   ;;  %v6978_v62 = vpack.c.bf16 %v4452_v35, %v4451_v18  ;;  %v4454_v21 = vmax.f32 %v4198_v22, 0.0  ;;  %v4200_v40 = vadd.f32 %v10453_v43, %v3937_v26  ;;  %v3940_v1 = vmul.f32 %v10456_v52, %v3677_v54  ;;  %v3691_v26 = vld [vmem:[%s10089_s23 + $0x4d0] sm:$0xff] }
 0x4b8   : > { %v4455_v23 = vmax.f32 %v4199_v5, 0.0  ;;  %v4201_v17 = vadd.f32 %v10453_v43, %v3938_v38  ;;  %v4202_v55 = vadd.f32 %v10453_v43, %v3939_v32  ;;  %v3941_v30 = vmul.f32 %v10456_v52, %v3678_v58  ;;  %v3692_v58 = vld [vmem:[%s10089_s23 + $0x4d8] sm:$0xff] }
 0x4b9   : > { %7350 = vst [vmem:[%s8137_s11 + $0x210] sm:$0xff] %v6978_v62   ;;  %v6983_v8 = vpack.c.bf16 %v4454_v21, %v4453_v41  ;;  %v4456_v39 = vmax.f32 %v4200_v40, 0.0  ;;  %v4203_v48 = vadd.f32 %v10453_v43, %v3940_v1  ;;  %v3942_v34 = vmul.f32 %v10456_v52, %v3679_v0  ;;  %v3693_v0 = vld [vmem:[%s10089_s23 + $0x4e0] sm:$0xff] }
 0x4ba   : > { %v4457_v56 = vmax.f32 %v4201_v17, 0.0  ;;  %v4458_v16 = vmax.f32 %v4202_v55, 0.0  ;;  %v4204_v13 = vadd.f32 %v10453_v43, %v3941_v30  ;;  %v3943_v44 = vmul.f32 %v10456_v52, %v3680_v7  ;;  %v3694_v7 = vld [vmem:[%s10089_s23 + $0x4e8] sm:$0xff] }
 0x4bb   : > { %7351 = vst [vmem:[%s8137_s11 + $0x218] sm:$0xff] %v6983_v8   ;;  %v6988_v46 = vpack.c.bf16 %v4456_v39, %v4455_v23  ;;  %v4459_v2 = vmax.f32 %v4203_v48, 0.0  ;;  %v4205_v25 = vadd.f32 %v10453_v43, %v3942_v34  ;;  %v3944_v6 = vmul.f32 %v10456_v52, %v3681_v29  ;;  %v3695_v29 = vld [vmem:[%s10089_s23 + $0x4f0] sm:$0xff] }
 0x4bc   : > { %v6993_v37 = vpack.c.bf16 %v4458_v16, %v4457_v56  ;;  %v4460_v42 = vmax.f32 %v4204_v13, 0.0  ;;  %v4206_v50 = vadd.f32 %v10453_v43, %v3943_v44  ;;  %v3945_v10 = vmul.f32 %v10456_v52, %v3682_v27  ;;  %v3696_v27 = vld [vmem:[%s10089_s23 + $0x4f8] sm:$0xff] }
 0x4bd   : > { %7352 = vst [vmem:[%s8137_s11 + $0x220] sm:$0xff] %v6988_v46   ;;  %v4461_v59 = vmax.f32 %v4205_v25, 0.0  ;;  %v4207_v45 = vadd.f32 %v10453_v43, %v3944_v6  ;;  %v3946_v19 = vmul.f32 %v10456_v52, %v3683_v47  ;;  %v3947_v57 = vmul.f32 %v10456_v52, %v3684_v15  ;;  %v3697_v47 = vld [vmem:[%s10089_s23 + $0x500] sm:$0xff]  ;;  %v3698_v6 = vld [vmem:[%s10089_s23 + $0x508] sm:$0xff] }
 0x4be   : > { %7353 = vst [vmem:[%s8137_s11 + $0x228] sm:$0xff] %v6993_v37   ;;  %v6998_v20 = vpack.c.bf16 %v4460_v42, %v4459_v2  ;;  %v4462_v53 = vmax.f32 %v4206_v50, 0.0  ;;  %v4208_v60 = vadd.f32 %v10453_v43, %v3945_v10  ;;  %v3948_v36 = vmul.f32 %v10456_v52, %v3685_v51  ;;  %v3699_v10 = vld [vmem:[%s10089_s23 + $0x510] sm:$0xff] }
 0x4bf   : > { %v4463_v3 = vmax.f32 %v4207_v45, 0.0  ;;  %v4209_v28 = vadd.f32 %v10453_v43, %v3946_v19  ;;  %v4210_v12 = vadd.f32 %v10453_v43, %v3947_v57  ;;  %v3949_v63 = vmul.f32 %v10456_v52, %v3686_v11  ;;  %v3700_v11 = vld [vmem:[%s10089_s23 + $0x518] sm:$0xff] }
 0x4c0   : > { %7354 = vst [vmem:[%s8137_s11 + $0x230] sm:$0xff] %v6998_v20   ;;  %v7003_v4 = vpack.c.bf16 %v4462_v53, %v4461_v59  ;;  %v4464_v24 = vmax.f32 %v4208_v60, 0.0  ;;  %v4211_v18 = vadd.f32 %v10453_v43, %v3948_v36  ;;  %v3950_v33 = vmul.f32 %v10456_v52, %v3687_v14  ;;  %v3701_v14 = vld [vmem:[%s10089_s23 + $0x520] sm:$0xff] }
 0x4c1   : > { %v4465_v54 = vmax.f32 %v4209_v28, 0.0  ;;  %v4466_v61 = vmax.f32 %v4210_v12, 0.0  ;;  %v4212_v35 = vadd.f32 %v10453_v43, %v3949_v63  ;;  %v3951_v22 = vmul.f32 %v10456_v52, %v3688_v49  ;;  %v3702_v49 = vld [vmem:[%s10089_s23 + $0x528] sm:$0xff] }
 0x4c2   : > { %7355 = vst [vmem:[%s8137_s11 + $0x238] sm:$0xff] %v7003_v4   ;;  %v7008_v41 = vpack.c.bf16 %v4464_v24, %v4463_v3  ;;  %v4467_v5 = vmax.f32 %v4211_v18, 0.0  ;;  %v4213_v38 = vadd.f32 %v10453_v43, %v3950_v33  ;;  %v3952_v32 = vmul.f32 %v10456_v52, %v3689_v31  ;;  %v3703_v31 = vld [vmem:[%s10089_s23 + $0x530] sm:$0xff] }
 0x4c3   : > { %v7013_v62 = vpack.c.bf16 %v4466_v61, %v4465_v54  ;;  %v4468_v21 = vmax.f32 %v4212_v35, 0.0  ;;  %v4214_v40 = vadd.f32 %v10453_v43, %v3951_v22  ;;  %v3953_v1 = vmul.f32 %v10456_v52, %v3690_v9  ;;  %v3704_v9 = vld [vmem:[%s10089_s23 + $0x538] sm:$0xff] }
 0x4c4   : > { %7356 = vst [vmem:[%s8137_s11 + $0x240] sm:$0xff] %v7008_v41   ;;  %v4469_v23 = vmax.f32 %v4213_v38, 0.0  ;;  %v4215_v17 = vadd.f32 %v10453_v43, %v3952_v32  ;;  %v3954_v55 = vmul.f32 %v10456_v52, %v3691_v26  ;;  %v3955_v30 = vmul.f32 %v10456_v52, %v3692_v58  ;;  %v3705_v26 = vld [vmem:[%s10089_s23 + $0x540] sm:$0xff]  ;;  %v3706_v32 = vld [vmem:[%s10089_s23 + $0x548] sm:$0xff] }
 0x4c5   : > { %7357 = vst [vmem:[%s8137_s11 + $0x248] sm:$0xff] %v7013_v62   ;;  %v7018_v8 = vpack.c.bf16 %v4468_v21, %v4467_v5  ;;  %v4470_v39 = vmax.f32 %v4214_v40, 0.0  ;;  %v4216_v48 = vadd.f32 %v10453_v43, %v3953_v1  ;;  %v3956_v34 = vmul.f32 %v10456_v52, %v3693_v0  ;;  %v3707_v1 = vld [vmem:[%s10089_s23 + $0x550] sm:$0xff] }
 0x4c6   : > { %v4471_v56 = vmax.f32 %v4215_v17, 0.0  ;;  %v4217_v16 = vadd.f32 %v10453_v43, %v3954_v55  ;;  %v4218_v13 = vadd.f32 %v10453_v43, %v3955_v30  ;;  %v3957_v44 = vmul.f32 %v10456_v52, %v3694_v7  ;;  %v3708_v7 = vld [vmem:[%s10089_s23 + $0x558] sm:$0xff] }
 0x4c7   : > { %7358 = vst [vmem:[%s8137_s11 + $0x250] sm:$0xff] %v7018_v8   ;;  %v7023_v15 = vpack.c.bf16 %v4470_v39, %v4469_v23  ;;  %v4472_v46 = vmax.f32 %v4216_v48, 0.0  ;;  %v4219_v2 = vadd.f32 %v10453_v43, %v3956_v34  ;;  %v3958_v25 = vmul.f32 %v10456_v52, %v3695_v29  ;;  %v3709_v29 = vld [vmem:[%s10089_s23 + $0x560] sm:$0xff] }
 0x4c8   : > { %v4473_v51 = vmax.f32 %v4217_v16, 0.0  ;;  %v4474_v37 = vmax.f32 %v4218_v13, 0.0  ;;  %v4220_v42 = vadd.f32 %v10453_v43, %v3957_v44  ;;  %v3959_v50 = vmul.f32 %v10456_v52, %v3696_v27  ;;  %v3710_v27 = vld [vmem:[%s10089_s23 + $0x568] sm:$0xff] }
 0x4c9   : > { %7359 = vst [vmem:[%s8137_s11 + $0x258] sm:$0xff] %v7023_v15   ;;  %v7028_v59 = vpack.c.bf16 %v4472_v46, %v4471_v56  ;;  %v4475_v45 = vmax.f32 %v4219_v2, 0.0  ;;  %v4221_v19 = vadd.f32 %v10453_v43, %v3958_v25  ;;  %v3960_v57 = vmul.f32 %v10456_v52, %v3697_v47  ;;  %v3711_v47 = vld [vmem:[%s10089_s23 + $0x570] sm:$0xff] }
 0x4ca   : > { %v7033_v20 = vpack.c.bf16 %v4474_v37, %v4473_v51  ;;  %v4476_v53 = vmax.f32 %v4220_v42, 0.0  ;;  %v4222_v60 = vadd.f32 %v10453_v43, %v3959_v50  ;;  %v3961_v36 = vmul.f32 %v10456_v52, %v3698_v6  ;;  %v3712_v6 = vld [vmem:[%s10089_s23 + $0x578] sm:$0xff] }
 0x4cb   : > { %7360 = vst [vmem:[%s8137_s11 + $0x260] sm:$0xff] %v7028_v59   ;;  %v4477_v3 = vmax.f32 %v4221_v19, 0.0  ;;  %v4223_v28 = vadd.f32 %v10453_v43, %v3960_v57  ;;  %v3962_v12 = vmul.f32 %v10456_v52, %v3699_v10  ;;  %v3963_v63 = vmul.f32 %v10456_v52, %v3700_v11  ;;  %v3713_v10 = vld [vmem:[%s10089_s23 + $0x580] sm:$0xff]  ;;  %v3714_v57 = vld [vmem:[%s10089_s23 + $0x588] sm:$0xff] }
 0x4cc   : > { %7361 = vst [vmem:[%s8137_s11 + $0x268] sm:$0xff] %v7033_v20   ;;  %v7038_v4 = vpack.c.bf16 %v4476_v53, %v4475_v45  ;;  %v4478_v24 = vmax.f32 %v4222_v60, 0.0  ;;  %v4224_v18 = vadd.f32 %v10453_v43, %v3961_v36  ;;  %v3964_v33 = vmul.f32 %v10456_v52, %v3701_v14  ;;  %v3715_v36 = vld [vmem:[%s10089_s23 + $0x590] sm:$0xff] }
 0x4cd   : > { %v4479_v54 = vmax.f32 %v4223_v28, 0.0  ;;  %v4225_v61 = vadd.f32 %v10453_v43, %v3962_v12  ;;  %v4226_v35 = vadd.f32 %v10453_v43, %v3963_v63  ;;  %v3965_v22 = vmul.f32 %v10456_v52, %v3702_v49  ;;  %v3716_v49 = vld [vmem:[%s10089_s23 + $0x598] sm:$0xff] }
 0x4ce   : > { %7362 = vst [vmem:[%s8137_s11 + $0x270] sm:$0xff] %v7038_v4   ;;  %v7043_v58 = vpack.c.bf16 %v4478_v24, %v4477_v3  ;;  %v4480_v41 = vmax.f32 %v4224_v18, 0.0  ;;  %v4227_v5 = vadd.f32 %v10453_v43, %v3964_v33  ;;  %v3966_v38 = vmul.f32 %v10456_v52, %v3703_v31  ;;  %v3717_v31 = vld [vmem:[%s10089_s23 + $0x5a0] sm:$0xff] }
 0x4cf   : > { %v4481_v0 = vmax.f32 %v4225_v61, 0.0  ;;  %v4482_v62 = vmax.f32 %v4226_v35, 0.0  ;;  %v4228_v21 = vadd.f32 %v10453_v43, %v3965_v22  ;;  %v3967_v40 = vmul.f32 %v10456_v52, %v3704_v9  ;;  %v3718_v9 = vld [vmem:[%s10089_s23 + $0x5a8] sm:$0xff] }
 0x4d0   : > { %7363 = vst [vmem:[%s8137_s11 + $0x278] sm:$0xff] %v7043_v58   ;;  %v7048_v23 = vpack.c.bf16 %v4480_v41, %v4479_v54  ;;  %v4483_v17 = vmax.f32 %v4227_v5, 0.0  ;;  %v4229_v55 = vadd.f32 %v10453_v43, %v3966_v38  ;;  %v3968_v30 = vmul.f32 %v10456_v52, %v3705_v26  ;;  %v3719_v26 = vld [vmem:[%s10089_s23 + $0x5b0] sm:$0xff] }
 0x4d1   : > { %v7053_v8 = vpack.c.bf16 %v4482_v62, %v4481_v0  ;;  %v4484_v39 = vmax.f32 %v4228_v21, 0.0  ;;  %v4230_v48 = vadd.f32 %v10453_v43, %v3967_v40  ;;  %v3969_v34 = vmul.f32 %v10456_v52, %v3706_v32  ;;  %v3720_v32 = vld [vmem:[%s10089_s23 + $0x5b8] sm:$0xff] }
 0x4d2   : > { %7364 = vst [vmem:[%s8137_s11 + $0x280] sm:$0xff] %v7048_v23   ;;  %v4485_v56 = vmax.f32 %v4229_v55, 0.0  ;;  %v4231_v16 = vadd.f32 %v10453_v43, %v3968_v30  ;;  %v3970_v13 = vmul.f32 %v10456_v52, %v3707_v1  ;;  %v3971_v44 = vmul.f32 %v10456_v52, %v3708_v7  ;;  %v3721_v1 = vld [vmem:[%s10089_s23 + $0x5c0] sm:$0xff]  ;;  %v3722_v30 = vld [vmem:[%s10089_s23 + $0x5c8] sm:$0xff] }
 0x4d3   : > { %7365 = vst [vmem:[%s8137_s11 + $0x288] sm:$0xff] %v7053_v8   ;;  %v7058_v15 = vpack.c.bf16 %v4484_v39, %v4483_v17  ;;  %v4486_v46 = vmax.f32 %v4230_v48, 0.0  ;;  %v4232_v2 = vadd.f32 %v10453_v43, %v3969_v34  ;;  %v3972_v25 = vmul.f32 %v10456_v52, %v3709_v29  ;;  %v3723_v34 = vld [vmem:[%s10089_s23 + $0x5d0] sm:$0xff] }
 0x4d4   : > { %v4487_v51 = vmax.f32 %v4231_v16, 0.0  ;;  %v4233_v37 = vadd.f32 %v10453_v43, %v3970_v13  ;;  %v4234_v42 = vadd.f32 %v10453_v43, %v3971_v44  ;;  %v3973_v50 = vmul.f32 %v10456_v52, %v3710_v27  ;;  %v3724_v27 = vld [vmem:[%s10089_s23 + $0x5d8] sm:$0xff] }
 0x4d5   : > { %7366 = vst [vmem:[%s8137_s11 + $0x290] sm:$0xff] %v7058_v15   ;;  %v7063_v11 = vpack.c.bf16 %v4486_v46, %v4485_v56  ;;  %v4488_v59 = vmax.f32 %v4232_v2, 0.0  ;;  %v4235_v45 = vadd.f32 %v10453_v43, %v3972_v25  ;;  %v3974_v19 = vmul.f32 %v10456_v52, %v3711_v47  ;;  %v3725_v47 = vld [vmem:[%s10089_s23 + $0x5e0] sm:$0xff] }
 0x4d6   : > { %v4489_v14 = vmax.f32 %v4233_v37, 0.0  ;;  %v4490_v20 = vmax.f32 %v4234_v42, 0.0  ;;  %v4236_v53 = vadd.f32 %v10453_v43, %v3973_v50  ;;  %v3975_v60 = vmul.f32 %v10456_v52, %v3712_v6  ;;  %v3726_v6 = vld [vmem:[%s10089_s23 + $0x5e8] sm:$0xff] }
 0x4d7   : > { %7367 = vst [vmem:[%s8137_s11 + $0x298] sm:$0xff] %v7063_v11   ;;  %v7068_v3 = vpack.c.bf16 %v4488_v59, %v4487_v51  ;;  %v4491_v28 = vmax.f32 %v4235_v45, 0.0  ;;  %v4237_v12 = vadd.f32 %v10453_v43, %v3974_v19  ;;  %v3976_v63 = vmul.f32 %v10456_v52, %v3713_v10  ;;  %v3727_v10 = vld [vmem:[%s10089_s23 + $0x5f0] sm:$0xff] }
 0x4d8   : > { %v7073_v4 = vpack.c.bf16 %v4490_v20, %v4489_v14  ;;  %v4492_v24 = vmax.f32 %v4236_v53, 0.0  ;;  %v4238_v18 = vadd.f32 %v10453_v43, %v3975_v60  ;;  %v3977_v33 = vmul.f32 %v10456_v52, %v3714_v57  ;;  %v3728_v57 = vld [vmem:[%s10089_s23 + $0x5f8] sm:$0xff] }
 0x4d9   : > { %7368 = vst [vmem:[%s8137_s11 + $0x2a0] sm:$0xff] %v7068_v3   ;;  %v4493_v54 = vmax.f32 %v4237_v12, 0.0  ;;  %v4239_v61 = vadd.f32 %v10453_v43, %v3976_v63  ;;  %v3978_v35 = vmul.f32 %v10456_v52, %v3715_v36  ;;  %v3979_v22 = vmul.f32 %v10456_v52, %v3716_v49  ;;  %v3729_v36 = vld [vmem:[%s10089_s23 + $0x600] sm:$0xff]  ;;  %v3730_v63 = vld [vmem:[%s10089_s23 + $0x608] sm:$0xff] }
 0x4da   : > { %7369 = vst [vmem:[%s8137_s11 + $0x2a8] sm:$0xff] %v7073_v4   ;;  %v7078_v58 = vpack.c.bf16 %v4492_v24, %v4491_v28  ;;  %v4494_v41 = vmax.f32 %v4238_v18, 0.0  ;;  %v4240_v5 = vadd.f32 %v10453_v43, %v3977_v33  ;;  %v3980_v38 = vmul.f32 %v10456_v52, %v3717_v31  ;;  %v3731_v33 = vld [vmem:[%s10089_s23 + $0x610] sm:$0xff] }
 0x4db   : > { %v4495_v0 = vmax.f32 %v4239_v61, 0.0  ;;  %v4241_v62 = vadd.f32 %v10453_v43, %v3978_v35  ;;  %v4242_v21 = vadd.f32 %v10453_v43, %v3979_v22  ;;  %v3981_v40 = vmul.f32 %v10456_v52, %v3718_v9  ;;  %v3732_v9 = vld [vmem:[%s10089_s23 + $0x618] sm:$0xff] }
 0x4dc   : > { %7370 = vst [vmem:[%s8137_s11 + $0x2b0] sm:$0xff] %v7078_v58   ;;  %v7083_v7 = vpack.c.bf16 %v4494_v41, %v4493_v54  ;;  %v4496_v23 = vmax.f32 %v4240_v5, 0.0  ;;  %v4243_v17 = vadd.f32 %v10453_v43, %v3980_v38  ;;  %v3982_v55 = vmul.f32 %v10456_v52, %v3719_v26  ;;  %v3733_v26 = vld [vmem:[%s10089_s23 + $0x620] sm:$0xff] }
 0x4dd   : > { %v4497_v29 = vmax.f32 %v4241_v62, 0.0  ;;  %v4498_v8 = vmax.f32 %v4242_v21, 0.0  ;;  %v4244_v39 = vadd.f32 %v10453_v43, %v3981_v40  ;;  %v3983_v48 = vmul.f32 %v10456_v52, %v3720_v32  ;;  %v3734_v32 = vld [vmem:[%s10089_s23 + $0x628] sm:$0xff] }
 0x4de   : > { %7371 = vst [vmem:[%s8137_s11 + $0x2b8] sm:$0xff] %v7083_v7   ;;  %v7088_v56 = vpack.c.bf16 %v4496_v23, %v4495_v0  ;;  %v4499_v16 = vmax.f32 %v4243_v17, 0.0  ;;  %v4245_v13 = vadd.f32 %v10453_v43, %v3982_v55  ;;  %v3984_v44 = vmul.f32 %v10456_v52, %v3721_v1  ;;  %v3735_v1 = vld [vmem:[%s10089_s23 + $0x630] sm:$0xff] }
 0x4df   : > { %v7093_v15 = vpack.c.bf16 %v4498_v8, %v4497_v29  ;;  %v4500_v46 = vmax.f32 %v4244_v39, 0.0  ;;  %v4246_v2 = vadd.f32 %v10453_v43, %v3983_v48  ;;  %v3985_v25 = vmul.f32 %v10456_v52, %v3722_v30  ;;  %v3736_v30 = vld [vmem:[%s10089_s23 + $0x638] sm:$0xff] }
 0x4e0   : > { %7372 = vst [vmem:[%s8137_s11 + $0x2c0] sm:$0xff] %v7088_v56   ;;  %v4501_v51 = vmax.f32 %v4245_v13, 0.0  ;;  %v4247_v37 = vadd.f32 %v10453_v43, %v3984_v44  ;;  %v3986_v42 = vmul.f32 %v10456_v52, %v3723_v34  ;;  %v3987_v50 = vmul.f32 %v10456_v52, %v3724_v27  ;;  %v3737_v34 = vld [vmem:[%s10089_s23 + $0x640] sm:$0xff]  ;;  %v3738_v44 = vld [vmem:[%s10089_s23 + $0x648] sm:$0xff] }
 0x4e1   : > { %7373 = vst [vmem:[%s8137_s11 + $0x2c8] sm:$0xff] %v7093_v15   ;;  %v7098_v11 = vpack.c.bf16 %v4500_v46, %v4499_v16  ;;  %v4502_v59 = vmax.f32 %v4246_v2, 0.0  ;;  %v4248_v45 = vadd.f32 %v10453_v43, %v3985_v25  ;;  %v3988_v19 = vmul.f32 %v10456_v52, %v3725_v47  ;;  %v3739_v25 = vld [vmem:[%s10089_s23 + $0x650] sm:$0xff] }
 0x4e2   : > { %v4503_v14 = vmax.f32 %v4247_v37, 0.0  ;;  %v4249_v20 = vadd.f32 %v10453_v43, %v3986_v42  ;;  %v4250_v53 = vadd.f32 %v10453_v43, %v3987_v50  ;;  %v3989_v60 = vmul.f32 %v10456_v52, %v3726_v6  ;;  %v3740_v6 = vld [vmem:[%s10089_s23 + $0x658] sm:$0xff] }
 0x4e3   : > { %7374 = vst [vmem:[%s8137_s11 + $0x2d0] sm:$0xff] %v7098_v11   ;;  %v7103_v49 = vpack.c.bf16 %v4502_v59, %v4501_v51  ;;  %v4504_v3 = vmax.f32 %v4248_v45, 0.0  ;;  %v4251_v28 = vadd.f32 %v10453_v43, %v3988_v19  ;;  %v3990_v12 = vmul.f32 %v10456_v52, %v3727_v10  ;;  %v3741_v10 = vld [vmem:[%s10089_s23 + $0x660] sm:$0xff] }
 0x4e4   : > { %v4505_v31 = vmax.f32 %v4249_v20, 0.0  ;;  %v4506_v4 = vmax.f32 %v4250_v53, 0.0  ;;  %v4252_v24 = vadd.f32 %v10453_v43, %v3989_v60  ;;  %v3991_v18 = vmul.f32 %v10456_v52, %v3728_v57  ;;  %v3742_v57 = vld [vmem:[%s10089_s23 + $0x668] sm:$0xff] }
 0x4e5   : > { %7375 = vst [vmem:[%s8137_s11 + $0x2d8] sm:$0xff] %v7103_v49   ;;  %v7108_v54 = vpack.c.bf16 %v4504_v3, %v4503_v14  ;;  %v4507_v61 = vmax.f32 %v4251_v28, 0.0  ;;  %v4253_v35 = vadd.f32 %v10453_v43, %v3990_v12  ;;  %v3992_v22 = vmul.f32 %v10456_v52, %v3729_v36  ;;  %v3743_v36 = vld [vmem:[%s10089_s23 + $0x670] sm:$0xff] }
 0x4e6   : > { %v7113_v58 = vpack.c.bf16 %v4506_v4, %v4505_v31  ;;  %v4508_v41 = vmax.f32 %v4252_v24, 0.0  ;;  %v4254_v5 = vadd.f32 %v10453_v43, %v3991_v18  ;;  %v3993_v38 = vmul.f32 %v10456_v52, %v3730_v63  ;;  %v3744_v63 = vld [vmem:[%s10089_s23 + $0x678] sm:$0xff] }
 0x4e7   : > { %7376 = vst [vmem:[%s8137_s11 + $0x2e0] sm:$0xff] %v7108_v54   ;;  %v4509_v0 = vmax.f32 %v4253_v35, 0.0  ;;  %v4255_v62 = vadd.f32 %v10453_v43, %v3992_v22  ;;  %v3994_v21 = vmul.f32 %v10456_v52, %v3731_v33  ;;  %v3995_v40 = vmul.f32 %v10456_v52, %v3732_v9  ;;  %v3745_v33 = vld [vmem:[%s10089_s23 + $0x680] sm:$0xff]  ;;  %v3746_v22 = vld [vmem:[%s10089_s23 + $0x688] sm:$0xff] }
 0x4e8   : > { %7377 = vst [vmem:[%s8137_s11 + $0x2e8] sm:$0xff] %v7113_v58   ;;  %v7118_v7 = vpack.c.bf16 %v4508_v41, %v4507_v61  ;;  %v4510_v23 = vmax.f32 %v4254_v5, 0.0  ;;  %v4256_v17 = vadd.f32 %v10453_v43, %v3993_v38  ;;  %v3996_v55 = vmul.f32 %v10456_v52, %v3733_v26  ;;  %v10816_v41 = vld [vmem:[#allocation6] ss:$0 sm:$0xff]  ;;  %v10819_v38 = vld [vmem:[#allocation5] ss:$0 sm:$0xff] }
 0x4e9   : > { %v4511_v29 = vmax.f32 %v4255_v62, 0.0  ;;  %v4257_v8 = vadd.f32 %v10453_v43, %v3994_v21  ;;  %v4258_v39 = vadd.f32 %v10453_v43, %v3995_v40  ;;  %v3997_v48 = vmul.f32 %v10456_v52, %v3734_v32  ;;  %v3748_v62 = vld [vmem:[%s10089_s23 + $0x698] sm:$0xff] }
 0x4ea   : > { %7378 = vst [vmem:[%s8137_s11 + $0x2f0] sm:$0xff] %v7118_v7   ;;  %v7123_v27 = vpack.c.bf16 %v4510_v23, %v4509_v0  ;;  %v4512_v56 = vmax.f32 %v4256_v17, 0.0  ;;  %v4259_v16 = vadd.f32 %v10453_v43, %v3996_v55  ;;  %v3998_v13 = vmul.f32 %v10456_v52, %v3735_v1  ;;  %v3747_v0 = vld [vmem:[%s10089_s23 + $0x690] sm:$0xff]  ;;  %v3749_v1 = vld [vmem:[%s10089_s23 + $0x6a0] sm:$0xff] }
 0x4eb   : > { %v4513_v47 = vmax.f32 %v4257_v8, 0.0  ;;  %v4514_v15 = vmax.f32 %v4258_v39, 0.0  ;;  %v4260_v46 = vadd.f32 %v10453_v43, %v3997_v48  ;;  %v3999_v2 = vmul.f32 %v10456_v52, %v3736_v30  ;;  %v3750_v30 = vld [vmem:[%s10089_s23 + $0x6a8] sm:$0xff] }
 0x4ec   : > { %7379 = vst [vmem:[%s8137_s11 + $0x2f8] sm:$0xff] %v7123_v27   ;;  %v7128_v51 = vpack.c.bf16 %v4512_v56, %v4511_v29  ;;  %v4515_v37 = vmax.f32 %v4259_v16, 0.0  ;;  %v4261_v42 = vadd.f32 %v10453_v43, %v3998_v13  ;;  %v4000_v50 = vmul.f32 %v10456_v52, %v3737_v34  ;;  %v3751_v34 = vld [vmem:[%s10089_s23 + $0x6b0] sm:$0xff] }
 0x4ed   : > { %v7133_v11 = vpack.c.bf16 %v4514_v15, %v4513_v47  ;;  %v4516_v59 = vmax.f32 %v4260_v46, 0.0  ;;  %v4262_v45 = vadd.f32 %v10453_v43, %v3999_v2  ;;  %v4001_v19 = vmul.f32 %v10456_v52, %v3738_v44  ;;  %v3752_v44 = vld [vmem:[%s10089_s23 + $0x6b8] sm:$0xff] }
 0x4ee   : > { %7380 = vst [vmem:[%s8137_s11 + $0x300] sm:$0xff] %v7128_v51   ;;  %v4517_v14 = vmax.f32 %v4261_v42, 0.0  ;;  %v4263_v20 = vadd.f32 %v10453_v43, %v4000_v50  ;;  %v4002_v53 = vmul.f32 %v10456_v52, %v3739_v25  ;;  %v4003_v60 = vmul.f32 %v10456_v52, %v3740_v6  ;;  %v3753_v25 = vld [vmem:[%s10089_s23 + $0x6c0] sm:$0xff]  ;;  %v3754_v50 = vld [vmem:[%s10089_s23 + $0x6c8] sm:$0xff] }
 0x4ef   : > { %7381 = vst [vmem:[%s8137_s11 + $0x308] sm:$0xff] %v7133_v11   ;;  %v7138_v49 = vpack.c.bf16 %v4516_v59, %v4515_v37  ;;  %v4518_v3 = vmax.f32 %v4262_v45, 0.0  ;;  %v4264_v28 = vadd.f32 %v10453_v43, %v4001_v19  ;;  %v4004_v12 = vmul.f32 %v10456_v52, %v3741_v10  ;;  %v3755_v19 = vld [vmem:[%s10089_s23 + $0x6d0] sm:$0xff] }
 0x4f0   : > { %v4519_v31 = vmax.f32 %v4263_v20, 0.0  ;;  %v4265_v4 = vadd.f32 %v10453_v43, %v4002_v53  ;;  %v4266_v24 = vadd.f32 %v10453_v43, %v4003_v60  ;;  %v4005_v18 = vmul.f32 %v10456_v52, %v3742_v57  ;;  %v3756_v57 = vld [vmem:[%s10089_s23 + $0x6d8] sm:$0xff] }
 0x4f1   : > { %7382 = vst [vmem:[%s8137_s11 + $0x310] sm:$0xff] %v7138_v49   ;;  %v7143_v9 = vpack.c.bf16 %v4518_v3, %v4517_v14  ;;  %v4520_v54 = vmax.f32 %v4264_v28, 0.0  ;;  %v4267_v61 = vadd.f32 %v10453_v43, %v4004_v12  ;;  %v4006_v35 = vmul.f32 %v10456_v52, %v3743_v36  ;;  %v3757_v36 = vld [vmem:[%s10089_s23 + $0x6e0] sm:$0xff] }
 0x4f2   : > { %v4521_v26 = vmax.f32 %v4265_v4, 0.0  ;;  %v4522_v58 = vmax.f32 %v4266_v24, 0.0  ;;  %v4268_v5 = vadd.f32 %v10816_v41, %v4005_v18  ;;  %v4007_v32 = vmul.f32 %v10819_v38, %v3744_v63  ;;  %v3758_v63 = vld [vmem:[%s10089_s23 + $0x6e8] sm:$0xff] }
 0x4f3   : > { %7383 = vst [vmem:[%s8137_s11 + $0x318] sm:$0xff] %v7143_v9   ;;  %v7148_v43 = vpack.c.bf16 %v4520_v54, %v4519_v31  ;;  %v4523_v52 = vmax.f32 %v4267_v61, 0.0  ;;  %v4269_v21 = vadd.f32 %v10816_v41, %v4006_v35  ;;  %v4008_v40 = vmul.f32 %v10819_v38, %v3745_v33  ;;  %v3759_v33 = vld [vmem:[%s10089_s23 + $0x6f0] sm:$0xff] }
 0x4f4   : > { %v7153_v7 = vpack.c.bf16 %v4522_v58, %v4521_v26  ;;  %v4524_v23 = vmax.f32 %v4268_v5, 0.0  ;;  %v4270_v17 = vadd.f32 %v10816_v41, %v4007_v32  ;;  %v4009_v55 = vmul.f32 %v10819_v38, %v3746_v22  ;;  %v3760_v22 = vld [vmem:[%s10089_s23 + $0x6f8] sm:$0xff] }
 0x4f5   : > { %7384 = vst [vmem:[%s8137_s11 + $0x320] sm:$0xff] %v7148_v43   ;;  %v4525_v29 = vmax.f32 %v4269_v21, 0.0  ;;  %v4271_v8 = vadd.f32 %v10816_v41, %v4008_v40  ;;  %v4010_v39 = vmul.f32 %v10819_v38, %v3747_v0  ;;  %v4011_v48 = vmul.f32 %v10819_v38, %v3748_v62  ;;  %v3761_v0 = vld [vmem:[%s10089_s23 + $0x700] sm:$0xff]  ;;  %v3762_v40 = vld [vmem:[%s10089_s23 + $0x708] sm:$0xff] }
 0x4f6   : > { %7385 = vst [vmem:[%s8137_s11 + $0x328] sm:$0xff] %v7153_v7   ;;  %v7158_v27 = vpack.c.bf16 %v4524_v23, %v4523_v52  ;;  %v4526_v56 = vmax.f32 %v4270_v17, 0.0  ;;  %v4272_v16 = vadd.f32 %v10816_v41, %v4009_v55  ;;  %v4012_v13 = vmul.f32 %v10819_v38, %v3749_v1  ;;  %v3763_v55 = vld [vmem:[%s10089_s23 + $0x710] sm:$0xff] }
 0x4f7   : > { %v4527_v47 = vmax.f32 %v4271_v8, 0.0  ;;  %v4273_v15 = vadd.f32 %v10816_v41, %v4010_v39  ;;  %v4274_v46 = vadd.f32 %v10816_v41, %v4011_v48  ;;  %v4013_v2 = vmul.f32 %v10819_v38, %v3750_v30  ;;  %v3764_v30 = vld [vmem:[%s10089_s23 + $0x718] sm:$0xff] }
 0x4f8   : > { %7386 = vst [vmem:[%s8137_s11 + $0x330] sm:$0xff] %v7158_v27   ;;  %v7163_v6 = vpack.c.bf16 %v4526_v56, %v4525_v29  ;;  %v4528_v51 = vmax.f32 %v4272_v16, 0.0  ;;  %v4275_v37 = vadd.f32 %v10816_v41, %v4012_v13  ;;  %v4014_v42 = vmul.f32 %v10819_v38, %v3751_v34  ;;  %v3765_v34 = vld [vmem:[%s10089_s23 + $0x720] sm:$0xff] }
 0x4f9   : > { %v4529_v10 = vmax.f32 %v4273_v15, 0.0  ;;  %v4530_v11 = vmax.f32 %v4274_v46, 0.0  ;;  %v4276_v59 = vadd.f32 %v10816_v41, %v4013_v2  ;;  %v4015_v45 = vmul.f32 %v10819_v38, %v3752_v44  ;;  %v3766_v44 = vld [vmem:[%s10089_s23 + $0x728] sm:$0xff] }
 0x4fa   : > { %7387 = vst [vmem:[%s8137_s11 + $0x338] sm:$0xff] %v7163_v6   ;;  %v7168_v14 = vpack.c.bf16 %v4528_v51, %v4527_v47  ;;  %v4531_v20 = vmax.f32 %v4275_v37, 0.0  ;;  %v4277_v53 = vadd.f32 %v10816_v41, %v4014_v42  ;;  %v4016_v60 = vmul.f32 %v10819_v38, %v3753_v25  ;;  %v3767_v25 = vld [vmem:[%s10089_s23 + $0x730] sm:$0xff] }
 0x4fb   : > { %v7173_v49 = vpack.c.bf16 %v4530_v11, %v4529_v10  ;;  %v4532_v3 = vmax.f32 %v4276_v59, 0.0  ;;  %v4278_v28 = vadd.f32 %v10816_v41, %v4015_v45  ;;  %v4017_v12 = vmul.f32 %v10819_v38, %v3754_v50  ;;  %v3768_v50 = vld [vmem:[%s10089_s23 + $0x738] sm:$0xff] }
 0x4fc   : > { %7388 = vst [vmem:[%s8137_s11 + $0x340] sm:$0xff] %v7168_v14   ;;  %v4533_v31 = vmax.f32 %v4277_v53, 0.0  ;;  %v4279_v4 = vadd.f32 %v10816_v41, %v4016_v60  ;;  %v4018_v24 = vmul.f32 %v10819_v38, %v3755_v19  ;;  %v4019_v18 = vmul.f32 %v10819_v38, %v3756_v57  ;;  %v3769_v19 = vld [vmem:[%s10089_s23 + $0x740] sm:$0xff]  ;;  %v3770_v60 = vld [vmem:[%s10089_s23 + $0x748] sm:$0xff] }
 0x4fd   : > { %7389 = vst [vmem:[%s8137_s11 + $0x348] sm:$0xff] %v7173_v49   ;;  %v7178_v9 = vpack.c.bf16 %v4532_v3, %v4531_v20  ;;  %v4534_v54 = vmax.f32 %v4278_v28, 0.0  ;;  %v4280_v61 = vadd.f32 %v10816_v41, %v4017_v12  ;;  %v4020_v35 = vmul.f32 %v10819_v38, %v3757_v36  ;;  %v3771_v12 = vld [vmem:[%s10089_s23 + $0x750] sm:$0xff] }
 0x4fe   : > { %v4535_v26 = vmax.f32 %v4279_v4, 0.0  ;;  %v4281_v58 = vadd.f32 %v10816_v41, %v4018_v24  ;;  %v4282_v5 = vadd.f32 %v10816_v41, %v4019_v18  ;;  %v4021_v32 = vmul.f32 %v10819_v38, %v3758_v63  ;;  %v3772_v63 = vld [vmem:[%s10089_s23 + $0x758] sm:$0xff] }
 0x4ff   : > { %7390 = vst [vmem:[%s8137_s11 + $0x350] sm:$0xff] %v7178_v9   ;;  %v7183_v62 = vpack.c.bf16 %v4534_v54, %v4533_v31  ;;  %v4536_v43 = vmax.f32 %v4280_v61, 0.0  ;;  %v4283_v52 = vadd.f32 %v10816_v41, %v4020_v35  ;;  %v4022_v21 = vmul.f32 %v10819_v38, %v3759_v33  ;;  %v3773_v33 = vld [vmem:[%s10089_s23 + $0x760] sm:$0xff] }
 0x500   : > { %v4537_v1 = vmax.f32 %v4281_v58, 0.0  ;;  %v4538_v7 = vmax.f32 %v4282_v5, 0.0  ;;  %v4284_v23 = vadd.f32 %v10816_v41, %v4021_v32  ;;  %v4023_v17 = vmul.f32 %v10819_v38, %v3760_v22  ;;  %v3774_v22 = vld [vmem:[%s10089_s23 + $0x768] sm:$0xff] }
 0x501   : > { %7391 = vst [vmem:[%s8137_s11 + $0x358] sm:$0xff] %v7183_v62   ;;  %v7188_v29 = vpack.c.bf16 %v4536_v43, %v4535_v26  ;;  %v4539_v8 = vmax.f32 %v4283_v52, 0.0  ;;  %v4285_v39 = vadd.f32 %v10816_v41, %v4022_v21  ;;  %v4024_v48 = vmul.f32 %v10819_v38, %v3761_v0  ;;  %v3775_v0 = vld [vmem:[%s10089_s23 + $0x770] sm:$0xff] }
 0x502   : > { %v7193_v27 = vpack.c.bf16 %v4538_v7, %v4537_v1  ;;  %v4540_v56 = vmax.f32 %v4284_v23, 0.0  ;;  %v4286_v16 = vadd.f32 %v10816_v41, %v4023_v17  ;;  %v4025_v13 = vmul.f32 %v10819_v38, %v3762_v40  ;;  %v3776_v40 = vld [vmem:[%s10089_s23 + $0x778] sm:$0xff] }
 0x503   : > { %7392 = vst [vmem:[%s8137_s11 + $0x360] sm:$0xff] %v7188_v29   ;;  %v4541_v47 = vmax.f32 %v4285_v39, 0.0  ;;  %v4287_v15 = vadd.f32 %v10816_v41, %v4024_v48  ;;  %v4026_v46 = vmul.f32 %v10819_v38, %v3763_v55  ;;  %v4027_v2 = vmul.f32 %v10819_v38, %v3764_v30  ;;  %v3777_v55 = vld [vmem:[%s10089_s23 + $0x780] sm:$0xff]  ;;  %v3778_v48 = vld [vmem:[%s10089_s23 + $0x788] sm:$0xff] }
 0x504   : > { %7393 = vst [vmem:[%s8137_s11 + $0x368] sm:$0xff] %v7193_v27   ;;  %v7198_v6 = vpack.c.bf16 %v4540_v56, %v4539_v8  ;;  %v4542_v51 = vmax.f32 %v4286_v16, 0.0  ;;  %v4288_v37 = vadd.f32 %v10816_v41, %v4025_v13  ;;  %v4028_v42 = vmul.f32 %v10819_v38, %v3765_v34  ;;  %v3779_v13 = vld [vmem:[%s10089_s23 + $0x790] sm:$0xff] }
 0x505   : > { %v4543_v10 = vmax.f32 %v4287_v15, 0.0  ;;  %v4289_v11 = vadd.f32 %v10816_v41, %v4026_v46  ;;  %v4290_v59 = vadd.f32 %v10816_v41, %v4027_v2  ;;  %v4029_v45 = vmul.f32 %v10819_v38, %v3766_v44  ;;  %v3780_v44 = vld [vmem:[%s10089_s23 + $0x798] sm:$0xff] }
 0x506   : > { %7394 = vst [vmem:[%s8137_s11 + $0x370] sm:$0xff] %v7198_v6   ;;  %v7203_v57 = vpack.c.bf16 %v4542_v51, %v4541_v47  ;;  %v4544_v14 = vmax.f32 %v4288_v37, 0.0  ;;  %v4291_v20 = vadd.f32 %v10816_v41, %v4028_v42  ;;  %v4030_v53 = vmul.f32 %v10819_v38, %v3767_v25  ;;  %v3781_v25 = vld [vmem:[%s10089_s23 + $0x7a0] sm:$0xff] }
 0x507   : > { %v4545_v36 = vmax.f32 %v4289_v11, 0.0  ;;  %v4546_v49 = vmax.f32 %v4290_v59, 0.0  ;;  %v4292_v3 = vadd.f32 %v10816_v41, %v4029_v45  ;;  %v4031_v28 = vmul.f32 %v10819_v38, %v3768_v50  ;;  %v3782_v50 = vld [vmem:[%s10089_s23 + $0x7a8] sm:$0xff] }
 0x508   : > { %7395 = vst [vmem:[%s8137_s11 + $0x378] sm:$0xff] %v7203_v57   ;;  %v7208_v31 = vpack.c.bf16 %v4544_v14, %v4543_v10  ;;  %v4547_v4 = vmax.f32 %v4291_v20, 0.0  ;;  %v4293_v24 = vadd.f32 %v10816_v41, %v4030_v53  ;;  %v4032_v18 = vmul.f32 %v10819_v38, %v3769_v19  ;;  %v3783_v19 = vld [vmem:[%s10089_s23 + $0x7b0] sm:$0xff] }
 0x509   : > { %v7213_v9 = vpack.c.bf16 %v4546_v49, %v4545_v36  ;;  %v4548_v54 = vmax.f32 %v4292_v3, 0.0  ;;  %v4294_v61 = vadd.f32 %v10816_v41, %v4031_v28  ;;  %v4033_v35 = vmul.f32 %v10819_v38, %v3770_v60  ;;  %v3784_v60 = vld [vmem:[%s10089_s23 + $0x7b8] sm:$0xff] }
 0x50a   : > { %7396 = vst [vmem:[%s8137_s11 + $0x380] sm:$0xff] %v7208_v31   ;;  %v4549_v26 = vmax.f32 %v4293_v24, 0.0  ;;  %v4295_v58 = vadd.f32 %v10816_v41, %v4032_v18  ;;  %v4034_v5 = vmul.f32 %v10819_v38, %v3771_v12  ;;  %v4035_v32 = vmul.f32 %v10819_v38, %v3772_v63  ;;  %v3785_v12 = vld [vmem:[%s10089_s23 + $0x7c0] sm:$0xff]  ;;  %v3786_v18 = vld [vmem:[%s10089_s23 + $0x7c8] sm:$0xff] }
 0x50b   : > { %7397 = vst [vmem:[%s8137_s11 + $0x388] sm:$0xff] %v7213_v9   ;;  %v7218_v62 = vpack.c.bf16 %v4548_v54, %v4547_v4  ;;  %v4550_v43 = vmax.f32 %v4294_v61, 0.0  ;;  %v4296_v52 = vadd.f32 %v10816_v41, %v4033_v35  ;;  %v4036_v21 = vmul.f32 %v10819_v38, %v3773_v33  ;;  %v3787_v35 = vld [vmem:[%s10089_s23 + $0x7d0] sm:$0xff] }
 0x50c   : > { %v4551_v1 = vmax.f32 %v4295_v58, 0.0  ;;  %v4297_v7 = vadd.f32 %v10816_v41, %v4034_v5  ;;  %v4298_v23 = vadd.f32 %v10816_v41, %v4035_v32  ;;  %v4037_v17 = vmul.f32 %v10819_v38, %v3774_v22  ;;  %v3788_v22 = vld [vmem:[%s10089_s23 + $0x7d8] sm:$0xff] }
 0x50d   : > { %7398 = vst [vmem:[%s8137_s11 + $0x390] sm:$0xff] %v7218_v62   ;;  %v7223_v30 = vpack.c.bf16 %v4550_v43, %v4549_v26  ;;  %v4552_v29 = vmax.f32 %v4296_v52, 0.0  ;;  %v4299_v8 = vadd.f32 %v10816_v41, %v4036_v21  ;;  %v4038_v39 = vmul.f32 %v10819_v38, %v3775_v0  ;;  %v3789_v0 = vld [vmem:[%s10089_s23 + $0x7e0] sm:$0xff] }
 0x50e   : > { %v4553_v34 = vmax.f32 %v4297_v7, 0.0  ;;  %v4554_v27 = vmax.f32 %v4298_v23, 0.0  ;;  %v4300_v56 = vadd.f32 %v10816_v41, %v4037_v17  ;;  %v4039_v16 = vmul.f32 %v10819_v38, %v3776_v40  ;;  %v3790_v40 = vld [vmem:[%s10089_s23 + $0x7e8] sm:$0xff] }
 0x50f   : > { %7399 = vst [vmem:[%s8137_s11 + $0x398] sm:$0xff] %v7223_v30   ;;  %v7228_v47 = vpack.c.bf16 %v4552_v29, %v4551_v1  ;;  %v4555_v15 = vmax.f32 %v4299_v8, 0.0  ;;  %v4301_v46 = vadd.f32 %v10816_v41, %v4038_v39  ;;  %v4040_v2 = vmul.f32 %v10819_v38, %v3777_v55  ;;  %v3791_v55 = vld [vmem:[%s10089_s23 + $0x7f0] sm:$0xff] }
 0x510   : > { %v7233_v6 = vpack.c.bf16 %v4554_v27, %v4553_v34  ;;  %v4556_v51 = vmax.f32 %v4300_v56, 0.0  ;;  %v4302_v37 = vadd.f32 %v10816_v41, %v4039_v16  ;;  %v4041_v42 = vmul.f32 %v10819_v38, %v3778_v48  ;;  %v3792_v48 = vld [vmem:[%s10089_s23 + $0x7f8] sm:$0xff] }
 0x511   : > { %7400 = vst [vmem:[%s8137_s11 + $0x3a0] sm:$0xff] %v7228_v47   ;;  %v4557_v10 = vmax.f32 %v4301_v46, 0.0  ;;  %v4303_v11 = vadd.f32 %v10816_v41, %v4040_v2  ;;  %v4042_v59 = vmul.f32 %v10819_v38, %v3779_v13  ;;  %v4043_v45 = vmul.f32 %v10819_v38, %v3780_v44 }
 0x512   : > { %7401 = vst [vmem:[%s8137_s11 + $0x3a8] sm:$0xff] %v7233_v6   ;;  %v7238_v57 = vpack.c.bf16 %v4556_v51, %v4555_v15  ;;  %v4558_v14 = vmax.f32 %v4302_v37, 0.0  ;;  %v4304_v20 = vadd.f32 %v10816_v41, %v4041_v42  ;;  %v4044_v53 = vmul.f32 %v10819_v38, %v3781_v25 }
 0x513   : > { %v4559_v36 = vmax.f32 %v4303_v11, 0.0  ;;  %v4305_v49 = vadd.f32 %v10816_v41, %v4042_v59  ;;  %v4306_v3 = vadd.f32 %v10816_v41, %v4043_v45  ;;  %v4045_v28 = vmul.f32 %v10819_v38, %v3782_v50 }
 0x514   : > { %7402 = vst [vmem:[%s8137_s11 + $0x3b0] sm:$0xff] %v7238_v57   ;;  %v7243_v63 = vpack.c.bf16 %v4558_v14, %v4557_v10  ;;  %v4560_v31 = vmax.f32 %v4304_v20, 0.0  ;;  %v4307_v4 = vadd.f32 %v10816_v41, %v4044_v53  ;;  %v4046_v24 = vmul.f32 %v10819_v38, %v3783_v19 }
 0x515   : > { %v4561_v33 = vmax.f32 %v4305_v49, 0.0  ;;  %v4562_v9 = vmax.f32 %v4306_v3, 0.0  ;;  %v4308_v54 = vadd.f32 %v10816_v41, %v4045_v28  ;;  %v4047_v61 = vmul.f32 %v10819_v38, %v3784_v60 }
 0x516   : > { %7403 = vst [vmem:[%s8137_s11 + $0x3b8] sm:$0xff] %v7243_v63   ;;  %v7248_v26 = vpack.c.bf16 %v4560_v31, %v4559_v36  ;;  %v4563_v58 = vmax.f32 %v4307_v4, 0.0  ;;  %v4309_v5 = vadd.f32 %v10816_v41, %v4046_v24  ;;  %v4048_v32 = vmul.f32 %v10819_v38, %v3785_v12 }
 0x517   : > { %v7253_v62 = vpack.c.bf16 %v4562_v9, %v4561_v33  ;;  %v4564_v43 = vmax.f32 %v4308_v54, 0.0  ;;  %v4310_v52 = vadd.f32 %v10816_v41, %v4047_v61  ;;  %v4049_v21 = vmul.f32 %v10819_v38, %v3786_v18 }
 0x518   : > { %7404 = vst [vmem:[%s8137_s11 + $0x3c0] sm:$0xff] %v7248_v26   ;;  %v4565_v1 = vmax.f32 %v4309_v5, 0.0  ;;  %v4311_v7 = vadd.f32 %v10816_v41, %v4048_v32  ;;  %v4050_v23 = vmul.f32 %v10819_v38, %v3787_v35  ;;  %v4051_v17 = vmul.f32 %v10819_v38, %v3788_v22 }
 0x519   : > { %7405 = vst [vmem:[%s8137_s11 + $0x3c8] sm:$0xff] %v7253_v62   ;;  %v7258_v30 = vpack.c.bf16 %v4564_v43, %v4563_v58  ;;  %v4566_v29 = vmax.f32 %v4310_v52, 0.0  ;;  %v4312_v8 = vadd.f32 %v10816_v41, %v4049_v21  ;;  %v4052_v39 = vmul.f32 %v10819_v38, %v3789_v0 }
 0x51a   : > { %v4567_v34 = vmax.f32 %v4311_v7, 0.0  ;;  %v4313_v27 = vadd.f32 %v10816_v41, %v4050_v23  ;;  %v4314_v56 = vadd.f32 %v10816_v41, %v4051_v17  ;;  %v4053_v16 = vmul.f32 %v10819_v38, %v3790_v40 }
 0x51b   : > { %7406 = vst [vmem:[%s8137_s11 + $0x3d0] sm:$0xff] %v7258_v30   ;;  %v7263_v13 = vpack.c.bf16 %v4566_v29, %v4565_v1  ;;  %v4568_v44 = vmax.f32 %v4312_v8, 0.0  ;;  %v4315_v47 = vadd.f32 %v10816_v41, %v4052_v39  ;;  %v4054_v15 = vmul.f32 %v10819_v38, %v3791_v55 }
 0x51c   : > { %v4569_v46 = vmax.f32 %v4313_v27, 0.0  ;;  %v4570_v2 = vmax.f32 %v4314_v56, 0.0  ;;  %v4316_v25 = vadd.f32 %v10816_v41, %v4053_v16  ;;  %v4055_v6 = vmul.f32 %v10819_v38, %v3792_v48 }
 0x51d   : > { %7407 = vst [vmem:[%s8137_s11 + $0x3d8] sm:$0xff] %v7263_v13   ;;  %v7268_v51 = vpack.c.bf16 %v4568_v44, %v4567_v34  ;;  %v4571_v37 = vmax.f32 %v4315_v47, 0.0  ;;  %v4317_v42 = vadd.f32 %v10816_v41, %v4054_v15 }
 0x51e   : > { %v7273_v50 = vpack.c.bf16 %v4570_v2, %v4569_v46  ;;  %v4572_v10 = vmax.f32 %v4316_v25, 0.0  ;;  %v4318_v11 = vadd.f32 %v10816_v41, %v4055_v6 }
 0x51f   : > { %7408 = vst [vmem:[%s8137_s11 + $0x3e0] sm:$0xff] %v7268_v51   ;;  %v4573_v59 = vmax.f32 %v4317_v42, 0.0 }
 0x520   : > { %7409 = vst [vmem:[%s8137_s11 + $0x3e8] sm:$0xff] %v7273_v50   ;;  %v7278_v45 = vpack.c.bf16 %v4572_v10, %v4571_v37  ;;  %v4574_v19 = vmax.f32 %v4318_v11, 0.0 }
 0x522   : > { %7410 = vst [vmem:[%s8137_s11 + $0x3f0] sm:$0xff] %v7278_v45   ;;  %v7283_v57 = vpack.c.bf16 %v4574_v19, %v4573_v59 }
 0x524   : > { %7411 = vst [vmem:[%s8137_s11 + $0x3f8] sm:$0xff] %v7283_v57  }
 0x525 PF: > { %s14_s19 = sadd.s32 1, %s8057_s19   ;;  %s11831_s15 = smov %s8049_s17 }
 0x526   : > { %p11_p11 = scmp.ge.s32.totalorder %s14_s19, 10   ;;  %s11832_s16 = smov %s8053_s18 }
 0x527   : > { %s11833_s17 = smov %s11836_s20  ;;  %s11834_s18 = smov %s11840_s21 }
 0x528   :  { %13 = sbr.rel (!%p11_p11) target bundleno = 3 (0x3), region = 87 }

</bundles_post_ra>
